<compile_context>
chip_gen: v7x
topology: tpu7x:2x2x1
jax: 0.10.0
libtpu: 0.0.40
codegen_flags: <defaults>
</compile_context>

<pallas_src>
import math
import functools

import jax
import jax.numpy as jnp
from jax.experimental import pallas as pl
from jax.experimental.pallas import tpu as pltpu


def _round_up(n, m):
    return ((n + m - 1) // m) * m


def _default_gate_bf16():
    """bf16 sigmoid/tanh gate only where the VPU/EUP have a bf16 datapath."""
    try:
        kind = jax.devices()[0].device_kind.lower()
    except Exception:
        return False
    return ("v6" in kind) or ("v7" in kind)


# ---------------------------------------------------------------------------
# Packed-slab layouts (shared by make_params and the kernel; all Python ints)
# ---------------------------------------------------------------------------

def _layouts(C):
    # bf16 matmul-weight slab: rows x C
    wl, off = {}, 0

    def take_w(name, n):
        nonlocal off
        wl[name] = (off, n)
        off += n

    take_w("wmd", 2 * C)
    take_w("wcp", 2 * C)
    take_w("wor", C)
    for i in range(4):
        take_w(f"wt{i}", C)
    take_w("wdec", 16)          # 3 real decoder rows, padded to 16
    w_rows = off

    # f32 bias/alpha slab: rows x 1
    sl, off = {}, 0

    def take_s(name, n):
        nonlocal off
        sl[name] = (off, n)
        off += n

    take_s("b_enc", C)
    take_s("b_encn", C)
    take_s("bcp", 2 * C)
    take_s("bor", C)
    for i in range(4):
        take_s(f"bt{i}", C)
    take_s("bdec", 16)
    take_s("a_enc", C)
    take_s("a_encn", C)
    for i in range(4):
        take_s(f"at{i}", C)
    take_s("adec", 16)
    s_rows = off
    return wl, w_rows, sl, s_rows


# ---------------------------------------------------------------------------
# Fused Pallas kernel (whole TSCNet pointwise chain for one pixel tile)
# ---------------------------------------------------------------------------

def _tscnet_fused_kernel(C, gate_bf16, wl, sl,
                         x_ref, n_ref, bmd_ref, w_ref, we_ref, s_ref, o_ref):
    """Channels-on-sublanes / pixels-on-lanes layout.

    x_ref:   (1, 2, TP)  rows = [Re(x), Im(x)]
    n_ref:   (1, 2, TP)  rows = [Re(noisy), Im(noisy)]
    bmd_ref: (1, 2C, 1)  merge_diffusion bias with the diffusion emb folded in
    w_ref:   (9C+16, C)  bf16 weight slab (wmd|wcp|wor|wt0..3|wdec)
    we_ref:  (2C, 3)     f32 encoder weights (w_enc | w_encn)
    s_ref:   (15C+32, 1) f32 bias/alpha slab
    o_ref:   (1, 2, TP)  rows = [final_real, final_imag]
    """
    f32, bf16 = jnp.float32, jnp.bfloat16

    def W(name):
        o, n = wl[name]
        return w_ref[o:o + n, :]                       # bf16 (n, C)

    def S(name):
        o, n = sl[name]
        return s_ref[o:o + n, :]                       # f32 (n, 1)

    def prelu(y, a):
        return jnp.maximum(y, 0.0) + a * jnp.minimum(y, 0.0)

    x2 = x_ref[0]                                      # (2, TP) f32
    n2 = n_ref[0]
    x_re, x_im = x2[0:1, :], x2[1:2, :]
    n_re, n_im = n2[0:1, :], n2[1:2, :]
    # Magnitudes computed in-kernel (sqrt rides the otherwise idle EUP slot).
    x_mag = jnp.sqrt(x_re * x_re + x_im * x_im)
    n_mag = jnp.sqrt(n_re * n_re + n_im * n_im)

    def enc3(mag, re, im, w, b, a):
        # 3-input-channel 1x1 conv as VPU broadcast-MACs (K=3 would underfill MXU).
        y = (w[:, 0:1] * mag + w[:, 1:2] * re + w[:, 2:3] * im) + b
        return prelu(y, a)

    # Encoders (stand-ins for DenseEncoder)
    out = enc3(x_mag, x_re, x_im, we_ref[0:C, :], S("b_enc"), S("a_enc"))
    out_noisy = enc3(n_mag, n_re, n_im, we_ref[C:2 * C, :], S("b_encn"), S("a_encn"))

    # conditioner_projection(out_noisy): identical in all 4 MergeBlock calls -> hoist.
    cp = jnp.dot(W("wcp"), out_noisy.astype(bf16),
                 preferred_element_type=f32) + S("bcp")                    # (2C, TP)

    bmd_eff = bmd_ref[0]                               # (2C, 1): wmd @ d + bmd
    wmd = W("wmd")
    wor = W("wor")
    inv_sqrt2 = 1.0 / math.sqrt(2.0)

    for i in range(4):
        # ---- MergeBlock:  wmd @ (out + d) + bmd  ==  wmd @ out + bmd_eff ----
        z = jnp.dot(wmd, out.astype(bf16),
                    preferred_element_type=f32) + bmd_eff + cp            # (2C, TP)
        if gate_bf16:
            zb = z.astype(bf16)
            g = jax.nn.sigmoid(zb[:C, :]) * jnp.tanh(zb[C:, :])           # bf16
        else:
            g = (jax.nn.sigmoid(z[:C, :]) * jnp.tanh(z[C:, :])).astype(bf16)
        res = jnp.dot(wor, g, preferred_element_type=f32) + S("bor")
        out = (out + res) * inv_sqrt2
        # ---- TSCB_i stand-in (1x1 conv + PReLU) ----
        out = prelu(jnp.dot(W(f"wt{i}"), out.astype(bf16),
                            preferred_element_type=f32) + S(f"bt{i}"),
                    S(f"at{i}"))

    # ---- mask / complex decoders (stand-ins) + finalize ----
    dec = prelu(jnp.dot(W("wdec"), out.astype(bf16),
                        preferred_element_type=f32) + S("bdec"),
                S("adec"))                                                 # (16, TP)
    mask = dec[0:1, :]
    # mask*|x|*cos(ang) == mask*Re(x),  mask*|x|*sin(ang) == mask*Im(x)
    fin = jnp.concatenate([mask * x_re + dec[1:2, :],
                           mask * x_im + dec[2:3, :]], axis=0)             # (2, TP)
    o_ref[0, :, :] = fin                                                   # one wide store


# ---------------------------------------------------------------------------
# pallas_call wrapper
# ---------------------------------------------------------------------------

def _tscnet_fused_call(x2, n2, bmd_eff, params, *, C, tp, gate_bf16):
    B, _, P_pad = x2.shape
    grid = (B, P_pad // tp)
    wl, _, sl, _ = _layouts(C)

    wslab = params["wslab"]          # bf16 (9C+16, C)
    wenc = params["wenc_slab"]       # f32  (2C, 3)
    sslab = params["sslab"]          # f32  (15C+32, 1)

    def rep(arr):
        shp = arr.shape
        zeros = (0,) * len(shp)
        return pl.BlockSpec(shp, lambda bi, pi, _z=zeros: _z)

    kern = functools.partial(_tscnet_fused_kernel, C, gate_bf16, wl, sl)
    return pl.pallas_call(
        kern,
        out_shape=jax.ShapeDtypeStruct((B, 2, P_pad), jnp.float32),
        grid_spec=pltpu.PrefetchScalarGridSpec(
            num_scalar_prefetch=0,
            grid=grid,
            in_specs=[pl.BlockSpec((1, 2, tp), lambda bi, pi: (bi, 0, pi)),
                      pl.BlockSpec((1, 2, tp), lambda bi, pi: (bi, 0, pi)),
                      pl.BlockSpec((1, 2 * C, 1), lambda bi, pi: (bi, 0, 0)),
                      rep(wslab), rep(wenc), rep(sslab)],
            out_specs=pl.BlockSpec((1, 2, tp), lambda bi, pi: (bi, 0, pi))),
        compiler_params=pltpu.CompilerParams(
            dimension_semantics=("parallel", "parallel"),
            # A few MiB actually used; explicit limit keeps headroom on v5e's
            # 16 MiB scoped default and is safe on v7x's 64 MiB VMEM.
            vmem_limit_bytes=32 * 1024 * 1024),
    )(x2, n2, bmd_eff, wslab, wenc, sslab)


# ---------------------------------------------------------------------------
# Parameter construction (deterministic, in-script)
# ---------------------------------------------------------------------------

def make_params(key, C, num_steps):
    assert C % 16 == 0, "num_channel must be a multiple of 16 (bf16 sublane packing)"
    keys = jax.random.split(key, 16)
    p = {}

    # DiffusionEmbedding (DiffWave-style assumption): fixed sin/cos table + 2 SiLU linears.
    steps = jnp.arange(num_steps, dtype=jnp.float32)[:, None]
    dims = jnp.arange(64, dtype=jnp.float32)[None, :]
    table = steps * 10.0 ** (dims * 4.0 / 63.0)
    p["emb_table"] = jnp.concatenate([jnp.sin(table), jnp.cos(table)], axis=1)  # (T, 128)

    def lin(k, fin, fout):
        kw, kb = jax.random.split(k)
        s = 1.0 / math.sqrt(fin)
        return (jax.random.normal(kw, (fin, fout), jnp.float32) * s,
                jax.random.normal(kb, (fout,), jnp.float32) * s)

    p["p1w"], p["p1b"] = lin(keys[0], 128, 512)
    p["p2w"], p["p2b"] = lin(keys[1], 512, 512)
    p["dpw"], p["dpb"] = lin(keys[2], 512, C)       # diffusion_projection Linear(512, C)

    def conv1x1(k, cin, cout):                      # W (Cout, Cin), b (Cout, 1)
        kw, kb = jax.random.split(k)
        s = 1.0 / math.sqrt(cin)
        return (jax.random.normal(kw, (cout, cin), jnp.float32) * s,
                jax.random.normal(kb, (cout, 1), jnp.float32) * s)

    # Encoders (stand-ins)
    w_enc, b_enc = conv1x1(keys[3], 3, C)
    a_enc = jnp.full((C, 1), 0.25, jnp.float32)
    w_encn, b_encn = conv1x1(keys[4], 3, C)
    a_encn = jnp.full((C, 1), 0.25, jnp.float32)

    # MergeBlock 1x1 convs (exact module)
    wmd, bmd = conv1x1(keys[5], C, 2 * C)
    wcp, bcp = conv1x1(keys[6], C, 2 * C)
    wor, bor = conv1x1(keys[7], C, C)

    # TSCB stand-ins
    wt, bt = zip(*[conv1x1(keys[8 + i], C, C) for i in range(4)])
    at = [jnp.full((C, 1), 0.25, jnp.float32) for _ in range(4)]

    # Decoders (stand-ins): row 0 = mask (PReLU 0.2), rows 1-2 = complex (identity)
    wm, bm = conv1x1(keys[12], C, 1)
    wc, bc = conv1x1(keys[13], C, 2)
    w_dec = jnp.concatenate([wm, wc], axis=0)       # (3, C)
    b_dec = jnp.concatenate([bm, bc], axis=0)       # (3, 1)
    a_dec = jnp.array([[0.2], [1.0], [1.0]], jnp.float32)

    # Raw merge_diffusion weight/bias kept in f32 for the wrapper-side fold.
    p["wmd"], p["bmd"] = wmd, bmd

    # ---- pack resident kernel params into 3 slabs ----
    wl, w_rows, sl, s_rows = _layouts(C)

    wslab = jnp.zeros((w_rows, C), jnp.float32)

    def put(slab, layout, name, val):
        o, _ = layout[name]
        return slab.at[o:o + val.shape[0], :].set(val)

    wslab = put(wslab, wl, "wmd", wmd)
    wslab = put(wslab, wl, "wcp", wcp)
    wslab = put(wslab, wl, "wor", wor)
    for i in range(4):
        wslab = put(wslab, wl, f"wt{i}", wt[i])
    wslab = put(wslab, wl, "wdec", w_dec)           # remaining dec rows stay zero
    p["wslab"] = wslab.astype(jnp.bfloat16)         # bf16 MXU operands

    p["wenc_slab"] = jnp.concatenate([w_enc, w_encn], axis=0)   # (2C, 3) f32 (VPU MACs)

    sslab = jnp.zeros((s_rows, 1), jnp.float32)
    sslab = put(sslab, sl, "b_enc", b_enc)
    sslab = put(sslab, sl, "b_encn", b_encn)
    sslab = put(sslab, sl, "bcp", bcp)
    sslab = put(sslab, sl, "bor", bor)
    for i in range(4):
        sslab = put(sslab, sl, f"bt{i}", bt[i])
    sslab = put(sslab, sl, "bdec", b_dec)
    sslab = put(sslab, sl, "a_enc", a_enc)
    sslab = put(sslab, sl, "a_encn", a_encn)
    for i in range(4):
        sslab = put(sslab, sl, f"at{i}", at[i])
    sslab = put(sslab, sl, "adec", a_dec)
    p["sslab"] = sslab
    return p


# ---------------------------------------------------------------------------
# TSCNet forward
# ---------------------------------------------------------------------------

def diffusion_embedding(t, p):
    """t: int32 (B,) -> (B, 512).  Tiny scalar-path compute; kept in plain JAX."""
    x = p["emb_table"][t]                           # (B, 128)
    x = jax.nn.silu(x @ p["p1w"] + p["p1b"])
    x = jax.nn.silu(x @ p["p2w"] + p["p2b"])
    return x


def tscnet_forward(x, noisy_spec, diffusion_step, params, *, tp=1024, gate_bf16=None):
    """x, noisy_spec: complex64 [B, F, T]; diffusion_step: int32 [B].

    Returns (final_real, final_imag), each [B, 1, T, F] (PyTorch output layout).
    """
    B, F, T = x.shape
    C = params["wmd"].shape[1]
    P = T * F
    if gate_bf16 is None:
        gate_bf16 = _default_gate_bf16()

    # [B, F, T] complex -> (B, 2, P) re/im rows with p = t*F + f
    # (matches .unsqueeze(1).permute(0, 1, 3, 2) in the PyTorch forward).
    def to_rows(c):
        ri = jnp.stack([jnp.real(c), jnp.imag(c)], axis=1)          # (B, 2, F, T)
        return jnp.transpose(ri, (0, 1, 3, 2)).reshape(B, 2, P).astype(jnp.float32)

    x2 = to_rows(x)
    n2 = to_rows(noisy_spec)

    # Lane-dense pixel tile: multiple of 128, capped at the padded pixel count.
    # For B == 1, also cap so the grid keeps >= 2 blocks (both v7x TCs get work).
    max_tp = _round_up(P, 128)
    if B == 1:
        max_tp = max(128, _round_up((P + 1) // 2, 128))
    tp_eff = min(_round_up(tp, 128), max_tp)
    P_pad = _round_up(P, tp_eff)
    if P_pad != P:
        pad = ((0, 0), (0, 0), (0, P_pad - P))
        x2 = jnp.pad(x2, pad)
        n2 = jnp.pad(n2, pad)

    # Diffusion embedding -> projection to C, folded into the merge_diffusion bias
    # (shared across the 4 MergeBlock calls):  bmd_eff = wmd @ d + bmd.
    d = diffusion_embedding(diffusion_step, params)                  # (B, 512)
    d_proj = d @ params["dpw"] + params["dpb"]                       # (B, C)
    bmd_eff = (d_proj @ params["wmd"].T + params["bmd"][:, 0])[:, :, None]  # (B, 2C, 1)

    out = _tscnet_fused_call(x2, n2, bmd_eff, params,
                             C=C, tp=tp_eff, gate_bf16=gate_bf16)
    out = out[:, :, :P].reshape(B, 2, T, F)
    return out[:, 0:1], out[:, 1:2]                                  # (B,1,T,F) x2


# ---------------------------------------------------------------------------
# Demo
# ---------------------------------------------------------------------------

if __name__ == "__main__":
    B, F, T = 2, 201, 8         # F=201 matches the real model and exercises padding
    C = 32                      # num_channel (default 64; small for demo)
    NUM_STEPS = 50              # len(noise_schedule)

    key = jax.random.PRNGKey(0)
    k_params, k_xr, k_xi, k_nr, k_ni, k_t = jax.random.split(key, 6)

    params = make_params(k_params, C, NUM_STEPS)

    x = jax.lax.complex(jax.random.normal(k_xr, (B, F, T), jnp.float32),
                        jax.random.normal(k_xi, (B, F, T), jnp.float32))
    noisy = jax.lax.complex(jax.random.normal(k_nr, (B, F, T), jnp.float32),
                            jax.random.normal(k_ni, (B, F, T), jnp.float32))
    diffusion_step = jax.random.randint(k_t, (B,), 0, NUM_STEPS, jnp.int32)

    fwd = jax.jit(functools.partial(tscnet_forward, params=params, tp=1024))
    final_real, final_imag = fwd(x, noisy, diffusion_step)
    jax.block_until_ready((final_real, final_imag))

    assert final_real.shape == (B, 1, T, F) and final_imag.shape == (B, 1, T, F)
    assert bool(jnp.isfinite(final_real).all()) and bool(jnp.isfinite(final_imag).all())
    print("KERNEL_OK")
</pallas_src>

<mosaic_0001>
module attributes {stable_mosaic.version = 11 : i64} {
  func.func @_tscnet_fused_kernel(%arg0: i32, %arg1: i32, %arg2: memref<1x2x1024xf32, #tpu.memory_space<vmem>>, %arg3: memref<1x2x1024xf32, #tpu.memory_space<vmem>>, %arg4: memref<1x64x1xf32, #tpu.memory_space<vmem>>, %arg5: memref<304x32xbf16, #tpu.memory_space<vmem>>, %arg6: memref<64x3xf32, #tpu.memory_space<vmem>>, %arg7: memref<512x1xf32, #tpu.memory_space<vmem>>, %arg8: memref<1x2x1024xf32, #tpu.memory_space<vmem>>) attributes {dimension_semantics = [#tpu.dimension_semantics<parallel>, #tpu.dimension_semantics<parallel>], iteration_bounds = array<i64: 2, 2>, scalar_prefetch = 0 : i64, scratch_operands = 0 : i64, tpu.core_type = #tpu.core_type<tc>, window_params = [{transform_indices = @transform_0, window_bounds = array<i64: 1, 2, 1024>}, {transform_indices = @transform_1, window_bounds = array<i64: 1, 2, 1024>}, {transform_indices = @transform_2, window_bounds = array<i64: 1, 64, 1>}, {pipeline_mode = #tpu.pipeline_mode<synchronous>, transform_indices = @transform_3, window_bounds = array<i64: 304, 32>}, {pipeline_mode = #tpu.pipeline_mode<synchronous>, transform_indices = @transform_4, window_bounds = array<i64: 64, 3>}, {pipeline_mode = #tpu.pipeline_mode<synchronous>, transform_indices = @transform_5, window_bounds = array<i64: 512, 1>}, {transform_indices = @transform_6, window_bounds = array<i64: 1, 2, 1024>}]} {
    %c0 = arith.constant 0 : index
    %c0_0 = arith.constant 0 : index
    %c0_1 = arith.constant 0 : index
    %0 = vector.load %arg2[%c0, %c0_0, %c0_1] : memref<1x2x1024xf32, #tpu.memory_space<vmem>>, vector<1x2x1024xf32>
    %1 = vector.shape_cast %0 : vector<1x2x1024xf32> to vector<2x1024xf32>
    %c0_2 = arith.constant 0 : index
    %c0_3 = arith.constant 0 : index
    %c0_4 = arith.constant 0 : index
    %2 = vector.load %arg3[%c0_2, %c0_3, %c0_4] : memref<1x2x1024xf32, #tpu.memory_space<vmem>>, vector<1x2x1024xf32>
    %3 = vector.shape_cast %2 : vector<1x2x1024xf32> to vector<2x1024xf32>
    %4 = vector.extract_strided_slice %1 {offsets = [0, 0], sizes = [1, 1024], strides = [1, 1]} : vector<2x1024xf32> to vector<1x1024xf32>
    %5 = vector.extract_strided_slice %1 {offsets = [1, 0], sizes = [1, 1024], strides = [1, 1]} : vector<2x1024xf32> to vector<1x1024xf32>
    %6 = vector.extract_strided_slice %3 {offsets = [0, 0], sizes = [1, 1024], strides = [1, 1]} : vector<2x1024xf32> to vector<1x1024xf32>
    %7 = vector.extract_strided_slice %3 {offsets = [1, 0], sizes = [1, 1024], strides = [1, 1]} : vector<2x1024xf32> to vector<1x1024xf32>
    %8 = arith.mulf %4, %4 : vector<1x1024xf32>
    %9 = arith.mulf %5, %5 : vector<1x1024xf32>
    %10 = arith.addf %8, %9 : vector<1x1024xf32>
    %11 = math.sqrt %10 : vector<1x1024xf32>
    %12 = arith.mulf %6, %6 : vector<1x1024xf32>
    %13 = arith.mulf %7, %7 : vector<1x1024xf32>
    %14 = arith.addf %12, %13 : vector<1x1024xf32>
    %15 = math.sqrt %14 : vector<1x1024xf32>
    %c0_5 = arith.constant 0 : index
    %c0_6 = arith.constant 0 : index
    %16 = vector.load %arg6[%c0_5, %c0_6] : memref<64x3xf32, #tpu.memory_space<vmem>>, vector<32x3xf32>
    %c0_7 = arith.constant 0 : index
    %c0_8 = arith.constant 0 : index
    %17 = vector.load %arg7[%c0_7, %c0_8] : memref<512x1xf32, #tpu.memory_space<vmem>>, vector<32x1xf32>
    %c304 = arith.constant 304 : index
    %c0_9 = arith.constant 0 : index
    %18 = vector.load %arg7[%c304, %c0_9] : memref<512x1xf32, #tpu.memory_space<vmem>>, vector<32x1xf32>
    %19 = vector.extract_strided_slice %16 {offsets = [0, 0], sizes = [32, 1], strides = [1, 1]} : vector<32x3xf32> to vector<32x1xf32>
    %20 = vector.broadcast %19 : vector<32x1xf32> to vector<32x1024xf32>
    %21 = vector.broadcast %11 : vector<1x1024xf32> to vector<32x1024xf32>
    %22 = arith.mulf %20, %21 : vector<32x1024xf32>
    %23 = vector.extract_strided_slice %16 {offsets = [0, 1], sizes = [32, 1], strides = [1, 1]} : vector<32x3xf32> to vector<32x1xf32>
    %24 = vector.broadcast %23 : vector<32x1xf32> to vector<32x1024xf32>
    %25 = vector.broadcast %4 : vector<1x1024xf32> to vector<32x1024xf32>
    %26 = arith.mulf %24, %25 : vector<32x1024xf32>
    %27 = arith.addf %22, %26 : vector<32x1024xf32>
    %28 = vector.extract_strided_slice %16 {offsets = [0, 2], sizes = [32, 1], strides = [1, 1]} : vector<32x3xf32> to vector<32x1xf32>
    %29 = vector.broadcast %28 : vector<32x1xf32> to vector<32x1024xf32>
    %30 = vector.broadcast %5 : vector<1x1024xf32> to vector<32x1024xf32>
    %31 = arith.mulf %29, %30 : vector<32x1024xf32>
    %32 = arith.addf %27, %31 : vector<32x1024xf32>
    %33 = vector.broadcast %17 : vector<32x1xf32> to vector<32x1024xf32>
    %34 = arith.addf %32, %33 : vector<32x1024xf32>
    %cst = arith.constant 0.000000e+00 : f32
    %35 = vector.broadcast %cst : f32 to vector<32x1024xf32>
    %36 = arith.maximumf %34, %35 : vector<32x1024xf32>
    %cst_10 = arith.constant 0.000000e+00 : f32
    %37 = vector.broadcast %cst_10 : f32 to vector<32x1024xf32>
    %38 = arith.minimumf %34, %37 : vector<32x1024xf32>
    %39 = vector.broadcast %18 : vector<32x1xf32> to vector<32x1024xf32>
    %40 = arith.mulf %39, %38 : vector<32x1024xf32>
    %41 = arith.addf %36, %40 : vector<32x1024xf32>
    %c32 = arith.constant 32 : index
    %c0_11 = arith.constant 0 : index
    %42 = vector.load %arg6[%c32, %c0_11] : memref<64x3xf32, #tpu.memory_space<vmem>>, vector<32x3xf32>
    %c32_12 = arith.constant 32 : index
    %c0_13 = arith.constant 0 : index
    %43 = vector.load %arg7[%c32_12, %c0_13] : memref<512x1xf32, #tpu.memory_space<vmem>>, vector<32x1xf32>
    %c336 = arith.constant 336 : index
    %c0_14 = arith.constant 0 : index
    %44 = vector.load %arg7[%c336, %c0_14] : memref<512x1xf32, #tpu.memory_space<vmem>>, vector<32x1xf32>
    %45 = vector.extract_strided_slice %42 {offsets = [0, 0], sizes = [32, 1], strides = [1, 1]} : vector<32x3xf32> to vector<32x1xf32>
    %46 = vector.broadcast %45 : vector<32x1xf32> to vector<32x1024xf32>
    %47 = vector.broadcast %15 : vector<1x1024xf32> to vector<32x1024xf32>
    %48 = arith.mulf %46, %47 : vector<32x1024xf32>
    %49 = vector.extract_strided_slice %42 {offsets = [0, 1], sizes = [32, 1], strides = [1, 1]} : vector<32x3xf32> to vector<32x1xf32>
    %50 = vector.broadcast %49 : vector<32x1xf32> to vector<32x1024xf32>
    %51 = vector.broadcast %6 : vector<1x1024xf32> to vector<32x1024xf32>
    %52 = arith.mulf %50, %51 : vector<32x1024xf32>
    %53 = arith.addf %48, %52 : vector<32x1024xf32>
    %54 = vector.extract_strided_slice %42 {offsets = [0, 2], sizes = [32, 1], strides = [1, 1]} : vector<32x3xf32> to vector<32x1xf32>
    %55 = vector.broadcast %54 : vector<32x1xf32> to vector<32x1024xf32>
    %56 = vector.broadcast %7 : vector<1x1024xf32> to vector<32x1024xf32>
    %57 = arith.mulf %55, %56 : vector<32x1024xf32>
    %58 = arith.addf %53, %57 : vector<32x1024xf32>
    %59 = vector.broadcast %43 : vector<32x1xf32> to vector<32x1024xf32>
    %60 = arith.addf %58, %59 : vector<32x1024xf32>
    %cst_15 = arith.constant 0.000000e+00 : f32
    %61 = vector.broadcast %cst_15 : f32 to vector<32x1024xf32>
    %62 = arith.maximumf %60, %61 : vector<32x1024xf32>
    %cst_16 = arith.constant 0.000000e+00 : f32
    %63 = vector.broadcast %cst_16 : f32 to vector<32x1024xf32>
    %64 = arith.minimumf %60, %63 : vector<32x1024xf32>
    %65 = vector.broadcast %44 : vector<32x1xf32> to vector<32x1024xf32>
    %66 = arith.mulf %65, %64 : vector<32x1024xf32>
    %67 = arith.addf %62, %66 : vector<32x1024xf32>
    %c64 = arith.constant 64 : index
    %c0_17 = arith.constant 0 : index
    %68 = vector.load %arg5[%c64, %c0_17] : memref<304x32xbf16, #tpu.memory_space<vmem>>, vector<64x32xbf16>
    %69 = arith.truncf %67 : vector<32x1024xf32> to vector<32x1024xbf16>
    %cst_18 = arith.constant dense<0.000000e+00> : vector<64x1024xf32>
    %70 = tpu.matmul %68, %69, %cst_18 {dimension_numbers = #tpu.dot_dimension_numbers<[1], [0], [0], [1], [0, 0, 1, 1], [], []>} : vector<64x32xbf16>, vector<32x1024xbf16>, vector<64x1024xf32> -> vector<64x1024xf32>
    %c64_19 = arith.constant 64 : index
    %c0_20 = arith.constant 0 : index
    %71 = vector.load %arg7[%c64_19, %c0_20] : memref<512x1xf32, #tpu.memory_space<vmem>>, vector<64x1xf32>
    %72 = vector.broadcast %71 : vector<64x1xf32> to vector<64x1024xf32>
    %73 = arith.addf %70, %72 : vector<64x1024xf32>
    %c0_21 = arith.constant 0 : index
    %c0_22 = arith.constant 0 : index
    %c0_23 = arith.constant 0 : index
    %74 = vector.load %arg4[%c0_21, %c0_22, %c0_23] : memref<1x64x1xf32, #tpu.memory_space<vmem>>, vector<1x64x1xf32>
    %75 = vector.shape_cast %74 : vector<1x64x1xf32> to vector<64x1xf32>
    %c0_24 = arith.constant 0 : index
    %c0_25 = arith.constant 0 : index
    %76 = vector.load %arg5[%c0_24, %c0_25] : memref<304x32xbf16, #tpu.memory_space<vmem>>, vector<64x32xbf16>
    %c128 = arith.constant 128 : index
    %c0_26 = arith.constant 0 : index
    %77 = vector.load %arg5[%c128, %c0_26] : memref<304x32xbf16, #tpu.memory_space<vmem>>, vector<32x32xbf16>
    %78 = arith.truncf %41 : vector<32x1024xf32> to vector<32x1024xbf16>
    %cst_27 = arith.constant dense<0.000000e+00> : vector<64x1024xf32>
    %79 = tpu.matmul %76, %78, %cst_27 {dimension_numbers = #tpu.dot_dimension_numbers<[1], [0], [0], [1], [0, 0, 1, 1], [], []>} : vector<64x32xbf16>, vector<32x1024xbf16>, vector<64x1024xf32> -> vector<64x1024xf32>
    %80 = vector.broadcast %75 : vector<64x1xf32> to vector<64x1024xf32>
    %81 = arith.addf %79, %80 : vector<64x1024xf32>
    %82 = arith.addf %81, %73 : vector<64x1024xf32>
    %83 = vector.extract_strided_slice %82 {offsets = [0, 0], sizes = [32, 1024], strides = [1, 1]} : vector<64x1024xf32> to vector<32x1024xf32>
    %84 = arith.negf %83 : vector<32x1024xf32>
    %85 = math.exp %84 : vector<32x1024xf32>
    %cst_28 = arith.constant 1.000000e+00 : f32
    %86 = vector.broadcast %cst_28 : f32 to vector<32x1024xf32>
    %87 = arith.addf %86, %85 : vector<32x1024xf32>
    %88 = arith.divf %86, %87 : vector<32x1024xf32>
    %89 = vector.extract_strided_slice %82 {offsets = [32, 0], sizes = [32, 1024], strides = [1, 1]} : vector<64x1024xf32> to vector<32x1024xf32>
    %90 = math.tanh %89 : vector<32x1024xf32>
    %91 = arith.mulf %88, %90 : vector<32x1024xf32>
    %92 = arith.truncf %91 : vector<32x1024xf32> to vector<32x1024xbf16>
    %cst_29 = arith.constant dense<0.000000e+00> : vector<32x1024xf32>
    %93 = tpu.matmul %77, %92, %cst_29 {dimension_numbers = #tpu.dot_dimension_numbers<[1], [0], [0], [1], [0, 0, 1, 1], [], []>} : vector<32x32xbf16>, vector<32x1024xbf16>, vector<32x1024xf32> -> vector<32x1024xf32>
    %c128_30 = arith.constant 128 : index
    %c0_31 = arith.constant 0 : index
    %94 = vector.load %arg7[%c128_30, %c0_31] : memref<512x1xf32, #tpu.memory_space<vmem>>, vector<32x1xf32>
    %95 = vector.broadcast %94 : vector<32x1xf32> to vector<32x1024xf32>
    %96 = arith.addf %93, %95 : vector<32x1024xf32>
    %97 = arith.addf %41, %96 : vector<32x1024xf32>
    %cst_32 = arith.constant 0.707106769 : f32
    %98 = vector.broadcast %cst_32 : f32 to vector<32x1024xf32>
    %99 = arith.mulf %97, %98 : vector<32x1024xf32>
    %c160 = arith.constant 160 : index
    %c0_33 = arith.constant 0 : index
    %100 = vector.load %arg5[%c160, %c0_33] : memref<304x32xbf16, #tpu.memory_space<vmem>>, vector<32x32xbf16>
    %101 = arith.truncf %99 : vector<32x1024xf32> to vector<32x1024xbf16>
    %cst_34 = arith.constant dense<0.000000e+00> : vector<32x1024xf32>
    %102 = tpu.matmul %100, %101, %cst_34 {dimension_numbers = #tpu.dot_dimension_numbers<[1], [0], [0], [1], [0, 0, 1, 1], [], []>} : vector<32x32xbf16>, vector<32x1024xbf16>, vector<32x1024xf32> -> vector<32x1024xf32>
    %c160_35 = arith.constant 160 : index
    %c0_36 = arith.constant 0 : index
    %103 = vector.load %arg7[%c160_35, %c0_36] : memref<512x1xf32, #tpu.memory_space<vmem>>, vector<32x1xf32>
    %104 = vector.broadcast %103 : vector<32x1xf32> to vector<32x1024xf32>
    %105 = arith.addf %102, %104 : vector<32x1024xf32>
    %c368 = arith.constant 368 : index
    %c0_37 = arith.constant 0 : index
    %106 = vector.load %arg7[%c368, %c0_37] : memref<512x1xf32, #tpu.memory_space<vmem>>, vector<32x1xf32>
    %cst_38 = arith.constant 0.000000e+00 : f32
    %107 = vector.broadcast %cst_38 : f32 to vector<32x1024xf32>
    %108 = arith.maximumf %105, %107 : vector<32x1024xf32>
    %cst_39 = arith.constant 0.000000e+00 : f32
    %109 = vector.broadcast %cst_39 : f32 to vector<32x1024xf32>
    %110 = arith.minimumf %105, %109 : vector<32x1024xf32>
    %111 = vector.broadcast %106 : vector<32x1xf32> to vector<32x1024xf32>
    %112 = arith.mulf %111, %110 : vector<32x1024xf32>
    %113 = arith.addf %108, %112 : vector<32x1024xf32>
    %114 = arith.truncf %113 : vector<32x1024xf32> to vector<32x1024xbf16>
    %cst_40 = arith.constant dense<0.000000e+00> : vector<64x1024xf32>
    %115 = tpu.matmul %76, %114, %cst_40 {dimension_numbers = #tpu.dot_dimension_numbers<[1], [0], [0], [1], [0, 0, 1, 1], [], []>} : vector<64x32xbf16>, vector<32x1024xbf16>, vector<64x1024xf32> -> vector<64x1024xf32>
    %116 = vector.broadcast %75 : vector<64x1xf32> to vector<64x1024xf32>
    %117 = arith.addf %115, %116 : vector<64x1024xf32>
    %118 = arith.addf %117, %73 : vector<64x1024xf32>
    %119 = vector.extract_strided_slice %118 {offsets = [0, 0], sizes = [32, 1024], strides = [1, 1]} : vector<64x1024xf32> to vector<32x1024xf32>
    %120 = arith.negf %119 : vector<32x1024xf32>
    %121 = math.exp %120 : vector<32x1024xf32>
    %cst_41 = arith.constant 1.000000e+00 : f32
    %122 = vector.broadcast %cst_41 : f32 to vector<32x1024xf32>
    %123 = arith.addf %122, %121 : vector<32x1024xf32>
    %124 = arith.divf %122, %123 : vector<32x1024xf32>
    %125 = vector.extract_strided_slice %118 {offsets = [32, 0], sizes = [32, 1024], strides = [1, 1]} : vector<64x1024xf32> to vector<32x1024xf32>
    %126 = math.tanh %125 : vector<32x1024xf32>
    %127 = arith.mulf %124, %126 : vector<32x1024xf32>
    %128 = arith.truncf %127 : vector<32x1024xf32> to vector<32x1024xbf16>
    %cst_42 = arith.constant dense<0.000000e+00> : vector<32x1024xf32>
    %129 = tpu.matmul %77, %128, %cst_42 {dimension_numbers = #tpu.dot_dimension_numbers<[1], [0], [0], [1], [0, 0, 1, 1], [], []>} : vector<32x32xbf16>, vector<32x1024xbf16>, vector<32x1024xf32> -> vector<32x1024xf32>
    %c128_43 = arith.constant 128 : index
    %c0_44 = arith.constant 0 : index
    %130 = vector.load %arg7[%c128_43, %c0_44] : memref<512x1xf32, #tpu.memory_space<vmem>>, vector<32x1xf32>
    %131 = vector.broadcast %130 : vector<32x1xf32> to vector<32x1024xf32>
    %132 = arith.addf %129, %131 : vector<32x1024xf32>
    %133 = arith.addf %113, %132 : vector<32x1024xf32>
    %cst_45 = arith.constant 0.707106769 : f32
    %134 = vector.broadcast %cst_45 : f32 to vector<32x1024xf32>
    %135 = arith.mulf %133, %134 : vector<32x1024xf32>
    %c192 = arith.constant 192 : index
    %c0_46 = arith.constant 0 : index
    %136 = vector.load %arg5[%c192, %c0_46] : memref<304x32xbf16, #tpu.memory_space<vmem>>, vector<32x32xbf16>
    %137 = arith.truncf %135 : vector<32x1024xf32> to vector<32x1024xbf16>
    %cst_47 = arith.constant dense<0.000000e+00> : vector<32x1024xf32>
    %138 = tpu.matmul %136, %137, %cst_47 {dimension_numbers = #tpu.dot_dimension_numbers<[1], [0], [0], [1], [0, 0, 1, 1], [], []>} : vector<32x32xbf16>, vector<32x1024xbf16>, vector<32x1024xf32> -> vector<32x1024xf32>
    %c192_48 = arith.constant 192 : index
    %c0_49 = arith.constant 0 : index
    %139 = vector.load %arg7[%c192_48, %c0_49] : memref<512x1xf32, #tpu.memory_space<vmem>>, vector<32x1xf32>
    %140 = vector.broadcast %139 : vector<32x1xf32> to vector<32x1024xf32>
    %141 = arith.addf %138, %140 : vector<32x1024xf32>
    %c400 = arith.constant 400 : index
    %c0_50 = arith.constant 0 : index
    %142 = vector.load %arg7[%c400, %c0_50] : memref<512x1xf32, #tpu.memory_space<vmem>>, vector<32x1xf32>
    %cst_51 = arith.constant 0.000000e+00 : f32
    %143 = vector.broadcast %cst_51 : f32 to vector<32x1024xf32>
    %144 = arith.maximumf %141, %143 : vector<32x1024xf32>
    %cst_52 = arith.constant 0.000000e+00 : f32
    %145 = vector.broadcast %cst_52 : f32 to vector<32x1024xf32>
    %146 = arith.minimumf %141, %145 : vector<32x1024xf32>
    %147 = vector.broadcast %142 : vector<32x1xf32> to vector<32x1024xf32>
    %148 = arith.mulf %147, %146 : vector<32x1024xf32>
    %149 = arith.addf %144, %148 : vector<32x1024xf32>
    %150 = arith.truncf %149 : vector<32x1024xf32> to vector<32x1024xbf16>
    %cst_53 = arith.constant dense<0.000000e+00> : vector<64x1024xf32>
    %151 = tpu.matmul %76, %150, %cst_53 {dimension_numbers = #tpu.dot_dimension_numbers<[1], [0], [0], [1], [0, 0, 1, 1], [], []>} : vector<64x32xbf16>, vector<32x1024xbf16>, vector<64x1024xf32> -> vector<64x1024xf32>
    %152 = vector.broadcast %75 : vector<64x1xf32> to vector<64x1024xf32>
    %153 = arith.addf %151, %152 : vector<64x1024xf32>
    %154 = arith.addf %153, %73 : vector<64x1024xf32>
    %155 = vector.extract_strided_slice %154 {offsets = [0, 0], sizes = [32, 1024], strides = [1, 1]} : vector<64x1024xf32> to vector<32x1024xf32>
    %156 = arith.negf %155 : vector<32x1024xf32>
    %157 = math.exp %156 : vector<32x1024xf32>
    %cst_54 = arith.constant 1.000000e+00 : f32
    %158 = vector.broadcast %cst_54 : f32 to vector<32x1024xf32>
    %159 = arith.addf %158, %157 : vector<32x1024xf32>
    %160 = arith.divf %158, %159 : vector<32x1024xf32>
    %161 = vector.extract_strided_slice %154 {offsets = [32, 0], sizes = [32, 1024], strides = [1, 1]} : vector<64x1024xf32> to vector<32x1024xf32>
    %162 = math.tanh %161 : vector<32x1024xf32>
    %163 = arith.mulf %160, %162 : vector<32x1024xf32>
    %164 = arith.truncf %163 : vector<32x1024xf32> to vector<32x1024xbf16>
    %cst_55 = arith.constant dense<0.000000e+00> : vector<32x1024xf32>
    %165 = tpu.matmul %77, %164, %cst_55 {dimension_numbers = #tpu.dot_dimension_numbers<[1], [0], [0], [1], [0, 0, 1, 1], [], []>} : vector<32x32xbf16>, vector<32x1024xbf16>, vector<32x1024xf32> -> vector<32x1024xf32>
    %c128_56 = arith.constant 128 : index
    %c0_57 = arith.constant 0 : index
    %166 = vector.load %arg7[%c128_56, %c0_57] : memref<512x1xf32, #tpu.memory_space<vmem>>, vector<32x1xf32>
    %167 = vector.broadcast %166 : vector<32x1xf32> to vector<32x1024xf32>
    %168 = arith.addf %165, %167 : vector<32x1024xf32>
    %169 = arith.addf %149, %168 : vector<32x1024xf32>
    %cst_58 = arith.constant 0.707106769 : f32
    %170 = vector.broadcast %cst_58 : f32 to vector<32x1024xf32>
    %171 = arith.mulf %169, %170 : vector<32x1024xf32>
    %c224 = arith.constant 224 : index
    %c0_59 = arith.constant 0 : index
    %172 = vector.load %arg5[%c224, %c0_59] : memref<304x32xbf16, #tpu.memory_space<vmem>>, vector<32x32xbf16>
    %173 = arith.truncf %171 : vector<32x1024xf32> to vector<32x1024xbf16>
    %cst_60 = arith.constant dense<0.000000e+00> : vector<32x1024xf32>
    %174 = tpu.matmul %172, %173, %cst_60 {dimension_numbers = #tpu.dot_dimension_numbers<[1], [0], [0], [1], [0, 0, 1, 1], [], []>} : vector<32x32xbf16>, vector<32x1024xbf16>, vector<32x1024xf32> -> vector<32x1024xf32>
    %c224_61 = arith.constant 224 : index
    %c0_62 = arith.constant 0 : index
    %175 = vector.load %arg7[%c224_61, %c0_62] : memref<512x1xf32, #tpu.memory_space<vmem>>, vector<32x1xf32>
    %176 = vector.broadcast %175 : vector<32x1xf32> to vector<32x1024xf32>
    %177 = arith.addf %174, %176 : vector<32x1024xf32>
    %c432 = arith.constant 432 : index
    %c0_63 = arith.constant 0 : index
    %178 = vector.load %arg7[%c432, %c0_63] : memref<512x1xf32, #tpu.memory_space<vmem>>, vector<32x1xf32>
    %cst_64 = arith.constant 0.000000e+00 : f32
    %179 = vector.broadcast %cst_64 : f32 to vector<32x1024xf32>
    %180 = arith.maximumf %177, %179 : vector<32x1024xf32>
    %cst_65 = arith.constant 0.000000e+00 : f32
    %181 = vector.broadcast %cst_65 : f32 to vector<32x1024xf32>
    %182 = arith.minimumf %177, %181 : vector<32x1024xf32>
    %183 = vector.broadcast %178 : vector<32x1xf32> to vector<32x1024xf32>
    %184 = arith.mulf %183, %182 : vector<32x1024xf32>
    %185 = arith.addf %180, %184 : vector<32x1024xf32>
    %186 = arith.truncf %185 : vector<32x1024xf32> to vector<32x1024xbf16>
    %cst_66 = arith.constant dense<0.000000e+00> : vector<64x1024xf32>
    %187 = tpu.matmul %76, %186, %cst_66 {dimension_numbers = #tpu.dot_dimension_numbers<[1], [0], [0], [1], [0, 0, 1, 1], [], []>} : vector<64x32xbf16>, vector<32x1024xbf16>, vector<64x1024xf32> -> vector<64x1024xf32>
    %188 = vector.broadcast %75 : vector<64x1xf32> to vector<64x1024xf32>
    %189 = arith.addf %187, %188 : vector<64x1024xf32>
    %190 = arith.addf %189, %73 : vector<64x1024xf32>
    %191 = vector.extract_strided_slice %190 {offsets = [0, 0], sizes = [32, 1024], strides = [1, 1]} : vector<64x1024xf32> to vector<32x1024xf32>
    %192 = arith.negf %191 : vector<32x1024xf32>
    %193 = math.exp %192 : vector<32x1024xf32>
    %cst_67 = arith.constant 1.000000e+00 : f32
    %194 = vector.broadcast %cst_67 : f32 to vector<32x1024xf32>
    %195 = arith.addf %194, %193 : vector<32x1024xf32>
    %196 = arith.divf %194, %195 : vector<32x1024xf32>
    %197 = vector.extract_strided_slice %190 {offsets = [32, 0], sizes = [32, 1024], strides = [1, 1]} : vector<64x1024xf32> to vector<32x1024xf32>
    %198 = math.tanh %197 : vector<32x1024xf32>
    %199 = arith.mulf %196, %198 : vector<32x1024xf32>
    %200 = arith.truncf %199 : vector<32x1024xf32> to vector<32x1024xbf16>
    %cst_68 = arith.constant dense<0.000000e+00> : vector<32x1024xf32>
    %201 = tpu.matmul %77, %200, %cst_68 {dimension_numbers = #tpu.dot_dimension_numbers<[1], [0], [0], [1], [0, 0, 1, 1], [], []>} : vector<32x32xbf16>, vector<32x1024xbf16>, vector<32x1024xf32> -> vector<32x1024xf32>
    %c128_69 = arith.constant 128 : index
    %c0_70 = arith.constant 0 : index
    %202 = vector.load %arg7[%c128_69, %c0_70] : memref<512x1xf32, #tpu.memory_space<vmem>>, vector<32x1xf32>
    %203 = vector.broadcast %202 : vector<32x1xf32> to vector<32x1024xf32>
    %204 = arith.addf %201, %203 : vector<32x1024xf32>
    %205 = arith.addf %185, %204 : vector<32x1024xf32>
    %cst_71 = arith.constant 0.707106769 : f32
    %206 = vector.broadcast %cst_71 : f32 to vector<32x1024xf32>
    %207 = arith.mulf %205, %206 : vector<32x1024xf32>
    %c256 = arith.constant 256 : index
    %c0_72 = arith.constant 0 : index
    %208 = vector.load %arg5[%c256, %c0_72] : memref<304x32xbf16, #tpu.memory_space<vmem>>, vector<32x32xbf16>
    %209 = arith.truncf %207 : vector<32x1024xf32> to vector<32x1024xbf16>
    %cst_73 = arith.constant dense<0.000000e+00> : vector<32x1024xf32>
    %210 = tpu.matmul %208, %209, %cst_73 {dimension_numbers = #tpu.dot_dimension_numbers<[1], [0], [0], [1], [0, 0, 1, 1], [], []>} : vector<32x32xbf16>, vector<32x1024xbf16>, vector<32x1024xf32> -> vector<32x1024xf32>
    %c256_74 = arith.constant 256 : index
    %c0_75 = arith.constant 0 : index
    %211 = vector.load %arg7[%c256_74, %c0_75] : memref<512x1xf32, #tpu.memory_space<vmem>>, vector<32x1xf32>
    %212 = vector.broadcast %211 : vector<32x1xf32> to vector<32x1024xf32>
    %213 = arith.addf %210, %212 : vector<32x1024xf32>
    %c464 = arith.constant 464 : index
    %c0_76 = arith.constant 0 : index
    %214 = vector.load %arg7[%c464, %c0_76] : memref<512x1xf32, #tpu.memory_space<vmem>>, vector<32x1xf32>
    %cst_77 = arith.constant 0.000000e+00 : f32
    %215 = vector.broadcast %cst_77 : f32 to vector<32x1024xf32>
    %216 = arith.maximumf %213, %215 : vector<32x1024xf32>
    %cst_78 = arith.constant 0.000000e+00 : f32
    %217 = vector.broadcast %cst_78 : f32 to vector<32x1024xf32>
    %218 = arith.minimumf %213, %217 : vector<32x1024xf32>
    %219 = vector.broadcast %214 : vector<32x1xf32> to vector<32x1024xf32>
    %220 = arith.mulf %219, %218 : vector<32x1024xf32>
    %221 = arith.addf %216, %220 : vector<32x1024xf32>
    %c288 = arith.constant 288 : index
    %c0_79 = arith.constant 0 : index
    %222 = vector.load %arg5[%c288, %c0_79] : memref<304x32xbf16, #tpu.memory_space<vmem>>, vector<16x32xbf16>
    %223 = arith.truncf %221 : vector<32x1024xf32> to vector<32x1024xbf16>
    %cst_80 = arith.constant dense<0.000000e+00> : vector<16x1024xf32>
    %224 = tpu.matmul %222, %223, %cst_80 {dimension_numbers = #tpu.dot_dimension_numbers<[1], [0], [0], [1], [0, 0, 1, 1], [], []>} : vector<16x32xbf16>, vector<32x1024xbf16>, vector<16x1024xf32> -> vector<16x1024xf32>
    %c288_81 = arith.constant 288 : index
    %c0_82 = arith.constant 0 : index
    %225 = vector.load %arg7[%c288_81, %c0_82] : memref<512x1xf32, #tpu.memory_space<vmem>>, vector<16x1xf32>
    %226 = vector.broadcast %225 : vector<16x1xf32> to vector<16x1024xf32>
    %227 = arith.addf %224, %226 : vector<16x1024xf32>
    %c496 = arith.constant 496 : index
    %c0_83 = arith.constant 0 : index
    %228 = vector.load %arg7[%c496, %c0_83] : memref<512x1xf32, #tpu.memory_space<vmem>>, vector<16x1xf32>
    %cst_84 = arith.constant 0.000000e+00 : f32
    %229 = vector.broadcast %cst_84 : f32 to vector<16x1024xf32>
    %230 = arith.maximumf %227, %229 : vector<16x1024xf32>
    %cst_85 = arith.constant 0.000000e+00 : f32
    %231 = vector.broadcast %cst_85 : f32 to vector<16x1024xf32>
    %232 = arith.minimumf %227, %231 : vector<16x1024xf32>
    %233 = vector.broadcast %228 : vector<16x1xf32> to vector<16x1024xf32>
    %234 = arith.mulf %233, %232 : vector<16x1024xf32>
    %235 = arith.addf %230, %234 : vector<16x1024xf32>
    %236 = vector.extract_strided_slice %235 {offsets = [0, 0], sizes = [1, 1024], strides = [1, 1]} : vector<16x1024xf32> to vector<1x1024xf32>
    %237 = arith.mulf %236, %4 : vector<1x1024xf32>
    %238 = vector.extract_strided_slice %235 {offsets = [1, 0], sizes = [1, 1024], strides = [1, 1]} : vector<16x1024xf32> to vector<1x1024xf32>
    %239 = arith.addf %237, %238 : vector<1x1024xf32>
    %240 = arith.mulf %236, %5 : vector<1x1024xf32>
    %241 = vector.extract_strided_slice %235 {offsets = [2, 0], sizes = [1, 1024], strides = [1, 1]} : vector<16x1024xf32> to vector<1x1024xf32>
    %242 = arith.addf %240, %241 : vector<1x1024xf32>
    %243 = tpu.concatenate %239, %242 in 0 : vector<1x1024xf32>, vector<1x1024xf32> -> vector<2x1024xf32>
    %c0_86 = arith.constant 0 : index
    %c0_87 = arith.constant 0 : index
    %c0_88 = arith.constant 0 : index
    %244 = vector.load %arg8[%c0_86, %c0_87, %c0_88] : memref<1x2x1024xf32, #tpu.memory_space<vmem>>, vector<1x2x1024xf32>
    %245 = vector.shape_cast %244 : vector<1x2x1024xf32> to vector<2x1024xf32>
    %246 = vector.shape_cast %243 : vector<2x1024xf32> to vector<1x2x1024xf32>
    tpu.vector_store %arg8[%c0_86, %c0_87, %c0_88], %246 {strides = array<i32>} : memref<1x2x1024xf32, #tpu.memory_space<vmem>>, vector<1x2x1024xf32>,
    return
  }
  func.func @transform_0(%arg0: i32, %arg1: i32) -> (i32, i32, i32) {
    %c0_i32 = arith.constant 0 : i32
    %c0_i32_0 = arith.constant 0 : i32
    return %arg0, %c0_i32, %arg1 : i32, i32, i32
  }
  func.func @transform_1(%arg0: i32, %arg1: i32) -> (i32, i32, i32) {
    %c0_i32 = arith.constant 0 : i32
    %c0_i32_0 = arith.constant 0 : i32
    return %arg0, %c0_i32, %arg1 : i32, i32, i32
  }
  func.func @transform_2(%arg0: i32, %arg1: i32) -> (i32, i32, i32) {
    %c0_i32 = arith.constant 0 : i32
    %c0_i32_0 = arith.constant 0 : i32
    %c0_i32_1 = arith.constant 0 : i32
    return %arg0, %c0_i32, %c0_i32_0 : i32, i32, i32
  }
  func.func @transform_3(%arg0: i32, %arg1: i32) -> (i32, i32) {
    %c0_i32 = arith.constant 0 : i32
    %c0_i32_0 = arith.constant 0 : i32
    %c0_i32_1 = arith.constant 0 : i32
    return %c0_i32, %c0_i32_0 : i32, i32
  }
  func.func @transform_4(%arg0: i32, %arg1: i32) -> (i32, i32) {
    %c0_i32 = arith.constant 0 : i32
    %c0_i32_0 = arith.constant 0 : i32
    %c0_i32_1 = arith.constant 0 : i32
    return %c0_i32, %c0_i32_0 : i32, i32
  }
  func.func @transform_5(%arg0: i32, %arg1: i32) -> (i32, i32) {
    %c0_i32 = arith.constant 0 : i32
    %c0_i32_0 = arith.constant 0 : i32
    %c0_i32_1 = arith.constant 0 : i32
    return %c0_i32, %c0_i32_0 : i32, i32
  }
  func.func @transform_6(%arg0: i32, %arg1: i32) -> (i32, i32, i32) {
    %c0_i32 = arith.constant 0 : i32
    %c0_i32_0 = arith.constant 0 : i32
    return %arg0, %c0_i32, %arg1 : i32, i32, i32
  }
}

</mosaic_0001>

<bundles_post_ra>
// kernel: custom-call.1
= control target key start
LH: loop header
LB: loop body
LE: loop exit
PB: predicated region body
PF: predicated region fallthrough
CT: control target
= control target key end

     0   :  { %s59_s0 = inlined_call_operand.hbm [shape: c64[2,201,8], index: 0, kind: input, shape index: {}]   ;;  %s60_s1 = inlined_call_operand.vmem [shape: f32[2,201,8], index: 1, kind: output, shape index: {}]  }
   0x1   :  { %s2_s8 = scalar_lea.hbm %s59_s0, 512 }
   0x2   :  { %3 = vsyncpa [#allocation0], 0  ;;  %s4_s11 = sshll.u32 %s60_s1, 4  ;;  %s34_s14 = scalar_lea.hbm %s59_s0, 1024  ;;  %s5_s11 = int_to_ptr.vmem [resolvable:$true] %s4_s11 }
   0x3   :  { %p11_p0 = scmp.ne.s32.totalorder %s2_s8, %s34_s14  ;;  %p13_p1 = scmp.lt.u32.totalorder %s2_s8, %s59_s0 }
   0x4   :  { %p14_p2 = scmp.lt.u32.totalorder %s34_s14, %s34_s14  ;;  %p16_p4 = scmp.lt.u32.totalorder %s34_s14, %s2_s8 }
   0x6   :  { %p15_p3 = por %p14_p2, %p13_p1 }
   0x8   :  { %p17_p5 = por %p16_p4, %p15_p3 }
   0xa   :  { %p18_p6 = pnand %p17_p5, %p11_p0 }
   0xc   :  { %21 = shalt.err (!%p18_p6)  }
   0xd   :  { %s22_s17 = scalar_lea.vmem %s5_s11, 512  ;;  %p27_p8 = scmp.lt.s32.totalorder %s5_s11, %s5_s11 }
   0xe   :  { %p23_p7 = scmp.ne.s32.totalorder %s5_s11, %s22_s17  ;;  %p28_p9 = scmp.lt.s32.totalorder %s22_s17, %s22_s17 }
  0x10   :  { %p29_p10 = por %p28_p9, %p27_p8 }
  0x12   :  { %p30_p11 = pnand %p29_p10, %p23_p7 }
  0x14   :  { %33 = shalt.err (!%p30_p11)  }
  0x15   :  { %7 = dma.hbm_to_vmem [thread:$0]  %s2_s8, 512, %s5_s11, [#allocation0] }
  0x16   :  { %35 = dma.done.wait [#allocation0], 512  }
  0x17   :  { %36 = vsyncadd [#allocation0], 4294966784 }
  0x18   :  { %9 = vsyncpa [#allocation0], 1 }

// kernel: custom-call
= control target key start
LH: loop header
LB: loop body
LE: loop exit
PB: predicated region body
PF: predicated region fallthrough
CT: control target
= control target key end

     0   :  { %2 = vsyncpa [#allocation0], 0  ;;  %s61_s0 = inlined_call_operand.hbm [shape: c64[2,201,8], index: 0, kind: input, shape index: {}]   ;;  %s62_s1 = inlined_call_operand.vmem [shape: f32[2,201,8], index: 1, kind: output, shape index: {}]  }
   0x1   :  { %s3_s8 = sshll.u32 %s62_s1, 4  ;;  %s9_s11 = scalar_lea.hbm %s61_s0, 512  ;;  %s4_s8 = int_to_ptr.vmem [resolvable:$true] %s3_s8 }
   0x2   :  { %p10_p0 = scmp.ne.s32.totalorder %s61_s0, %s9_s11  ;;  %s11_s16 = scalar_lea.hbm %s61_s0, 1024 }
   0x3   :  { %p12_p1 = scmp.lt.u32.totalorder %s11_s16, %s9_s11  ;;  %p13_p2 = scmp.lt.u32.totalorder %s9_s11, %s61_s0 }
   0x5   :  { %p14_p3 = por %p13_p2, %p12_p1 }
   0x7   :  { %p15_p4 = pnand %p14_p3, %p10_p0 }
   0x9   :  { %18 = shalt.err (!%p15_p4)  }
   0xa   :  { %s19_s1 = scalar_lea.vmem %s4_s8, 512  ;;  %p24_p6 = scmp.lt.s32.totalorder %s4_s8, %s4_s8 }
   0xb   :  { %p20_p5 = scmp.ne.s32.totalorder %s4_s8, %s19_s1  ;;  %p25_p7 = scmp.lt.s32.totalorder %s19_s1, %s19_s1 }
   0xd   :  { %p26_p8 = por %p25_p7, %p24_p6 }
   0xf   :  { %p27_p9 = pnand %p26_p8, %p20_p5 }
  0x11   :  { %30 = shalt.err (!%p27_p9)  }
  0x12   :  { %6 = dma.hbm_to_vmem [thread:$0]  %s61_s0, 512, %s4_s8, [#allocation0] }
  0x13   :  { %31 = dma.done.wait [#allocation0], 512  }
  0x14   :  { %32 = vsyncadd [#allocation0], 4294966784 }
  0x15   :  { %8 = vsyncpa [#allocation0], 1 }

// kernel: tscnet_forward.1
= control target key start
LH: loop header
LB: loop body
LE: loop exit
PB: predicated region body
PF: predicated region fallthrough
CT: control target
= control target key end

     0   :  { %s9379_s21 = smov 0   ;;  %s9381_s22 = smov 0   ;;  %s14041_s0 = inlined_call_operand.vmem [shape: f32[2,2,2048], index: 0, kind: input, shape index: {}]   ;;  %s14042_s1 = inlined_call_operand.vmem [shape: f32[2,2,2048], index: 1, kind: input, shape index: {}]   ;;  %s14043_s2 = inlined_call_operand.vmem [shape: f32[2,64,1], index: 2, kind: input, shape index: {}]   ;;  %s14044_s3 = inlined_call_operand.vmem [shape: bf16[304,32], index: 3, kind: input, shape index: {}]   ;;  %s14045_s4 = inlined_call_operand.vmem [shape: f32[64,3], index: 4, kind: input, shape index: {}]   ;;  %s14046_s5 = inlined_call_operand.vmem [shape: f32[512,1], index: 5, kind: input, shape index: {}]   ;;  %s14047_s6 = inlined_call_operand.vmem [shape: f32[2,2,2048], index: 6, kind: output, shape index: {}]  }
   0x1   :  { %s9383_s23 = smov 0   ;;  %s9385_s24 = smov 0  }
   0x2   :  { %s9387_s25 = smov 0  }
   0x3 LB: > { %s25_s26 = sadd.s32 1, %s9330_s23  ;;  %s28_s27 = sadd.s32 1, %s9334_s24  ;;  %s9338_s25 = sphi %s9387_s25, %s16_s25   ;;  %s9334_s24 = sphi %s9385_s24, %s15054_s24   ;;  %s9330_s23 = sphi %s9383_s23, %s15053_s23   ;;  %s9326_s22 = sphi %s9381_s22, %s15052_s22   ;;  %s9322_s21 = sphi %s9379_s21, %s15051_s21  }
   0x4   : > { %p26_p0 = scmp.ge.s32.totalorder %s25_s26, 2  ;;  %p8111_p1 = scmp.ge.s32.totalorder %s9338_s25, 1 }
   0x5   : > { %p260_p2 = scmp.lt.s32.totalorder %s9338_s25, 5 }
   0x6   : > { %s15056_s26 = smov (%p26_p0, %s25_s26), 0  ;;  %s15058_s27 = smov (!%p26_p0, %s28_s27), %s9334_s24 }
   0x7   : > { %p261_p3 = pnand %p8111_p1, %p260_p2  ;;  %p30_p4 = scmp.ge.s32.totalorder %s15058_s27, 2 }
   0x9   : > { %s15060_s27 = smov (%p30_p4, %s15058_s27), 0  ;;  %264 = sbr.rel (%p261_p3) target bundleno = 3625 (0xe29), region = 44 }
  0x10   : > { %v1048_v0 = vld [vmem:[%s14045_s4 + $0x20] sm:$0xff]  ;;  %v9340_v1 = vmov 2   ;;  %v9341_v2 = vmov 1   ;;  %v1050_v3 = vld [vmem:[%s14045_s4 + $0x30] sm:$0xff]  ;;  %v1049_v4 = vld [vmem:[%s14045_s4 + $0x28] sm:$0xff]  ;;  %v14048_v5 = vmov 0   ;;  %v438_v45 = vlaneseq }
  0x11   : > { %8470 = vset.pattern.permute.xlu0 %v9340_v1  ;;  %8469 = vset.pattern.permute.xlu1 %v9341_v2  ;;  %v1051_v6 = vld [vmem:[%s14045_s4 + $0x38] sm:$0xff]  ;;  %v1053_v7 = vld [vmem:[%s14046_s5 + $0x28] sm:$0xff]  ;;  %v1056_v8 = vld [vmem:[%s14046_s5 + $0x150] sm:$0xff]  ;;  %s8112_s28 = sshll.u32 %s9322_s21, 3  ;;  %p313_p5 = scmp.lt.s32.totalorder %s9326_s22, 1  ;;  %vm1784_vm8 = vcmask 261120  }
  0x12   : > { %1341 = vperm.xlu0 %8470, %v1048_v0   ;;  %1187 = vperm.xlu1 %8469, %v1048_v0   ;;  %v1058_v9 = vld [vmem:[%s14046_s5 + $0x160] sm:$0xff]  ;;  %v1054_v12 = vld [vmem:[%s14046_s5 + $0x30] sm:$0xff]  ;;  %v1055_v13 = vld [vmem:[%s14046_s5 + $0x38] sm:$0xff]  ;;  %p315_p6 = scmp.lt.s32.totalorder %s8112_s28, 15  ;;  %v9562_v50 = vshrl.u32 %v438_v45, 7  ;;  %vm7932_vm9 = vcmask 1040384  }
  0x13   : > { %1829 = vmatprep.mubr.bf16.mxu0 %v14048_v5  ;;  %1902 = vmatprep.mubr.bf16.mxu1 %v14048_v5  ;;  %v1052_v10 = vld [vmem:[%s14046_s5 + $0x20] sm:$0xff]  ;;  %v406_v14 = vld [vmem:[%s14045_s4 + $0x10] sm:$0xff]  ;;  %v1057_v15 = vld [vmem:[%s14046_s5 + $0x158] sm:$0xff]  ;;  %s15062_s22 = smov (!%p313_p5, %s9326_s22), 1 }
  0x14   : > { %v404_v11 = vld [vmem:[%s14045_s4] sm:$0xff]  ;;  %v405_v16 = vld [vmem:[%s14045_s4 + $0x8] sm:$0xff]  ;;  %v407_v18 = vld [vmem:[%s14045_s4 + $0x18] sm:$0xff]  ;;  %s15064_s28 = smov (!%p315_p6, %s8112_s28), 15  ;;  %s8113_s21 = sshll.u32 %s15062_s22, 4  ;;  %14388 = vst [vmem:[#allocation2_spill] sm:$0xff] %v9562_v50 }
  0x15   : > { %v1059_v17 = vld [vmem:[%s14046_s5 + $0x168] sm:$0xff]  ;;  %v410_v19 = vld [vmem:[%s14046_s5 + $0x10] sm:$0xff]  ;;  %v413_v20 = vld [vmem:[%s14046_s5 + $0x138] sm:$0xff]  ;;  %s8424_s9 = sshll.u32 %s15062_s22, 6  ;;  %s318_s10 = sadd.s32 %s8113_s21, %s15064_s28  ;;  %v9572_v54 = vsub.s32 2, %v9562_v50  ;;  %v9575_v55 = vsub.s32 3, %v9562_v50 }
  0x16   : > { %1349 = vperm.xlu0 %8470, %v1050_v3   ;;  %1191 = vperm.xlu1 %8469, %v1049_v4   ;;  %v415_v21 = vld [vmem:[%s14046_s5 + $0x148] sm:$0xff]  ;;  %s9494_s15 = scalar_lea.vmem %s14043_s2, %s8424_s9  ;;  %s9497_s16 = sshll.u32 %s318_s10, 1  ;;  %v1719_v25 = vld [vmem:[%s14046_s5 + $0x58] sm:$0xff]  ;;  %v408_v36 = vld [vmem:[%s14046_s5] sm:$0xff]  ;;  %v9579_v56 = vsub.s32 0, %v9562_v50  ;;  %v9582_v57 = vsub.s32 6, %v9562_v50 }
  0x17   : > { %v1717_v22 = vld [vmem:[%s14046_s5 + $0x48] sm:$0xff]  ;;  %s330_s18 = scalar_lea.vmem %s14042_s1, %s9497_s16  ;;  %v2092_v28 = vld [vmem:[%s9494_s15 + $0x18] sm:$0xff]  ;;  %s9519_s30 = scalar_lea.vmem %s14041_s0, %s9497_s16  ;;  %v412_v51 = vld [vmem:[%s14046_s5 + $0x130] sm:$0xff]  ;;  %14389 = vst [vmem:[#allocation3_spill] sm:$0xff] %v9575_v55  ;;  %v9585_v58 = vsub.s32 7, %v9562_v50  ;;  %v9591_v61 = vsub.s32 1, %v9562_v50 }
  0x18   : > { %v2090_v23 = vld [vmem:[%s9494_s15 + $0x8] sm:$0xff]  ;;  %v9504_v24 = vld [vmem:[%s330_s18] sm:$0xff]  ;;  %v1723_v43 = vld [vmem:[%s14046_s5 + $0x78] sm:$0xff]  ;;  %14390 = vst [vmem:[#allocation4_spill] sm:$0xff] %v9579_v56  ;;  %s14000_s21 = scalar_lea.vmem %s14047_s6, %s9497_s16 }
  0x19   : > { %v9509_v26 = vld [vmem:[%s330_s18 + $0x8] sm:$0xff]  ;;  %v378_v27 = vmul.f32 %v9504_v24, %v9504_v24  ;;  %v9524_v31 = vld [vmem:[%s9519_s30] sm:$0xff]  ;;  %v411_v47 = vld [vmem:[%s14046_s5 + $0x18] sm:$0xff]  ;;  %14391 = vst [vmem:[#allocation5_spill] sm:$0xff] %v9585_v58 }
  0x1a   : > { %8471 = vset.pattern.permute.xlu1 %v9340_v1  ;;  %8474 = vset.pattern.permute.xlu0 %v14048_v5  ;;  %v379_v29 = vmul.f32 %v9509_v26, %v9509_v26  ;;  %v1721_v32 = vld [vmem:[%s14046_s5 + $0x68] sm:$0xff]  ;;  %v352_v35 = vmul.f32 %v9524_v31, %v9524_v31  ;;  %v2096_v48 = vld [vmem:[%s9494_s15 + $0x38] sm:$0xff]  ;;  %v414_v60 = vld [vmem:[%s14046_s5 + $0x140] sm:$0xff]  ;;  %14392 = vst [vmem:[#allocation6_spill] sm:$0xff] %v9591_v61 }
  0x1b   : > { %1345 = vperm.xlu1 %8471, %v1049_v4   ;;  %1062 = vperm.xlu0 %8474, %v1048_v0   ;;  %v8125_v30 = vrot.slane %v378_v27, 9  ;;  %v9531_v34 = vld [vmem:[%s9519_s30 + $0x8] sm:$0xff]  ;;  %v2828_v62 = vld [vmem:[%s14046_s5 + $0x98] sm:$0xff]  ;;  %v9598_v0 = vsub.s32 4, %v9562_v50 }
  0x1c   : > { %v8126_v33 = vrot.slane %v379_v29, 9  ;;  %v2094_v38 = vld [vmem:[%s9494_s15 + $0x28] sm:$0xff]  ;;  %v353_v39 = vmul.f32 %v9531_v34, %v9531_v34  ;;  %v8123_v41 = vrot.slane %v352_v35, 9 }
  0x1d   : > { %v9538_v37 = vadd.f32 %v8125_v30, %v378_v27  ;;  %v409_v42 = vld [vmem:[%s14046_s5 + $0x8] sm:$0xff]  ;;  %v2089_v27 = vld [vmem:[%s9494_s15] sm:$0xff] }
  0x1e   : > { %v9543_v40 = vadd.f32 %v8126_v33, %v379_v29  ;;  %v8124_v44 = vrot.slane %v353_v39, 9  ;;  %v9554_v46 = vadd.f32 %v8123_v41, %v352_v35  ;;  %v2826_v52 = vld [vmem:[%s14046_s5 + $0x88] sm:$0xff]  ;;  %v3164_v33 = vld [vmem:[%s14046_s5 + $0xb8] sm:$0xff] }
  0x1f   : > { %1067 = vperm.xlu0 %8474, %v1049_v4   ;;  %8472 = vset.pattern.permute.xlu1 %v14048_v5  ;;  %8505 = vrsqrt.f32 %v9538_v37  ;;  %vm392_vm0 = vcmp.eq.f32.partialorder %v9538_v37, inf  ;;  %v1219_v4 = vrot.slane %v9504_v24, %v9582_v57  ;;  %vm394_vm1 = vcmp.eq.f32.partialorder %v9538_v37, 0.0 }
  0x20   : > { %1072 = vperm.xlu1 %8472, %v1050_v3   ;;  %8507 = vrsqrt.f32 %v9543_v40  ;;  %v9560_v49 = vadd.f32 %v8124_v44, %v353_v39  ;;  %vm399_vm2 = vcmp.eq.f32.partialorder %v9543_v40, inf  ;;  %vm401_vm3 = vcmp.eq.f32.partialorder %v9543_v40, 0.0 }
  0x21   : > { %8509 = vrsqrt.f32 %v9554_v46  ;;  %vm366_vm4 = vcmp.eq.f32.partialorder %v9554_v46, inf  ;;  %v1223_v44 = vrot.slane %v9509_v26, %v9579_v56  ;;  %vm368_vm6 = vcmp.eq.f32.partialorder %v9554_v46, 0.0 }
  0x22   : > { %8511 = vrsqrt.f32 %v9560_v49  ;;  %vm373_vm5 = vcmp.eq.f32.partialorder %v9560_v49, inf  ;;  %vm375_vm7 = vcmp.eq.f32.partialorder %v9560_v49, 0.0 }
  0x23   : > { %1077 = vperm.xlu0 %8474, %v1051_v6  }
  0x24   : > { %8473 = vset.pattern.permute.xlu1 %v9341_v2 }
  0x25   : > { %1195 = vperm.xlu1 %8473, %v1050_v3   ;;  %v1363_v3 = vrot.slane %v9504_v24, %v9575_v55 }
  0x27   : > { %1499 = vperm.xlu0 %8474, %v1053_v7   ;;  %v1207_v7 = vrot.slane %v9504_v24, %v9579_v56 }
  0x29   : > { %1199 = vperm.xlu1 %8473, %v1051_v6   ;;  %v8506_v53 = vpop.eup %8505  ;;  %v9656_v30 = vrot.slane %v1207_v7, %v9579_v56 }
  0x2a   : > { %v8508_v59 = vpop.eup %8507  ;;  %v391_v63 = vmul.f32 %v8506_v53, %v9538_v37  ;;  %v3414_v53 = vld [vmem:[%s14046_s5 + $0x178] sm:$0xff] }
  0x2b   : > { %1610 = vperm.xlu0 %8474, %v1056_v8   ;;  %v398_v8 = vmul.f32 %v8508_v59, %v9543_v40 }
  0x2d   : > { %8475 = vset.pattern.permute.xlu1 %v9340_v1 }
  0x2e   : > { %1353 = vperm.xlu1 %8475, %v1051_v6   ;;  %v1371_v6 = vrot.slane %v9504_v24, %v9585_v58 }
  0x2f   : > { %1620 = vperm.xlu0 %8474, %v1058_v9   ;;  %v1716_v9 = vld [vmem:[%s14046_s5 + $0x40] sm:$0xff] }
  0x30   : > { %v9653_v29 = vrot.slane %v1371_v6, %v9591_v61  ;;  %v1375_v6 = vrot.slane %v9509_v26, %v9591_v61 }
  0x32   : > { %8476 = vset.pattern.permute.xlu1 %v14048_v5 }
  0x33   : > { %1494 = vperm.xlu1 %8476, %v1052_v10   ;;  %418 = vperm.xlu0 %8474, %v404_v11   ;;  %v395_v10 = vand.u32 2147483648, %v9538_v37 }
  0x37   : > { %1504 = vperm.xlu1 %8476, %v1054_v12   ;;  %8477 = vset.pattern.permute.xlu0 %v9341_v2  ;;  %v3162_v12 = vld [vmem:[%s14046_s5 + $0xa8] sm:$0xff] }
  0x38   : > { %543 = vperm.xlu0 %8477, %v404_v11  }
  0x3b   : > { %1509 = vperm.xlu1 %8476, %v1055_v13   ;;  %v393_v13 = vsel %vm392_vm0, %v9538_v37, %v391_v63 }
  0x3c   : > { %551 = vperm.xlu0 %8477, %v406_v14  }
  0x3f   : > { %1615 = vperm.xlu1 %8476, %v1057_v15  }
  0x40   : > { %8481 = vset.pattern.permute.xlu0 %v9340_v1 }
  0x41   : > { %701 = vperm.xlu0 %8481, %v405_v16  }
  0x43   : > { %1625 = vperm.xlu1 %8476, %v1059_v17   ;;  %v8510_v17 = vpop.eup %8509 }
  0x45   : > { %709 = vperm.xlu0 %8481, %v407_v18  }
  0x47   : > { %423 = vperm.xlu1 %8476, %v405_v16  }
  0x49   : > { %8485 = vset.pattern.permute.xlu0 %v14048_v5 }
  0x4a   : > { %860 = vperm.xlu0 %8485, %v410_v19   ;;  %v402_v19 = vand.u32 2147483648, %v9543_v40 }
  0x4b   : > { %8478 = vset.pattern.permute.xlu1 %v9341_v2 }
  0x4c   : > { %547 = vperm.xlu1 %8478, %v405_v16   ;;  %v1227_v16 = vrot.slane %v9509_v26, %v9572_v54 }
  0x4e   : > { %971 = vperm.xlu0 %8485, %v413_v20   ;;  %v1379_v20 = vrot.slane %v9509_v26, %v9575_v55  ;;  %v9671_v37 = vrot.slane %v1227_v16, %v9579_v56 }
  0x50   : > { %8479 = vset.pattern.permute.xlu1 %v9340_v1  ;;  %14394 = vst [vmem:[#allocation8_spill] sm:$0xff] %v9671_v37 }
  0x51   : > { %697 = vperm.xlu1 %8479, %v404_v11   ;;  %v1359_v11 = vrot.slane %v9504_v24, %v9591_v61 }
  0x52   : > { %981 = vperm.xlu0 %8485, %v415_v21   ;;  %v1235_v21 = vrot.slane %v9509_v26, %v9582_v57 }
  0x54   : > { %v9678_v41 = vrot.slane %v1235_v21, %v9579_v56  ;;  %v9747_v21 = vrot.slane %v1375_v6, %v9591_v61 }
  0x55   : > { %8480 = vset.pattern.permute.xlu1 %v14048_v5 }
  0x56   : > { %428 = vperm.xlu1 %8480, %v406_v14   ;;  %1731 = vperm.xlu0 %8485, %v1717_v22   ;;  %v9642_v22 = vrot.slane %v1363_v3, %v9591_v61  ;;  %14396 = vst [vmem:[#allocation10_spill] sm:$0xff] %v9678_v41  ;;  %v1231_v3 = vrot.slane %v9509_v26, %v9598_v0 }
  0x5a   : > { %433 = vperm.xlu1 %8480, %v407_v18   ;;  %2132 = vperm.xlu0 %8485, %v2090_v23   ;;  %v9645_v23 = vrot.slane %v1219_v4, %v9579_v56  ;;  %v376_v4 = vand.u32 2147483648, %v9560_v49 }
  0x5e   : > { %8482 = vset.pattern.permute.xlu1 %v9341_v2  ;;  %1741 = vperm.xlu0 %8485, %v1719_v25   ;;  %v1211_v2 = vrot.slane %v9504_v24, %v9572_v54  ;;  %v8512_v25 = vpop.eup %8511 }
  0x5f   : > { %555 = vperm.xlu1 %8482, %v407_v18   ;;  %v372_v45 = vmul.f32 %v8512_v25, %v9560_v49  ;;  %v9753_v25 = vrot.slane %v1231_v3, %v9579_v56  ;;  %v2093_v3 = vld [vmem:[%s9494_s15 + $0x20] sm:$0xff] }
  0x60   : > { %v9634_v18 = vrot.slane %v1211_v2, %v9579_v56 }
  0x61   : > { %14400 = vst [vmem:[#allocation14_spill] sm:$0xff] %v9753_v25 }
  0x62   : > { %2142 = vperm.xlu0 %8485, %v2092_v28   ;;  %v396_v28 = vsel %vm394_vm1, %v395_v10, %v393_v13  ;;  %v9716_v10 = vrot.slane %v1223_v44, %v9579_v56  ;;  %v3416_v13 = vld [vmem:[%s14046_s5 + $0x188] sm:$0xff]  ;;  %v9770_v44 = vrot.slane %v9524_v31, %v9572_v54 }
  0x63   : > { %8483 = vset.pattern.permute.xlu1 %v9340_v1  ;;  %v9601_v1 = vsub.s32 5, %v9562_v50  ;;  %v1093_v59 = vrot.slane %v396_v28, %v9598_v0 }
  0x64   : > { %705 = vperm.xlu1 %8483, %v406_v14   ;;  %v1215_v14 = vrot.slane %v9504_v24, %v9598_v0  ;;  %14398 = vst [vmem:[#allocation12_spill] sm:$0xff] %v9716_v10  ;;  %14402 = vst [vmem:[#allocation16_spill] sm:$0xff] %v9770_v44 }
  0x65   : > { %14393 = vst [vmem:[#allocation7_spill] sm:$0xff] %v9601_v1  ;;  %v1367_v15 = vrot.slane %v9504_v24, %v9601_v1  ;;  %v400_v24 = vsel %vm399_vm2, %v9543_v40, %v398_v8  ;;  %v9675_v40 = vrot.slane %v1379_v20, %v9591_v61  ;;  %v374_v8 = vsel %vm373_vm5, %v9560_v49, %v372_v45 }
  0x66   : > { %1751 = vperm.xlu0 %8485, %v1721_v32   ;;  %v9659_v32 = vrot.slane %v1359_v11, %v9591_v61  ;;  %v9665_v35 = vrot.slane %v1215_v14, %v9579_v56  ;;  %v403_v39 = vsel %vm401_vm3, %v402_v19, %v400_v24  ;;  %v1383_v11 = vrot.slane %v9509_v26, %v9601_v1 }
  0x67   : > { %14395 = vst [vmem:[#allocation9_spill] sm:$0xff] %v9675_v40  ;;  %v1113_v63 = vrot.slane %v403_v39, %v9582_v57  ;;  %v1101_v2 = vrot.slane %v403_v39, %v9579_v56  ;;  %v1109_v7 = vrot.slane %v403_v39, %v9598_v0  ;;  %v9733_v16 = vrot.slane %v1093_v59, %v9579_v56 }
  0x68   : > { %8484 = vset.pattern.permute.xlu1 %v14048_v5  ;;  %v9744_v20 = vsel %vm375_vm7, %v376_v4, %v374_v8  ;;  %v9774_v45 = vrot.slane %v9524_v31, %v9582_v57  ;;  %v9796_v59 = vrot.slane %v9524_v31, %v9598_v0  ;;  %v4508_v8 = vld [vmem:[%s14046_s5 + $0xd8] sm:$0xff] }
  0x69   : > { %850 = vperm.xlu1 %8484, %v408_v36   ;;  %v9668_v36 = vrot.slane %v1367_v15, %v9591_v61  ;;  %v9742_v19 = vrot.slane %v1101_v2, %v9579_v56  ;;  %v9750_v24 = vrot.slane %v1109_v7, %v9579_v56  ;;  %v457_v2 = vrot.slane %v9744_v20, %v9579_v56 }
  0x6a   : > { %2152 = vperm.xlu0 %8485, %v2094_v38   ;;  %v365_v38 = vmul.f32 %v8510_v17, %v9554_v46  ;;  %14403 = vst [vmem:[#allocation17_spill] sm:$0xff] %v9774_v45  ;;  %14408 = vst [vmem:[#allocation22_spill] sm:$0xff] %v9796_v59 }
  0x6b   : > { %v9869_v50 = vrot.slane %v457_v2, %v9579_v56  ;;  %v4758_v2 = vld [vmem:[%s14046_s5 + $0x198] sm:$0xff] }
  0x6d   : > { %855 = vperm.xlu1 %8484, %v409_v42   ;;  %v1089_v42 = vrot.slane %v396_v28, %v9572_v54  ;;  %14426 = vst [vmem:[#allocation40_spill] sm:$0xff] %v9869_v50 }
  0x6e   : > { %1761 = vperm.xlu0 %8485, %v1723_v43   ;;  %v1387_v43 = vrot.slane %v9509_v26, %v9585_v58  ;;  %v9739_v26 = vrot.slane %v1113_v63, %v9579_v56  ;;  %v469_v63 = vrot.slane %v9744_v20, %v9582_v57 }
  0x6f   : > { %v9724_v14 = vrot.slane %v1089_v42, %v9579_v56 }
  0x70   : > { %v9866_v5 = vrot.slane %v469_v63, %v9579_v56  ;;  %v465_v63 = vrot.slane %v9744_v20, %v9598_v0 }
  0x71   : > { %865 = vperm.xlu1 %8484, %v411_v47   ;;  %v1718_v47 = vld [vmem:[%s14046_s5 + $0x50] sm:$0xff] }
  0x72   : > { %2162 = vperm.xlu0 %8485, %v2096_v48   ;;  %v1097_v48 = vrot.slane %v396_v28, %v9582_v57  ;;  %14425 = vst [vmem:[#allocation39_spill] sm:$0xff] %v9866_v5 }
  0x74   : > { %v9727_v49 = vrot.slane %v1097_v48, %v9579_v56  ;;  %v461_v48 = vrot.slane %v9744_v20, %v9572_v54 }
  0x75   : > { %966 = vperm.xlu1 %8484, %v412_v51   ;;  %v1085_v51 = vrot.slane %v396_v28, %v9579_v56  ;;  %v1720_v28 = vld [vmem:[%s14046_s5 + $0x60] sm:$0xff] }
  0x76   : > { %2836 = vperm.xlu0 %8485, %v2826_v52   ;;  %v369_v52 = vand.u32 2147483648, %v9554_v46 }
  0x77   : > { %v9730_v15 = vrot.slane %v1085_v51, %v9579_v56  ;;  %v9784_v51 = vrot.slane %v9524_v31, %v9575_v55  ;;  %v2095_v55 = vld [vmem:[%s9494_s15 + $0x30] sm:$0xff] }
  0x79   : > { %976 = vperm.xlu1 %8484, %v414_v60   ;;  %v1105_v60 = vrot.slane %v403_v39, %v9572_v54  ;;  %14405 = vst [vmem:[#allocation19_spill] sm:$0xff] %v9784_v51 }
  0x7a   : > { %2846 = vperm.xlu0 %8485, %v2828_v62   ;;  %v367_v62 = vsel %vm366_vm4, %v9554_v46, %v365_v38  ;;  %v2091_v46 = vld [vmem:[%s9494_s15 + $0x10] sm:$0xff] }
  0x7b   : > { %v9736_v17 = vrot.slane %v1105_v60, %v9579_v56 }
  0x7d   : > { %1726 = vperm.xlu1 %8484, %v1716_v9   ;;  %v9713_v9 = vrot.slane %v1387_v43, %v9591_v61  ;;  %14399 = vst [vmem:[#allocation13_spill] sm:$0xff] %v9736_v17  ;;  %v4506_v43 = vld [vmem:[%s14046_s5 + $0xc8] sm:$0xff] }
  0x7e   : > { %3172 = vperm.xlu0 %8485, %v3162_v12   ;;  %v370_v12 = vsel %vm368_vm6, %v369_v52, %v367_v62  ;;  %v9788_v52 = vrot.slane %v9524_v31, %v9585_v58  ;;  %v9803_v62 = vrot.slane %v9524_v31, %v9601_v1 }
  0x7f   : > { %14397 = vst [vmem:[#allocation11_spill] sm:$0xff] %v9713_v9  ;;  %v453_v38 = vrot.slane %v370_v12, %v9582_v57  ;;  %v441_v39 = vrot.slane %v370_v12, %v9579_v56  ;;  %v449_v42 = vrot.slane %v370_v12, %v9598_v0 }
  0x80   : > { %14406 = vst [vmem:[#allocation20_spill] sm:$0xff] %v9788_v52  ;;  %14410 = vst [vmem:[#allocation24_spill] sm:$0xff] %v9803_v62 }
  0x81   : > { %2127 = vperm.xlu1 %8484, %v2089_v27   ;;  %v445_v27 = vrot.slane %v370_v12, %v9572_v54  ;;  %v9811_v4 = vrot.slane %v453_v38, %v9579_v56  ;;  %v9814_v6 = vrot.slane %v441_v39, %v9579_v56  ;;  %v9817_v7 = vrot.slane %v449_v42, %v9579_v56 }
  0x82   : > { %3182 = vperm.xlu0 %8485, %v3164_v33   ;;  %v9760_v33 = vrot.slane %v1383_v11, %v9591_v61  ;;  %v9832_v11 = vrot.slane %v9774_v45, %v9579_v56  ;;  %v9855_v38 = vrot.slane %v9796_v59, %v9579_v56 }
  0x83   : > { %v9799_v60 = vrot.slane %v445_v27, %v9579_v56  ;;  %14411 = vst [vmem:[#allocation25_spill] sm:$0xff] %v9811_v4  ;;  %14412 = vst [vmem:[#allocation26_spill] sm:$0xff] %v9814_v6  ;;  %v9847_v27 = vrot.slane %v9788_v52, %v9591_v61 }
  0x84   : > { %14401 = vst [vmem:[#allocation15_spill] sm:$0xff] %v9760_v33  ;;  %14413 = vst [vmem:[#allocation27_spill] sm:$0xff] %v9817_v7 }
  0x85   : > { %1736 = vperm.xlu1 %8484, %v1718_v47   ;;  %v9778_v47 = vrot.slane %v9524_v31, %v9579_v56  ;;  %14409 = vst [vmem:[#allocation23_spill] sm:$0xff] %v9799_v60  ;;  %14416 = vst [vmem:[#allocation30_spill] sm:$0xff] %v9832_v11 }
  0x86   : > { %3488 = vperm.xlu0 %8485, %v3414_v53   ;;  %v9792_v53 = vrot.slane %v9524_v31, %v9591_v61  ;;  %v9821_v31 = vrot.slane %v9531_v34, %v9572_v54  ;;  %v9843_v54 = vrot.slane %v9784_v51, %v9591_v61  ;;  %14420 = vst [vmem:[#allocation34_spill] sm:$0xff] %v9847_v27  ;;  %14422 = vst [vmem:[#allocation36_spill] sm:$0xff] %v9855_v38  ;;  %v4760_v38 = vld [vmem:[%s14046_s5 + $0x1a8] sm:$0xff] }
  0x87   : > { %14404 = vst [vmem:[#allocation18_spill] sm:$0xff] %v9778_v47  ;;  %v9836_v12 = vrot.slane %v9778_v47, %v9579_v56 }
  0x88   : > { %14407 = vst [vmem:[#allocation21_spill] sm:$0xff] %v9792_v53  ;;  %14414 = vst [vmem:[#allocation28_spill] sm:$0xff] %v9821_v31 }
  0x89   : > { %2137 = vperm.xlu1 %8484, %v2091_v46   ;;  %v9828_v46 = vrot.slane %v9770_v44, %v9579_v56  ;;  %14417 = vst [vmem:[#allocation31_spill] sm:$0xff] %v9836_v12  ;;  %14419 = vst [vmem:[#allocation33_spill] sm:$0xff] %v9843_v54 }
  0x8a   : > { %3498 = vperm.xlu0 %8485, %v3416_v13   ;;  %v9839_v13 = vrot.slane %v461_v48, %v9579_v56  ;;  %v9863_v48 = vrot.slane %v9821_v31, %v9579_v56  ;;  %v9880_v31 = vrot.slane %v9531_v34, %v9582_v57 }
  0x8b   : > { %14415 = vst [vmem:[#allocation29_spill] sm:$0xff] %v9828_v46 }
  0x8c   : > { %14418 = vst [vmem:[#allocation32_spill] sm:$0xff] %v9839_v13  ;;  %14424 = vst [vmem:[#allocation38_spill] sm:$0xff] %v9863_v48 }
  0x8d   : > { %1746 = vperm.xlu1 %8484, %v1720_v28   ;;  %v9851_v28 = vrot.slane %v9792_v53, %v9591_v61  ;;  %14427 = vst [vmem:[#allocation41_spill] sm:$0xff] %v9880_v31 }
  0x8e   : > { %4516 = vperm.xlu0 %8485, %v4506_v43   ;;  %v9859_v43 = vrot.slane %v9803_v62, %v9591_v61 }
  0x8f   : > { %14421 = vst [vmem:[#allocation35_spill] sm:$0xff] %v9851_v28 }
  0x90   : > { %14423 = vst [vmem:[#allocation37_spill] sm:$0xff] %v9859_v43 }
  0x91   : > { %v1188_v39 = vpop.permute.xlu1 %1187  ;;  %2147 = vperm.xlu1 %8484, %v2093_v3   ;;  %v1342_v42 = vpop.permute.xlu0 %1341  ;;  %v1722_v3 = vld [vmem:[%s14046_s5 + $0x70] sm:$0xff] }
  0x92   : > { %4526 = vperm.xlu0 %8485, %v4508_v8   ;;  %v1277_v52 = vmul.f32 %v9634_v18, %v1188_v39  ;;  %v9876_v45 = vmul.f32 %v9642_v22, %v1342_v42  ;;  %v1279_v8 = vmul.f32 %v9645_v23, %v1188_v39  ;;  %v9889_v59 = vmul.f32 %v9653_v29, %v1342_v42 }
  0x93   : > { %v1276_v62 = vmul.f32 %v9656_v30, %v1188_v39  ;;  %v9893_v51 = vmul.f32 %v9659_v32, %v1342_v42  ;;  %v1278_v57 = vmul.f32 %v9665_v35, %v1188_v39  ;;  %v9897_v44 = vmul.f32 %v9668_v36, %v1342_v42 }
  0x94   : > { %v9900_v20 = vmul.f32 %v9671_v37, %v1188_v39  ;;  %v9903_v53 = vmul.f32 %v9675_v40, %v1342_v42  ;;  %v9906_v50 = vmul.f32 %v9678_v41, %v1188_v39  ;;  %v9909_v58 = vmul.f32 %v9713_v9, %v1342_v42 }
  0x95   : > { %v1192_v47 = vpop.permute.xlu1 %1191  ;;  %1756 = vperm.xlu1 %8484, %v1722_v3   ;;  %v1350_v1 = vpop.permute.xlu0 %1349  ;;  %v9912_v61 = vmul.f32 %v9716_v10, %v1188_v39  ;;  %v9915_v5 = vmul.f32 %v9747_v21, %v1342_v42  ;;  %v9921_v3 = vmul.f32 %v9753_v25, %v1188_v39  ;;  %v9924_v43 = vmul.f32 %v9760_v33, %v1342_v42 }
  0x96   : > { %4832 = vperm.xlu0 %8485, %v4758_v2   ;;  %v1285_v48 = vmul.f32 %v9634_v18, %v1192_v47  ;;  %v1287_v13 = vmul.f32 %v9645_v23, %v1192_v47  ;;  %v1284_v7 = vmul.f32 %v9656_v30, %v1192_v47  ;;  %v1286_v28 = vmul.f32 %v9665_v35, %v1192_v47 }
  0x97   : > { %14428 = vst [vmem:[#allocation42_spill] sm:$0xff] %v9915_v5  ;;  %14429 = vst [vmem:[#allocation43_spill] sm:$0xff] %v9921_v3  ;;  %v9932_v2 = vmul.f32 %v9642_v22, %v1350_v1  ;;  %v9935_v12 = vmul.f32 %v9653_v29, %v1350_v1  ;;  %v9938_v39 = vmul.f32 %v9659_v32, %v1350_v1 }
  0x98   : > { %14430 = vst [vmem:[#allocation44_spill] sm:$0xff] %v9924_v43  ;;  %v9941_v42 = vmul.f32 %v9668_v36, %v1350_v1  ;;  %v9944_v6 = vmul.f32 %v9671_v37, %v1192_v47  ;;  %v9947_v27 = vmul.f32 %v9678_v41, %v1192_v47  ;;  %v9950_v11 = vmul.f32 %v9716_v10, %v1192_v47 }
  0x99   : > { %2157 = vperm.xlu1 %8484, %v2095_v55   ;;  %v9953_v4 = vmul.f32 %v9753_v25, %v1192_v47  ;;  %v9956_v54 = vmul.f32 %v9675_v40, %v1350_v1  ;;  %v9959_v46 = vmul.f32 %v9713_v9, %v1350_v1  ;;  %v2825_v55 = vld [vmem:[%s14046_s5 + $0x80] sm:$0xff]  ;;  %v9969_v10 = vmul.f32 %v9747_v21, %v1350_v1 }
  0x9a   : > { %14431 = vst [vmem:[#allocation45_spill] sm:$0xff] %v9950_v11  ;;  %v9961_v60 = vpop.permute.xlu1 %1345  ;;  %v9963_v37 = vpop.permute.xlu0 %1062  ;;  %4842 = vperm.xlu0 %8485, %v4760_v38   ;;  %v9972_v47 = vmul.f32 %v9760_v33, %v1350_v1  ;;  %v9976_v25 = vrot.slane %v9880_v31, %v9579_v56  ;;  %v5850_v38 = vld [vmem:[%s14046_s5 + $0xe8] sm:$0xff]  ;;  %v9990_v1 = vrot.slane %v465_v63, %v9579_v56 }
  0x9b   : > { %14432 = vst [vmem:[#allocation46_spill] sm:$0xff] %v9953_v4  ;;  %14433 = vst [vmem:[#allocation47_spill] sm:$0xff] %v9956_v54  ;;  %v1155_v41 = vmul.f32 %v9724_v14, %v9963_v37  ;;  %v9994_v31 = vrot.slane %v9531_v34, %v9598_v0  ;;  %v1156_v54 = vmul.f32 %v9733_v16, %v9963_v37 }
  0x9c   : > { %14434 = vst [vmem:[#allocation48_spill] sm:$0xff] %v9959_v46  ;;  %14435 = vst [vmem:[#allocation49_spill] sm:$0xff] %v9969_v10  ;;  %v9980_v46 = vrot.slane %v9531_v34, %v9579_v56  ;;  %v1157_v10 = vmul.f32 %v9727_v49, %v9963_v37  ;;  %v1438_v34 = vmul.f32 %v9668_v36, %v9961_v60 }
  0x9d   : > { %14436 = vst [vmem:[#allocation50_spill] sm:$0xff] %v9972_v47  ;;  %14437 = vst [vmem:[#allocation51_spill] sm:$0xff] %v9976_v25  ;;  %v1439_v25 = vmul.f32 %v9653_v29, %v9961_v60  ;;  %v1154_v47 = vmul.f32 %v9730_v15, %v9963_v37  ;;  %2831 = vperm.xlu1 %8484, %v2825_v55   ;;  %v1309_v43 = vadd.f32 %v1277_v52, %v1155_v41  ;;  %v5852_v52 = vld [vmem:[%s14046_s5 + $0xf8] sm:$0xff] }
  0x9e   : > { %14438 = vst [vmem:[#allocation52_spill] sm:$0xff] %v9980_v46  ;;  %14439 = vst [vmem:[#allocation53_spill] sm:$0xff] %v9990_v1  ;;  %v1437_v46 = vmul.f32 %v9642_v22, %v9961_v60  ;;  %v1311_v63 = vadd.f32 %v1279_v8, %v1157_v10  ;;  %v1436_v1 = vmul.f32 %v9659_v32, %v9961_v60  ;;  %v10008_v0 = vpop.permute.xlu0 %1067  ;;  %5860 = vperm.xlu0 %8485, %v5850_v38  }
  0x9f   : > { %14440 = vst [vmem:[#allocation54_spill] sm:$0xff] %v9994_v31  ;;  %v2827_v31 = vld [vmem:[%s14046_s5 + $0x90] sm:$0xff]  ;;  %v1308_v56 = vadd.f32 %v1276_v62, %v1154_v47  ;;  %v1310_v33 = vadd.f32 %v1278_v57, %v1156_v54  ;;  %v1159_v55 = vmul.f32 %v9736_v17, %v9963_v37  ;;  %v10017_v41 = vmul.f32 %v9675_v40, %v9961_v60  ;;  %v10019_v10 = vpop.permute.xlu1 %1072 }
  0xa0   : > { %v1163_v8 = vmul.f32 %v9724_v14, %v10008_v0  ;;  %v1165_v62 = vmul.f32 %v9727_v49, %v10008_v0  ;;  %v1161_v54 = vmul.f32 %v9739_v26, %v9963_v37  ;;  %v10032_v57 = vmul.f32 %v9713_v9, %v9961_v60 }
  0xa1   : > { %v10035_v47 = vadd.f32 %v9876_v45, %v1309_v43  ;;  %v10038_v38 = vadd.f32 %v9889_v59, %v1311_v63  ;;  %v1162_v40 = vmul.f32 %v9730_v15, %v10008_v0  ;;  %v1164_v4 = vmul.f32 %v9733_v16, %v10008_v0  ;;  %2841 = vperm.xlu1 %8484, %v2827_v31   ;;  %v3161_v59 = vld [vmem:[%s14046_s5 + $0xa0] sm:$0xff] }
  0xa2   : > { %v1317_v5 = vadd.f32 %v1285_v48, %v1163_v8  ;;  %v1319_v3 = vadd.f32 %v1287_v13, %v1165_v62  ;;  %v10045_v11 = vadd.f32 %v9893_v51, %v1308_v56  ;;  %v10048_v9 = vadd.f32 %v9897_v44, %v1310_v33  ;;  %v10050_v45 = vpop.permute.xlu0 %1077  ;;  %5870 = vperm.xlu0 %8485, %v5852_v52   ;;  %v6102_v56 = vld [vmem:[%s14046_s5 + $0x1b8] sm:$0xff] }
  0xa3   : > { %14441 = vst [vmem:[#allocation55_spill] sm:$0xff] %v10050_v45  ;;  %v1316_v43 = vadd.f32 %v1284_v7, %v1162_v40  ;;  %v1318_v63 = vadd.f32 %v1286_v28, %v1164_v4  ;;  %v1171_v31 = vmul.f32 %v9724_v14, %v10019_v10  ;;  %v1173_v13 = vmul.f32 %v9727_v49, %v10019_v10 }
  0xa4   : > { %v1469_v33 = vadd.f32 %v1437_v46, %v1317_v5  ;;  %v1471_v44 = vadd.f32 %v1439_v25, %v1319_v3  ;;  %v1170_v51 = vmul.f32 %v9730_v15, %v10019_v10  ;;  %v1172_v48 = vmul.f32 %v9733_v16, %v10019_v10  ;;  %v10066_v40 = vpop.permute.xlu1 %1195 }
  0xa5   : > { %14442 = vst [vmem:[#allocation56_spill] sm:$0xff] %v10066_v40  ;;  %v1468_v4 = vadd.f32 %v1436_v1, %v1316_v43  ;;  %v1470_v7 = vadd.f32 %v1438_v34, %v1318_v63  ;;  %v1179_v28 = vmul.f32 %v9724_v14, %v10050_v45  ;;  %v1181_v52 = vmul.f32 %v9727_v49, %v10050_v45  ;;  %v3163_v14 = vld [vmem:[%s14046_s5 + $0xb0] sm:$0xff] }
  0xa6   : > { %3167 = vperm.xlu1 %8484, %v3161_v59   ;;  %v1293_v5 = vmul.f32 %v9634_v18, %v10066_v40  ;;  %v1295_v25 = vmul.f32 %v9645_v23, %v10066_v40  ;;  %v1292_v46 = vmul.f32 %v9656_v30, %v10066_v40  ;;  %v1294_v3 = vmul.f32 %v9665_v35, %v10066_v40  ;;  %v10080_v1 = vpop.permute.xlu0 %1499  ;;  %v6104_v59 = vld [vmem:[%s14046_s5 + $0x1c8] sm:$0xff] }
  0xa7   : > { %6176 = vperm.xlu0 %8485, %v6102_v56   ;;  %v1178_v49 = vmul.f32 %v9730_v15, %v10050_v45  ;;  %v1180_v34 = vmul.f32 %v9733_v16, %v10050_v45  ;;  %v1167_v8 = vmul.f32 %v9736_v17, %v10008_v0  ;;  %v1313_v62 = vadd.f32 %v9900_v20, %v1159_v55 }
  0xa8   : > { %v10096_v43 = vadd.f32 %v10080_v1, %v1469_v33  ;;  %v10099_v63 = vadd.f32 %v10080_v1, %v1471_v44  ;;  %v10102_v15 = vadd.f32 %v10080_v1, %v1468_v4  ;;  %v10105_v16 = vadd.f32 %v10080_v1, %v1470_v7  ;;  %v10107_v56 = vpop.permute.xlu1 %1199  ;;  %v3413_v7 = vld [vmem:[%s14046_s5 + $0x170] sm:$0xff] }
  0xa9   : > { %v1325_v40 = vadd.f32 %v1293_v5, %v1171_v31  ;;  %v1327_v20 = vadd.f32 %v1295_v25, %v1173_v13  ;;  %v1169_v55 = vmul.f32 %v9739_v26, %v10008_v0  ;;  %v1315_v45 = vadd.f32 %v9906_v50, %v1161_v54  ;;  %v7194_v54 = vld [vmem:[%s14046_s5 + $0x108] sm:$0xff] }
  0xaa   : > { %3177 = vperm.xlu1 %8484, %v3163_v14   ;;  %v1585_v44 = vmin.f32 %v10096_v43, 0.0  ;;  %v1324_v17 = vadd.f32 %v1292_v46, %v1170_v51  ;;  %v1326_v4 = vadd.f32 %v1294_v3, %v1172_v48  ;;  %v1587_v13 = vmin.f32 %v10099_v63, 0.0 }
  0xab   : > { %6186 = vperm.xlu0 %8485, %v6104_v59   ;;  %v1584_v50 = vmin.f32 %v10102_v15, 0.0  ;;  %v1301_v25 = vmul.f32 %v9634_v18, %v10107_v56  ;;  %v1303_v46 = vmul.f32 %v9645_v23, %v10107_v56  ;;  %v1477_v3 = vadd.f32 %v9932_v2, %v1325_v40  ;;  %v3415_v23 = vld [vmem:[%s14046_s5 + $0x180] sm:$0xff] }
  0xac   : > { %v1479_v14 = vadd.f32 %v9935_v12, %v1327_v20  ;;  %v1300_v59 = vmul.f32 %v9656_v30, %v10107_v56  ;;  %v1302_v5 = vmul.f32 %v9665_v35, %v10107_v56  ;;  %v1476_v18 = vadd.f32 %v9938_v39, %v1324_v17  ;;  %v7196_v17 = vld [vmem:[%s14046_s5 + $0x118] sm:$0xff] }
  0xad   : > { %v10136_v31 = vpop.permute.xlu1 %1353  ;;  %v1333_v51 = vadd.f32 %v1301_v25, %v1179_v28  ;;  %v1335_v33 = vadd.f32 %v1303_v46, %v1181_v52  ;;  %v1321_v48 = vadd.f32 %v9944_v6, %v1167_v8  ;;  %v1323_v28 = vadd.f32 %v9947_v27, %v1169_v55  ;;  %v4505_v27 = vld [vmem:[%s14046_s5 + $0xc0] sm:$0xff] }
  0xae   : > { %3483 = vperm.xlu1 %8484, %v3413_v7   ;;  %v1453_v30 = vmul.f32 %v9642_v22, %v10136_v31  ;;  %v1455_v35 = vmul.f32 %v9653_v29, %v10136_v31  ;;  %v1332_v12 = vadd.f32 %v1300_v59, %v1178_v49  ;;  %v1452_v2 = vmul.f32 %v9659_v32, %v10136_v31 }
  0xaf   : > { %7204 = vperm.xlu0 %8485, %v7194_v54   ;;  %v1334_v6 = vadd.f32 %v1302_v5, %v1180_v34  ;;  %v1454_v39 = vmul.f32 %v9668_v36, %v10136_v31  ;;  %v1473_v40 = vadd.f32 %v10017_v41, %v1321_v48  ;;  %v1478_v29 = vadd.f32 %v9941_v42, %v1326_v4  ;;  %v10197_v4 = vpop.permute.xlu0 %1610 }
  0xb0   : > { %v1485_v22 = vadd.f32 %v1453_v30, %v1333_v51  ;;  %v10156_v52 = vadd.f32 %v1455_v35, %v1335_v33  ;;  %v1465_v49 = vadd.f32 %v9903_v53, %v1313_v62  ;;  %v1484_v32 = vadd.f32 %v1452_v2, %v1332_v12 }
  0xb1   : > { %v10160_v8 = vadd.f32 %v1454_v39, %v1334_v6  ;;  %v10163_v34 = vadd.f32 %v10080_v1, %v1473_v40  ;;  %v1467_v36 = vadd.f32 %v9909_v58, %v1315_v45  ;;  %v10172_v42 = vadd.f32 %v10032_v57, %v1323_v28  ;;  %v7446_v45 = vld [vmem:[%s14046_s5 + $0x1d8] sm:$0xff] }
  0xb2   : > { %3493 = vperm.xlu1 %8484, %v3415_v23   ;;  %v10166_v20 = vpop.permute.xlu1 %1494  ;;  %v10176_v53 = vmul.f32 %v9742_v19, %v9963_v37  ;;  %v10180_v41 = vmul.f32 %v9742_v19, %v10008_v0  ;;  %v10184_v58 = vmul.f32 %v9747_v21, %v9961_v60  ;;  %v10205_v54 = vmul.f32 %v9750_v24, %v9963_v37  ;;  %v4507_v37 = vld [vmem:[%s14046_s5 + $0xd0] sm:$0xff]  ;;  %v7448_v23 = vld [vmem:[%s14046_s5 + $0x1e8] sm:$0xff] }
  0xb3   : > { %7214 = vperm.xlu0 %8485, %v7196_v17   ;;  %v1513_v57 = vadd.f32 %v10166_v20, %v10035_v47  ;;  %v1515_v62 = vadd.f32 %v10166_v20, %v10038_v38  ;;  %v1512_v55 = vadd.f32 %v10166_v20, %v10045_v11  ;;  %v1514_v33 = vadd.f32 %v10166_v20, %v10048_v9 }
  0xb4   : > { %v10200_v7 = vadd.f32 %v10166_v20, %v1465_v49  ;;  %v1557_v5 = vmax.f32 %v10163_v34, 0.0  ;;  %v10209_v47 = vmul.f32 %v9750_v24, %v10008_v0  ;;  %v1589_v9 = vmin.f32 %v10163_v34, 0.0  ;;  %v6101_v34 = vld [vmem:[%s14046_s5 + $0x1b0] sm:$0xff] }
  0xb5   : > { %v1577_v11 = vmin.f32 %v1513_v57, 0.0  ;;  %v1579_v38 = vmin.f32 %v1515_v62, 0.0  ;;  %v10213_v51 = vadd.f32 %v10166_v20, %v1467_v36  ;;  %v1545_v25 = vmax.f32 %v1513_v57, 0.0 }
  0xb6   : > { %4511 = vperm.xlu1 %8484, %v4505_v27   ;;  %v10215_v48 = vpop.permute.xlu1 %1504  ;;  %v1547_v46 = vmax.f32 %v1515_v62, 0.0  ;;  %v1576_v59 = vmin.f32 %v1512_v55, 0.0  ;;  %v1578_v0 = vmin.f32 %v1514_v33, 0.0  ;;  %v1544_v17 = vmax.f32 %v1512_v55, 0.0 }
  0xb7   : > { %7520 = vperm.xlu0 %8485, %v7446_v45   ;;  %v1629_v30 = vmul.f32 %v10197_v4, %v1577_v11  ;;  %v1631_v35 = vmul.f32 %v10197_v4, %v1579_v38  ;;  %v1529_v12 = vadd.f32 %v10215_v48, %v1477_v3  ;;  %v1531_v2 = vadd.f32 %v10215_v48, %v1479_v14  ;;  %v10235_v45 = vpop.permute.xlu0 %1620  ;;  %v4757_v14 = vld [vmem:[%s14046_s5 + $0x190] sm:$0xff] }
  0xb8   : > { %v1628_v6 = vmul.f32 %v10197_v4, %v1576_v59  ;;  %v1630_v39 = vmul.f32 %v10197_v4, %v1578_v0  ;;  %v10230_v40 = vadd.f32 %v10215_v48, %v1476_v18  ;;  %v1546_v49 = vmax.f32 %v1514_v33, 0.0  ;;  %v7798_v33 = vld [vmem:[%s14046_s5 + $0x1f0] sm:$0xff] }
  0xb9   : > { %v1661_v28 = vadd.f32 %v1629_v30, %v1545_v25  ;;  %v1593_v36 = vmin.f32 %v1529_v12, 0.0  ;;  %v10233_v27 = vadd.f32 %v10215_v48, %v1478_v29  ;;  %v1663_v57 = vadd.f32 %v1631_v35, %v1547_v46 }
  0xba   : > { %4521 = vperm.xlu1 %8484, %v4507_v37   ;;  %v10237_v3 = vpop.permute.xlu1 %1509  ;;  %v1660_v62 = vadd.f32 %v1628_v6, %v1544_v17  ;;  %v1561_v18 = vmax.f32 %v1529_v12, 0.0  ;;  %v1595_v55 = vmin.f32 %v1531_v2, 0.0  ;;  %v1662_v11 = vadd.f32 %v1630_v39, %v1546_v49 }
  0xbb   : > { %7530 = vperm.xlu0 %8485, %v7448_v23   ;;  %v1537_v29 = vadd.f32 %v10237_v3, %v1485_v22  ;;  %v1645_v38 = vmul.f32 %v10235_v45, %v1593_v36  ;;  %v1539_v37 = vadd.f32 %v10237_v3, %v10156_v52  ;;  %v1563_v25 = vmax.f32 %v1531_v2, 0.0  ;;  %v4759_v52 = vld [vmem:[%s14046_s5 + $0x1a0] sm:$0xff] }
  0xbc   : > { %v1647_v59 = vmul.f32 %v10235_v45, %v1595_v55  ;;  %v1536_v46 = vadd.f32 %v10237_v3, %v1484_v32  ;;  %v1592_v0 = vmin.f32 %v10230_v40, 0.0  ;;  %v1560_v35 = vmax.f32 %v10230_v40, 0.0 }
  0xbd   : > { %v1569_v23 = vmax.f32 %v1537_v29, 0.0  ;;  %v1601_v30 = vmin.f32 %v1537_v29, 0.0  ;;  %v1538_v22 = vadd.f32 %v10237_v3, %v10160_v8  ;;  %v1677_v2 = vadd.f32 %v1645_v38, %v1561_v18 }
  0xbe   : > { %4827 = vperm.xlu1 %8484, %v4757_v14   ;;  %v10255_v12 = vpop.permute.xlu1 %1615  ;;  %v1571_v17 = vmax.f32 %v1539_v37, 0.0  ;;  %v1603_v32 = vmin.f32 %v1539_v37, 0.0  ;;  %v1679_v6 = vadd.f32 %v1647_v59, %v1563_v25  ;;  %v14443_v49 = vmin.f32 %v10105_v16, 0.0 }
  0xbf   : > { %7817 = vperm.xlu0 %8485, %v7798_v33   ;;  %v1637_v39 = vmul.f32 %v10255_v12, %v1585_v44  ;;  %v1639_v40 = vmul.f32 %v10255_v12, %v1587_v13  ;;  %v1636_v8 = vmul.f32 %v10255_v12, %v1584_v50  ;;  %v1568_v14 = vmax.f32 %v1536_v46, 0.0 }
  0xc0   : > { %v1638_v36 = vmul.f32 %v10255_v12, %v14443_v49  ;;  %v1600_v18 = vmin.f32 %v1536_v46, 0.0  ;;  %v1644_v55 = vmul.f32 %v10235_v45, %v1592_v0  ;;  %v1594_v33 = vmin.f32 %v10233_v27, 0.0  ;;  %v5849_v46 = vld [vmem:[%s14046_s5 + $0xe0] sm:$0xff] }
  0xc1   : > { %v14444_v44 = vmax.f32 %v10096_v43, 0.0  ;;  %v14445_v13 = vmax.f32 %v10099_v63, 0.0  ;;  %v14446_v37 = vmax.f32 %v10102_v15, 0.0  ;;  %v14447_v25 = vmax.f32 %v10105_v16, 0.0 }
  0xc2   : > { %4837 = vperm.xlu1 %8484, %v4759_v52   ;;  %v10282_v49 = vpop.permute.xlu1 %1625  ;;  %v1562_v0 = vmax.f32 %v10233_v27, 0.0  ;;  %v1570_v52 = vmax.f32 %v1538_v22, 0.0  ;;  %v1602_v43 = vmin.f32 %v1538_v22, 0.0  ;;  %v1676_v27 = vadd.f32 %v1644_v55, %v1560_v35 }
  0xc3   : > { %v1669_v29 = vadd.f32 %v1637_v39, %v14444_v44  ;;  %v1671_v38 = vadd.f32 %v1639_v40, %v14445_v13  ;;  %v1668_v50 = vadd.f32 %v1636_v8, %v14446_v37  ;;  %v1670_v59 = vadd.f32 %v1638_v36, %v14447_v25 }
  0xc4   : > { %v1646_v39 = vmul.f32 %v10235_v45, %v1594_v33  ;;  %v1653_v16 = vmul.f32 %v10282_v49, %v1601_v30  ;;  %v1655_v8 = vmul.f32 %v10282_v49, %v1603_v32  ;;  %v1652_v36 = vmul.f32 %v10282_v49, %v1600_v18 }
  0xc5   : > { %v1701_v63 = vpack.c.bf16 %v1669_v29, %v1661_v28  ;;  %v1703_v40 = vpack.c.bf16 %v1671_v38, %v1663_v57  ;;  %v1700_v44 = vpack.c.bf16 %v1668_v50, %v1660_v62  ;;  %v1702_v15 = vpack.c.bf16 %v1670_v59, %v1662_v11  ;;  %v5851_v11 = vld [vmem:[%s14046_s5 + $0xf0] sm:$0xff] }
  0xc6   : > { %v1654_v13 = vmul.f32 %v10282_v49, %v1602_v43  ;;  %5855 = vperm.xlu1 %8484, %v5849_v46   ;;  %v1581_v22 = vmin.f32 %v10200_v7, 0.0  ;;  %v1641_v28 = vmul.f32 %v10255_v12, %v1589_v9  ;;  %v1527_v57 = vadd.f32 %v10080_v1, %v10172_v42  ;;  %v10299_v62 = vpop.permute.xlu1 %423  ;;  %v14450_v43 = vld [vmem:[#allocation42_spill] sm:$0xff] }
  0xc7   : > { %1797 = vmatprep.subr.bf16.mxu0 %v1701_v63  ;;  %1870 = vmatprep.subr.bf16.mxu1 %v1703_v40  ;;  %v1685_v30 = vadd.f32 %v1653_v16, %v1569_v23  ;;  %v1687_v32 = vadd.f32 %v1655_v8, %v1571_v17  ;;  %v1684_v35 = vadd.f32 %v1652_v36, %v1568_v14  ;;  %v1549_v18 = vmax.f32 %v10200_v7, 0.0  ;;  %v14453_v36 = vld [vmem:[#allocation44_spill] sm:$0xff] }
  0xc8   : > { %1798 = vmatpush1.bf16.msra.mxu0 %v1700_v44  ;;  %1871 = vmatpush1.bf16.msra.mxu1 %v1702_v15  ;;  %v1678_v55 = vadd.f32 %v1646_v39, %v1562_v0  ;;  %v1686_v33 = vadd.f32 %v1654_v13, %v1570_v52  ;;  %v1633_v9 = vmul.f32 %v10197_v4, %v1581_v22  ;;  %v1583_v50 = vmin.f32 %v10213_v51, 0.0  ;;  %v14451_v44 = vld [vmem:[#allocation46_spill] sm:$0xff] }
  0xc9   : > { %v1673_v42 = vadd.f32 %v1641_v28, %v1557_v5  ;;  %v1709_v29 = vpack.c.bf16 %v1685_v30, %v1677_v2  ;;  %v1711_v38 = vpack.c.bf16 %v1687_v32, %v1679_v6  ;;  %v1708_v37 = vpack.c.bf16 %v1684_v35, %v1676_v27  ;;  %v10319_v5 = vld [vmem:[%s14044_s3 + $0x20] sm:$0xff]   ;;  %v14448_v2 = vld [vmem:[#allocation45_spill] sm:$0xff]  ;;  %v10336_v27 = vpop.permute.xlu0 %418 }
  0xca   : > { %5865 = vperm.xlu1 %8484, %v5851_v11   ;;  %v1710_v25 = vpack.c.bf16 %v1686_v33, %v1678_v55  ;;  %v1665_v23 = vadd.f32 %v1633_v9, %v1549_v18  ;;  %v1591_v17 = vmin.f32 %v1527_v57, 0.0  ;;  %v1312_v7 = vadd.f32 %v9912_v61, %v10176_v53  ;;  %v14449_v61 = vld [vmem:[#allocation43_spill] sm:$0xff]  ;;  %v6103_v28 = vld [vmem:[%s14046_s5 + $0x1c0] sm:$0xff] }
  0xcb   : > { %1799 = vmatprep.subr.bf16.mxu0 %v1709_v29  ;;  %1872 = vmatprep.subr.bf16.mxu1 %v1711_v38  ;;  %v1551_v14 = vmax.f32 %v10213_v51, 0.0  ;;  %v1635_v59 = vmul.f32 %v10197_v4, %v1583_v50  ;;  %v1320_v6 = vadd.f32 %v14448_v2, %v10180_v41  ;;  %v1314_v53 = vadd.f32 %v14449_v61, %v10205_v54  ;;  %v10325_v51 = vpop.permute.xlu1 %547  ;;  %v14452_v41 = vld [vmem:[#allocation15_spill] sm:$0xff]  ;;  %v14457_v50 = vld [vmem:[#allocation56_spill] sm:$0xff] }
  0xcc   : > { %1800 = vmatpush1.bf16.msra.mxu0 %v1708_v37  ;;  %1873 = vmatpush1.bf16.msra.mxu1 %v1710_v25  ;;  %v1705_v46 = vpack.c.bf16 %v1673_v42, %v1665_v23  ;;  %v1559_v0 = vmax.f32 %v1527_v57, 0.0  ;;  %v1643_v52 = vmul.f32 %v10255_v12, %v1591_v17  ;;  %v1464_v39 = vadd.f32 %v14450_v43, %v1312_v7  ;;  %v14456_v9 = vld [vmem:[#allocation55_spill] sm:$0xff]  ;;  %v14458_v25 = vld [vmem:[#allocation8_spill] sm:$0xff] }
  0xcd   : > { %v1667_v63 = vadd.f32 %v1635_v59, %v1551_v14  ;;  %v1472_v40 = vadd.f32 %v10184_v58, %v1320_v6  ;;  %v1322_v15 = vadd.f32 %v14451_v44, %v10209_v47  ;;  %v1442_v16 = vmul.f32 %v14452_v41, %v9961_v60  ;;  %v14454_v60 = vld [vmem:[#allocation13_spill] sm:$0xff]  ;;  %v7193_v59 = vld [vmem:[%s14046_s5 + $0x100] sm:$0xff]  ;;  %v14460_v44 = vld [vmem:[#allocation47_spill] sm:$0xff] }
  0xce   : > { %1943 = vmatprep.subr.bf16.mxu0 %v1705_v46  ;;  %v1675_v54 = vadd.f32 %v1643_v52, %v1559_v0  ;;  %6171 = vperm.xlu1 %8484, %v6101_v34   ;;  %v1516_v8 = vadd.f32 %v10166_v20, %v1464_v39  ;;  %v1466_v13 = vadd.f32 %v14453_v36, %v1314_v53  ;;  %v14455_v35 = vmov 0   ;;  %v10368_v34 = vld [vmem:[%s14044_s3 + $0x28] sm:$0xff]   ;;  %v14459_v53 = vld [vmem:[#allocation9_spill] sm:$0xff]  ;;  %v10373_v0 = vpop.permute.xlu0 %543 }
  0xcf   : > { %8131 = vmatmul.mubr.msk.bf16.vlgmr.msra.gmra.mrb[0].mxu0 %vm1784_vm8, %v10319_v5  ;;  %8135 = vmatmul.mubr.msk.bf16.vlgmr.msra.gmra.mrb[0].mxu1 %vm1784_vm8, %v10319_v5  ;;  %v1524_v58 = vadd.f32 %v10080_v1, %v1472_v40  ;;  %v1474_v47 = vadd.f32 %v1442_v16, %v1322_v15  ;;  %v1175_v22 = vmul.f32 %v14454_v60, %v10019_v10 }
  0xd0   : > { %v1707_v57 = vpack.c.bf16 %v1675_v54, %v1667_v63  ;;  %v1548_v11 = vmax.f32 %v1516_v8, 0.0  ;;  %v1580_v30 = vmin.f32 %v1516_v8, 0.0  ;;  %v1518_v32 = vadd.f32 %v10166_v20, %v1466_v13  ;;  %1839 = vmatprep.mubr.bf16.mxu0 %v14455_v35  ;;  %1912 = vmatprep.mubr.bf16.mxu1 %v14455_v35  ;;  %v10357_v20 = vpop.permute.xlu1 %697 }
  0xd1   : > { %v1556_v18 = vmax.f32 %v1524_v58, 0.0  ;;  %v1588_v55 = vmin.f32 %v1524_v58, 0.0  ;;  %v1526_v33 = vadd.f32 %v10080_v1, %v1474_v47  ;;  %v1183_v42 = vmul.f32 %v14454_v60, %v14456_v9  ;;  %v7195_v47 = vld [vmem:[%s14046_s5 + $0x110] sm:$0xff] }
  0xd2   : > { %2016 = vmatprep.subr.bf16.mxu1 %v1707_v57  ;;  %v1632_v29 = vmul.f32 %v10197_v4, %v1580_v30  ;;  %v1550_v38 = vmax.f32 %v1518_v32, 0.0  ;;  %v1582_v37 = vmin.f32 %v1518_v32, 0.0  ;;  %v1297_v23 = vmul.f32 %v14458_v25, %v14457_v50  ;;  %6181 = vperm.xlu1 %8484, %v6103_v28  }
  0xd3   : > { %v1640_v17 = vmul.f32 %v10255_v12, %v1588_v55  ;;  %v1558_v7 = vmax.f32 %v1526_v33, 0.0  ;;  %v1590_v14 = vmin.f32 %v1526_v33, 0.0  ;;  %v1305_v1 = vmul.f32 %v14458_v25, %v10107_v56 }
  0xd4   : > { %v1664_v2 = vadd.f32 %v1632_v29, %v1548_v11  ;;  %v1634_v6 = vmul.f32 %v10197_v4, %v1582_v37  ;;  %v1329_v61 = vadd.f32 %v1297_v23, %v1175_v22  ;;  %v1457_v46 = vmul.f32 %v14459_v53, %v10136_v31  ;;  %v14461_v4 = vld [vmem:[#allocation10_spill] sm:$0xff]  ;;  %v14462_v22 = vld [vmem:[#allocation11_spill] sm:$0xff]  ;;  %v10399_v11 = vpop.permute.xlu0 %551  ;;  %v14463_v29 = vld [vmem:[#allocation48_spill] sm:$0xff] }
  0xd5   : > { %v1672_v52 = vadd.f32 %v1640_v17, %v1556_v18  ;;  %v1642_v43 = vmul.f32 %v10255_v12, %v1590_v14  ;;  %v1337_v39 = vadd.f32 %v1305_v1, %v1183_v42  ;;  %v1177_v63 = vmul.f32 %v9739_v26, %v10019_v10  ;;  %v10383_v8 = vpop.permute.xlu1 %428  ;;  %v14464_v37 = vld [vmem:[#allocation12_spill] sm:$0xff] }
  0xd6   : > { %v1666_v40 = vadd.f32 %v1634_v6, %v1550_v38  ;;  %v1481_v15 = vadd.f32 %v14460_v44, %v1329_v61  ;;  %v1185_v16 = vmul.f32 %v9739_v26, %v14456_v9  ;;  %v1299_v54 = vmul.f32 %v14461_v4, %v14457_v50  ;;  %7199 = vperm.xlu1 %8484, %v7193_v59   ;;  %v10419_v59 = vld [vmem:[%s14044_s3 + $0x30] sm:$0xff]  }
  0xd7   : > { %v1704_v36 = vpack.c.bf16 %v1672_v52, %v1664_v2  ;;  %v1674_v13 = vadd.f32 %v1642_v43, %v1558_v7  ;;  %v1489_v58 = vadd.f32 %v1457_v46, %v1337_v39  ;;  %v1307_v12 = vmul.f32 %v14461_v4, %v10107_v56  ;;  %8132 = vmatmul.mubr.msk.bf16.gmra.mrb[4].mxu0 %vm1784_vm8, %v10368_v34 }
  0xd8   : > { %v1533_v26 = vadd.f32 %v10215_v48, %v1481_v15  ;;  %v1331_v60 = vadd.f32 %v1299_v54, %v1177_v63  ;;  %v1459_v28 = vmul.f32 %v14462_v22, %v10136_v31  ;;  %v1174_v57 = vmul.f32 %v9742_v19, %v10019_v10  ;;  %8136 = vmatmul.mubr.msk.bf16.gmra.mrb[4].mxu1 %vm1784_vm8, %v10368_v34  ;;  %v14465_v15 = vld [vmem:[#allocation49_spill] sm:$0xff]  ;;  %v10430_v4 = vpop.permute.xlu0 %701 }
  0xd9   : > { %1944 = vmatpush1.bf16.msra.mxu0 %v1704_v36  ;;  %v1706_v30 = vpack.c.bf16 %v1674_v13, %v1666_v40  ;;  %v1541_v32 = vadd.f32 %v10237_v3, %v1489_v58  ;;  %v1339_v18 = vadd.f32 %v1307_v12, %v1185_v16  ;;  %v1182_v55 = vmul.f32 %v9742_v19, %v14456_v9  ;;  %v10407_v23 = vpop.permute.xlu1 %433  ;;  %v7445_v19 = vld [vmem:[%s14046_s5 + $0x1d0] sm:$0xff] }
  0xda   : > { %v1565_v33 = vmax.f32 %v1533_v26, 0.0  ;;  %v1597_v42 = vmin.f32 %v1533_v26, 0.0  ;;  %v1483_v38 = vadd.f32 %v14463_v29, %v1331_v60  ;;  %v1296_v25 = vmul.f32 %v14464_v37, %v14457_v50  ;;  %7209 = vperm.xlu1 %8484, %v7195_v47   ;;  %1849 = vmatprep.mubr.bf16.mxu0 %v14455_v35  ;;  %v14466_v60 = vld [vmem:[#allocation14_spill] sm:$0xff] }
  0xdb   : > { %2017 = vmatpush1.bf16.msra.mxu1 %v1706_v30  ;;  %v1573_v17 = vmax.f32 %v1541_v32, 0.0  ;;  %v1605_v7 = vmin.f32 %v1541_v32, 0.0  ;;  %v1491_v14 = vadd.f32 %v1459_v28, %v1339_v18  ;;  %v1304_v1 = vmul.f32 %v14464_v37, %v10107_v56  ;;  %1922 = vmatprep.mubr.bf16.mxu1 %v14455_v35 }
  0xdc   : > { %v1649_v2 = vmul.f32 %v10235_v45, %v1597_v42  ;;  %v1535_v6 = vadd.f32 %v10215_v48, %v1483_v38  ;;  %v1328_v61 = vadd.f32 %v1296_v25, %v1174_v57  ;;  %v1456_v53 = vmul.f32 %v9747_v21, %v10136_v31  ;;  %v7615_v38 = vld [vmem:[%s14046_s5 + $0x120] sm:$0xff] }
  0xdd   : > { %v1657_v46 = vmul.f32 %v10282_v49, %v1605_v7  ;;  %v1543_v52 = vadd.f32 %v10237_v3, %v1491_v14  ;;  %v1336_v43 = vadd.f32 %v1304_v1, %v1182_v55  ;;  %v1176_v39 = vmul.f32 %v9750_v24, %v10019_v10  ;;  %v7447_v10 = vld [vmem:[%s14046_s5 + $0x1e0] sm:$0xff]  ;;  %v14468_v1 = vld [vmem:[#allocation23_spill] sm:$0xff] }
  0xde   : > { %v1681_v63 = vadd.f32 %v1649_v2, %v1565_v33  ;;  %v1567_v40 = vmax.f32 %v1535_v6, 0.0  ;;  %v1599_v44 = vmin.f32 %v1535_v6, 0.0  ;;  %v1480_v16 = vadd.f32 %v14465_v15, %v1328_v61  ;;  %7515 = vperm.xlu1 %8484, %v7445_v19   ;;  %v10434_v58 = vpop.permute.xlu1 %555  ;;  %v10469_v2 = vpop.permute.xlu0 %709 }
  0xdf   : > { %v1689_v54 = vadd.f32 %v1657_v46, %v1573_v17  ;;  %v1575_v36 = vmax.f32 %v1543_v52, 0.0  ;;  %v1607_v13 = vmin.f32 %v1543_v52, 0.0  ;;  %v1488_v21 = vadd.f32 %v1456_v53, %v1336_v43  ;;  %8133 = vmatmul.mubr.msk.bf16.gmra.mrb[8].mxu0 %vm1784_vm8, %v10419_v59  ;;  %v14467_v17 = vld [vmem:[#allocation50_spill] sm:$0xff]  ;;  %v14469_v46 = vld [vmem:[#allocation29_spill] sm:$0xff] }
  0xe0   : > { %v1651_v12 = vmul.f32 %v10235_v45, %v1599_v44  ;;  %v1532_v47 = vadd.f32 %v10215_v48, %v1480_v16  ;;  %v1184_v26 = vmul.f32 %v9750_v24, %v14456_v9  ;;  %v1298_v22 = vmul.f32 %v14466_v60, %v14457_v50  ;;  %8137 = vmatmul.mubr.msk.bf16.gmra.mrb[8].mxu1 %vm1784_vm8, %v10419_v59  ;;  %v14470_v44 = vld [vmem:[#allocation33_spill] sm:$0xff] }
  0xe1   : > { %v1713_v28 = vpack.c.bf16 %v1689_v54, %v1681_v63  ;;  %v1659_v57 = vmul.f32 %v10282_v49, %v1607_v13  ;;  %v1540_v30 = vadd.f32 %v10237_v3, %v1488_v21  ;;  %v1306_v32 = vmul.f32 %v14466_v60, %v10107_v56  ;;  %1859 = vmatprep.mubr.bf16.mxu0 %v14455_v35  ;;  %v10459_v56 = vld [vmem:[%s14044_s3 + $0x38] sm:$0xff]  }
  0xe2   : > { %v1683_v18 = vadd.f32 %v1651_v12, %v1567_v40  ;;  %v1564_v55 = vmax.f32 %v1532_v47, 0.0  ;;  %v1596_v33 = vmin.f32 %v1532_v47, 0.0  ;;  %v1330_v24 = vadd.f32 %v1298_v22, %v1176_v39  ;;  %7525 = vperm.xlu1 %8484, %v7447_v10   ;;  %1932 = vmatprep.mubr.bf16.mxu1 %v14455_v35  ;;  %v14471_v47 = vld [vmem:[#allocation25_spill] sm:$0xff] }
  0xe3   : > { %1945 = vmatprep.subr.bf16.mxu0 %v1713_v28  ;;  %v1691_v9 = vadd.f32 %v1659_v57, %v1575_v36  ;;  %v1572_v50 = vmax.f32 %v1540_v30, 0.0  ;;  %v1604_v42 = vmin.f32 %v1540_v30, 0.0  ;;  %v1338_v29 = vadd.f32 %v1306_v32, %v1184_v26  ;;  %v10465_v14 = vpop.permute.xlu1 %705  ;;  %v10497_v57 = vpop.permute.xlu0 %860 }
  0xe4   : > { %v1648_v37 = vmul.f32 %v10235_v45, %v1596_v33  ;;  %v1458_v25 = vmul.f32 %v14452_v41, %v10136_v31  ;;  %v1482_v7 = vadd.f32 %v14467_v17, %v1330_v24  ;;  %v511_v19 = vmul.f32 %v14468_v1, %v10336_v27 }
  0xe5   : > { %v1715_v6 = vpack.c.bf16 %v1691_v9, %v1683_v18  ;;  %v1656_v61 = vmul.f32 %v10282_v49, %v1604_v42  ;;  %v519_v53 = vmul.f32 %v14468_v1, %v10299_v62  ;;  %v633_v52 = vmul.f32 %v14469_v46, %v10373_v0  ;;  %v14472_v18 = vld [vmem:[#allocation30_spill] sm:$0xff] }
  0xe6   : > { %v1680_v43 = vadd.f32 %v1648_v37, %v1564_v55  ;;  %v1490_v31 = vadd.f32 %v1458_v25, %v1338_v29  ;;  %v1534_v41 = vadd.f32 %v10215_v48, %v1482_v7  ;;  %7619 = vperm.xlu1 %8484, %v7615_v38   ;;  %v641_v39 = vmul.f32 %v14469_v46, %v10325_v51 }
  0xe7   : > { %2018 = vmatprep.subr.bf16.mxu1 %v1715_v6  ;;  %v1688_v63 = vadd.f32 %v1656_v61, %v1572_v50  ;;  %8134 = vmatmul.mubr.msk.bf16.gmra.mrb[12].mxu0 %vm1784_vm8, %v10459_v56  ;;  %v665_v40 = vadd.f32 %v633_v52, %v511_v19  ;;  %v785_v15 = vmul.f32 %v14470_v44, %v10357_v20  ;;  %v14474_v6 = vld [vmem:[#allocation26_spill] sm:$0xff] }
  0xe8   : > { %v1542_v16 = vadd.f32 %v10237_v3, %v1490_v31  ;;  %v1566_v54 = vmax.f32 %v1534_v41, 0.0  ;;  %v1598_v36 = vmin.f32 %v1534_v41, 0.0  ;;  %8138 = vmatmul.mubr.msk.bf16.gmra.mrb[12].mxu1 %vm1784_vm8, %v10459_v56  ;;  %1975 = vmatprep.mubr.bf16.mxu0 %v14455_v35  ;;  %v673_v48 = vadd.f32 %v641_v39, %v519_v53  ;;  %v10487_v21 = vpop.permute.xlu1 %850 }
  0xe9   : > { %v1712_v13 = vpack.c.bf16 %v1688_v63, %v1680_v43  ;;  %2048 = vmatprep.mubr.bf16.mxu1 %v14455_v35  ;;  %v793_v10 = vmul.f32 %v14470_v44, %v10430_v4  ;;  %v817_v12 = vadd.f32 %v785_v15, %v665_v40  ;;  %v513_v3 = vmul.f32 %v14471_v47, %v10336_v27  ;;  %v14475_v43 = vld [vmem:[#allocation31_spill] sm:$0xff] }
  0xea   : > { %v1574_v26 = vmax.f32 %v1542_v16, 0.0  ;;  %v1606_v60 = vmin.f32 %v1542_v16, 0.0  ;;  %v1650_v22 = vmul.f32 %v10235_v45, %v1598_v36  ;;  %v521_v28 = vmul.f32 %v14471_v47, %v10299_v62  ;;  %v14473_v45 = vld [vmem:[#allocation34_spill] sm:$0xff]  ;;  %v14476_v15 = vld [vmem:[#allocation35_spill] sm:$0xff] }
  0xeb   : > { %1946 = vmatpush1.bf16.msra.mxu0 %v1712_v13  ;;  %v825_v30 = vadd.f32 %v793_v10, %v673_v48  ;;  %v869_v32 = vadd.f32 %v10487_v21, %v817_v12  ;;  %v635_v55 = vmul.f32 %v14472_v18, %v10373_v0  ;;  %v643_v33 = vmul.f32 %v14472_v18, %v10325_v51 }
  0xec   : > { %v1658_v24 = vmul.f32 %v10282_v49, %v1606_v60  ;;  %v1682_v9 = vadd.f32 %v1650_v22, %v1566_v54  ;;  %v787_v50 = vmul.f32 %v14473_v45, %v10357_v20  ;;  %v795_v42 = vmul.f32 %v14473_v45, %v10430_v4  ;;  %v10509_v29 = vpop.permute.xlu1 %855  ;;  %v10525_v54 = vpop.permute.xlu0 %971  ;;  %v14477_v60 = vld [vmem:[#allocation27_spill] sm:$0xff] }
  0xed   : > { %v901_v38 = vmax.f32 %v869_v32, 0.0  ;;  %v933_v37 = vmin.f32 %v869_v32, 0.0  ;;  %v667_v25 = vadd.f32 %v635_v55, %v513_v3  ;;  %v675_v17 = vadd.f32 %v643_v33, %v521_v28 }
  0xee   : > { %v1690_v7 = vadd.f32 %v1658_v24, %v1574_v26  ;;  %v877_v19 = vadd.f32 %v10509_v29, %v825_v30  ;;  %v510_v61 = vmul.f32 %v14474_v6, %v10336_v27  ;;  %v518_v49 = vmul.f32 %v14474_v6, %v10299_v62 }
  0xef   : > { %8139 = vmatmul.mubr.msk.bf16.vlgmr.msra.gmra.mrb[16].mxu0 %vm1784_vm8, %v10319_v5  ;;  %v819_v53 = vadd.f32 %v787_v50, %v667_v25  ;;  %v827_v52 = vadd.f32 %v795_v42, %v675_v17  ;;  %v632_v31 = vmul.f32 %v14475_v43, %v10373_v0  ;;  %v640_v41 = vmul.f32 %v14475_v43, %v10325_v51  ;;  %v14479_v42 = vld [vmem:[#allocation36_spill] sm:$0xff] }
  0xf0   : > { %v1714_v39 = vpack.c.bf16 %v1690_v7, %v1682_v9  ;;  %1985 = vmatprep.mubr.bf16.mxu0 %v14455_v35  ;;  %v909_v63 = vmax.f32 %v877_v19, 0.0  ;;  %v941_v40 = vmin.f32 %v877_v19, 0.0  ;;  %v784_v16 = vmul.f32 %v14476_v15, %v10357_v20  ;;  %v10527_v36 = vpop.permute.xlu1 %865 }
  0xf1   : > { %v871_v48 = vadd.f32 %v10487_v21, %v819_v53  ;;  %v879_v13 = vadd.f32 %v10509_v29, %v827_v52  ;;  %v664_v10 = vadd.f32 %v632_v31, %v510_v61  ;;  %v672_v12 = vadd.f32 %v640_v41, %v518_v49  ;;  %v14480_v61 = vld [vmem:[#allocation37_spill] sm:$0xff] }
  0xf2   : > { %2019 = vmatpush1.bf16.msra.mxu1 %v1714_v39  ;;  %v993_v3 = vmul.f32 %v10525_v54, %v941_v40  ;;  %v792_v26 = vmul.f32 %v14476_v15, %v10430_v4  ;;  %v512_v22 = vmul.f32 %v14477_v60, %v10336_v27  ;;  %v520_v28 = vmul.f32 %v14477_v60, %v10299_v62 }
  0xf3   : > { %v903_v30 = vmax.f32 %v871_v48, 0.0  ;;  %v911_v32 = vmax.f32 %v879_v13, 0.0  ;;  %v935_v55 = vmin.f32 %v871_v48, 0.0  ;;  %v943_v33 = vmin.f32 %v879_v13, 0.0 }
  0xf4   : > { %v10538_v24 = vadd.f32 %v993_v3, %v909_v63  ;;  %v816_v9 = vadd.f32 %v784_v16, %v664_v10  ;;  %v824_v50 = vadd.f32 %v792_v26, %v672_v12  ;;  %v634_v25 = vmul.f32 %v14479_v42, %v10373_v0  ;;  %v10544_v17 = vpop.permute.xlu1 %966 }
  0xf5   : > { %8143 = vmatmul.mubr.msk.bf16.vlgmr.msra.gmra.mrb[16].mxu1 %vm1784_vm8, %v10319_v5  ;;  %v995_v7 = vmul.f32 %v10525_v54, %v943_v33  ;;  %v642_v19 = vmul.f32 %v14479_v42, %v10325_v51  ;;  %v786_v49 = vmul.f32 %v14480_v61, %v10357_v20  ;;  %v794_v53 = vmul.f32 %v14480_v61, %v10430_v4 }
  0xf6   : > { %14478 = vst [vmem:[#allocation45_spill] sm:$0xff] %v10538_v24  ;;  %2058 = vmatprep.mubr.bf16.mxu1 %v14455_v35  ;;  %v985_v52 = vmul.f32 %v10544_v17, %v933_v37  ;;  %v987_v31 = vmul.f32 %v10544_v17, %v935_v55  ;;  %v868_v5 = vadd.f32 %v10487_v21, %v816_v9 }
  0xf7   : > { %v876_v41 = vadd.f32 %v10509_v29, %v824_v50  ;;  %8140 = vmatmul.mubr.msk.bf16.gmra.mrb[20].mxu0 %vm1784_vm8, %v10368_v34  ;;  %v10560_v39 = vadd.f32 %v995_v7, %v911_v32  ;;  %v666_v63 = vadd.f32 %v634_v25, %v512_v22  ;;  %v674_v40 = vadd.f32 %v642_v19, %v520_v28 }
  0xf8   : > { %v527_v16 = vmul.f32 %v14468_v1, %v10383_v8  ;;  %v10564_v48 = vadd.f32 %v985_v52, %v901_v38  ;;  %v10566_v13 = vadd.f32 %v987_v31, %v903_v30  ;;  %1995 = vmatprep.mubr.bf16.mxu0 %v14455_v35  ;;  %v900_v37 = vmax.f32 %v868_v5, 0.0 }
  0xf9   : > { %14481 = vst [vmem:[#allocation43_spill] sm:$0xff] %v10560_v39  ;;  %v908_v10 = vmax.f32 %v876_v41, 0.0  ;;  %v932_v12 = vmin.f32 %v868_v5, 0.0  ;;  %v940_v3 = vmin.f32 %v876_v41, 0.0  ;;  %v818_v26 = vadd.f32 %v786_v49, %v666_v63 }
  0xfa   : > { %14482 = vst [vmem:[#allocation42_spill] sm:$0xff] %v10564_v48  ;;  %14483 = vst [vmem:[#allocation46_spill] sm:$0xff] %v10566_v13  ;;  %v826_v55 = vadd.f32 %v794_v53, %v674_v40  ;;  %v2110_v32 = vpack.c.bf16 %v10538_v24, %v10564_v48  ;;  %v2112_v22 = vpack.c.bf16 %v10560_v39, %v10566_v13 }
  0xfb   : > { %v535_v38 = vmul.f32 %v14468_v1, %v10407_v23  ;;  %v649_v28 = vmul.f32 %v14469_v46, %v10399_v11  ;;  %v984_v30 = vmul.f32 %v10544_v17, %v932_v12  ;;  %v992_v33 = vmul.f32 %v10525_v54, %v940_v3 }
  0xfc   : > { %v870_v9 = vadd.f32 %v10487_v21, %v818_v26  ;;  %v878_v50 = vadd.f32 %v10509_v29, %v826_v55  ;;  %2197 = vmatprep.subr.bf16.mxu0 %v2110_v32  ;;  %2270 = vmatprep.subr.bf16.mxu1 %v2112_v22  ;;  %v657_v25 = vmul.f32 %v14469_v46, %v10434_v58  ;;  %v10614_v32 = vpop.permute.xlu1 %976 }
  0xfd   : > { %v681_v7 = vadd.f32 %v649_v28, %v527_v16  ;;  %v801_v1 = vmul.f32 %v14470_v44, %v10465_v14  ;;  %8144 = vmatmul.mubr.msk.bf16.gmra.mrb[20].mxu1 %vm1784_vm8, %v10368_v34  ;;  %v10587_v19 = vadd.f32 %v984_v30, %v900_v37  ;;  %v10589_v49 = vadd.f32 %v992_v33, %v908_v10 }
  0xfe   : > { %v902_v53 = vmax.f32 %v870_v9, 0.0  ;;  %v910_v52 = vmax.f32 %v878_v50, 0.0  ;;  %2068 = vmatprep.mubr.bf16.mxu1 %v14455_v35  ;;  %v934_v31 = vmin.f32 %v870_v9, 0.0  ;;  %v942_v5 = vmin.f32 %v878_v50, 0.0 }
  0xff   : > { %14484 = vst [vmem:[#allocation15_spill] sm:$0xff] %v10587_v19  ;;  %14485 = vst [vmem:[#allocation44_spill] sm:$0xff] %v10589_v49  ;;  %v689_v41 = vadd.f32 %v657_v25, %v535_v38  ;;  %v809_v46 = vmul.f32 %v14470_v44, %v10469_v2  ;;  %v2109_v63 = vpack.c.bf16 %v10589_v49, %v10587_v19  ;;  %8141 = vmatmul.mubr.msk.bf16.gmra.mrb[24].mxu0 %vm1784_vm8, %v10419_v59 }
 0x100   : > { %v833_v34 = vadd.f32 %v801_v1, %v681_v7  ;;  %v529_v40 = vmul.f32 %v14471_v47, %v10383_v8  ;;  %v537_v16 = vmul.f32 %v14471_v47, %v10407_v23  ;;  %v986_v37 = vmul.f32 %v10544_v17, %v934_v31  ;;  %2005 = vmatprep.mubr.bf16.mxu0 %v14455_v35  ;;  %v10625_v31 = vpop.permute.xlu0 %981  ;;  %v11101_v13 = vpop.permute.xlu1 %1726 }
 0x101   : > { %v994_v10 = vmul.f32 %v10525_v54, %v942_v5  ;;  %v841_v12 = vadd.f32 %v809_v46, %v689_v41  ;;  %v651_v44 = vmul.f32 %v14472_v18, %v10399_v11  ;;  %2198 = vmatpush1.bf16.msra.mxu0 %v2109_v63  ;;  %v659_v26 = vmul.f32 %v14472_v18, %v10434_v58 }
 0x102   : > { %v885_v3 = vadd.f32 %v10497_v57, %v833_v34  ;;  %v803_v55 = vmul.f32 %v14473_v45, %v10465_v14  ;;  %v811_v47 = vmul.f32 %v14473_v45, %v10469_v2  ;;  %v10616_v22 = vadd.f32 %v986_v37, %v902_v53 }
 0x103   : > { %v10618_v38 = vadd.f32 %v994_v10, %v910_v52  ;;  %v893_v28 = vadd.f32 %v10527_v36, %v841_v12  ;;  %v683_v30 = vadd.f32 %v651_v44, %v529_v40  ;;  %v691_v50 = vadd.f32 %v659_v26, %v537_v16 }
 0x104   : > { %14486 = vst [vmem:[#allocation13_spill] sm:$0xff] %v10616_v22  ;;  %v917_v33 = vmax.f32 %v885_v3, 0.0  ;;  %v949_v9 = vmin.f32 %v885_v3, 0.0  ;;  %v526_v18 = vmul.f32 %v14474_v6, %v10383_v8  ;;  %v534_v5 = vmul.f32 %v14474_v6, %v10407_v23  ;;  %v11107_v19 = vpop.permute.xlu0 %1731 }
 0x105   : > { %14487 = vst [vmem:[#allocation55_spill] sm:$0xff] %v10618_v38  ;;  %v2111_v25 = vpack.c.bf16 %v10618_v38, %v10616_v22  ;;  %v925_v7 = vmax.f32 %v893_v28, 0.0  ;;  %v957_v45 = vmin.f32 %v893_v28, 0.0  ;;  %v835_v1 = vadd.f32 %v803_v55, %v683_v30  ;;  %8145 = vmatmul.mubr.msk.bf16.gmra.mrb[24].mxu1 %vm1784_vm8, %v10419_v59 }
 0x106   : > { %v1001_v53 = vmul.f32 %v10614_v32, %v949_v9  ;;  %v843_v52 = vadd.f32 %v811_v47, %v691_v50  ;;  %v648_v41 = vmul.f32 %v14475_v43, %v10399_v11  ;;  %v656_v34 = vmul.f32 %v14475_v43, %v10434_v58  ;;  %2078 = vmatprep.mubr.bf16.mxu1 %v14455_v35 }
 0x107   : > { %2271 = vmatpush1.bf16.msra.mxu1 %v2111_v25  ;;  %v1009_v46 = vmul.f32 %v10625_v31, %v957_v45  ;;  %v887_v63 = vadd.f32 %v10497_v57, %v835_v1  ;;  %v800_v59 = vmul.f32 %v14476_v15, %v10465_v14  ;;  %v808_v6 = vmul.f32 %v14476_v15, %v10469_v2 }
 0x108   : > { %v10640_v40 = vadd.f32 %v1001_v53, %v917_v33  ;;  %v895_v16 = vadd.f32 %v10527_v36, %v843_v52  ;;  %v680_v37 = vadd.f32 %v648_v41, %v526_v18  ;;  %v688_v3 = vadd.f32 %v656_v34, %v534_v5  ;;  %8142 = vmatmul.mubr.msk.bf16.gmra.mrb[28].mxu0 %vm1784_vm8, %v10459_v56  ;;  %v14492_v34 = vld [vmem:[#allocation32_spill] sm:$0xff] }
 0x109   : > { %v10646_v10 = vadd.f32 %v1009_v46, %v925_v7  ;;  %v919_v12 = vmax.f32 %v887_v63, 0.0  ;;  %v951_v44 = vmin.f32 %v887_v63, 0.0  ;;  %v528_v47 = vmul.f32 %v14477_v60, %v10383_v8  ;;  %2229 = vmatprep.mubr.bf16.mxu0 %v14455_v35 }
 0x10a   : > { %14488 = vst [vmem:[#allocation56_spill] sm:$0xff] %v10640_v40  ;;  %v927_v43 = vmax.f32 %v895_v16, 0.0  ;;  %v959_v26 = vmin.f32 %v895_v16, 0.0  ;;  %v832_v55 = vadd.f32 %v800_v59, %v680_v37  ;;  %v840_v30 = vadd.f32 %v808_v6, %v688_v3 }
 0x10b   : > { %14489 = vst [vmem:[#allocation8_spill] sm:$0xff] %v10646_v10  ;;  %v2118_v15 = vpack.c.bf16 %v10646_v10, %v10640_v40  ;;  %v1003_v28 = vmul.f32 %v10614_v32, %v951_v44  ;;  %v536_v33 = vmul.f32 %v14477_v60, %v10407_v23  ;;  %v650_v18 = vmul.f32 %v14479_v42, %v10399_v11  ;;  %v14493_v44 = vld [vmem:[#allocation38_spill] sm:$0xff] }
 0x10c   : > { %v1011_v9 = vmul.f32 %v10625_v31, %v959_v26  ;;  %v884_v50 = vadd.f32 %v10497_v57, %v832_v55  ;;  %v658_v25 = vmul.f32 %v14479_v42, %v10434_v58  ;;  %v892_v45 = vadd.f32 %v10527_v36, %v840_v30  ;;  %v14497_v30 = vld [vmem:[#allocation39_spill] sm:$0xff] }
 0x10d   : > { %2199 = vmatprep.subr.bf16.mxu0 %v2118_v15  ;;  %v10664_v7 = vadd.f32 %v1003_v28, %v919_v12  ;;  %v802_v1 = vmul.f32 %v14480_v61, %v10465_v14  ;;  %v810_v60 = vmul.f32 %v14480_v61, %v10469_v2  ;;  %v682_v41 = vadd.f32 %v650_v18, %v528_v47  ;;  %v10692_v47 = vld [vmem:[%s9519_s30 + $0x8] sm:$0xff] }
 0x10e   : > { %v10671_v53 = vadd.f32 %v1011_v9, %v927_v43  ;;  %v916_v52 = vmax.f32 %v884_v50, 0.0  ;;  %v948_v5 = vmin.f32 %v884_v50, 0.0  ;;  %8146 = vmatmul.mubr.msk.bf16.gmra.mrb[28].mxu1 %vm1784_vm8, %v10459_v56  ;;  %v924_v42 = vmax.f32 %v892_v45, 0.0  ;;  %v14495_v15 = vld [vmem:[#allocation3_spill] sm:$0xff] }
 0x10f   : > { %14490 = vst [vmem:[#allocation9_spill] sm:$0xff] %v10664_v7  ;;  %v956_v46 = vmin.f32 %v892_v45, 0.0  ;;  %v690_v63 = vadd.f32 %v658_v25, %v536_v33  ;;  %v515_v59 = vmul.f32 %v14492_v34, %v10336_v27  ;;  %2302 = vmatprep.mubr.bf16.mxu1 %v14455_v35  ;;  %v834_v37 = vadd.f32 %v802_v1, %v682_v41 }
 0x110   : > { %14491 = vst [vmem:[#allocation47_spill] sm:$0xff] %v10671_v53  ;;  %v2120_v61 = vpack.c.bf16 %v10671_v53, %v10664_v7  ;;  %v1000_v16 = vmul.f32 %v10614_v32, %v948_v5  ;;  %v523_v6 = vmul.f32 %v14492_v34, %v10299_v62  ;;  %v637_v3 = vmul.f32 %v14493_v44, %v10373_v0 }
 0x111   : > { %v1008_v56 = vmul.f32 %v10625_v31, %v956_v46  ;;  %v842_v12 = vadd.f32 %v810_v60, %v690_v63  ;;  %v645_v43 = vmul.f32 %v14493_v44, %v10325_v51  ;;  %v886_v55 = vadd.f32 %v10497_v57, %v834_v37  ;;  %v14499_v60 = vld [vmem:[#allocation6_spill] sm:$0xff] }
 0x112   : > { %2272 = vmatprep.subr.bf16.mxu1 %v2120_v61  ;;  %v10688_v26 = vadd.f32 %v1000_v16, %v916_v52  ;;  %v10696_v28 = vrot.slane %v10692_v47, %v14495_v15  ;;  %v517_v33 = vmul.f32 %v14497_v30, %v10336_v27  ;;  %v669_v18 = vadd.f32 %v637_v3, %v515_v59  ;;  %v14503_v15 = vld [vmem:[#allocation40_spill] sm:$0xff] }
 0x113   : > { %v10700_v9 = vadd.f32 %v1008_v56, %v924_v42  ;;  %v894_v50 = vadd.f32 %v10527_v36, %v842_v12  ;;  %v677_v25 = vadd.f32 %v645_v43, %v523_v6  ;;  %v918_v45 = vmax.f32 %v886_v55, 0.0  ;;  %v14500_v42 = vld [vmem:[#allocation51_spill] sm:$0xff]  ;;  %v10723_v56 = vld [vmem:[%s14044_s3] sm:$0xff]   ;;  %v14501_v43 = vld [vmem:[#allocation5_spill] sm:$0xff] }
 0x114   : > { %14494 = vst [vmem:[#allocation10_spill] sm:$0xff] %v10688_v26  ;;  %14496 = vst [vmem:[#allocation11_spill] sm:$0xff] %v10696_v28  ;;  %v950_v1 = vmin.f32 %v886_v55, 0.0  ;;  %v10705_v52 = vrot.slane %v10696_v28, %v14499_v60  ;;  %v525_v5 = vmul.f32 %v14497_v30, %v10299_v62  ;;  %v639_v61 = vmul.f32 %v14500_v42, %v10373_v0 }
 0x115   : > { %14498 = vst [vmem:[#allocation48_spill] sm:$0xff] %v10700_v9  ;;  %v2117_v41 = vpack.c.bf16 %v10700_v9, %v10688_v26  ;;  %v926_v46 = vmax.f32 %v894_v50, 0.0  ;;  %v958_v63 = vmin.f32 %v894_v50, 0.0  ;;  %v647_v6 = vmul.f32 %v14500_v42, %v10325_v51 }
 0x116   : > { %v1002_v59 = vmul.f32 %v10614_v32, %v950_v1  ;;  %v789_v16 = vmul.f32 %v10705_v52, %v10357_v20  ;;  %v797_v37 = vmul.f32 %v10705_v52, %v10430_v4  ;;  %v671_v3 = vadd.f32 %v639_v61, %v517_v33  ;;  %v14507_v61 = vld [vmem:[#allocation52_spill] sm:$0xff] }
 0x117   : > { %2200 = vmatpush1.bf16.msra.mxu0 %v2117_v41  ;;  %v1010_v12 = vmul.f32 %v10625_v31, %v958_v63  ;;  %v10728_v55 = vrot.slane %v10692_v47, %v14501_v43  ;;  %v514_v50 = vmul.f32 %v14503_v15, %v10336_v27  ;;  %v679_v10 = vadd.f32 %v647_v6, %v525_v5  ;;  %v14506_v63 = vld [vmem:[#allocation4_spill] sm:$0xff] }
 0x118   : > { %v10732_v1 = vadd.f32 %v1002_v59, %v918_v45  ;;  %v821_v28 = vadd.f32 %v789_v16, %v669_v18  ;;  %v829_v53 = vadd.f32 %v797_v37, %v677_v25  ;;  %v522_v33 = vmul.f32 %v14503_v15, %v10299_v62  ;;  %v14509_v25 = vld [vmem:[#allocation53_spill] sm:$0xff] }
 0x119   : > { %14502 = vst [vmem:[#allocation12_spill] sm:$0xff] %v10728_v55  ;;  %v10734_v9 = vadd.f32 %v1010_v12, %v926_v46  ;;  %v10738_v41 = vrot.slane %v10728_v55, %v14499_v60  ;;  %v10744_v43 = vrot.slane %v14507_v61, %v14506_v63  ;;  %v10752_v18 = vrot.slane %v10692_v47, %v14499_v60 }
 0x11a   : > { %14504 = vst [vmem:[#allocation49_spill] sm:$0xff] %v10732_v1  ;;  %v873_v7 = vadd.f32 %v10487_v21, %v821_v28  ;;  %v881_v45 = vadd.f32 %v10509_v29, %v829_v53  ;;  %8151 = vmatmul.mubr.msk.bf16.vlgmr.msra.gmra.mrb[32].mxu0 %vm1784_vm8, %v10723_v56  ;;  %v516_v5 = vmul.f32 %v14509_v25, %v10336_v27 }
 0x11b   : > { %14505 = vst [vmem:[#allocation14_spill] sm:$0xff] %v10734_v9  ;;  %14508 = vst [vmem:[#allocation50_spill] sm:$0xff] %v10752_v18  ;;  %v2119_v46 = vpack.c.bf16 %v10734_v9, %v10732_v1  ;;  %v791_v59 = vmul.f32 %v10738_v41, %v10357_v20  ;;  %v799_v28 = vmul.f32 %v10738_v41, %v10430_v4  ;;  %2239 = vmatprep.mubr.bf16.mxu0 %v14455_v35 }
 0x11c   : > { %v636_v53 = vmul.f32 %v10744_v43, %v10373_v0  ;;  %v905_v16 = vmax.f32 %v873_v7, 0.0  ;;  %v913_v37 = vmax.f32 %v881_v45, 0.0  ;;  %v937_v6 = vmin.f32 %v873_v7, 0.0  ;;  %v10778_v7 = vld [vmem:[%s14044_s3 + $0x8] sm:$0xff]  }
 0x11d   : > { %v945_v12 = vmin.f32 %v881_v45, 0.0  ;;  %2273 = vmatpush1.bf16.msra.mxu1 %v2119_v46  ;;  %v823_v27 = vadd.f32 %v791_v59, %v671_v3  ;;  %v831_v55 = vadd.f32 %v799_v28, %v679_v10  ;;  %v644_v61 = vmul.f32 %v10744_v43, %v10325_v51  ;;  %v14510_v45 = vld [vmem:[#allocation54_spill] sm:$0xff] }
 0x11e   : > { %v668_v9 = vadd.f32 %v636_v53, %v514_v50  ;;  %v989_v40 = vmul.f32 %v10544_v17, %v937_v6  ;;  %v10771_v26 = vrot.slane %v10752_v18, %v14499_v60  ;;  %v524_v39 = vmul.f32 %v14509_v25, %v10299_v62 }
 0x11f   : > { %v997_v1 = vmul.f32 %v10525_v54, %v945_v12  ;;  %v875_v10 = vadd.f32 %v10487_v21, %v823_v27  ;;  %v883_v3 = vadd.f32 %v10509_v29, %v831_v55  ;;  %v676_v50 = vadd.f32 %v644_v61, %v522_v33 }
 0x120   : > { %v10784_v46 = vrot.slane %v14510_v45, %v14506_v63  ;;  %v10786_v59 = vadd.f32 %v989_v40, %v905_v16  ;;  %8155 = vmatmul.mubr.msk.bf16.vlgmr.msra.gmra.mrb[32].mxu1 %vm1784_vm8, %v10723_v56  ;;  %v788_v62 = vmul.f32 %v10771_v26, %v10357_v20  ;;  %v796_v53 = vmul.f32 %v10771_v26, %v10430_v4 }
 0x121   : > { %v10788_v28 = vadd.f32 %v997_v1, %v913_v37  ;;  %v907_v6 = vmax.f32 %v875_v10, 0.0  ;;  %v915_v55 = vmax.f32 %v883_v3, 0.0  ;;  %v939_v33 = vmin.f32 %v875_v10, 0.0  ;;  %2312 = vmatprep.mubr.bf16.mxu1 %v14455_v35  ;;  %v14513_v10 = vld [vmem:[#allocation7_spill] sm:$0xff] }
 0x122   : > { %14511 = vst [vmem:[#allocation23_spill] sm:$0xff] %v10786_v59  ;;  %v947_v61 = vmin.f32 %v883_v3, 0.0  ;;  %v820_v1 = vadd.f32 %v788_v62, %v668_v9  ;;  %v828_v63 = vadd.f32 %v796_v53, %v676_v50  ;;  %v638_v16 = vmul.f32 %v10784_v46, %v10373_v0  ;;  %8152 = vmatmul.mubr.msk.bf16.gmra.mrb[36].mxu0 %vm1784_vm8, %v10778_v7 }
 0x123   : > { %14512 = vst [vmem:[#allocation29_spill] sm:$0xff] %v10788_v28  ;;  %v2114_v40 = vpack.c.bf16 %v10788_v28, %v10786_v59  ;;  %v991_v37 = vmul.f32 %v10544_v17, %v939_v33  ;;  %v646_v27 = vmul.f32 %v10784_v46, %v10325_v51  ;;  %v10809_v3 = vrot.slane %v10692_v47, %v14513_v10 }
 0x124   : > { %v999_v12 = vmul.f32 %v10525_v54, %v947_v61  ;;  %2249 = vmatprep.mubr.bf16.mxu0 %v14455_v35  ;;  %v872_v9 = vadd.f32 %v10487_v21, %v820_v1  ;;  %v880_v0 = vadd.f32 %v10509_v29, %v828_v63  ;;  %v670_v50 = vadd.f32 %v638_v16, %v516_v5 }
 0x125   : > { %14514 = vst [vmem:[#allocation33_spill] sm:$0xff] %v10809_v3  ;;  %2343 = vmatprep.subr.bf16.mxu0 %v2114_v40  ;;  %v531_v62 = vmul.f32 %v14492_v34, %v10383_v8  ;;  %v10816_v53 = vadd.f32 %v991_v37, %v907_v6  ;;  %v678_v51 = vadd.f32 %v646_v27, %v524_v39 }
 0x126   : > { %v10818_v33 = vadd.f32 %v999_v12, %v915_v55  ;;  %v10822_v47 = vrot.slane %v10809_v3, %v14499_v60  ;;  %v904_v61 = vmax.f32 %v872_v9, 0.0  ;;  %v912_v10 = vmax.f32 %v880_v0, 0.0  ;;  %v10835_v60 = vld [vmem:[%s14044_s3 + $0x10] sm:$0xff]  }
 0x127   : > { %14515 = vst [vmem:[#allocation25_spill] sm:$0xff] %v10816_v53  ;;  %v936_v40 = vmin.f32 %v872_v9, 0.0  ;;  %v944_v45 = vmin.f32 %v880_v0, 0.0  ;;  %v539_v39 = vmul.f32 %v14492_v34, %v10407_v23  ;;  %v653_v16 = vmul.f32 %v14493_v44, %v10399_v11 }
 0x128   : > { %14516 = vst [vmem:[#allocation30_spill] sm:$0xff] %v10818_v33  ;;  %v2116_v1 = vpack.c.bf16 %v10818_v33, %v10816_v53  ;;  %v790_v5 = vmul.f32 %v10822_v47, %v10357_v20  ;;  %v798_v6 = vmul.f32 %v10822_v47, %v10430_v4  ;;  %v661_v20 = vmul.f32 %v14493_v44, %v10434_v58 }
 0x129   : > { %v988_v55 = vmul.f32 %v10544_v17, %v936_v40  ;;  %v996_v63 = vmul.f32 %v10525_v54, %v944_v45  ;;  %8156 = vmatmul.mubr.msk.bf16.gmra.mrb[36].mxu1 %vm1784_vm8, %v10778_v7  ;;  %v805_v37 = vmul.f32 %v10705_v52, %v10465_v14  ;;  %v813_v12 = vmul.f32 %v10705_v52, %v10469_v2 }
 0x12a   : > { %2416 = vmatprep.subr.bf16.mxu1 %v2116_v1  ;;  %v822_v4 = vadd.f32 %v790_v5, %v670_v50  ;;  %v830_v34 = vadd.f32 %v798_v6, %v678_v51  ;;  %v685_v9 = vadd.f32 %v653_v16, %v531_v62  ;;  %v693_v0 = vadd.f32 %v661_v20, %v539_v39 }
 0x12b   : > { %v10849_v27 = vadd.f32 %v988_v55, %v904_v61  ;;  %v10851_v45 = vadd.f32 %v996_v63, %v912_v10  ;;  %2322 = vmatprep.mubr.bf16.mxu1 %v14455_v35  ;;  %v533_v50 = vmul.f32 %v14497_v30, %v10383_v8  ;;  %v541_v51 = vmul.f32 %v14497_v30, %v10407_v23 }
 0x12c   : > { %v874_v44 = vadd.f32 %v10487_v21, %v822_v4  ;;  %v882_v40 = vadd.f32 %v10509_v29, %v830_v34  ;;  %8153 = vmatmul.mubr.msk.bf16.gmra.mrb[40].mxu0 %vm1784_vm8, %v10835_v60  ;;  %v837_v62 = vadd.f32 %v805_v37, %v685_v9  ;;  %v845_v61 = vadd.f32 %v813_v12, %v693_v0  ;;  %v10880_v34 = vld [vmem:[%s14044_s3 + $0x18] sm:$0xff]  }
 0x12d   : > { %14517 = vst [vmem:[#allocation34_spill] sm:$0xff] %v10849_v27  ;;  %14518 = vst [vmem:[#allocation26_spill] sm:$0xff] %v10851_v45  ;;  %v2113_v52 = vpack.c.bf16 %v10851_v45, %v10849_v27  ;;  %v655_v10 = vmul.f32 %v14500_v42, %v10399_v11  ;;  %2259 = vmatprep.mubr.bf16.mxu0 %v14455_v35  ;;  %v663_v39 = vmul.f32 %v14500_v42, %v10434_v58 }
 0x12e   : > { %v906_v21 = vmax.f32 %v874_v44, 0.0  ;;  %v914_v29 = vmax.f32 %v882_v40, 0.0  ;;  %v938_v1 = vmin.f32 %v874_v44, 0.0  ;;  %v946_v5 = vmin.f32 %v882_v40, 0.0 }
 0x12f   : > { %2344 = vmatpush1.bf16.msra.mxu0 %v2113_v52  ;;  %v889_v30 = vadd.f32 %v10497_v57, %v837_v62  ;;  %v897_v6 = vadd.f32 %v10527_v36, %v845_v61  ;;  %v687_v55 = vadd.f32 %v655_v10, %v533_v50  ;;  %v807_v20 = vmul.f32 %v10738_v41, %v10465_v14 }
 0x130   : > { %v990_v63 = vmul.f32 %v10544_v17, %v938_v1  ;;  %v998_v16 = vmul.f32 %v10525_v54, %v946_v5  ;;  %v815_v4 = vmul.f32 %v10738_v41, %v10469_v2  ;;  %v695_v0 = vadd.f32 %v663_v39, %v541_v51 }
 0x131   : > { %v921_v37 = vmax.f32 %v889_v30, 0.0  ;;  %v929_v12 = vmax.f32 %v897_v6, 0.0  ;;  %v953_v9 = vmin.f32 %v889_v30, 0.0  ;;  %v961_v42 = vmin.f32 %v897_v6, 0.0  ;;  %8157 = vmatmul.mubr.msk.bf16.gmra.mrb[40].mxu1 %vm1784_vm8, %v10835_v60 }
 0x132   : > { %v10884_v17 = vadd.f32 %v990_v63, %v906_v21  ;;  %v10886_v54 = vadd.f32 %v998_v16, %v914_v29  ;;  %v839_v44 = vadd.f32 %v807_v20, %v687_v55  ;;  %2332 = vmatprep.mubr.bf16.mxu1 %v14455_v35  ;;  %v530_v50 = vmul.f32 %v14503_v15, %v10383_v8 }
 0x133   : > { %v1005_v41 = vmul.f32 %v10614_v32, %v953_v9  ;;  %v1013_v40 = vmul.f32 %v10625_v31, %v961_v42  ;;  %v538_v52 = vmul.f32 %v14503_v15, %v10407_v23  ;;  %v847_v61 = vadd.f32 %v815_v4, %v695_v0 }
 0x134   : > { %14519 = vst [vmem:[#allocation31_spill] sm:$0xff] %v10884_v17  ;;  %14520 = vst [vmem:[#allocation35_spill] sm:$0xff] %v10886_v54  ;;  %v2115_v62 = vpack.c.bf16 %v10886_v54, %v10884_v17  ;;  %v891_v10 = vadd.f32 %v10497_v57, %v839_v44  ;;  %v652_v51 = vmul.f32 %v10744_v43, %v10399_v11  ;;  %8154 = vmatmul.mubr.msk.bf16.gmra.mrb[44].mxu0 %vm1784_vm8, %v10880_v34 }
 0x135   : > { %v10902_v21 = vadd.f32 %v1005_v41, %v921_v37  ;;  %v10904_v29 = vadd.f32 %v1013_v40, %v929_v12  ;;  %v660_v1 = vmul.f32 %v10744_v43, %v10434_v58  ;;  %v804_v15 = vmul.f32 %v10771_v26, %v10465_v14  ;;  %2375 = vmatprep.mubr.bf16.mxu0 %v14455_v35 }
 0x136   : > { %2417 = vmatpush1.bf16.msra.mxu1 %v2115_v62  ;;  %v899_v5 = vadd.f32 %v10527_v36, %v847_v61  ;;  %v923_v30 = vmax.f32 %v891_v10, 0.0  ;;  %v955_v6 = vmin.f32 %v891_v10, 0.0  ;;  %v684_v39 = vadd.f32 %v652_v51, %v530_v50 }
 0x137   : > { %14521 = vst [vmem:[#allocation27_spill] sm:$0xff] %v10902_v21  ;;  %14522 = vst [vmem:[#allocation36_spill] sm:$0xff] %v10904_v29  ;;  %v2122_v55 = vpack.c.bf16 %v10904_v29, %v10902_v21  ;;  %v692_v63 = vadd.f32 %v660_v1, %v538_v52  ;;  %v812_v16 = vmul.f32 %v10771_v26, %v10469_v2 }
 0x138   : > { %v532_v43 = vmul.f32 %v14509_v25, %v10383_v8  ;;  %v931_v20 = vmax.f32 %v899_v5, 0.0  ;;  %v963_v4 = vmin.f32 %v899_v5, 0.0  ;;  %v1007_v37 = vmul.f32 %v10614_v32, %v955_v6 }
 0x139   : > { %v836_v12 = vadd.f32 %v804_v15, %v684_v39  ;;  %2345 = vmatprep.subr.bf16.mxu0 %v2122_v55  ;;  %v844_v9 = vadd.f32 %v812_v16, %v692_v63  ;;  %v540_v42 = vmul.f32 %v14509_v25, %v10407_v23  ;;  %v654_v0 = vmul.f32 %v10784_v46, %v10399_v11 }
 0x13a   : > { %v662_v44 = vmul.f32 %v10784_v46, %v10434_v58  ;;  %v1015_v26 = vmul.f32 %v10625_v31, %v963_v4  ;;  %v10926_v41 = vadd.f32 %v1007_v37, %v923_v30  ;;  %v806_v40 = vmul.f32 %v10822_v47, %v10465_v14  ;;  %8158 = vmatmul.mubr.msk.bf16.gmra.mrb[44].mxu1 %vm1784_vm8, %v10880_v34 }
 0x13b   : > { %v888_v8 = vadd.f32 %v10497_v57, %v836_v12  ;;  %v896_v23 = vadd.f32 %v10527_v36, %v844_v9  ;;  %v686_v25 = vadd.f32 %v654_v0, %v532_v43  ;;  %v814_v11 = vmul.f32 %v10822_v47, %v10469_v2  ;;  %2448 = vmatprep.mubr.bf16.mxu1 %v14455_v35 }
 0x13c   : > { %14523 = vst [vmem:[#allocation37_spill] sm:$0xff] %v10926_v41  ;;  %v694_v50 = vadd.f32 %v662_v44, %v540_v42  ;;  %v10937_v58 = vadd.f32 %v1015_v26, %v931_v20 }
 0x13d   : > { %v952_v46 = vmin.f32 %v888_v8, 0.0  ;;  %v960_v52 = vmin.f32 %v896_v23, 0.0  ;;  %v838_v62 = vadd.f32 %v806_v40, %v686_v25  ;;  %v920_v10 = vmax.f32 %v888_v8, 0.0 }
 0x13e   : > { %14524 = vst [vmem:[#allocation32_spill] sm:$0xff] %v10937_v58  ;;  %v846_v61 = vadd.f32 %v814_v11, %v694_v50  ;;  %v2124_v14 = vpack.c.bf16 %v10937_v58, %v10926_v41  ;;  %v928_v1 = vmax.f32 %v896_v23, 0.0 }
 0x13f   : > { %v1004_v51 = vmul.f32 %v10614_v32, %v952_v46  ;;  %v1012_v15 = vmul.f32 %v10625_v31, %v960_v52  ;;  %v890_v5 = vadd.f32 %v10497_v57, %v838_v62 }
 0x140   : > { %v898_v2 = vadd.f32 %v10527_v36, %v846_v61  ;;  %2418 = vmatprep.subr.bf16.mxu1 %v2124_v14 }
 0x141   : > { %v10945_v47 = vadd.f32 %v1004_v51, %v920_v10  ;;  %v10947_v30 = vadd.f32 %v1012_v15, %v928_v1  ;;  %v954_v6 = vmin.f32 %v890_v5, 0.0  ;;  %v922_v63 = vmax.f32 %v890_v5, 0.0 }
 0x142   : > { %v962_v39 = vmin.f32 %v898_v2, 0.0  ;;  %v930_v43 = vmax.f32 %v898_v2, 0.0 }
 0x143   : > { %14525 = vst [vmem:[#allocation38_spill] sm:$0xff] %v10945_v47  ;;  %14526 = vst [vmem:[#allocation3_spill] sm:$0xff] %v10947_v30  ;;  %v2121_v55 = vpack.c.bf16 %v10947_v30, %v10945_v47  ;;  %v1006_v16 = vmul.f32 %v10614_v32, %v954_v6 }
 0x144   : > { %v1014_v20 = vmul.f32 %v10625_v31, %v962_v39 }
 0x145   : > { %2346 = vmatpush1.bf16.msra.mxu0 %v2121_v55  ;;  %v10953_v57 = vadd.f32 %v1006_v16, %v922_v63 }
 0x146   : > { %v10955_v36 = vadd.f32 %v1014_v20, %v930_v43 }
 0x147   : > { %14527 = vst [vmem:[#allocation39_spill] sm:$0xff] %v10953_v57 }
 0x148   : > { %14528 = vst [vmem:[#allocation6_spill] sm:$0xff] %v10955_v36  ;;  %v2123_v4 = vpack.c.bf16 %v10955_v36, %v10953_v57  ;;  %8159 = vmatmul.mubr.msk.bf16.vlgmr.msra.gmra.mrb[48].mxu0 %vm1784_vm8, %v10723_v56 }
 0x149   : > { %2385 = vmatprep.mubr.bf16.mxu0 %v14455_v35 }
 0x14a   : > { %2419 = vmatpush1.bf16.msra.mxu1 %v2123_v4 }
 0x14d   : > { %8163 = vmatmul.mubr.msk.bf16.vlgmr.msra.gmra.mrb[48].mxu1 %vm1784_vm8, %v10723_v56 }
 0x14e   : > { %2458 = vmatprep.mubr.bf16.mxu1 %v14455_v35 }
 0x150   : > { %8160 = vmatmul.mubr.msk.bf16.gmra.mrb[52].mxu0 %vm1784_vm8, %v10778_v7 }
 0x151   : > { %2395 = vmatprep.mubr.bf16.mxu0 %v14455_v35 }
 0x155   : > { %8164 = vmatmul.mubr.msk.bf16.gmra.mrb[52].mxu1 %vm1784_vm8, %v10778_v7 }
 0x156   : > { %2468 = vmatprep.mubr.bf16.mxu1 %v14455_v35 }
 0x158   : > { %8161 = vmatmul.mubr.msk.bf16.gmra.mrb[56].mxu0 %vm1784_vm8, %v10835_v60 }
 0x159   : > { %2405 = vmatprep.mubr.bf16.mxu0 %v14455_v35 }
 0x15d   : > { %8165 = vmatmul.mubr.msk.bf16.gmra.mrb[56].mxu1 %vm1784_vm8, %v10835_v60 }
 0x15e   : > { %2478 = vmatprep.mubr.bf16.mxu1 %v14455_v35 }
 0x160   : > { %8162 = vmatmul.mubr.msk.bf16.gmra.mrb[60].mxu0 %vm1784_vm8, %v10880_v34 }
 0x161   : > { %2897 = vmatprep.mubr.bf16.mxu0 %v14455_v35 }
 0x165   : > { %8166 = vmatmul.mubr.msk.bf16.gmra.mrb[60].mxu1 %vm1784_vm8, %v10880_v34 }
 0x166   : > { %2950 = vmatprep.mubr.bf16.mxu1 %v14455_v35 }
 0x1a2   : > { %v10983_v32 = vpop.f32.mrb[0].mxu0  ;;  %v10985_v31 = vpop.f32.mrb[0].mxu1 }
 0x1a3   : > { %v10987_v56 = vpop.f32.mrb[1].mxu0  ;;  %v10989_v7 = vpop.f32.mrb[1].mxu1 }
 0x1a4   : > { %v10991_v60 = vpop.f32.mrb[2].mxu0  ;;  %v10993_v37 = vpop.f32.mrb[2].mxu1 }
 0x1a5   : > { %v10995_v12 = vpop.f32.mrb[3].mxu0  ;;  %v10997_v9 = vpop.f32.mrb[3].mxu1  ;;  %v11135_v35 = vadd.f32 %v10991_v60, %v11107_v19 }
 0x1a7   : > { %14554 = vst [vmem:[#allocation76_spill] sm:$0xff] %v11135_v35 }
 0x1aa   : > { %v10999_v42 = vpop.f32.mrb[4].mxu0 }
 0x1ab   : > { %v11001_v34 = vpop.f32.mrb[4].mxu1  ;;  %v11003_v0 = vpop.f32.mrb[5].mxu0 }
 0x1ac   : > { %v11005_v44 = vpop.f32.mrb[5].mxu1  ;;  %v11007_v26 = vpop.f32.mrb[6].mxu0 }
 0x1ad   : > { %v11009_v8 = vpop.f32.mrb[6].mxu1  ;;  %v11011_v40 = vpop.f32.mrb[7].mxu0 }
 0x1ae   : > { %v11013_v23 = vpop.f32.mrb[7].mxu1 }
 0x1b2   : > { %v11015_v25 = vpop.f32.mrb[8].mxu0 }
 0x1b3   : > { %v11017_v50 = vpop.f32.mrb[8].mxu1  ;;  %v11019_v11 = vpop.f32.mrb[9].mxu0 }
 0x1b4   : > { %v11021_v46 = vpop.f32.mrb[9].mxu1  ;;  %v11023_v52 = vpop.f32.mrb[10].mxu0 }
 0x1b5   : > { %v11025_v62 = vpop.f32.mrb[10].mxu1  ;;  %v11027_v61 = vpop.f32.mrb[11].mxu0 }
 0x1b6   : > { %v11029_v14 = vpop.f32.mrb[11].mxu1 }
 0x1ba   : > { %v11031_v10 = vpop.f32.mrb[12].mxu0 }
 0x1bb   : > { %v11033_v51 = vpop.f32.mrb[12].mxu1  ;;  %v11035_v1 = vpop.f32.mrb[13].mxu0 }
 0x1bc   : > { %v11037_v15 = vpop.f32.mrb[13].mxu1  ;;  %v11039_v5 = vpop.f32.mrb[14].mxu0 }
 0x1bd   : > { %v11041_v2 = vpop.f32.mrb[14].mxu1  ;;  %v11043_v6 = vpop.f32.mrb[15].mxu0 }
 0x1be   : > { %v11045_v39 = vpop.f32.mrb[15].mxu1 }
 0x1c2   : > { %v11047_v55 = vpop.f32.mrb[16].mxu0 }
 0x1c3   : > { %v11049_v63 = vpop.f32.mrb[17].mxu0 }
 0x1c4   : > { %v11051_v16 = vpop.f32.mrb[18].mxu0 }
 0x1c5   : > { %v11053_v43 = vpop.f32.mrb[19].mxu0 }
 0x1c8   : > { %v11055_v20 = vpop.f32.mrb[16].mxu1 }
 0x1c9   : > { %v11057_v4 = vpop.f32.mrb[17].mxu1 }
 0x1ca   : > { %v11059_v3 = vpop.f32.mrb[18].mxu1  ;;  %v11061_v18 = vpop.f32.mrb[20].mxu0 }
 0x1cb   : > { %v11063_v58 = vpop.f32.mrb[19].mxu1  ;;  %v11065_v29 = vpop.f32.mrb[21].mxu0 }
 0x1cc   : > { %v11067_v36 = vpop.f32.mrb[22].mxu0 }
 0x1cd   : > { %14529 = vst [vmem:[#allocation51_spill] sm:$0xff] %v11067_v36  ;;  %v11069_v30 = vpop.f32.mrb[23].mxu0 }
 0x1ce   : > { %14530 = vst [vmem:[#allocation5_spill] sm:$0xff] %v11069_v30 }
 0x1d0   : > { %v11071_v41 = vpop.f32.mrb[20].mxu1 }
 0x1d1   : > { %14531 = vst [vmem:[#allocation40_spill] sm:$0xff] %v11071_v41  ;;  %v11073_v21 = vpop.f32.mrb[21].mxu1 }
 0x1d2   : > { %14532 = vst [vmem:[#allocation4_spill] sm:$0xff] %v11073_v21  ;;  %v11075_v57 = vpop.f32.mrb[22].mxu1  ;;  %v11077_v47 = vpop.f32.mrb[24].mxu0 }
 0x1d3   : > { %14533 = vst [vmem:[#allocation53_spill] sm:$0xff] %v11075_v57  ;;  %14534 = vst [vmem:[#allocation7_spill] sm:$0xff] %v11077_v47  ;;  %v11079_v33 = vpop.f32.mrb[23].mxu1  ;;  %v11081_v28 = vpop.f32.mrb[25].mxu0  ;;  %v11162_v57 = vadd.f32 %v10997_v9, %v11107_v19 }
 0x1d4   : > { %14535 = vst [vmem:[#allocation57_spill] sm:$0xff] %v11079_v33  ;;  %14536 = vst [vmem:[#allocation58_spill] sm:$0xff] %v11081_v28  ;;  %v11083_v54 = vpop.f32.mrb[26].mxu0 }
 0x1d5   : > { %14537 = vst [vmem:[#allocation59_spill] sm:$0xff] %v11083_v54  ;;  %v11085_v45 = vpop.f32.mrb[27].mxu0  ;;  %14559 = vst [vmem:[#allocation81_spill] sm:$0xff] %v11162_v57 }
 0x1d6   : > { %14538 = vst [vmem:[#allocation60_spill] sm:$0xff] %v11085_v45 }
 0x1d8   : > { %v11087_v53 = vpop.f32.mrb[24].mxu1 }
 0x1d9   : > { %14539 = vst [vmem:[#allocation61_spill] sm:$0xff] %v11087_v53  ;;  %v11089_v59 = vpop.f32.mrb[25].mxu1 }
 0x1da   : > { %14540 = vst [vmem:[#allocation62_spill] sm:$0xff] %v11089_v59  ;;  %v11091_v17 = vpop.f32.mrb[26].mxu1 }
 0x1db   : > { %14541 = vst [vmem:[#allocation63_spill] sm:$0xff] %v11091_v17  ;;  %v11093_v27 = vpop.f32.mrb[27].mxu1  ;;  %v11095_v24 = vpop.f32.mrb[28].mxu0 }
 0x1dc   : > { %14542 = vst [vmem:[#allocation64_spill] sm:$0xff] %v11093_v27  ;;  %14543 = vst [vmem:[#allocation65_spill] sm:$0xff] %v11095_v24  ;;  %v11097_v38 = vpop.f32.mrb[29].mxu0  ;;  %v11115_v27 = vpop.permute.xlu1 %2127 }
 0x1dd   : > { %14544 = vst [vmem:[#allocation66_spill] sm:$0xff] %v11097_v38  ;;  %v11099_v49 = vpop.f32.mrb[30].mxu0  ;;  %14551 = vst [vmem:[#allocation73_spill] sm:$0xff] %v11115_v27  ;;  %v11117_v24 = vpop.permute.xlu0 %2132 }
 0x1de   : > { %14545 = vst [vmem:[#allocation67_spill] sm:$0xff] %v11099_v49  ;;  %v11103_v48 = vpop.f32.mrb[31].mxu0 }
 0x1df   : > { %14546 = vst [vmem:[#allocation68_spill] sm:$0xff] %v11103_v48  ;;  %v11125_v48 = vadd.f32 %v10983_v32, %v11101_v13 }
 0x1e0   : > { %v11119_v38 = vpop.permute.xlu1 %1736 }
 0x1e1   : > { %v11105_v22 = vpop.f32.mrb[28].mxu1  ;;  %v11121_v59 = vpop.permute.xlu0 %1741  ;;  %14552 = vst [vmem:[#allocation74_spill] sm:$0xff] %v11125_v48 }
 0x1e2   : > { %14547 = vst [vmem:[#allocation69_spill] sm:$0xff] %v11105_v22  ;;  %v11109_v45 = vpop.f32.mrb[29].mxu1 }
 0x1e3   : > { %14548 = vst [vmem:[#allocation70_spill] sm:$0xff] %v11109_v45  ;;  %v11111_v54 = vpop.f32.mrb[30].mxu1 }
 0x1e4   : > { %14549 = vst [vmem:[#allocation71_spill] sm:$0xff] %v11111_v54  ;;  %v11113_v17 = vpop.f32.mrb[31].mxu1  ;;  %v11130_v54 = vadd.f32 %v10987_v56, %v11101_v13  ;;  %v11139_v33 = vpop.permute.xlu1 %2137  ;;  %v11147_v56 = vadd.f32 %v10995_v12, %v11107_v19 }
 0x1e5   : > { %14550 = vst [vmem:[#allocation72_spill] sm:$0xff] %v11113_v17 }
 0x1e6   : > { %14553 = vst [vmem:[#allocation75_spill] sm:$0xff] %v11130_v54  ;;  %14556 = vst [vmem:[#allocation78_spill] sm:$0xff] %v11147_v56 }
 0x1ed   : > { %v2231_v49 = vpop.f32.mrb[32].mxu0 }
 0x1ee   : > { %v2232_v22 = vadd.f32 %v2231_v49, %v11115_v27  ;;  %v2233_v45 = vpop.f32.mrb[33].mxu0  ;;  %v11143_v49 = vadd.f32 %v10985_v31, %v11101_v13 }
 0x1ef   : > { %v2234_v17 = vadd.f32 %v2233_v45, %v11115_v27  ;;  %v2235_v28 = vpop.f32.mrb[34].mxu0 }
 0x1f0   : > { %v2489_v53 = vadd.f32 %v2232_v22, %v11125_v48  ;;  %v2236_v47 = vadd.f32 %v2235_v28, %v11117_v24  ;;  %v2237_v32 = vpop.f32.mrb[35].mxu0  ;;  %14555 = vst [vmem:[#allocation77_spill] sm:$0xff] %v11143_v49  ;;  %v11153_v22 = vadd.f32 %v10989_v7, %v11101_v13  ;;  %v11157_v28 = vadd.f32 %v10993_v37, %v11107_v19 }
 0x1f1   : > { %v2490_v45 = vadd.f32 %v2234_v17, %v11130_v54  ;;  %v2238_v60 = vadd.f32 %v2237_v32, %v11117_v24  ;;  %v11166_v17 = vadd.f32 %v10999_v42, %v11119_v38  ;;  %v11169_v54 = vpop.permute.xlu0 %2142  ;;  %v11173_v37 = vadd.f32 %v11003_v0, %v11119_v38 }
 0x1f2   : > { %14557 = vst [vmem:[#allocation79_spill] sm:$0xff] %v11153_v22  ;;  %14558 = vst [vmem:[#allocation80_spill] sm:$0xff] %v11157_v28  ;;  %v8167_v48 = vmul.f32 -1.442695, %v2489_v53  ;;  %v2497_v31 = vadd.f32 %v2236_v47, %v11135_v35  ;;  %v11178_v35 = vadd.f32 %v11007_v26, %v11121_v59 }
 0x1f3   : > { %14560 = vst [vmem:[#allocation82_spill] sm:$0xff] %v11166_v17  ;;  %v2304_v12 = vpop.f32.mrb[32].mxu1  ;;  %v8168_v32 = vmul.f32 -1.442695, %v2490_v45  ;;  %v2498_v7 = vadd.f32 %v2238_v60, %v11147_v56  ;;  %14561 = vst [vmem:[#allocation83_spill] sm:$0xff] %v11169_v54 }
 0x1f4   : > { %14562 = vst [vmem:[#allocation84_spill] sm:$0xff] %v11173_v37  ;;  %8513 = vpow2.f32 %v8167_v48  ;;  %v2305_v53 = vadd.f32 %v2304_v12, %v11115_v27  ;;  %v2306_v47 = vpop.f32.mrb[33].mxu1  ;;  %v8175_v9 = vmul.f32 -1.442695, %v2497_v31  ;;  %14563 = vst [vmem:[#allocation85_spill] sm:$0xff] %v11178_v35  ;;  %v11184_v31 = vpop.permute.xlu1 %1746 }
 0x1f5   : > { %8515 = vpow2.f32 %v8168_v32  ;;  %v2307_v42 = vadd.f32 %v2306_v47, %v11115_v27  ;;  %v2308_v45 = vpop.f32.mrb[34].mxu1  ;;  %v8176_v60 = vmul.f32 -1.442695, %v2498_v7  ;;  %v2241_v56 = vpop.f32.mrb[36].mxu0  ;;  %14564 = vst [vmem:[#allocation86_spill] sm:$0xff] %v11184_v31 }
 0x1f6   : > { %v2491_v30 = vadd.f32 %v2305_v53, %v11143_v49  ;;  %8517 = vpow2.f32 %v8175_v9  ;;  %v2309_v0 = vadd.f32 %v2308_v45, %v11117_v24  ;;  %v2310_v48 = vpop.f32.mrb[35].mxu1  ;;  %v2242_v12 = vadd.f32 %v2241_v56, %v11139_v33  ;;  %v2243_v21 = vpop.f32.mrb[37].mxu0 }
 0x1f7   : > { %v2492_v26 = vadd.f32 %v2307_v42, %v11153_v22  ;;  %8519 = vpow2.f32 %v8176_v60  ;;  %v2311_v32 = vadd.f32 %v2310_v48, %v11117_v24  ;;  %v2244_v47 = vadd.f32 %v2243_v21, %v11139_v33  ;;  %v2245_v7 = vpop.f32.mrb[38].mxu0  ;;  %v11195_v21 = vpop.permute.xlu0 %1751 }
 0x1f8   : > { %v8169_v27 = vmul.f32 -1.442695, %v2491_v30  ;;  %v2499_v53 = vadd.f32 %v2309_v0, %v11157_v28  ;;  %v2505_v9 = vadd.f32 %v2242_v12, %v11166_v17  ;;  %v2246_v45 = vadd.f32 %v2245_v7, %v11169_v54  ;;  %v2247_v49 = vpop.f32.mrb[39].mxu0  ;;  %14565 = vst [vmem:[#allocation87_spill] sm:$0xff] %v11195_v21 }
 0x1f9   : > { %v8170_v56 = vmul.f32 -1.442695, %v2492_v26  ;;  %v2500_v41 = vadd.f32 %v2311_v32, %v11162_v57  ;;  %v2506_v36 = vadd.f32 %v2244_v47, %v11173_v37  ;;  %v11199_v12 = vadd.f32 %v11001_v34, %v11119_v38 }
 0x1fa   : > { %8521 = vpow2.f32 %v8169_v27  ;;  %v8177_v42 = vmul.f32 -1.442695, %v2499_v53  ;;  %v8183_v60 = vmul.f32 -1.442695, %v2505_v9  ;;  %v2513_v48 = vadd.f32 %v2246_v45, %v11178_v35  ;;  %v11202_v27 = vpop.permute.xlu1 %2147 }
 0x1fb   : > { %8523 = vpow2.f32 %v8170_v56  ;;  %v8178_v30 = vmul.f32 -1.442695, %v2500_v41  ;;  %v8184_v28 = vmul.f32 -1.442695, %v2506_v36  ;;  %14566 = vst [vmem:[#allocation88_spill] sm:$0xff] %v11199_v12  ;;  %v11206_v7 = vadd.f32 %v11005_v44, %v11119_v38 }
 0x1fc   : > { %v2314_v0 = vpop.f32.mrb[36].mxu1  ;;  %8525 = vpow2.f32 %v8177_v42  ;;  %v8191_v47 = vmul.f32 -1.442695, %v2513_v48  ;;  %v11210_v41 = vadd.f32 %v11009_v8, %v11121_v59  ;;  %v11215_v9 = vadd.f32 %v11011_v40, %v11121_v59 }
 0x1fd   : > { %v2315_v26 = vadd.f32 %v2314_v0, %v11139_v33  ;;  %v2316_v32 = vpop.f32.mrb[37].mxu1  ;;  %14567 = vst [vmem:[#allocation89_spill] sm:$0xff] %v11206_v7  ;;  %8527 = vpow2.f32 %v8178_v30  ;;  %v11219_v45 = vadd.f32 %v11013_v23, %v11121_v59  ;;  %v11226_v48 = vadd.f32 %v11015_v25, %v11184_v31 }
 0x1fe   : > { %14568 = vst [vmem:[#allocation90_spill] sm:$0xff] %v11210_v41  ;;  %v2317_v36 = vadd.f32 %v2316_v32, %v11139_v33  ;;  %v2318_v34 = vpop.f32.mrb[38].mxu1  ;;  %v8514_v53 = vpop.eup %8513  ;;  %14569 = vst [vmem:[#allocation91_spill] sm:$0xff] %v11215_v9  ;;  %8529 = vpow2.f32 %v8183_v60  ;;  %v11233_v23 = vadd.f32 %v11017_v50, %v11184_v31  ;;  %v11237_v60 = vadd.f32 %v11019_v11, %v11184_v31 }
 0x1ff   : > { %14570 = vst [vmem:[#allocation92_spill] sm:$0xff] %v11219_v45  ;;  %v2507_v44 = vadd.f32 %v2315_v26, %v11199_v12  ;;  %v2320_v56 = vpop.f32.mrb[39].mxu1  ;;  %v11222_v42 = vpop.f32.mrb[40].mxu0  ;;  %14571 = vst [vmem:[#allocation93_spill] sm:$0xff] %v11226_v48  ;;  %v2649_v30 = vadd.f32 1.0, %v8514_v53  ;;  %8531 = vpow2.f32 %v8184_v28  ;;  %v11245_v28 = vadd.f32 %v11021_v46, %v11184_v31 }
 0x200   : > { %v8516_v8 = vpop.eup %8515  ;;  %v2508_v40 = vadd.f32 %v2317_v36, %v11206_v7  ;;  %v11229_v0 = vpop.f32.mrb[41].mxu0  ;;  %14572 = vst [vmem:[#allocation94_spill] sm:$0xff] %v11233_v23  ;;  %14573 = vst [vmem:[#allocation95_spill] sm:$0xff] %v11237_v60  ;;  %8533 = vpow2.f32 %v8191_v47  ;;  %v11252_v47 = vadd.f32 %v11023_v52, %v11195_v21  ;;  %v11256_v37 = vadd.f32 %v11025_v62, %v11195_v21 }
 0x201   : > { %v8518_v32 = vpop.eup %8517  ;;  %v2650_v26 = vadd.f32 1.0, %v8516_v8  ;;  %v11239_v35 = vpop.f32.mrb[42].mxu0  ;;  %14574 = vst [vmem:[#allocation96_spill] sm:$0xff] %v11245_v28  ;;  %8535 = vrcp.f32 %v2649_v30  ;;  %v8185_v7 = vmul.f32 -1.442695, %v2507_v44  ;;  %v2319_v8 = vadd.f32 %v2318_v34, %v11169_v54 }
 0x202   : > { %v8520_v25 = vpop.eup %8519  ;;  %v11241_v53 = vpop.permute.xlu0 %2152  ;;  %v2657_v36 = vadd.f32 1.0, %v8518_v32  ;;  %v8186_v11 = vmul.f32 -1.442695, %v2508_v40  ;;  %14575 = vst [vmem:[#allocation97_spill] sm:$0xff] %v11252_v47  ;;  %14576 = vst [vmem:[#allocation98_spill] sm:$0xff] %v11256_v37  ;;  %v2248_v46 = vadd.f32 %v2247_v49, %v11169_v54  ;;  %v11263_v40 = vadd.f32 %v11027_v61, %v11195_v21 }
 0x203   : > { %v11247_v50 = vpop.f32.mrb[43].mxu0  ;;  %8537 = vrcp.f32 %v2650_v26  ;;  %v2658_v12 = vadd.f32 1.0, %v8520_v25  ;;  %v11259_v32 = vpop.permute.xlu1 %1756  ;;  %v11267_v34 = vadd.f32 %v11029_v14, %v11195_v21  ;;  %v2321_v52 = vadd.f32 %v2320_v56, %v11169_v54 }
 0x204   : > { %8539 = vrcp.f32 %v2657_v36  ;;  %v2324_v30 = vpop.f32.mrb[40].mxu1  ;;  %v8522_v44 = vpop.eup %8521  ;;  %14577 = vst [vmem:[#allocation99_spill] sm:$0xff] %v11259_v32  ;;  %14578 = vst [vmem:[#allocation100_spill] sm:$0xff] %v11263_v40  ;;  %v11272_v49 = vadd.f32 %v11031_v10, %v11259_v32  ;;  %v11276_v25 = vadd.f32 %v11033_v51, %v11259_v32  ;;  %v11282_v14 = vadd.f32 %v11035_v1, %v11259_v32 }
 0x205   : > { %14579 = vst [vmem:[#allocation101_spill] sm:$0xff] %v11267_v34  ;;  %8541 = vrcp.f32 %v2658_v12  ;;  %v2326_v62 = vpop.f32.mrb[41].mxu1  ;;  %v8524_v26 = vpop.eup %8523  ;;  %v2651_v36 = vadd.f32 1.0, %v8522_v44  ;;  %v2515_v56 = vadd.f32 %v2319_v8, %v11210_v41  ;;  %v2514_v1 = vadd.f32 %v2248_v46, %v11215_v9 }
 0x206   : > { %14580 = vst [vmem:[#allocation102_spill] sm:$0xff] %v11272_v49  ;;  %14581 = vst [vmem:[#allocation103_spill] sm:$0xff] %v11276_v25  ;;  %8543 = vpow2.f32 %v8185_v7  ;;  %v11278_v61 = vpop.f32.mrb[42].mxu1  ;;  %v8526_v17 = vpop.eup %8525  ;;  %v2652_v12 = vadd.f32 1.0, %v8524_v26  ;;  %v11293_v7 = vadd.f32 %v11037_v15, %v11259_v32  ;;  %v2516_v41 = vadd.f32 %v2321_v52, %v11219_v45 }
 0x207   : > { %14582 = vst [vmem:[#allocation104_spill] sm:$0xff] %v11282_v14  ;;  %8545 = vpow2.f32 %v8186_v11  ;;  %v11285_v57 = vpop.f32.mrb[43].mxu1  ;;  %v11287_v10 = vpop.f32.mrb[44].mxu0  ;;  %v2659_v44 = vadd.f32 1.0, %v8526_v17  ;;  %v2252_v46 = vadd.f32 %v11222_v42, %v11202_v27  ;;  %v11327_v9 = vadd.f32 %v11047_v55, %v11101_v13 }
 0x208   : > { %v8528_v22 = vpop.eup %8527  ;;  %v11289_v51 = vpop.permute.xlu0 %1761  ;;  %14584 = vst [vmem:[#allocation106_spill] sm:$0xff] %v11293_v7  ;;  %8547 = vrcp.f32 %v2651_v36 }
 0x209   : > { %14583 = vst [vmem:[#allocation105_spill] sm:$0xff] %v11289_v51  ;;  %v11296_v21 = vpop.f32.mrb[45].mxu0  ;;  %v8530_v11 = vpop.eup %8529  ;;  %v11300_v8 = vadd.f32 %v11039_v5, %v11289_v51  ;;  %8549 = vrcp.f32 %v2652_v12  ;;  %v2660_v26 = vadd.f32 1.0, %v8528_v22  ;;  %v11307_v15 = vadd.f32 %v11041_v2, %v11289_v51  ;;  %14589 = vst [vmem:[#allocation111_spill] sm:$0xff] %v11327_v9 }
 0x20a   : > { %v11303_v31 = vpop.f32.mrb[46].mxu0  ;;  %v8532_v54 = vpop.eup %8531  ;;  %8551 = vrcp.f32 %v2659_v44  ;;  %v2665_v17 = vadd.f32 1.0, %v8530_v11  ;;  %v11315_v22 = vadd.f32 %v11043_v6, %v11289_v51  ;;  %v8193_v12 = vmul.f32 -1.442695, %v2515_v56 }
 0x20b   : > { %14585 = vst [vmem:[#allocation107_spill] sm:$0xff] %v11300_v8  ;;  %14586 = vst [vmem:[#allocation108_spill] sm:$0xff] %v11307_v15  ;;  %v11311_v36 = vpop.f32.mrb[47].mxu0  ;;  %v8534_v5 = vpop.eup %8533  ;;  %8553 = vrcp.f32 %v2660_v26  ;;  %v2666_v52 = vadd.f32 1.0, %v8532_v54  ;;  %v11321_v2 = vadd.f32 %v11045_v39, %v11289_v51  ;;  %v8192_v11 = vmul.f32 -1.442695, %v2514_v1 }
 0x20c   : > { %14587 = vst [vmem:[#allocation109_spill] sm:$0xff] %v11315_v22  ;;  %v11317_v45 = vpop.eup %8535  ;;  %8555 = vrcp.f32 %v2665_v17  ;;  %v2673_v44 = vadd.f32 1.0, %v8534_v5  ;;  %v8194_v6 = vmul.f32 -1.442695, %v2516_v41  ;;  %v2325_v54 = vadd.f32 %v2324_v30, %v11202_v27 }
 0x20d   : > { %14588 = vst [vmem:[#allocation110_spill] sm:$0xff] %v11321_v2  ;;  %v11323_v42 = vpop.eup %8537  ;;  %8557 = vrcp.f32 %v2666_v52  ;;  %v2334_v56 = vpop.f32.mrb[44].mxu1  ;;  %v11334_v39 = vadd.f32 %v11049_v63, %v11101_v13  ;;  %v2521_v1 = vadd.f32 %v2252_v46, %v11226_v48  ;;  %v2254_v17 = vadd.f32 %v11229_v0, %v11202_v27 }
 0x20e   : > { %v11330_v26 = vpop.eup %8539  ;;  %8559 = vrcp.f32 %v2673_v44  ;;  %v2336_v5 = vpop.f32.mrb[45].mxu1  ;;  %v11343_v41 = vadd.f32 %v11051_v16, %v11107_v19  ;;  %v11347_v30 = vadd.f32 %v11053_v43, %v11107_v19  ;;  %v2327_v63 = vadd.f32 %v2326_v62, %v11202_v27 }
 0x20f   : > { %14590 = vst [vmem:[#allocation112_spill] sm:$0xff] %v11334_v39  ;;  %v11339_v55 = vpop.eup %8541  ;;  %8561 = vpow2.f32 %v8193_v12  ;;  %v2338_v52 = vpop.f32.mrb[46].mxu1  ;;  %v11352_v46 = vadd.f32 %v11055_v20, %v11101_v13  ;;  %v11356_v0 = vadd.f32 %v11057_v4, %v11101_v13  ;;  %v2256_v16 = vadd.f32 %v11239_v35, %v11241_v53 }
 0x210   : > { %14591 = vst [vmem:[#allocation113_spill] sm:$0xff] %v11343_v41  ;;  %14592 = vst [vmem:[#allocation114_spill] sm:$0xff] %v11347_v30  ;;  %v8544_v44 = vpop.eup %8543  ;;  %8563 = vpow2.f32 %v8192_v11  ;;  %v2340_v48 = vpop.f32.mrb[47].mxu1  ;;  %v2523_v62 = vadd.f32 %v2325_v54, %v11233_v23  ;;  %v2329_v12 = vadd.f32 %v11278_v61, %v11241_v53  ;;  %v2522_v13 = vadd.f32 %v2254_v17, %v11237_v60 }
 0x211   : > { %14593 = vst [vmem:[#allocation115_spill] sm:$0xff] %v11352_v46  ;;  %14594 = vst [vmem:[#allocation116_spill] sm:$0xff] %v11356_v0  ;;  %v8546_v43 = vpop.eup %8545  ;;  %v2667_v51 = vadd.f32 1.0, %v8544_v44  ;;  %8565 = vpow2.f32 %v8194_v6  ;;  %v2258_v4 = vadd.f32 %v11247_v50, %v11241_v53  ;;  %v11372_v35 = vadd.f32 %v11059_v3, %v11107_v19 }
 0x212   : > { %v11363_v32 = vpop.eup %8547  ;;  %v2668_v20 = vadd.f32 1.0, %v8546_v43  ;;  %8567 = vtanh.f32 %v2521_v1  ;;  %v2524_v6 = vadd.f32 %v2327_v63, %v11245_v28  ;;  %v2331_v61 = vadd.f32 %v11285_v57, %v11241_v53  ;;  %v11379_v1 = vpop.permute.xlu1 %2157 }
 0x213   : > { %v11368_v11 = vpop.eup %8549  ;;  %14595 = vst [vmem:[#allocation117_spill] sm:$0xff] %v11372_v35  ;;  %8569 = vrcp.f32 %v2667_v51  ;;  %14596 = vst [vmem:[#allocation118_spill] sm:$0xff] %v11379_v1  ;;  %v11383_v17 = vadd.f32 %v11063_v58, %v11107_v19  ;;  %v11387_v50 = vadd.f32 %v11061_v18, %v11119_v38  ;;  %v2529_v3 = vadd.f32 %v2256_v16, %v11252_v47  ;;  %v11392_v63 = vpop.permute.xlu0 %2162 }
 0x214   : > { %v11377_v54 = vpop.eup %8551  ;;  %8571 = vrcp.f32 %v2668_v20  ;;  %14597 = vst [vmem:[#allocation119_spill] sm:$0xff] %v11392_v63  ;;  %v2531_v57 = vadd.f32 %v2329_v12, %v11256_v37  ;;  %v2262_v44 = vadd.f32 %v11287_v10, %v11379_v1  ;;  %v2264_v19 = vadd.f32 %v11296_v21, %v11379_v1  ;;  %v14598_v12 = vld [vmem:[#allocation51_spill] sm:$0xff] }
 0x215   : > { %v11390_v51 = vpop.eup %8553  ;;  %8573 = vtanh.f32 %v2523_v62  ;;  %v11403_v18 = vadd.f32 %v11065_v29, %v11119_v38  ;;  %v2530_v16 = vadd.f32 %v2258_v4, %v11263_v40  ;;  %v2266_v43 = vadd.f32 %v11303_v31, %v11392_v63  ;;  %v14601_v31 = vld [vmem:[#allocation4_spill] sm:$0xff] }
 0x216   : > { %v11399_v58 = vpop.eup %8555  ;;  %8575 = vtanh.f32 %v2522_v13  ;;  %v11412_v10 = vadd.f32 %v14598_v12, %v11121_v59  ;;  %v2532_v21 = vadd.f32 %v2331_v61, %v11267_v34  ;;  %v2268_v20 = vadd.f32 %v11311_v36, %v11392_v63  ;;  %v14600_v13 = vld [vmem:[#allocation40_spill] sm:$0xff] }
 0x217   : > { %v11408_v62 = vpop.eup %8557  ;;  %8577 = vtanh.f32 %v2524_v6  ;;  %v11421_v4 = vadd.f32 %v14600_v13, %v11119_v38  ;;  %v11425_v40 = vadd.f32 %v14601_v31, %v11119_v38  ;;  %v2335_v12 = vadd.f32 %v2334_v56, %v11379_v1 }
 0x218   : > { %14599 = vst [vmem:[#allocation51_spill] sm:$0xff] %v11412_v10  ;;  %v11417_v29 = vpop.eup %8559  ;;  %8579 = vtanh.f32 %v2529_v3  ;;  %v2537_v6 = vadd.f32 %v2262_v44, %v11272_v49  ;;  %v2538_v61 = vadd.f32 %v2264_v19, %v11282_v14  ;;  %v2337_v36 = vadd.f32 %v2336_v5, %v11379_v1  ;;  %v14603_v14 = vld [vmem:[#allocation73_spill] sm:$0xff] }
 0x219   : > { %14602 = vst [vmem:[#allocation40_spill] sm:$0xff] %v11425_v40  ;;  %v8562_v37 = vpop.eup %8561  ;;  %8581 = vtanh.f32 %v2531_v57  ;;  %v2545_v13 = vadd.f32 %v2266_v43, %v11300_v8  ;;  %v2339_v28 = vadd.f32 %v2338_v52, %v11392_v63  ;;  %v2546_v56 = vadd.f32 %v2268_v20, %v11315_v22 }
 0x21a   : > { %v8564_v34 = vpop.eup %8563  ;;  %v2675_v47 = vadd.f32 1.0, %v8562_v37  ;;  %8583 = vtanh.f32 %v2530_v16  ;;  %v2341_v3 = vadd.f32 %v2340_v48, %v11392_v63  ;;  %v2539_v5 = vadd.f32 %v2335_v12, %v11276_v25 }
 0x21b   : > { %v8566_v38 = vpop.eup %8565  ;;  %v2674_v31 = vadd.f32 1.0, %v8564_v34  ;;  %8585 = vtanh.f32 %v2532_v21  ;;  %v2377_v57 = vpop.f32.mrb[48].mxu0  ;;  %v2540_v52 = vadd.f32 %v2337_v36, %v11293_v7 }
 0x21c   : > { %v8568_v44 = vpop.eup %8567  ;;  %8587 = vrcp.f32 %v2675_v47  ;;  %v2676_v19 = vadd.f32 1.0, %v8566_v38  ;;  %v2378_v37 = vadd.f32 %v2377_v57, %v14603_v14  ;;  %v2379_v16 = vpop.f32.mrb[49].mxu0  ;;  %v2547_v47 = vadd.f32 %v2339_v28, %v11307_v15 }
 0x21d   : > { %v11437_v49 = vpop.eup %8569  ;;  %8589 = vrcp.f32 %v2674_v31  ;;  %v2380_v34 = vadd.f32 %v2379_v16, %v14603_v14  ;;  %v2381_v43 = vpop.f32.mrb[50].mxu0  ;;  %v11442_v21 = vmul.f32 %v8568_v44, %v11317_v45  ;;  %v2548_v36 = vadd.f32 %v2341_v3, %v11321_v2 }
 0x21e   : > { %v11444_v48 = vpop.eup %8571  ;;  %8591 = vrcp.f32 %v2676_v19  ;;  %v2493_v20 = vadd.f32 %v2378_v37, %v11327_v9  ;;  %v2382_v12 = vadd.f32 %v2381_v43, %v11117_v24  ;;  %v2383_v38 = vpop.f32.mrb[51].mxu0 }
 0x21f   : > { %v8574_v57 = vpop.eup %8573  ;;  %8593 = vtanh.f32 %v2537_v6  ;;  %v2494_v31 = vadd.f32 %v2380_v34, %v11334_v39  ;;  %v2384_v16 = vadd.f32 %v2383_v38, %v11117_v24 }
 0x220   : > { %v8576_v45 = vpop.eup %8575  ;;  %8595 = vtanh.f32 %v2539_v5  ;;  %v8171_v44 = vmul.f32 -1.442695, %v2493_v20  ;;  %v2450_v22 = vpop.f32.mrb[48].mxu1  ;;  %v2501_v19 = vadd.f32 %v2382_v12, %v11343_v41  ;;  %v11454_v28 = vmul.f32 %v8574_v57, %v11363_v32 }
 0x221   : > { %v8578_v37 = vpop.eup %8577  ;;  %8597 = vtanh.f32 %v2538_v61  ;;  %v2451_v43 = vadd.f32 %v2450_v22, %v14603_v14  ;;  %v8172_v6 = vmul.f32 -1.442695, %v2494_v31  ;;  %v2452_v9 = vpop.f32.mrb[49].mxu1  ;;  %v2502_v3 = vadd.f32 %v2384_v16, %v11347_v30 }
 0x222   : > { %v8580_v34 = vpop.eup %8579  ;;  %8599 = vtanh.f32 %v2540_v52  ;;  %v2453_v38 = vadd.f32 %v2452_v9, %v14603_v14  ;;  %v8179_v5 = vmul.f32 -1.442695, %v2501_v19  ;;  %v2454_v20 = vpop.f32.mrb[50].mxu1  ;;  %v2778_v2 = vmul.f32 %v8576_v45, %v11323_v42 }
 0x223   : > { %v8582_v12 = vpop.eup %8581  ;;  %8601 = vtanh.f32 %v2545_v13  ;;  %v2495_v32 = vadd.f32 %v2451_v43, %v11352_v46  ;;  %v2455_v61 = vadd.f32 %v2454_v20, %v11117_v24  ;;  %v8180_v57 = vmul.f32 -1.442695, %v2502_v3  ;;  %v2456_v22 = vpop.f32.mrb[51].mxu1 }
 0x224   : > { %v2387_v31 = vpop.f32.mrb[52].mxu0  ;;  %v8584_v41 = vpop.eup %8583  ;;  %8603 = vtanh.f32 %v2547_v47  ;;  %v2496_v16 = vadd.f32 %v2453_v38, %v11356_v0  ;;  %v2457_v52 = vadd.f32 %v2456_v22, %v11117_v24  ;;  %v2780_v9 = vmul.f32 %v8578_v37, %v11368_v11 }
 0x225   : > { %v2389_v19 = vpop.f32.mrb[53].mxu0  ;;  %v8586_v30 = vpop.eup %8585  ;;  %8605 = vtanh.f32 %v2546_v56  ;;  %v8173_v42 = vmul.f32 -1.442695, %v2495_v32  ;;  %v2503_v13 = vadd.f32 %v2455_v61, %v11372_v35  ;;  %v2786_v45 = vmul.f32 %v8584_v41, %v11339_v55 }
 0x226   : > { %v2391_v43 = vpop.f32.mrb[54].mxu0  ;;  %v11467_v3 = vpop.eup %8587  ;;  %8607 = vtanh.f32 %v2548_v36  ;;  %v8174_v20 = vmul.f32 -1.442695, %v2496_v16  ;;  %v2504_v47 = vadd.f32 %v2457_v52, %v11383_v17  ;;  %v2788_v38 = vmul.f32 %v8586_v30, %v11390_v51 }
 0x227   : > { %v11471_v22 = vpop.f32.mrb[55].mxu0  ;;  %v8590_v11 = vpop.eup %8589  ;;  %8609 = vpow2.f32 %v8171_v44  ;;  %v8181_v37 = vmul.f32 -1.442695, %v2503_v13  ;;  %v2810_v56 = vpack.c.bf16 %v2786_v45, %v2778_v2  ;;  %v2388_v32 = vadd.f32 %v2387_v31, %v11139_v33 }
 0x228   : > { %v11474_v61 = vpop.eup %8591  ;;  %8611 = vpow2.f32 %v8173_v42  ;;  %v8182_v55 = vmul.f32 -1.442695, %v2504_v47  ;;  %v2812_v41 = vpack.c.bf16 %v2788_v38, %v2780_v9  ;;  %v2460_v35 = vpop.f32.mrb[52].mxu1  ;;  %v2785_v36 = vmul.f32 %v8580_v34, %v11330_v26 }
 0x229   : > { %v11477_v16 = vpop.eup %8593  ;;  %8613 = vpow2.f32 %v8172_v6  ;;  %2865 = vmatprep.subr.bf16.mxu0 %v2810_v56  ;;  %v2509_v30 = vadd.f32 %v2388_v32, %v11387_v50  ;;  %v2461_v51 = vadd.f32 %v2460_v35, %v11139_v33  ;;  %v2787_v2 = vmul.f32 %v8582_v12, %v11377_v54  ;;  %v2462_v44 = vpop.f32.mrb[53].mxu1 }
 0x22a   : > { %v11482_v31 = vpop.eup %8595  ;;  %8615 = vpow2.f32 %v8174_v20  ;;  %2918 = vmatprep.subr.bf16.mxu1 %v2812_v41  ;;  %v2809_v52 = vpack.c.bf16 %v2785_v36, %v11442_v21  ;;  %v2390_v9 = vadd.f32 %v2389_v19, %v11139_v33  ;;  %v2463_v26 = vadd.f32 %v2462_v44, %v11139_v33  ;;  %v2464_v34 = vpop.f32.mrb[54].mxu1  ;;  %v14604_v20 = vld [vmem:[#allocation83_spill] sm:$0xff] }
 0x22b   : > { %v8598_v6 = vpop.eup %8597  ;;  %8617 = vpow2.f32 %v8179_v5  ;;  %v8187_v42 = vmul.f32 -1.442695, %v2509_v30  ;;  %v2511_v13 = vadd.f32 %v2461_v51, %v11421_v4  ;;  %v2811_v35 = vpack.c.bf16 %v2787_v2, %v11454_v28  ;;  %v2466_v54 = vpop.f32.mrb[55].mxu1 }
 0x22c   : > { %v11489_v12 = vpop.f32.mrb[56].mxu0  ;;  %v8600_v45 = vpop.eup %8599  ;;  %8619 = vpow2.f32 %v8181_v37  ;;  %2866 = vmatpush1.bf16.msra.mxu0 %v2809_v52  ;;  %v2510_v21 = vadd.f32 %v2390_v9, %v11403_v18  ;;  %v2512_v19 = vadd.f32 %v2463_v26, %v11425_v40  ;;  %v2392_v47 = vadd.f32 %v2391_v43, %v14604_v20 }
 0x22d   : > { %v11494_v38 = vpop.f32.mrb[57].mxu0  ;;  %v8602_v5 = vpop.eup %8601  ;;  %8621 = vpow2.f32 %v8180_v57  ;;  %v8189_v56 = vmul.f32 -1.442695, %v2511_v13  ;;  %2919 = vmatpush1.bf16.msra.mxu1 %v2811_v35  ;;  %v2794_v44 = vmul.f32 %v8598_v6, %v11408_v62 }
 0x22e   : > { %v11496_v32 = vpop.f32.mrb[58].mxu0  ;;  %v8604_v28 = vpop.eup %8603  ;;  %8623 = vpow2.f32 %v8182_v55  ;;  %v8188_v41 = vmul.f32 -1.442695, %v2510_v21  ;;  %v8190_v36 = vmul.f32 -1.442695, %v2512_v19  ;;  %v2517_v37 = vadd.f32 %v2392_v47, %v11412_v10  ;;  %v14605_v47 = vld [vmem:[#allocation5_spill] sm:$0xff] }
 0x22f   : > { %v11499_v30 = vpop.f32.mrb[59].mxu0  ;;  %v8606_v51 = vpop.eup %8605  ;;  %8625 = vpow2.f32 %v8187_v42  ;;  %v2796_v21 = vmul.f32 %v8600_v45, %v11444_v48  ;;  %v2465_v45 = vadd.f32 %v2464_v34, %v14604_v20  ;;  %v2467_v34 = vadd.f32 %v2466_v54, %v14604_v20 }
 0x230   : > { %v8608_v2 = vpop.eup %8607  ;;  %8627 = vpow2.f32 %v8189_v56  ;;  %v8195_v43 = vmul.f32 -1.442695, %v2517_v37  ;;  %v2802_v57 = vmul.f32 %v8606_v51, %v8590_v11  ;;  %v11502_v52 = vpop.f32.mrb[56].mxu1  ;;  %v11511_v56 = vadd.f32 %v14605_v47, %v11121_v59 }
 0x231   : > { %v8610_v9 = vpop.eup %8609  ;;  %8629 = vpow2.f32 %v8188_v41  ;;  %v11504_v26 = vpop.f32.mrb[57].mxu1  ;;  %v2804_v11 = vmul.f32 %v8608_v2, %v11474_v61  ;;  %v2793_v2 = vmul.f32 %v11477_v16, %v11399_v58  ;;  %v2795_v58 = vmul.f32 %v11482_v31, %v11437_v49 }
 0x232   : > { %v8612_v55 = vpop.eup %8611  ;;  %v2653_v13 = vadd.f32 1.0, %v8610_v9  ;;  %8631 = vpow2.f32 %v8190_v36  ;;  %v2818_v35 = vpack.c.bf16 %v2802_v57, %v2794_v44  ;;  %v11507_v19 = vpop.f32.mrb[58].mxu1  ;;  %14606 = vst [vmem:[#allocation4_spill] sm:$0xff] %v11511_v56  ;;  %v14607_v36 = vld [vmem:[#allocation53_spill] sm:$0xff]  ;;  %v2803_v54 = vmul.f32 %v8604_v28, %v11467_v3  ;;  %v11551_v3 = vld [vmem:[%s14044_s3 + $0x40] sm:$0xff]  }
 0x233   : > { %v8614_v42 = vpop.eup %8613  ;;  %v2655_v62 = vadd.f32 1.0, %v8612_v55  ;;  %8633 = vpow2.f32 %v8195_v43  ;;  %v11514_v6 = vpop.f32.mrb[59].mxu1  ;;  %v11520_v51 = vadd.f32 %v14607_v36, %v11121_v59  ;;  %v2820_v61 = vpack.c.bf16 %v2804_v11, %v2796_v21  ;;  %v14609_v11 = vld [vmem:[#allocation57_spill] sm:$0xff] }
 0x234   : > { %v11516_v41 = vpop.f32.mrb[60].mxu0  ;;  %v8616_v37 = vpop.eup %8615  ;;  %8635 = vrcp.f32 %v2653_v13  ;;  %v2654_v48 = vadd.f32 1.0, %v8614_v42  ;;  %2867 = vmatprep.subr.bf16.mxu0 %v2818_v35  ;;  %v2394_v13 = vadd.f32 %v11471_v22, %v14604_v20  ;;  %v2801_v21 = vmul.f32 %v8602_v5, %v11417_v29 }
 0x235   : > { %14608 = vst [vmem:[#allocation83_spill] sm:$0xff] %v11520_v51  ;;  %v11523_v44 = vpop.f32.mrb[61].mxu0  ;;  %v8618_v57 = vpop.eup %8617  ;;  %8637 = vrcp.f32 %v2655_v62  ;;  %v2656_v43 = vadd.f32 1.0, %v8616_v37  ;;  %2920 = vmatprep.subr.bf16.mxu1 %v2820_v61  ;;  %v11539_v37 = vadd.f32 %v14609_v11, %v11121_v59  ;;  %v2819_v61 = vpack.c.bf16 %v2803_v54, %v2795_v58 }
 0x236   : > { %v11527_v9 = vpop.f32.mrb[62].mxu0  ;;  %v8620_v55 = vpop.eup %8619  ;;  %8639 = vrcp.f32 %v2654_v48  ;;  %v2661_v47 = vadd.f32 1.0, %v8618_v57  ;;  %v2817_v29 = vpack.c.bf16 %v2801_v21, %v2793_v2  ;;  %v2518_v59 = vadd.f32 %v2394_v13, %v11511_v56  ;;  %v14612_v21 = vld [vmem:[#allocation7_spill] sm:$0xff] }
 0x237   : > { %v11532_v35 = vpop.f32.mrb[63].mxu0  ;;  %v8622_v42 = vpop.eup %8621  ;;  %8641 = vrcp.f32 %v2656_v43  ;;  %v2663_v62 = vadd.f32 1.0, %v8620_v55  ;;  %14610 = vst [vmem:[#allocation5_spill] sm:$0xff] %v11539_v37  ;;  %v2519_v43 = vadd.f32 %v2465_v45, %v11520_v51  ;;  %v2520_v45 = vadd.f32 %v2467_v34, %v11539_v37  ;;  %2921 = vmatpush1.bf16.msra.mxu1 %v2819_v61  ;;  %v14631_v37 = vld [vmem:[#allocation65_spill] sm:$0xff] }
 0x238   : > { %v8624_v16 = vpop.eup %8623  ;;  %8643 = vrcp.f32 %v2661_v47  ;;  %v2662_v22 = vadd.f32 1.0, %v8622_v42  ;;  %v11542_v36 = vpop.f32.mrb[60].mxu1  ;;  %2868 = vmatpush1.bf16.msra.mxu0 %v2817_v29  ;;  %v2471_v34 = vadd.f32 %v11502_v52, %v11202_v27  ;;  %v8196_v29 = vmul.f32 -1.442695, %v2518_v59 }
 0x239   : > { %v8626_v48 = vpop.eup %8625  ;;  %8645 = vrcp.f32 %v2663_v62  ;;  %v2664_v57 = vadd.f32 1.0, %v8624_v16  ;;  %v11545_v5 = vpop.f32.mrb[61].mxu1  ;;  %v14611_v62 = vld [vmem:[#allocation86_spill] sm:$0xff]  ;;  %v2398_v16 = vadd.f32 %v11489_v12, %v11202_v27  ;;  %v8197_v54 = vmul.f32 -1.442695, %v2519_v43 }
 0x23a   : > { %v8628_v49 = vpop.eup %8627  ;;  %8647 = vrcp.f32 %v2662_v22  ;;  %v2669_v31 = vadd.f32 1.0, %v8626_v48  ;;  %v11553_v28 = vpop.f32.mrb[62].mxu1  ;;  %v11560_v13 = vadd.f32 %v14612_v21, %v14611_v62  ;;  %v8198_v43 = vmul.f32 -1.442695, %v2520_v45  ;;  %8203 = vmatmul.mubr.msk.bf16.vlgmr.msra.gmra.mrb[64].mxu1 %vm1784_vm8, %v11551_v3  ;;  %v14619_v21 = vld [vmem:[#allocation62_spill] sm:$0xff] }
 0x23b   : > { %v8630_v55 = vpop.eup %8629  ;;  %8649 = vrcp.f32 %v2664_v57  ;;  %v2671_v47 = vadd.f32 1.0, %v8628_v49  ;;  %v11556_v2 = vpop.f32.mrb[63].mxu1  ;;  %v2400_v49 = vadd.f32 %v11494_v38, %v11202_v27  ;;  %8201 = vmatmul.mubr.msk.bf16.vlgmr.msra.gmra.mrb[64].mxu0 %vm1784_vm8, %v11551_v3  ;;  %v2473_v52 = vadd.f32 %v11504_v26, %v11202_v27 }
 0x23c   : > { %v8632_v42 = vpop.eup %8631  ;;  %14613 = vst [vmem:[#allocation53_spill] sm:$0xff] %v11560_v13  ;;  %8651 = vrcp.f32 %v2669_v31  ;;  %v2670_v58 = vadd.f32 1.0, %v8630_v55  ;;  %v14614_v31 = vld [vmem:[#allocation61_spill] sm:$0xff]  ;;  %v14616_v59 = vmov 0   ;;  %v14617_v55 = vld [vmem:[#allocation58_spill] sm:$0xff]  ;;  %v2402_v45 = vadd.f32 %v11496_v32, %v11241_v53 }
 0x23d   : > { %v8634_v11 = vpop.eup %8633  ;;  %8653 = vrcp.f32 %v2671_v47  ;;  %v2672_v22 = vadd.f32 1.0, %v8632_v42  ;;  %v11576_v61 = vadd.f32 %v14614_v31, %v14611_v62  ;;  %2907 = vmatprep.mubr.bf16.mxu0 %v14616_v59  ;;  %v11587_v47 = vadd.f32 %v14617_v55, %v14611_v62  ;;  %2960 = vmatprep.mubr.bf16.mxu1 %v14616_v59  ;;  %v14622_v31 = vld [vmem:[#allocation59_spill] sm:$0xff] }
 0x23e   : > { %v11566_v48 = vpop.eup %8635  ;;  %8655 = vrcp.f32 %v2670_v58  ;;  %v2677_v57 = vadd.f32 1.0, %v8634_v11  ;;  %v2525_v42 = vadd.f32 %v2398_v16, %v11560_v13  ;;  %v11597_v58 = vadd.f32 %v14619_v21, %v14611_v62  ;;  %v14621_v16 = vld [vmem:[#allocation87_spill] sm:$0xff] }
 0x23f   : > { %v11572_v12 = vpop.eup %8637  ;;  %14615 = vst [vmem:[#allocation57_spill] sm:$0xff] %v11576_v61  ;;  %8657 = vrcp.f32 %v2672_v22  ;;  %14618 = vst [vmem:[#allocation86_spill] sm:$0xff] %v11587_v47  ;;  %v2527_v11 = vadd.f32 %v2471_v34, %v11576_v61  ;;  %v2475_v22 = vadd.f32 %v11507_v19, %v11241_v53  ;;  %v11606_v55 = vadd.f32 %v14622_v31, %v14621_v16  ;;  %v11614_v62 = vld [vmem:[%s14044_s3 + $0x48] sm:$0xff]  }
 0x240   : > { %v11583_v38 = vpop.eup %8639  ;;  %8659 = vrcp.f32 %v2677_v57  ;;  %14620 = vst [vmem:[#allocation7_spill] sm:$0xff] %v11597_v58  ;;  %v2526_v32 = vadd.f32 %v2400_v49, %v11587_v47  ;;  %v2404_v13 = vadd.f32 %v11499_v30, %v11241_v53  ;;  %v14624_v19 = vld [vmem:[#allocation63_spill] sm:$0xff]  ;;  %v2528_v21 = vadd.f32 %v2473_v52, %v11597_v58  ;;  %v14626_v30 = vld [vmem:[#allocation60_spill] sm:$0xff] }
 0x241   : > { %v11593_v26 = vpop.eup %8641  ;;  %8661 = vpow2.f32 %v8197_v54  ;;  %14623 = vst [vmem:[#allocation61_spill] sm:$0xff] %v11606_v55  ;;  %v11620_v34 = vadd.f32 %v14624_v19, %v14621_v16  ;;  %v11629_v31 = vadd.f32 %v14626_v30, %v14621_v16  ;;  %v2533_v47 = vadd.f32 %v2402_v45, %v11606_v55 }
 0x242   : > { %v11602_v57 = vpop.eup %8643  ;;  %8663 = vpow2.f32 %v8196_v29  ;;  %v2477_v29 = vadd.f32 %v11514_v6, %v11241_v53  ;;  %v2408_v61 = vadd.f32 %v11516_v41, %v11379_v1  ;;  %v2481_v58 = vadd.f32 %v11542_v36, %v11379_v1  ;;  %8204 = vmatmul.mubr.msk.bf16.gmra.mrb[68].mxu1 %vm1784_vm8, %v11614_v62 }
 0x243   : > { %v11616_v54 = vpop.eup %8645  ;;  %14625 = vst [vmem:[#allocation58_spill] sm:$0xff] %v11620_v34  ;;  %8665 = vpow2.f32 %v8198_v43  ;;  %14627 = vst [vmem:[#allocation62_spill] sm:$0xff] %v11629_v31  ;;  %v14628_v43 = vld [vmem:[#allocation64_spill] sm:$0xff]  ;;  %v2535_v6 = vadd.f32 %v2475_v22, %v11620_v34  ;;  %v2534_v41 = vadd.f32 %v2404_v13, %v11629_v31  ;;  %8202 = vmatmul.mubr.msk.bf16.gmra.mrb[68].mxu0 %vm1784_vm8, %v11614_v62  ;;  %3056 = vmatprep.mubr.bf16.mxu1 %v14616_v59 }
 0x244   : > { %v11625_v49 = vpop.eup %8647  ;;  %8667 = vtanh.f32 %v2525_v42  ;;  %v11638_v52 = vadd.f32 %v14628_v43, %v14621_v16  ;;  %v14630_v42 = vld [vmem:[#allocation99_spill] sm:$0xff]  ;;  %3003 = vmatprep.mubr.bf16.mxu0 %v14616_v59 }
 0x245   : > { %v11634_v19 = vpop.eup %8649  ;;  %8669 = vtanh.f32 %v2527_v11  ;;  %v11647_v45 = vadd.f32 %v14631_v37, %v14630_v42  ;;  %v14633_v11 = vld [vmem:[#allocation69_spill] sm:$0xff] }
 0x246   : > { %14629 = vst [vmem:[#allocation87_spill] sm:$0xff] %v11638_v52  ;;  %v11643_v30 = vpop.eup %8651  ;;  %8671 = vtanh.f32 %v2526_v32  ;;  %v11656_v22 = vadd.f32 %v14633_v11, %v14630_v42  ;;  %v2536_v36 = vadd.f32 %v2477_v29, %v11638_v52  ;;  %v14635_v11 = vld [vmem:[#allocation66_spill] sm:$0xff] }
 0x247   : > { %14632 = vst [vmem:[#allocation59_spill] sm:$0xff] %v11647_v45  ;;  %v11652_v16 = vpop.eup %8653  ;;  %8673 = vtanh.f32 %v2528_v21  ;;  %v2541_v13 = vadd.f32 %v2408_v61, %v11647_v45  ;;  %v2410_v21 = vadd.f32 %v11523_v44, %v11379_v1  ;;  %v11675_v52 = vadd.f32 %v14635_v11, %v14630_v42  ;;  %v14637_v45 = vld [vmem:[#allocation70_spill] sm:$0xff]  ;;  %v14642_v11 = vld [vmem:[#allocation71_spill] sm:$0xff] }
 0x248   : > { %14634 = vst [vmem:[#allocation63_spill] sm:$0xff] %v11656_v22  ;;  %v11662_v37 = vpop.eup %8655  ;;  %8675 = vtanh.f32 %v2533_v47  ;;  %v2543_v43 = vadd.f32 %v2481_v58, %v11656_v22  ;;  %v2483_v61 = vadd.f32 %v11545_v5, %v11379_v1  ;;  %v11681_v31 = vadd.f32 %v14637_v45, %v14630_v42  ;;  %v14640_v58 = vld [vmem:[#allocation67_spill] sm:$0xff] }
 0x249   : > { %v11666_v32 = vpop.eup %8657  ;;  %8677 = vtanh.f32 %v2535_v6  ;;  %14636 = vst [vmem:[#allocation60_spill] sm:$0xff] %v11675_v52  ;;  %v14639_v6 = vld [vmem:[#allocation105_spill] sm:$0xff]  ;;  %v2412_v44 = vadd.f32 %v11527_v9, %v11392_v63  ;;  %v2485_v5 = vadd.f32 %v11553_v28, %v11392_v63 }
 0x24a   : > { %v11671_v29 = vpop.eup %8659  ;;  %8679 = vtanh.f32 %v2534_v41  ;;  %14638 = vst [vmem:[#allocation64_spill] sm:$0xff] %v11681_v31  ;;  %v11685_v22 = vadd.f32 %v14640_v58, %v14639_v6  ;;  %v11691_v41 = vadd.f32 %v14642_v11, %v14639_v6  ;;  %v2542_v58 = vadd.f32 %v2410_v21, %v11675_v52  ;;  %v14644_v11 = vld [vmem:[#allocation68_spill] sm:$0xff] }
 0x24b   : > { %v8662_v47 = vpop.eup %8661  ;;  %8681 = vtanh.f32 %v2536_v36  ;;  %v2414_v36 = vadd.f32 %v11532_v35, %v11392_v63  ;;  %v2544_v51 = vadd.f32 %v2483_v61, %v11681_v31  ;;  %v11703_v28 = vadd.f32 %v14644_v11, %v14639_v6  ;;  %v14646_v35 = vld [vmem:[#allocation72_spill] sm:$0xff] }
 0x24c   : > { %14641 = vst [vmem:[#allocation99_spill] sm:$0xff] %v11685_v22  ;;  %v8664_v34 = vpop.eup %8663  ;;  %14643 = vst [vmem:[#allocation65_spill] sm:$0xff] %v11691_v41  ;;  %v2679_v55 = vadd.f32 1.0, %v8662_v47  ;;  %8683 = vtanh.f32 %v2541_v13  ;;  %v2487_v47 = vadd.f32 %v11556_v2, %v11392_v63  ;;  %v2551_v61 = vadd.f32 %v2485_v5, %v11691_v41 }
 0x24d   : > { %v8666_v42 = vpop.eup %8665  ;;  %v2678_v45 = vadd.f32 1.0, %v8664_v34  ;;  %8685 = vtanh.f32 %v2543_v43  ;;  %14645 = vst [vmem:[#allocation69_spill] sm:$0xff] %v11703_v28  ;;  %v2549_v34 = vadd.f32 %v2412_v44, %v11685_v22  ;;  %v2550_v11 = vadd.f32 %v2414_v36, %v11703_v28 }
 0x24e   : > { %v8668_v56 = vpop.eup %8667  ;;  %8687 = vrcp.f32 %v2679_v55  ;;  %v2680_v9 = vadd.f32 1.0, %v8666_v42  ;;  %v11709_v55 = vadd.f32 %v14646_v35, %v14639_v6 }
 0x24f   : > { %v8670_v13 = vpop.eup %8669  ;;  %8689 = vrcp.f32 %v2678_v45  ;;  %v2781_v43 = vmul.f32 %v8668_v56, %v11566_v48 }
 0x250   : > { %v8672_v21 = vpop.eup %8671  ;;  %14647 = vst [vmem:[#allocation66_spill] sm:$0xff] %v11709_v55  ;;  %8691 = vrcp.f32 %v2680_v9  ;;  %v2783_v2 = vmul.f32 %v8670_v13, %v11572_v12  ;;  %v2552_v56 = vadd.f32 %v2487_v47, %v11709_v55 }
 0x251   : > { %v8674_v42 = vpop.eup %8673  ;;  %8693 = vtanh.f32 %v2542_v58  ;;  %v2782_v45 = vmul.f32 %v8672_v21, %v11583_v38 }
 0x252   : > { %v8676_v31 = vpop.eup %8675  ;;  %8695 = vtanh.f32 %v2544_v51  ;;  %v2784_v48 = vmul.f32 %v8674_v42, %v11593_v26 }
 0x253   : > { %v8678_v44 = vpop.eup %8677  ;;  %8697 = vtanh.f32 %v2549_v34  ;;  %v2789_v6 = vmul.f32 %v8676_v31, %v11602_v57 }
 0x254   : > { %v8680_v9 = vpop.eup %8679  ;;  %8699 = vtanh.f32 %v2551_v61  ;;  %v2791_v12 = vmul.f32 %v8678_v44, %v11616_v54 }
 0x255   : > { %v8682_v5 = vpop.eup %8681  ;;  %8701 = vtanh.f32 %v2550_v11  ;;  %v2790_v58 = vmul.f32 %v8680_v9, %v11625_v49  ;;  %v2813_v36 = vpack.c.bf16 %v2789_v6, %v2781_v43 }
 0x256   : > { %v8684_v38 = vpop.eup %8683  ;;  %8703 = vtanh.f32 %v2552_v56  ;;  %v2792_v51 = vmul.f32 %v8682_v5, %v11634_v19  ;;  %v2815_v47 = vpack.c.bf16 %v2791_v12, %v2783_v2 }
 0x257   : > { %v8686_v13 = vpop.eup %8685  ;;  %v2814_v26 = vpack.c.bf16 %v2790_v58, %v2782_v45  ;;  %v2797_v34 = vmul.f32 %v8684_v38, %v11643_v30 }
 0x258   : > { %v8688_v21 = vpop.eup %8687  ;;  %v2816_v57 = vpack.c.bf16 %v2792_v51, %v2784_v48  ;;  %v2799_v31 = vmul.f32 %v8686_v13, %v11652_v16 }
 0x259   : > { %v8690_v35 = vpop.eup %8689  ;;  %2971 = vmatprep.subr.bf16.mxu0 %v2814_v26 }
 0x25a   : > { %v8692_v54 = vpop.eup %8691  ;;  %3024 = vmatprep.subr.bf16.mxu1 %v2816_v57  ;;  %2972 = vmatpush1.bf16.msra.mxu0 %v2813_v36 }
 0x25b   : > { %v8694_v49 = vpop.eup %8693  ;;  %3025 = vmatpush1.bf16.msra.mxu1 %v2815_v47 }
 0x25c   : > { %v8696_v43 = vpop.eup %8695  ;;  %v2798_v61 = vmul.f32 %v8694_v49, %v11662_v37  ;;  %v11738_v37 = vpop.permute.xlu0 %2836 }
 0x25d   : > { %v8698_v19 = vpop.eup %8697  ;;  %v2800_v2 = vmul.f32 %v8696_v43, %v11666_v32  ;;  %14648 = vst [vmem:[#allocation70_spill] sm:$0xff] %v11738_v37  ;;  %v11740_v32 = vpop.permute.xlu1 %2831 }
 0x25e   : > { %v8700_v42 = vpop.eup %8699  ;;  %v2805_v30 = vmul.f32 %v8698_v19, %v11671_v29  ;;  %14649 = vst [vmem:[#allocation105_spill] sm:$0xff] %v11740_v32 }
 0x25f   : > { %v8702_v11 = vpop.eup %8701  ;;  %v2807_v45 = vmul.f32 %v8700_v42, %v8688_v21 }
 0x260   : > { %v8704_v56 = vpop.eup %8703  ;;  %v2806_v16 = vmul.f32 %v8702_v11, %v8690_v35  ;;  %v2821_v48 = vpack.c.bf16 %v2805_v30, %v2797_v34  ;;  %v14654_v30 = vld [vmem:[#allocation44_spill] sm:$0xff] }
 0x261   : > { %v2808_v44 = vmul.f32 %v8704_v56, %v8692_v54  ;;  %v2823_v6 = vpack.c.bf16 %v2807_v45, %v2799_v31  ;;  %v14651_v31 = vld [vmem:[#allocation13_spill] sm:$0xff]  ;;  %v14652_v54 = vld [vmem:[#allocation42_spill] sm:$0xff] }
 0x262   : > { %v2822_v9 = vpack.c.bf16 %v2806_v16, %v2798_v61  ;;  %v14655_v16 = vld [vmem:[#allocation55_spill] sm:$0xff] }
 0x263   : > { %v2824_v12 = vpack.c.bf16 %v2808_v44, %v2800_v2  ;;  %v14653_v2 = vld [vmem:[#allocation46_spill] sm:$0xff]  ;;  %v14656_v44 = vld [vmem:[#allocation45_spill] sm:$0xff] }
 0x264   : > { %2973 = vmatprep.subr.bf16.mxu0 %v2822_v9  ;;  %v11757_v9 = vpop.permute.xlu0 %2846 }
 0x265   : > { %3026 = vmatprep.subr.bf16.mxu1 %v2824_v12  ;;  %2974 = vmatpush1.bf16.msra.mxu0 %v2821_v48  ;;  %14657 = vst [vmem:[#allocation67_spill] sm:$0xff] %v11757_v9 }
 0x266   : > { %3027 = vmatpush1.bf16.msra.mxu1 %v2823_v6 }
 0x268   : > { %8205 = vmatmul.mubr.msk.bf16.vlgmr.msra.gmra.mrb[72].mxu0 %vm1784_vm8, %v11551_v3 }
 0x269   : > { %8207 = vmatmul.mubr.msk.bf16.vlgmr.msra.gmra.mrb[72].mxu1 %vm1784_vm8, %v11551_v3  ;;  %3013 = vmatprep.mubr.bf16.mxu0 %v14616_v59 }
 0x26a   : > { %3066 = vmatprep.mubr.bf16.mxu1 %v14616_v59 }
 0x270   : > { %8206 = vmatmul.mubr.msk.bf16.gmra.mrb[76].mxu0 %vm1784_vm8, %v11614_v62 }
 0x271   : > { %8208 = vmatmul.mubr.msk.bf16.gmra.mrb[76].mxu1 %vm1784_vm8, %v11614_v62  ;;  %3233 = vmatprep.mubr.bf16.mxu0 %v14616_v59  ;;  %v14650_v62 = vld [vmem:[#allocation15_spill] sm:$0xff] }
 0x272   : > { %3286 = vmatprep.mubr.bf16.mxu1 %v14616_v59 }
 0x30d   : > { %v2952_v5 = vpop.f32.mrb[64].mxu1 }
 0x30e   : > { %v2899_v29 = vpop.f32.mrb[64].mxu0  ;;  %v2953_v36 = vadd.f32 %v2952_v5, %v11740_v32  ;;  %v2954_v51 = vpop.f32.mrb[65].mxu1  ;;  %v14658_v5 = vld [vmem:[#allocation43_spill] sm:$0xff] }
 0x30f   : > { %v2900_v3 = vadd.f32 %v2899_v29, %v11740_v32  ;;  %v2901_v58 = vpop.f32.mrb[65].mxu0  ;;  %v2955_v26 = vadd.f32 %v2954_v51, %v11740_v32  ;;  %v2956_v21 = vpop.f32.mrb[66].mxu1 }
 0x310   : > { %v2902_v38 = vadd.f32 %v2901_v58, %v11740_v32  ;;  %v2903_v47 = vpop.f32.mrb[66].mxu0  ;;  %v3079_v35 = vadd.f32 %v2953_v36, %v14651_v31  ;;  %v2957_v43 = vadd.f32 %v2956_v21, %v11738_v37  ;;  %v2958_v19 = vpop.f32.mrb[67].mxu1 }
 0x311   : > { %v3077_v13 = vadd.f32 %v2900_v3, %v14650_v62  ;;  %v2904_v34 = vadd.f32 %v2903_v47, %v11738_v37  ;;  %v2905_v57 = vpop.f32.mrb[67].mxu0  ;;  %v3080_v42 = vadd.f32 %v2955_v26, %v14653_v2  ;;  %v2959_v45 = vadd.f32 %v2958_v19, %v11738_v37  ;;  %v11760_v36 = vpop.permute.xlu1 %2841  ;;  %v14660_v19 = vld [vmem:[#allocation10_spill] sm:$0xff] }
 0x312   : > { %v3078_v49 = vadd.f32 %v2902_v38, %v14652_v54  ;;  %v2906_v61 = vadd.f32 %v2905_v57, %v11738_v37  ;;  %v3087_v48 = vadd.f32 %v2957_v43, %v14655_v16  ;;  %v3111_v12 = vmul.f32 0.70710677, %v3079_v35  ;;  %14659 = vst [vmem:[#allocation71_spill] sm:$0xff] %v11760_v36  ;;  %v14661_v16 = vld [vmem:[#allocation49_spill] sm:$0xff] }
 0x313   : > { %v3085_v11 = vadd.f32 %v2904_v34, %v14654_v30  ;;  %v3109_v56 = vmul.f32 0.70710677, %v3077_v13  ;;  %v3088_v58 = vadd.f32 %v2959_v45, %v14658_v5  ;;  %v3112_v62 = vmul.f32 0.70710677, %v3080_v42 }
 0x314   : > { %v3086_v6 = vadd.f32 %v2906_v61, %v14656_v44  ;;  %v3110_v29 = vmul.f32 0.70710677, %v3078_v49  ;;  %v3119_v38 = vmul.f32 0.70710677, %v3087_v48  ;;  %v14662_v44 = vld [vmem:[#allocation56_spill] sm:$0xff] }
 0x315   : > { %v3117_v3 = vmul.f32 0.70710677, %v3085_v11  ;;  %v3120_v34 = vmul.f32 0.70710677, %v3088_v58  ;;  %v2962_v21 = vpop.f32.mrb[68].mxu1 }
 0x316   : > { %v3118_v51 = vmul.f32 0.70710677, %v3086_v6  ;;  %v2909_v47 = vpop.f32.mrb[68].mxu0  ;;  %v3147_v31 = vpack.c.bf16 %v3119_v38, %v3111_v12  ;;  %v2963_v54 = vadd.f32 %v2962_v21, %v11760_v36  ;;  %v2964_v49 = vpop.f32.mrb[69].mxu1  ;;  %v14664_v38 = vld [vmem:[#allocation48_spill] sm:$0xff] }
 0x317   : > { %v3145_v26 = vpack.c.bf16 %v3117_v3, %v3109_v56  ;;  %v2910_v13 = vadd.f32 %v2909_v47, %v11760_v36  ;;  %v2911_v57 = vpop.f32.mrb[69].mxu0  ;;  %v2965_v30 = vadd.f32 %v2964_v49, %v11760_v36  ;;  %v2966_v11 = vpop.f32.mrb[70].mxu1  ;;  %v3148_v56 = vpack.c.bf16 %v3120_v34, %v3112_v62  ;;  %v14666_v34 = vld [vmem:[#allocation8_spill] sm:$0xff]  ;;  %v14667_v49 = vld [vmem:[#allocation47_spill] sm:$0xff] }
 0x318   : > { %v2912_v35 = vadd.f32 %v2911_v57, %v11760_v36  ;;  %v2913_v43 = vpop.f32.mrb[70].mxu0  ;;  %v3146_v61 = vpack.c.bf16 %v3118_v51, %v3110_v29  ;;  %v3095_v48 = vadd.f32 %v2963_v54, %v14661_v16  ;;  %v2967_v12 = vadd.f32 %v2966_v11, %v11757_v9  ;;  %v2968_v5 = vpop.f32.mrb[71].mxu1  ;;  %v14663_v29 = vld [vmem:[#allocation9_spill] sm:$0xff] }
 0x319   : > { %v3093_v2 = vadd.f32 %v2910_v13, %v14660_v19  ;;  %v2914_v42 = vadd.f32 %v2913_v43, %v11757_v9  ;;  %v2915_v45 = vpop.f32.mrb[71].mxu0  ;;  %v3096_v58 = vadd.f32 %v2965_v30, %v14663_v29  ;;  %v2969_v47 = vadd.f32 %v2968_v5, %v11757_v9  ;;  %3254 = vmatprep.subr.bf16.mxu1 %v3148_v56  ;;  %v14665_v13 = vld [vmem:[#allocation14_spill] sm:$0xff] }
 0x31a   : > { %v3094_v6 = vadd.f32 %v2912_v35, %v14662_v44  ;;  %v2916_v3 = vadd.f32 %v2915_v45, %v11757_v9  ;;  %3201 = vmatprep.subr.bf16.mxu0 %v3146_v61  ;;  %v3103_v62 = vadd.f32 %v2967_v12, %v14665_v13  ;;  %3255 = vmatpush1.bf16.msra.mxu1 %v3147_v31  ;;  %v3127_v54 = vmul.f32 0.70710677, %v3095_v48  ;;  %v11792_v31 = vld [vmem:[%s14044_s3 + $0x58] sm:$0xff]  }
 0x31b   : > { %v3101_v51 = vadd.f32 %v2914_v42, %v14664_v38  ;;  %3202 = vmatpush1.bf16.msra.mxu0 %v3145_v26  ;;  %v3125_v57 = vmul.f32 0.70710677, %v3093_v2  ;;  %v3104_v43 = vadd.f32 %v2969_v47, %v14667_v49  ;;  %v3128_v30 = vmul.f32 0.70710677, %v3096_v58  ;;  %v11781_v26 = vld [vmem:[%s14044_s3 + $0x50] sm:$0xff]   ;;  %v14668_v38 = vld [vmem:[#allocation34_spill] sm:$0xff] }
 0x31c   : > { %v3102_v21 = vadd.f32 %v2916_v3, %v14666_v34  ;;  %v3126_v19 = vmul.f32 0.70710677, %v3094_v6  ;;  %v3135_v61 = vmul.f32 0.70710677, %v3103_v62 }
 0x31d   : > { %v3133_v35 = vmul.f32 0.70710677, %v3101_v51  ;;  %v3136_v42 = vmul.f32 0.70710677, %v3104_v43 }
 0x31e   : > { %v3134_v11 = vmul.f32 0.70710677, %v3102_v21  ;;  %v3155_v16 = vpack.c.bf16 %v3135_v61, %v3127_v54  ;;  %v14669_v21 = vld [vmem:[#allocation31_spill] sm:$0xff]  ;;  %v14671_v61 = vld [vmem:[#allocation25_spill] sm:$0xff] }
 0x31f   : > { %v3153_v45 = vpack.c.bf16 %v3133_v35, %v3125_v57  ;;  %v3156_v56 = vpack.c.bf16 %v3136_v42, %v3128_v30  ;;  %v14670_v54 = vld [vmem:[#allocation23_spill] sm:$0xff]  ;;  %v14672_v30 = vld [vmem:[#allocation26_spill] sm:$0xff] }
 0x320   : > { %v3154_v44 = vpack.c.bf16 %v3134_v11, %v3126_v19 }
 0x321   : > { %3256 = vmatprep.subr.bf16.mxu1 %v3156_v56 }
 0x322   : > { %3203 = vmatprep.subr.bf16.mxu0 %v3154_v44  ;;  %3257 = vmatpush1.bf16.msra.mxu1 %v3155_v16  ;;  %v14673_v44 = vld [vmem:[#allocation35_spill] sm:$0xff] }
 0x323   : > { %3204 = vmatpush1.bf16.msra.mxu0 %v3153_v45 }
 0x325   : > { %8213 = vmatmul.mubr.msk.bf16.vlgmr.msra.gmra.mrb[80].mxu1 %vm1784_vm8, %v11781_v26 }
 0x326   : > { %8211 = vmatmul.mubr.msk.bf16.vlgmr.msra.gmra.mrb[80].mxu0 %vm1784_vm8, %v11781_v26  ;;  %3296 = vmatprep.mubr.bf16.mxu1 %v14616_v59 }
 0x327   : > { %3243 = vmatprep.mubr.bf16.mxu0 %v14616_v59 }
 0x32d   : > { %8214 = vmatmul.mubr.msk.bf16.gmra.mrb[84].mxu1 %vm1784_vm8, %v11792_v31 }
 0x32e   : > { %8212 = vmatmul.mubr.msk.bf16.gmra.mrb[84].mxu0 %vm1784_vm8, %v11792_v31  ;;  %3392 = vmatprep.mubr.bf16.mxu1 %v14616_v59 }
 0x32f   : > { %3339 = vmatprep.mubr.bf16.mxu0 %v14616_v59 }
 0x33b   : > { %v3005_v2 = vpop.f32.mrb[72].mxu0 }
 0x33c   : > { %v3006_v48 = vadd.f32 %v3005_v2, %v11740_v32  ;;  %v3058_v6 = vpop.f32.mrb[72].mxu1  ;;  %v3007_v12 = vpop.f32.mrb[73].mxu0  ;;  %v14674_v2 = vld [vmem:[#allocation29_spill] sm:$0xff] }
 0x33d   : > { %v3059_v3 = vadd.f32 %v3058_v6, %v11740_v32  ;;  %v3008_v5 = vadd.f32 %v3007_v12, %v11740_v32  ;;  %v3060_v29 = vpop.f32.mrb[73].mxu1  ;;  %v3009_v58 = vpop.f32.mrb[74].mxu0 }
 0x33e   : > { %v3081_v51 = vadd.f32 %v3006_v48, %v14668_v38  ;;  %v3061_v47 = vadd.f32 %v3060_v29, %v11740_v32  ;;  %v3010_v13 = vadd.f32 %v3009_v58, %v11738_v37  ;;  %v3062_v62 = vpop.f32.mrb[74].mxu1  ;;  %v3011_v34 = vpop.f32.mrb[75].mxu0 }
 0x33f   : > { %v3083_v57 = vadd.f32 %v3059_v3, %v14669_v21  ;;  %v3082_v35 = vadd.f32 %v3008_v5, %v14670_v54  ;;  %v3063_v49 = vadd.f32 %v3062_v62, %v11738_v37  ;;  %v3012_v43 = vadd.f32 %v3011_v34, %v11738_v37  ;;  %v3064_v19 = vpop.f32.mrb[75].mxu1  ;;  %v14675_v5 = vld [vmem:[#allocation30_spill] sm:$0xff] }
 0x340   : > { %v3084_v11 = vadd.f32 %v3061_v47, %v14671_v61  ;;  %v3089_v45 = vadd.f32 %v3010_v13, %v14672_v30  ;;  %v3065_v42 = vadd.f32 %v3064_v19, %v11738_v37  ;;  %v3113_v16 = vmul.f32 0.70710677, %v3081_v51  ;;  %v14676_v30 = vld [vmem:[#allocation38_spill] sm:$0xff] }
 0x341   : > { %v3091_v56 = vadd.f32 %v3063_v49, %v14673_v44  ;;  %v3090_v48 = vadd.f32 %v3012_v43, %v14674_v2  ;;  %v3115_v6 = vmul.f32 0.70710677, %v3083_v57  ;;  %v3114_v12 = vmul.f32 0.70710677, %v3082_v35  ;;  %v14677_v2 = vld [vmem:[#allocation39_spill] sm:$0xff] }
 0x342   : > { %v3121_v3 = vmul.f32 0.70710677, %v3089_v45  ;;  %v3092_v29 = vadd.f32 %v3065_v42, %v14675_v5  ;;  %v3116_v34 = vmul.f32 0.70710677, %v3084_v11 }
 0x343   : > { %v3123_v58 = vmul.f32 0.70710677, %v3091_v56  ;;  %v3122_v38 = vmul.f32 0.70710677, %v3090_v48  ;;  %v3015_v62 = vpop.f32.mrb[76].mxu0 }
 0x344   : > { %v3149_v21 = vpack.c.bf16 %v3121_v3, %v3113_v16  ;;  %v3124_v47 = vmul.f32 0.70710677, %v3092_v29  ;;  %v3016_v13 = vadd.f32 %v3015_v62, %v11760_v36  ;;  %v3068_v54 = vpop.f32.mrb[76].mxu1  ;;  %v3017_v19 = vpop.f32.mrb[77].mxu0  ;;  %v14678_v3 = vld [vmem:[#allocation27_spill] sm:$0xff] }
 0x345   : > { %v3151_v51 = vpack.c.bf16 %v3123_v58, %v3115_v6  ;;  %v3069_v49 = vadd.f32 %v3068_v54, %v11760_v36  ;;  %v3018_v43 = vadd.f32 %v3017_v19, %v11760_v36  ;;  %v3070_v57 = vpop.f32.mrb[77].mxu1  ;;  %v3019_v35 = vpop.f32.mrb[78].mxu0  ;;  %v3150_v61 = vpack.c.bf16 %v3122_v38, %v3114_v12  ;;  %v14679_v12 = vld [vmem:[#allocation37_spill] sm:$0xff]  ;;  %v14680_v62 = vld [vmem:[#allocation3_spill] sm:$0xff]  ;;  %v14681_v19 = vld [vmem:[#allocation6_spill] sm:$0xff] }
 0x346   : > { %v3097_v45 = vadd.f32 %v3016_v13, %v14676_v30  ;;  %v3071_v42 = vadd.f32 %v3070_v57, %v11760_v36  ;;  %v3020_v11 = vadd.f32 %v3019_v35, %v11757_v9  ;;  %v3072_v16 = vpop.f32.mrb[78].mxu1  ;;  %v3021_v44 = vpop.f32.mrb[79].mxu0  ;;  %v3152_v56 = vpack.c.bf16 %v3124_v47, %v3116_v34  ;;  %v14682_v47 = vld [vmem:[#allocation36_spill] sm:$0xff] }
 0x347   : > { %v3099_v48 = vadd.f32 %v3069_v49, %v14677_v2  ;;  %v3098_v6 = vadd.f32 %v3018_v43, %v14678_v3  ;;  %v3073_v5 = vadd.f32 %v3072_v16, %v11757_v9  ;;  %v3022_v29 = vadd.f32 %v3021_v44, %v11757_v9  ;;  %v3074_v58 = vpop.f32.mrb[79].mxu1  ;;  %3307 = vmatprep.subr.bf16.mxu0 %v3150_v61  ;;  %v14683_v30 = vld [vmem:[#allocation32_spill] sm:$0xff] }
 0x348   : > { %v3100_v38 = vadd.f32 %v3071_v42, %v14679_v12  ;;  %v3105_v13 = vadd.f32 %v3020_v11, %v14680_v62  ;;  %v3075_v54 = vadd.f32 %v3074_v58, %v11757_v9  ;;  %3360 = vmatprep.subr.bf16.mxu1 %v3152_v56  ;;  %3308 = vmatpush1.bf16.msra.mxu0 %v3149_v21  ;;  %v3129_v43 = vmul.f32 0.70710677, %v3097_v45  ;;  %v11844_v21 = vpop.permute.xlu0 %3172 }
 0x349   : > { %v3107_v34 = vadd.f32 %v3073_v5, %v14681_v19  ;;  %v3106_v49 = vadd.f32 %v3022_v29, %v14682_v47  ;;  %3361 = vmatpush1.bf16.msra.mxu1 %v3151_v51  ;;  %v3131_v57 = vmul.f32 0.70710677, %v3099_v48  ;;  %v3130_v44 = vmul.f32 0.70710677, %v3098_v6  ;;  %v11846_v51 = vpop.permute.xlu1 %3167 }
 0x34a   : > { %v3137_v35 = vmul.f32 0.70710677, %v3105_v13  ;;  %v3108_v16 = vadd.f32 %v3075_v54, %v14683_v30  ;;  %v3132_v42 = vmul.f32 0.70710677, %v3100_v38 }
 0x34b   : > { %v3139_v61 = vmul.f32 0.70710677, %v3107_v34  ;;  %v3138_v2 = vmul.f32 0.70710677, %v3106_v49 }
 0x34c   : > { %v3157_v3 = vpack.c.bf16 %v3137_v35, %v3129_v43  ;;  %v3140_v11 = vmul.f32 0.70710677, %v3108_v16  ;;  %v11848_v45 = vpop.permute.xlu0 %3182 }
 0x34d   : > { %v3159_v12 = vpack.c.bf16 %v3139_v61, %v3131_v57  ;;  %v3158_v58 = vpack.c.bf16 %v3138_v2, %v3130_v44 }
 0x34e   : > { %v3160_v56 = vpack.c.bf16 %v3140_v11, %v3132_v42 }
 0x34f   : > { %3309 = vmatprep.subr.bf16.mxu0 %v3158_v58 }
 0x350   : > { %3362 = vmatprep.subr.bf16.mxu1 %v3160_v56  ;;  %3310 = vmatpush1.bf16.msra.mxu0 %v3157_v3  ;;  %v11858_v61 = vpop.permute.xlu0 %3488 }
 0x351   : > { %3363 = vmatpush1.bf16.msra.mxu1 %v3159_v12 }
 0x353   : > { %8215 = vmatmul.mubr.msk.bf16.vlgmr.msra.gmra.mrb[88].mxu0 %vm1784_vm8, %v11781_v26 }
 0x354   : > { %8217 = vmatmul.mubr.msk.bf16.vlgmr.msra.gmra.mrb[88].mxu1 %vm1784_vm8, %v11781_v26  ;;  %3349 = vmatprep.mubr.bf16.mxu0 %v14616_v59  ;;  %v11850_v26 = vpop.permute.xlu1 %3177 }
 0x355   : > { %3402 = vmatprep.mubr.bf16.mxu1 %v14616_v59 }
 0x358   : > { %v11860_v2 = vpop.permute.xlu1 %3483 }
 0x35b   : > { %8216 = vmatmul.mubr.msk.bf16.gmra.mrb[92].mxu0 %vm1784_vm8, %v11792_v31 }
 0x35c   : > { %8218 = vmatmul.mubr.msk.bf16.gmra.mrb[92].mxu1 %vm1784_vm8, %v11792_v31  ;;  %3613 = vmatprep.mubr.bf16.mxu0 %v14616_v59 }
 0x35d   : > { %3686 = vmatprep.mubr.bf16.mxu1 %v14616_v59 }
 0x3f8   : > { %v3288_v5 = vpop.f32.mrb[80].mxu1 }
 0x3f9   : > { %v3235_v48 = vpop.f32.mrb[80].mxu0  ;;  %v3289_v38 = vadd.f32 %v3288_v5, %v11846_v51  ;;  %v3290_v62 = vpop.f32.mrb[81].mxu1 }
 0x3fa   : > { %v3236_v6 = vadd.f32 %v3235_v48, %v11846_v51  ;;  %v3237_v29 = vpop.f32.mrb[81].mxu0  ;;  %v3291_v54 = vadd.f32 %v3290_v62, %v11846_v51  ;;  %v3292_v34 = vpop.f32.mrb[82].mxu1 }
 0x3fb   : > { %v3238_v31 = vadd.f32 %v3237_v29, %v11846_v51  ;;  %v3239_v13 = vpop.f32.mrb[82].mxu0  ;;  %v3294_v43 = vpop.f32.mrb[83].mxu1  ;;  %v3451_v57 = vmin.f32 %v3289_v38, 0.0  ;;  %v3293_v44 = vadd.f32 %v3292_v34, %v11844_v21  ;;  %v3419_v58 = vmax.f32 %v3289_v38, 0.0 }
 0x3fc   : > { %v3240_v19 = vadd.f32 %v3239_v13, %v11844_v21  ;;  %v3241_v47 = vpop.f32.mrb[83].mxu0  ;;  %v3449_v49 = vmin.f32 %v3236_v6, 0.0  ;;  %v3452_v30 = vmin.f32 %v3291_v54, 0.0  ;;  %v3417_v42 = vmax.f32 %v3236_v6, 0.0 }
 0x3fd   : > { %v3450_v35 = vmin.f32 %v3238_v31, 0.0  ;;  %v3242_v3 = vadd.f32 %v3241_v47, %v11844_v21  ;;  %v3295_v11 = vadd.f32 %v3294_v43, %v11844_v21  ;;  %v3503_v29 = vmul.f32 %v11860_v2, %v3451_v57 }
 0x3fe   : > { %v3457_v16 = vmin.f32 %v3240_v19, 0.0  ;;  %v3501_v12 = vmul.f32 %v11860_v2, %v3449_v49  ;;  %v3425_v56 = vmax.f32 %v3240_v19, 0.0  ;;  %v3459_v13 = vmin.f32 %v3293_v44, 0.0 }
 0x3ff   : > { %v3502_v62 = vmul.f32 %v11860_v2, %v3450_v35  ;;  %v3458_v34 = vmin.f32 %v3242_v3, 0.0  ;;  %v3418_v6 = vmax.f32 %v3238_v31, 0.0  ;;  %v3504_v47 = vmul.f32 %v11860_v2, %v3452_v30 }
 0x400   : > { %v3509_v48 = vmul.f32 %v11858_v61, %v3457_v16  ;;  %v3298_v9 = vpop.f32.mrb[84].mxu1  ;;  %v3460_v37 = vmin.f32 %v3295_v11, 0.0  ;;  %v3420_v49 = vmax.f32 %v3291_v54, 0.0  ;;  %v3511_v57 = vmul.f32 %v11858_v61, %v3459_v13 }
 0x401   : > { %v3245_v5 = vpop.f32.mrb[84].mxu0  ;;  %v3300_v38 = vpop.f32.mrb[85].mxu1  ;;  %v11876_v28 = vadd.f32 %v3501_v12, %v3417_v42  ;;  %v3427_v31 = vmax.f32 %v3293_v44, 0.0  ;;  %v3510_v30 = vmul.f32 %v11858_v61, %v3458_v34  ;;  %v11880_v22 = vadd.f32 %v3503_v29, %v3419_v58 }
 0x402   : > { %v3247_v36 = vpop.f32.mrb[85].mxu0  ;;  %v11870_v43 = vadd.f32 %v3245_v5, %v11850_v26  ;;  %v11872_v16 = vadd.f32 %v3509_v48, %v3425_v56  ;;  %v3302_v32 = vpop.f32.mrb[86].mxu1  ;;  %v3512_v41 = vmul.f32 %v11858_v61, %v3460_v37  ;;  %v11882_v52 = vadd.f32 %v3502_v62, %v3418_v6 }
 0x403   : > { %v3249_v19 = vpop.f32.mrb[86].mxu0  ;;  %v3248_v35 = vadd.f32 %v3247_v36, %v11850_v26  ;;  %14685 = vst [vmem:[#allocation72_spill] sm:$0xff] %v11876_v28  ;;  %v3304_v5 = vpop.f32.mrb[87].mxu1  ;;  %14686 = vst [vmem:[#allocation15_spill] sm:$0xff] %v11880_v22  ;;  %v3299_v56 = vadd.f32 %v3298_v9, %v11850_v26  ;;  %v11886_v48 = vadd.f32 %v3504_v47, %v3420_v49  ;;  %v3426_v42 = vmax.f32 %v3242_v3, 0.0 }
 0x404   : > { %14684 = vst [vmem:[#allocation68_spill] sm:$0xff] %v11872_v16  ;;  %v3251_v55 = vpop.f32.mrb[87].mxu0  ;;  %14687 = vst [vmem:[#allocation13_spill] sm:$0xff] %v11882_v52  ;;  %v3465_v54 = vmin.f32 %v11870_v43, 0.0  ;;  %v11888_v36 = vadd.f32 %v3511_v57, %v3427_v31  ;;  %v3428_v12 = vmax.f32 %v3295_v11, 0.0  ;;  %v3565_v44 = vpack.c.bf16 %v11872_v16, %v11876_v28  ;;  %v11894_v29 = vpop.permute.xlu1 %3493 }
 0x405   : > { %14688 = vst [vmem:[#allocation42_spill] sm:$0xff] %v11886_v48  ;;  %v3466_v13 = vmin.f32 %v3248_v35, 0.0  ;;  %v3301_v37 = vadd.f32 %v3300_v38, %v11850_v26  ;;  %v3250_v58 = vadd.f32 %v3249_v19, %v11848_v45  ;;  %v11896_v62 = vadd.f32 %v3510_v30, %v3426_v42  ;;  %v11906_v30 = vpop.permute.xlu0 %3498 }
 0x406   : > { %14689 = vst [vmem:[#allocation46_spill] sm:$0xff] %v11888_v36  ;;  %v11898_v34 = vadd.f32 %v3512_v41, %v3428_v12  ;;  %v3303_v9 = vadd.f32 %v3302_v32, %v11848_v45  ;;  %v3252_v6 = vadd.f32 %v3251_v55, %v11848_v45  ;;  %v3433_v3 = vmax.f32 %v11870_v43, 0.0 }
 0x407   : > { %14690 = vst [vmem:[#allocation44_spill] sm:$0xff] %v11896_v62  ;;  %v3517_v11 = vmul.f32 %v11894_v29, %v3465_v54  ;;  %v3467_v47 = vmin.f32 %v3299_v56, 0.0  ;;  %v3468_v49 = vmin.f32 %v3301_v37, 0.0  ;;  %v3567_v38 = vpack.c.bf16 %v11888_v36, %v11880_v22 }
 0x408   : > { %14691 = vst [vmem:[#allocation55_spill] sm:$0xff] %v11898_v34  ;;  %v3434_v19 = vmax.f32 %v3248_v35, 0.0  ;;  %v3473_v57 = vmin.f32 %v3250_v58, 0.0  ;;  %v3475_v31 = vmin.f32 %v3303_v9, 0.0  ;;  %v3518_v41 = vmul.f32 %v11894_v29, %v3466_v13 }
 0x409   : > { %v3441_v42 = vmax.f32 %v3250_v58, 0.0  ;;  %v3474_v32 = vmin.f32 %v3252_v6, 0.0  ;;  %v3305_v55 = vadd.f32 %v3304_v5, %v11848_v45  ;;  %v3566_v12 = vpack.c.bf16 %v11896_v62, %v11882_v52 }
 0x40a   : > { %v3525_v43 = vmul.f32 %v11906_v30, %v3473_v57  ;;  %v3527_v54 = vmul.f32 %v11906_v30, %v3475_v31  ;;  %v3568_v35 = vpack.c.bf16 %v11898_v34, %v11886_v48  ;;  %v3520_v36 = vmul.f32 %v11894_v29, %v3468_v49 }
 0x40b   : > { %v3442_v16 = vmax.f32 %v3252_v6, 0.0  ;;  %v3526_v22 = vmul.f32 %v11906_v30, %v3474_v32  ;;  %v3476_v13 = vmin.f32 %v3305_v55, 0.0  ;;  %v3519_v58 = vmul.f32 %v11894_v29, %v3467_v47  ;;  %3581 = vmatprep.subr.bf16.mxu0 %v3566_v12 }
 0x40c   : > { %v3436_v28 = vmax.f32 %v3301_v37, 0.0  ;;  %v11919_v5 = vadd.f32 %v3525_v43, %v3441_v42  ;;  %v3443_v57 = vmax.f32 %v3303_v9, 0.0  ;;  %3654 = vmatprep.subr.bf16.mxu1 %v3568_v35  ;;  %v11921_v31 = vadd.f32 %v3518_v41, %v3434_v19  ;;  %3582 = vmatpush1.bf16.msra.mxu0 %v3565_v44 }
 0x40d   : > { %v11923_v62 = vadd.f32 %v3526_v22, %v3442_v16  ;;  %v3444_v52 = vmax.f32 %v3305_v55, 0.0  ;;  %v3528_v34 = vmul.f32 %v11906_v30, %v3476_v13  ;;  %3655 = vmatpush1.bf16.msra.mxu1 %v3567_v38  ;;  %v11926_v6 = vadd.f32 %v3517_v11, %v3433_v3 }
 0x40e   : > { %14692 = vst [vmem:[#allocation45_spill] sm:$0xff] %v11919_v5  ;;  %14693 = vst [vmem:[#allocation43_spill] sm:$0xff] %v11921_v31  ;;  %v3435_v49 = vmax.f32 %v3299_v56, 0.0  ;;  %v11928_v32 = vadd.f32 %v3527_v54, %v3443_v57  ;;  %v11930_v37 = vadd.f32 %v3520_v36, %v3436_v28  ;;  %v11958_v28 = vld [vmem:[%s14044_s3 + $0x8] sm:$0xff]  }
 0x40f   : > { %14694 = vst [vmem:[#allocation10_spill] sm:$0xff] %v11923_v62  ;;  %14695 = vst [vmem:[#allocation49_spill] sm:$0xff] %v11926_v6  ;;  %v11932_v47 = vadd.f32 %v3528_v34, %v3444_v52  ;;  %v3574_v9 = vpack.c.bf16 %v11923_v62, %v11921_v31  ;;  %v3573_v22 = vpack.c.bf16 %v11919_v5, %v11926_v6  ;;  %v11947_v52 = vld [vmem:[%s14044_s3] sm:$0xff]  }
 0x410   : > { %14696 = vst [vmem:[#allocation56_spill] sm:$0xff] %v11928_v32  ;;  %14697 = vst [vmem:[#allocation9_spill] sm:$0xff] %v11930_v37  ;;  %v11936_v19 = vadd.f32 %v3519_v58, %v3435_v49  ;;  %v11974_v49 = vld [vmem:[%s14044_s3 + $0x10] sm:$0xff]  }
 0x411   : > { %14698 = vst [vmem:[#allocation48_spill] sm:$0xff] %v11932_v47  ;;  %3583 = vmatprep.subr.bf16.mxu0 %v3574_v9  ;;  %v3576_v16 = vpack.c.bf16 %v11932_v47, %v11930_v37 }
 0x412   : > { %14699 = vst [vmem:[#allocation14_spill] sm:$0xff] %v11936_v19  ;;  %v3575_v56 = vpack.c.bf16 %v11928_v32, %v11936_v19  ;;  %3584 = vmatpush1.bf16.msra.mxu0 %v3573_v22 }
 0x413   : > { %3656 = vmatprep.subr.bf16.mxu1 %v3576_v16 }
 0x414   : > { %3657 = vmatpush1.bf16.msra.mxu1 %v3575_v56 }
 0x415   : > { %8219 = vmatmul.mubr.msk.bf16.vlgmr.msra.gmra.mrb[96].mxu0 %vm1784_vm8, %v11947_v52 }
 0x416   : > { %3623 = vmatprep.mubr.bf16.mxu0 %v14616_v59 }
 0x417   : > { %8223 = vmatmul.mubr.msk.bf16.vlgmr.msra.gmra.mrb[96].mxu1 %vm1784_vm8, %v11947_v52 }
 0x418   : > { %3696 = vmatprep.mubr.bf16.mxu1 %v14616_v59 }
 0x41d   : > { %8220 = vmatmul.mubr.msk.bf16.gmra.mrb[100].mxu0 %vm1784_vm8, %v11958_v28 }
 0x41e   : > { %3633 = vmatprep.mubr.bf16.mxu0 %v14616_v59 }
 0x41f   : > { %8224 = vmatmul.mubr.msk.bf16.gmra.mrb[100].mxu1 %vm1784_vm8, %v11958_v28 }
 0x420   : > { %3706 = vmatprep.mubr.bf16.mxu1 %v14616_v59 }
 0x425   : > { %8221 = vmatmul.mubr.msk.bf16.gmra.mrb[104].mxu0 %vm1784_vm8, %v11974_v49 }
 0x426   : > { %v3341_v36 = vpop.f32.mrb[88].mxu0  ;;  %3643 = vmatprep.mubr.bf16.mxu0 %v14616_v59 }
 0x427   : > { %v3342_v44 = vadd.f32 %v3341_v36, %v11846_v51  ;;  %v3394_v34 = vpop.f32.mrb[88].mxu1  ;;  %v3343_v3 = vpop.f32.mrb[89].mxu0  ;;  %8225 = vmatmul.mubr.msk.bf16.gmra.mrb[104].mxu1 %vm1784_vm8, %v11974_v49 }
 0x428   : > { %v3395_v11 = vadd.f32 %v3394_v34, %v11846_v51  ;;  %v3344_v38 = vadd.f32 %v3343_v3, %v11846_v51  ;;  %v3396_v41 = vpop.f32.mrb[89].mxu1  ;;  %v3345_v42 = vpop.f32.mrb[90].mxu0  ;;  %3716 = vmatprep.mubr.bf16.mxu1 %v14616_v59 }
 0x429   : > { %v3397_v55 = vadd.f32 %v3396_v41, %v11846_v51  ;;  %v3346_v43 = vadd.f32 %v3345_v42, %v11844_v21  ;;  %v3398_v54 = vpop.f32.mrb[90].mxu1  ;;  %v3347_v12 = vpop.f32.mrb[91].mxu0  ;;  %v3453_v35 = vmin.f32 %v3342_v44, 0.0  ;;  %v3421_v16 = vmax.f32 %v3342_v44, 0.0 }
 0x42a   : > { %v3400_v13 = vpop.f32.mrb[91].mxu1  ;;  %v3455_v58 = vmin.f32 %v3395_v11, 0.0  ;;  %v3454_v57 = vmin.f32 %v3344_v38, 0.0  ;;  %v3399_v51 = vadd.f32 %v3398_v54, %v11844_v21  ;;  %v3348_v56 = vadd.f32 %v3347_v12, %v11844_v21 }
 0x42b   : > { %v3456_v9 = vmin.f32 %v3397_v55, 0.0  ;;  %v3461_v22 = vmin.f32 %v3346_v43, 0.0  ;;  %v3401_v36 = vadd.f32 %v3400_v13, %v11844_v21  ;;  %v3505_v34 = vmul.f32 %v11860_v2, %v3453_v35 }
 0x42c   : > { %v3423_v3 = vmax.f32 %v3395_v11, 0.0  ;;  %v3429_v41 = vmax.f32 %v3346_v43, 0.0  ;;  %v3507_v54 = vmul.f32 %v11860_v2, %v3455_v58  ;;  %v3506_v44 = vmul.f32 %v11860_v2, %v3454_v57 }
 0x42d   : > { %v3513_v42 = vmul.f32 %v11858_v61, %v3461_v22  ;;  %v3463_v62 = vmin.f32 %v3399_v51, 0.0  ;;  %v3462_v12 = vmin.f32 %v3348_v56, 0.0  ;;  %v3422_v13 = vmax.f32 %v3344_v38, 0.0 }
 0x42e   : > { %v3351_v47 = vpop.f32.mrb[92].mxu0  ;;  %v3508_v5 = vmul.f32 %v11860_v2, %v3456_v9  ;;  %v3464_v37 = vmin.f32 %v3401_v36, 0.0  ;;  %v3424_v22 = vmax.f32 %v3397_v55, 0.0  ;;  %v11997_v48 = vadd.f32 %v3505_v34, %v3421_v16 }
 0x42f   : > { %v3404_v32 = vpop.f32.mrb[92].mxu1  ;;  %v3353_v21 = vpop.f32.mrb[93].mxu0  ;;  %v11991_v11 = vadd.f32 %v3351_v47, %v11850_v26  ;;  %v11993_v31 = vadd.f32 %v3513_v42, %v3429_v41  ;;  %v3515_v58 = vmul.f32 %v11858_v61, %v3463_v62  ;;  %v3431_v38 = vmax.f32 %v3399_v51, 0.0  ;;  %v12010_v41 = vld [vmem:[%s14044_s3 + $0x18] sm:$0xff]  }
 0x430   : > { %v3406_v43 = vpop.f32.mrb[93].mxu1  ;;  %v3355_v35 = vpop.f32.mrb[94].mxu0  ;;  %v3354_v57 = vadd.f32 %v3353_v21, %v11850_v26  ;;  %v3514_v2 = vmul.f32 %v11858_v61, %v3462_v12  ;;  %v3516_v9 = vmul.f32 %v11858_v61, %v3464_v37  ;;  %v12001_v10 = vadd.f32 %v3507_v54, %v3423_v3  ;;  %8222 = vmatmul.mubr.msk.bf16.gmra.mrb[108].mxu0 %vm1784_vm8, %v12010_v41 }
 0x431   : > { %v3408_v19 = vpop.f32.mrb[94].mxu1  ;;  %v3357_v6 = vpop.f32.mrb[95].mxu0  ;;  %v12003_v40 = vadd.f32 %v3506_v44, %v3422_v13  ;;  %v3469_v55 = vmin.f32 %v11991_v11, 0.0  ;;  %v3405_v62 = vadd.f32 %v3404_v32, %v11850_v26  ;;  %v12014_v51 = vadd.f32 %v3508_v5, %v3424_v22  ;;  %3759 = vmatprep.mubr.bf16.mxu0 %v14616_v59  ;;  %8226 = vmatmul.mubr.msk.bf16.gmra.mrb[108].mxu1 %vm1784_vm8, %v12010_v41 }
 0x432   : > { %v3410_v47 = vpop.f32.mrb[95].mxu1  ;;  %v12016_v61 = vadd.f32 %v3515_v58, %v3431_v38  ;;  %v3430_v37 = vmax.f32 %v3348_v56, 0.0  ;;  %v3432_v16 = vmax.f32 %v3401_v36, 0.0  ;;  %v3569_v34 = vpack.c.bf16 %v11993_v31, %v11997_v48  ;;  %3832 = vmatprep.mubr.bf16.mxu1 %v14616_v59 }
 0x433   : > { %v3470_v32 = vmin.f32 %v3354_v57, 0.0  ;;  %v3407_v3 = vadd.f32 %v3406_v43, %v11850_v26  ;;  %v3356_v42 = vadd.f32 %v3355_v35, %v11848_v45  ;;  %v3409_v56 = vadd.f32 %v3408_v19, %v11848_v45 }
 0x434   : > { %14700 = vst [vmem:[#allocation8_spill] sm:$0xff] %v12016_v61  ;;  %v12025_v54 = vadd.f32 %v3514_v2, %v3430_v37  ;;  %v12027_v5 = vadd.f32 %v3516_v9, %v3432_v16  ;;  %v3358_v36 = vadd.f32 %v3357_v6, %v11848_v45  ;;  %v3437_v44 = vmax.f32 %v11991_v11, 0.0 }
 0x435   : > { %v3521_v12 = vmul.f32 %v11894_v29, %v3469_v55  ;;  %v3471_v26 = vmin.f32 %v3405_v62, 0.0  ;;  %v3472_v21 = vmin.f32 %v3407_v3, 0.0  ;;  %v3571_v13 = vpack.c.bf16 %v12016_v61, %v12001_v10 }
 0x436   : > { %14701 = vst [vmem:[#allocation47_spill] sm:$0xff] %v12025_v54  ;;  %14702 = vst [vmem:[#allocation34_spill] sm:$0xff] %v12027_v5  ;;  %v3438_v43 = vmax.f32 %v3354_v57, 0.0  ;;  %v3477_v35 = vmin.f32 %v3356_v42, 0.0  ;;  %v3479_v22 = vmin.f32 %v3409_v56, 0.0  ;;  %v3522_v58 = vmul.f32 %v11894_v29, %v3470_v32 }
 0x437   : > { %v3445_v38 = vmax.f32 %v3356_v42, 0.0  ;;  %v3478_v19 = vmin.f32 %v3358_v36, 0.0  ;;  %v3411_v6 = vadd.f32 %v3410_v47, %v11848_v45  ;;  %v3570_v9 = vpack.c.bf16 %v12025_v54, %v12003_v40 }
 0x438   : > { %v3529_v2 = vmul.f32 %v11906_v30, %v3477_v35  ;;  %v3531_v11 = vmul.f32 %v11906_v30, %v3479_v22  ;;  %v3572_v55 = vpack.c.bf16 %v12027_v5, %v12014_v51  ;;  %v3524_v57 = vmul.f32 %v11894_v29, %v3472_v21 }
 0x439   : > { %v3446_v37 = vmax.f32 %v3358_v36, 0.0  ;;  %v3530_v16 = vmul.f32 %v11906_v30, %v3478_v19  ;;  %v3480_v32 = vmin.f32 %v3411_v6, 0.0  ;;  %v3523_v42 = vmul.f32 %v11894_v29, %v3471_v26  ;;  %3727 = vmatprep.subr.bf16.mxu0 %v3570_v9 }
 0x43a   : > { %v3440_v61 = vmax.f32 %v3407_v3, 0.0  ;;  %v12047_v45 = vadd.f32 %v3529_v2, %v3445_v38  ;;  %v3447_v47 = vmax.f32 %v3409_v56, 0.0  ;;  %3800 = vmatprep.subr.bf16.mxu1 %v3572_v55  ;;  %v12049_v35 = vadd.f32 %v3522_v58, %v3438_v43  ;;  %3728 = vmatpush1.bf16.msra.mxu0 %v3569_v34 }
 0x43b   : > { %v12051_v22 = vadd.f32 %v3530_v16, %v3446_v37  ;;  %v3448_v54 = vmax.f32 %v3411_v6, 0.0  ;;  %v3532_v5 = vmul.f32 %v11906_v30, %v3480_v32  ;;  %3801 = vmatpush1.bf16.msra.mxu1 %v3571_v13  ;;  %v12054_v36 = vadd.f32 %v3521_v12, %v3437_v44  ;;  %v14711_v6 = vld [vmem:[#allocation75_spill] sm:$0xff]  ;;  %v14713_v16 = vld [vmem:[#allocation76_spill] sm:$0xff] }
 0x43c   : > { %14703 = vst [vmem:[#allocation31_spill] sm:$0xff] %v12047_v45  ;;  %14704 = vst [vmem:[#allocation23_spill] sm:$0xff] %v12049_v35  ;;  %v3439_v21 = vmax.f32 %v3405_v62, 0.0  ;;  %v12056_v19 = vadd.f32 %v3531_v11, %v3447_v47  ;;  %v12058_v29 = vadd.f32 %v3524_v57, %v3440_v61  ;;  %v14712_v57 = vld [vmem:[#allocation77_spill] sm:$0xff] }
 0x43d   : > { %14705 = vst [vmem:[#allocation25_spill] sm:$0xff] %v12051_v22  ;;  %v12060_v3 = vadd.f32 %v3532_v5, %v3448_v54  ;;  %v3578_v56 = vpack.c.bf16 %v12051_v22, %v12049_v35  ;;  %v3577_v43 = vpack.c.bf16 %v12047_v45, %v12054_v36  ;;  %v14710_v5 = vld [vmem:[#allocation74_spill] sm:$0xff]  ;;  %v14725_v22 = vld [vmem:[#allocation92_spill] sm:$0xff] }
 0x43e   : > { %14706 = vst [vmem:[#allocation26_spill] sm:$0xff] %v12056_v19  ;;  %14707 = vst [vmem:[#allocation35_spill] sm:$0xff] %v12058_v29  ;;  %v12064_v26 = vadd.f32 %v3523_v42, %v3439_v21 }
 0x43f   : > { %14708 = vst [vmem:[#allocation29_spill] sm:$0xff] %v12060_v3  ;;  %3729 = vmatprep.subr.bf16.mxu0 %v3578_v56  ;;  %v3580_v30 = vpack.c.bf16 %v12060_v3, %v12058_v29  ;;  %v14714_v56 = vld [vmem:[#allocation79_spill] sm:$0xff] }
 0x440   : > { %14709 = vst [vmem:[#allocation30_spill] sm:$0xff] %v12064_v26  ;;  %v3579_v62 = vpack.c.bf16 %v12056_v19, %v12064_v26  ;;  %3730 = vmatpush1.bf16.msra.mxu0 %v3577_v43 }
 0x441   : > { %3802 = vmatprep.subr.bf16.mxu1 %v3580_v30  ;;  %v14715_v30 = vld [vmem:[#allocation78_spill] sm:$0xff] }
 0x442   : > { %3803 = vmatpush1.bf16.msra.mxu1 %v3579_v62 }
 0x443   : > { %8227 = vmatmul.mubr.msk.bf16.vlgmr.msra.gmra.mrb[112].mxu0 %vm1784_vm8, %v11947_v52 }
 0x444   : > { %3769 = vmatprep.mubr.bf16.mxu0 %v14616_v59 }
 0x445   : > { %8231 = vmatmul.mubr.msk.bf16.vlgmr.msra.gmra.mrb[112].mxu1 %vm1784_vm8, %v11947_v52 }
 0x446   : > { %3842 = vmatprep.mubr.bf16.mxu1 %v14616_v59 }
 0x44b   : > { %8228 = vmatmul.mubr.msk.bf16.gmra.mrb[116].mxu0 %vm1784_vm8, %v11958_v28 }
 0x44c   : > { %3779 = vmatprep.mubr.bf16.mxu0 %v14616_v59 }
 0x44d   : > { %8232 = vmatmul.mubr.msk.bf16.gmra.mrb[116].mxu1 %vm1784_vm8, %v11958_v28 }
 0x44e   : > { %3852 = vmatprep.mubr.bf16.mxu1 %v14616_v59 }
 0x453   : > { %8229 = vmatmul.mubr.msk.bf16.gmra.mrb[120].mxu0 %vm1784_vm8, %v11974_v49 }
 0x454   : > { %3789 = vmatprep.mubr.bf16.mxu0 %v14616_v59 }
 0x455   : > { %8233 = vmatmul.mubr.msk.bf16.gmra.mrb[120].mxu1 %vm1784_vm8, %v11974_v49 }
 0x456   : > { %3862 = vmatprep.mubr.bf16.mxu1 %v14616_v59 }
 0x45b   : > { %8230 = vmatmul.mubr.msk.bf16.gmra.mrb[124].mxu0 %vm1784_vm8, %v12010_v41 }
 0x45c   : > { %4241 = vmatprep.mubr.bf16.mxu0 %v14616_v59 }
 0x45d   : > { %8234 = vmatmul.mubr.msk.bf16.gmra.mrb[124].mxu1 %vm1784_vm8, %v12010_v41 }
 0x45e   : > { %4294 = vmatprep.mubr.bf16.mxu1 %v14616_v59 }
 0x4e8   : > { %v3615_v52 = vpop.f32.mrb[96].mxu0 }
 0x4e9   : > { %v3616_v28 = vadd.f32 %v3615_v52, %v14603_v14  ;;  %v3617_v61 = vpop.f32.mrb[97].mxu0 }
 0x4ea   : > { %v3688_v34 = vpop.f32.mrb[96].mxu1  ;;  %v3618_v54 = vadd.f32 %v3617_v61, %v14603_v14  ;;  %v3619_v49 = vpop.f32.mrb[98].mxu0 }
 0x4eb   : > { %v3873_v44 = vadd.f32 %v3616_v28, %v14710_v5  ;;  %v3689_v12 = vadd.f32 %v3688_v34, %v14603_v14  ;;  %v3690_v13 = vpop.f32.mrb[97].mxu1  ;;  %v3620_v58 = vadd.f32 %v3619_v49, %v11117_v24  ;;  %v3621_v38 = vpop.f32.mrb[99].mxu0  ;;  %v14716_v34 = vld [vmem:[#allocation80_spill] sm:$0xff] }
 0x4ec   : > { %v3874_v41 = vadd.f32 %v3618_v54, %v14711_v6  ;;  %v3691_v2 = vadd.f32 %v3690_v13, %v14603_v14  ;;  %v3692_v11 = vpop.f32.mrb[98].mxu1  ;;  %v3622_v9 = vadd.f32 %v3621_v38, %v11117_v24 }
 0x4ed   : > { %v8235_v55 = vmul.f32 -1.442695, %v3873_v44  ;;  %v3875_v37 = vadd.f32 %v3689_v12, %v14712_v57  ;;  %v3881_v32 = vadd.f32 %v3620_v58, %v14713_v16  ;;  %v3693_v42 = vadd.f32 %v3692_v11, %v11117_v24  ;;  %v3694_v47 = vpop.f32.mrb[99].mxu1  ;;  %v14717_v44 = vld [vmem:[#allocation81_spill] sm:$0xff] }
 0x4ee   : > { %v8236_v21 = vmul.f32 -1.442695, %v3874_v41  ;;  %v3876_v43 = vadd.f32 %v3691_v2, %v14714_v56  ;;  %v3882_v62 = vadd.f32 %v3622_v9, %v14715_v30  ;;  %v3695_v52 = vadd.f32 %v3694_v47, %v11117_v24 }
 0x4ef   : > { %8705 = vpow2.f32 %v8235_v55  ;;  %v8237_v28 = vmul.f32 -1.442695, %v3875_v37  ;;  %v8243_v61 = vmul.f32 -1.442695, %v3881_v32  ;;  %v3883_v54 = vadd.f32 %v3693_v42, %v14716_v34  ;;  %v14718_v32 = vld [vmem:[#allocation82_spill] sm:$0xff] }
 0x4f0   : > { %8707 = vpow2.f32 %v8236_v21  ;;  %v8238_v49 = vmul.f32 -1.442695, %v3876_v43  ;;  %v3884_v12 = vadd.f32 %v3695_v52, %v14717_v44  ;;  %v3625_v13 = vpop.f32.mrb[100].mxu0  ;;  %v8244_v38 = vmul.f32 -1.442695, %v3882_v62  ;;  %v14719_v62 = vld [vmem:[#allocation84_spill] sm:$0xff] }
 0x4f1   : > { %8709 = vpow2.f32 %v8237_v28  ;;  %v8245_v58 = vmul.f32 -1.442695, %v3883_v54  ;;  %v3626_v41 = vadd.f32 %v3625_v13, %v11139_v33  ;;  %v3627_v2 = vpop.f32.mrb[101].mxu0  ;;  %v14720_v13 = vld [vmem:[#allocation88_spill] sm:$0xff]  ;;  %v14721_v44 = vld [vmem:[#allocation85_spill] sm:$0xff] }
 0x4f2   : > { %8711 = vpow2.f32 %v8238_v49  ;;  %v8246_v11 = vmul.f32 -1.442695, %v3884_v12  ;;  %v3698_v9 = vpop.f32.mrb[100].mxu1  ;;  %v3628_v55 = vadd.f32 %v3627_v2, %v11139_v33  ;;  %v3629_v37 = vpop.f32.mrb[102].mxu0 }
 0x4f3   : > { %8713 = vpow2.f32 %v8243_v61  ;;  %v3889_v42 = vadd.f32 %v3626_v41, %v14718_v32  ;;  %v3699_v47 = vadd.f32 %v3698_v9, %v11139_v33  ;;  %v3700_v21 = vpop.f32.mrb[101].mxu1  ;;  %v3630_v43 = vadd.f32 %v3629_v37, %v14604_v20  ;;  %v3631_v52 = vpop.f32.mrb[103].mxu0  ;;  %v14722_v9 = vld [vmem:[#allocation89_spill] sm:$0xff] }
 0x4f4   : > { %8715 = vpow2.f32 %v8245_v58  ;;  %v3890_v28 = vadd.f32 %v3628_v55, %v14719_v62  ;;  %v3701_v54 = vadd.f32 %v3700_v21, %v11139_v33  ;;  %v3702_v49 = vpop.f32.mrb[102].mxu1 }
 0x4f5   : > { %8717 = vpow2.f32 %v8244_v38  ;;  %v8251_v12 = vmul.f32 -1.442695, %v3889_v42  ;;  %v3891_v2 = vadd.f32 %v3699_v47, %v14720_v13  ;;  %v3897_v61 = vadd.f32 %v3630_v43, %v14721_v44  ;;  %v3704_v34 = vpop.f32.mrb[103].mxu1 }
 0x4f6   : > { %8719 = vpow2.f32 %v8246_v11  ;;  %v8252_v41 = vmul.f32 -1.442695, %v3890_v28  ;;  %v3892_v32 = vadd.f32 %v3701_v54, %v14722_v9  ;;  %v3703_v9 = vadd.f32 %v3702_v49, %v14604_v20  ;;  %v14723_v49 = vld [vmem:[#allocation90_spill] sm:$0xff] }
 0x4f7   : > { %8721 = vpow2.f32 %v8251_v12  ;;  %v8253_v37 = vmul.f32 -1.442695, %v3891_v2  ;;  %v8259_v30 = vmul.f32 -1.442695, %v3897_v61  ;;  %v3705_v56 = vadd.f32 %v3704_v34, %v14604_v20 }
 0x4f8   : > { %8723 = vpow2.f32 %v8252_v41  ;;  %v8254_v58 = vmul.f32 -1.442695, %v3892_v32  ;;  %v3635_v55 = vpop.f32.mrb[104].mxu0  ;;  %v3899_v57 = vadd.f32 %v3703_v9, %v14723_v49 }
 0x4f9   : > { %v8706_v62 = vpop.eup %8705  ;;  %8725 = vpow2.f32 %v8253_v37  ;;  %v12122_v21 = vpop.f32.mrb[105].mxu0  ;;  %v3636_v9 = vadd.f32 %v3635_v55, %v11202_v27 }
 0x4fa   : > { %v8708_v38 = vpop.eup %8707  ;;  %v4033_v42 = vadd.f32 1.0, %v8706_v62  ;;  %8727 = vpow2.f32 %v8254_v58  ;;  %v3708_v47 = vpop.f32.mrb[104].mxu1 }
 0x4fb   : > { %v12124_v43 = vpop.f32.mrb[106].mxu0  ;;  %v8710_v11 = vpop.eup %8709  ;;  %v4034_v28 = vadd.f32 1.0, %v8708_v38  ;;  %8729 = vpow2.f32 %v8259_v30  ;;  %v3632_v38 = vadd.f32 %v3631_v52, %v14604_v20 }
 0x4fc   : > { %v3710_v54 = vpop.f32.mrb[105].mxu1  ;;  %v12126_v12 = vpop.f32.mrb[107].mxu0  ;;  %8731 = vrcp.f32 %v4033_v42  ;;  %v4035_v32 = vadd.f32 1.0, %v8710_v11 }
 0x4fd   : > { %v8712_v2 = vpop.eup %8711  ;;  %v3712_v61 = vpop.f32.mrb[106].mxu1  ;;  %8733 = vrcp.f32 %v4034_v28 }
 0x4fe   : > { %v8714_v41 = vpop.eup %8713  ;;  %v4036_v37 = vadd.f32 1.0, %v8712_v2  ;;  %v12129_v62 = vpop.f32.mrb[107].mxu1  ;;  %8735 = vrcp.f32 %v4035_v32 }
 0x4ff   : > { %v8716_v58 = vpop.eup %8715  ;;  %v4041_v44 = vadd.f32 1.0, %v8714_v41  ;;  %v14724_v41 = vld [vmem:[#allocation91_spill] sm:$0xff] }
 0x500   : > { %v8718_v30 = vpop.eup %8717  ;;  %8737 = vrcp.f32 %v4036_v37  ;;  %v4043_v13 = vadd.f32 1.0, %v8716_v58  ;;  %v3898_v52 = vadd.f32 %v3632_v38, %v14724_v41  ;;  %v3709_v38 = vadd.f32 %v3708_v47, %v11202_v27 }
 0x501   : > { %v8720_v42 = vpop.eup %8719  ;;  %8739 = vrcp.f32 %v4041_v44  ;;  %v4042_v11 = vadd.f32 1.0, %v8718_v30  ;;  %v3900_v44 = vadd.f32 %v3705_v56, %v14725_v22  ;;  %v3640_v47 = vadd.f32 %v12124_v43, %v11241_v53 }
 0x502   : > { %v8722_v28 = vpop.eup %8721  ;;  %8741 = vrcp.f32 %v4043_v13  ;;  %v4044_v2 = vadd.f32 1.0, %v8720_v42  ;;  %v8260_v56 = vmul.f32 -1.442695, %v3898_v52  ;;  %v3642_v52 = vadd.f32 %v12126_v12, %v11241_v53 }
 0x503   : > { %v3645_v16 = vpop.f32.mrb[108].mxu0  ;;  %v8724_v5 = vpop.eup %8723  ;;  %8743 = vrcp.f32 %v4042_v11  ;;  %v4049_v32 = vadd.f32 1.0, %v8722_v28  ;;  %v8261_v28 = vmul.f32 -1.442695, %v3899_v57  ;;  %v8262_v55 = vmul.f32 -1.442695, %v3900_v44 }
 0x504   : > { %v3647_v6 = vpop.f32.mrb[109].mxu0  ;;  %v3718_v3 = vpop.f32.mrb[108].mxu1  ;;  %8745 = vrcp.f32 %v4044_v2  ;;  %v4050_v34 = vadd.f32 1.0, %v8724_v5  ;;  %v3638_v2 = vadd.f32 %v12122_v21, %v11202_v27  ;;  %v3713_v21 = vadd.f32 %v3712_v61, %v11241_v53  ;;  %v14728_v61 = vld [vmem:[#allocation97_spill] sm:$0xff] }
 0x505   : > { %v3649_v37 = vpop.f32.mrb[110].mxu0  ;;  %v8726_v58 = vpop.eup %8725  ;;  %8747 = vrcp.f32 %v4049_v32  ;;  %v3646_v12 = vadd.f32 %v3645_v16, %v11379_v1  ;;  %v14731_v16 = vld [vmem:[#allocation101_spill] sm:$0xff] }
 0x506   : > { %v3720_v30 = vpop.f32.mrb[109].mxu1  ;;  %v3651_v19 = vpop.f32.mrb[111].mxu0  ;;  %v4051_v13 = vadd.f32 1.0, %v8726_v58  ;;  %8749 = vrcp.f32 %v4050_v34  ;;  %v3711_v58 = vadd.f32 %v3710_v54, %v11202_v27  ;;  %v3906_v54 = vadd.f32 %v3638_v2, %v11237_v60  ;;  %v14730_v60 = vld [vmem:[#allocation100_spill] sm:$0xff] }
 0x507   : > { %v8728_v45 = vpop.eup %8727  ;;  %v3722_v42 = vpop.f32.mrb[110].mxu1 }
 0x508   : > { %v8730_v49 = vpop.eup %8729  ;;  %v4052_v11 = vadd.f32 1.0, %v8728_v45  ;;  %v3724_v41 = vpop.f32.mrb[111].mxu1  ;;  %8751 = vrcp.f32 %v4051_v13  ;;  %v14726_v45 = vld [vmem:[#allocation93_spill] sm:$0xff] }
 0x509   : > { %v12138_v29 = vpop.eup %8731  ;;  %v4057_v5 = vadd.f32 1.0, %v8730_v49  ;;  %v3905_v57 = vadd.f32 %v3636_v9, %v14726_v45  ;;  %v3907_v49 = vadd.f32 %v3709_v38, %v11233_v23  ;;  %v14727_v9 = vld [vmem:[#allocation96_spill] sm:$0xff]  ;;  %v3913_v38 = vadd.f32 %v3640_v47, %v14728_v61 }
 0x50a   : > { %v12142_v32 = vpop.eup %8733  ;;  %8753 = vrcp.f32 %v4052_v11  ;;  %v3908_v43 = vadd.f32 %v3711_v58, %v14727_v9  ;;  %v3914_v45 = vadd.f32 %v3642_v52, %v14730_v60  ;;  %v3650_v47 = vadd.f32 %v3649_v37, %v11392_v63 }
 0x50b   : > { %v12145_v34 = vpop.eup %8735  ;;  %8755 = vrcp.f32 %v4057_v5 }
 0x50c   : > { %v12150_v13 = vpop.eup %8737  ;;  %8757 = vpow2.f32 %v8261_v28  ;;  %v3715_v28 = vadd.f32 %v12129_v62, %v11241_v53  ;;  %v3648_v62 = vadd.f32 %v3647_v6, %v11379_v1 }
 0x50d   : > { %v12156_v44 = vpop.eup %8739  ;;  %8759 = vpow2.f32 %v8260_v56  ;;  %v14729_v56 = vld [vmem:[#allocation98_spill] sm:$0xff] }
 0x50e   : > { %v12159_v11 = vpop.eup %8741  ;;  %8761 = vpow2.f32 %v8262_v55  ;;  %v3915_v2 = vadd.f32 %v3713_v21, %v14729_v56  ;;  %v3719_v55 = vadd.f32 %v3718_v3, %v11379_v1  ;;  %v3723_v21 = vadd.f32 %v3722_v42, %v11392_v63  ;;  %v14732_v3 = vld [vmem:[#allocation102_spill] sm:$0xff] }
 0x50f   : > { %v12164_v5 = vpop.eup %8743  ;;  %8763 = vtanh.f32 %v3905_v57  ;;  %v3721_v57 = vadd.f32 %v3720_v30, %v11379_v1  ;;  %v3921_v52 = vadd.f32 %v3646_v12, %v14732_v3  ;;  %v14733_v30 = vld [vmem:[#allocation104_spill] sm:$0xff]  ;;  %v3929_v42 = vadd.f32 %v3650_v47, %v11300_v8 }
 0x510   : > { %v12168_v23 = vpop.eup %8745  ;;  %8765 = vtanh.f32 %v3907_v49  ;;  %v3916_v49 = vadd.f32 %v3715_v28, %v14731_v16  ;;  %v3923_v6 = vadd.f32 %v3719_v55, %v11276_v25  ;;  %v3931_v12 = vadd.f32 %v3723_v21, %v11307_v15 }
 0x511   : > { %v12173_v58 = vpop.eup %8747  ;;  %8767 = vtanh.f32 %v3906_v54  ;;  %v3652_v54 = vadd.f32 %v3651_v19, %v11392_v63  ;;  %v3924_v28 = vadd.f32 %v3721_v57, %v11293_v7  ;;  %v3725_v19 = vadd.f32 %v3724_v41, %v11392_v63 }
 0x512   : > { %v12178_v61 = vpop.eup %8749  ;;  %8769 = vtanh.f32 %v3908_v43  ;;  %v3922_v43 = vadd.f32 %v3648_v62, %v14733_v30 }
 0x513   : > { %v12182_v56 = vpop.eup %8751  ;;  %8771 = vtanh.f32 %v3913_v38 }
 0x514   : > { %v12186_v60 = vpop.eup %8753  ;;  %8773 = vtanh.f32 %v3915_v2 }
 0x515   : > { %v12189_v37 = vpop.eup %8755  ;;  %8775 = vtanh.f32 %v3914_v45  ;;  %v14734_v45 = vld [vmem:[#allocation109_spill] sm:$0xff] }
 0x516   : > { %v3761_v16 = vpop.f32.mrb[112].mxu0  ;;  %v8758_v38 = vpop.eup %8757  ;;  %8777 = vtanh.f32 %v3916_v49  ;;  %v3930_v9 = vadd.f32 %v3652_v54, %v14734_v45  ;;  %v14735_v49 = vld [vmem:[#allocation111_spill] sm:$0xff] }
 0x517   : > { %v3762_v2 = vadd.f32 %v3761_v16, %v14603_v14  ;;  %v3763_v3 = vpop.f32.mrb[113].mxu0  ;;  %v8760_v55 = vpop.eup %8759  ;;  %v4059_v25 = vadd.f32 1.0, %v8758_v38  ;;  %8779 = vtanh.f32 %v3921_v52 }
 0x518   : > { %v3834_v62 = vpop.f32.mrb[112].mxu1  ;;  %v3764_v57 = vadd.f32 %v3763_v3, %v14603_v14  ;;  %v3765_v7 = vpop.f32.mrb[114].mxu0  ;;  %v4058_v8 = vadd.f32 1.0, %v8760_v55  ;;  %8781 = vtanh.f32 %v3923_v6  ;;  %v14736_v3 = vld [vmem:[#allocation110_spill] sm:$0xff] }
 0x519   : > { %v8762_v47 = vpop.eup %8761  ;;  %v3877_v30 = vadd.f32 %v3762_v2, %v14735_v49  ;;  %v3835_v21 = vadd.f32 %v3834_v62, %v14603_v14  ;;  %v3836_v41 = vpop.f32.mrb[113].mxu1  ;;  %8783 = vrcp.f32 %v4059_v25  ;;  %v3932_v55 = vadd.f32 %v3725_v19, %v14736_v3 }
 0x51a   : > { %v3767_v15 = vpop.f32.mrb[115].mxu0  ;;  %v8764_v16 = vpop.eup %8763  ;;  %v4060_v22 = vadd.f32 1.0, %v8762_v47  ;;  %v3878_v52 = vadd.f32 %v3764_v57, %v11334_v39  ;;  %v3837_v54 = vadd.f32 %v3836_v41, %v14603_v14  ;;  %8785 = vrcp.f32 %v4058_v8  ;;  %v14737_v39 = vld [vmem:[#allocation113_spill] sm:$0xff] }
 0x51b   : > { %v3838_v38 = vpop.f32.mrb[114].mxu1  ;;  %v12203_v45 = vpop.eup %8765  ;;  %v3879_v6 = vadd.f32 %v3835_v21, %v11352_v46  ;;  %v3766_v2 = vadd.f32 %v3765_v7, %v11117_v24  ;;  %v8239_v35 = vmul.f32 -1.442695, %v3877_v30  ;;  %v3768_v8 = vadd.f32 %v3767_v15, %v11117_v24  ;;  %v14738_v46 = vld [vmem:[#allocation117_spill] sm:$0xff] }
 0x51c   : > { %v3840_v62 = vpop.f32.mrb[115].mxu1  ;;  %v8768_v49 = vpop.eup %8767  ;;  %8787 = vrcp.f32 %v4060_v22  ;;  %v3880_v25 = vadd.f32 %v3837_v54, %v11356_v0  ;;  %v3839_v57 = vadd.f32 %v3838_v38, %v11117_v24  ;;  %v8240_v41 = vmul.f32 -1.442695, %v3878_v52  ;;  %v14739_v0 = vld [vmem:[#allocation114_spill] sm:$0xff] }
 0x51d   : > { %v8770_v47 = vpop.eup %8769  ;;  %8789 = vtanh.f32 %v3922_v43  ;;  %v3885_v14 = vadd.f32 %v3766_v2, %v14737_v39  ;;  %v8241_v21 = vmul.f32 -1.442695, %v3879_v6  ;;  %v3841_v3 = vadd.f32 %v3840_v62, %v11117_v24 }
 0x51e   : > { %v8772_v19 = vpop.eup %8771  ;;  %8791 = vtanh.f32 %v3924_v28  ;;  %v3887_v7 = vadd.f32 %v3839_v57, %v14738_v46  ;;  %v3771_v22 = vpop.f32.mrb[116].mxu0  ;;  %v8242_v54 = vmul.f32 -1.442695, %v3880_v25  ;;  %v3886_v38 = vadd.f32 %v3768_v8, %v14739_v0 }
 0x51f   : > { %v8774_v30 = vpop.eup %8773  ;;  %8793 = vtanh.f32 %v3929_v42  ;;  %v4162_v43 = vmul.f32 %v8768_v49, %v12142_v32  ;;  %v3773_v52 = vpop.f32.mrb[117].mxu0  ;;  %v8247_v2 = vmul.f32 -1.442695, %v3885_v14  ;;  %v4164_v28 = vmul.f32 %v8770_v47, %v12150_v13 }
 0x520   : > { %v8776_v26 = vpop.eup %8775  ;;  %8795 = vtanh.f32 %v3931_v12  ;;  %v8249_v15 = vmul.f32 -1.442695, %v3887_v7  ;;  %v3844_v6 = vpop.f32.mrb[116].mxu1  ;;  %v3888_v62 = vadd.f32 %v3841_v3, %v11383_v17  ;;  %v3772_v25 = vadd.f32 %v3771_v22, %v11139_v33 }
 0x521   : > { %v3775_v39 = vpop.f32.mrb[118].mxu0  ;;  %v8778_v57 = vpop.eup %8777  ;;  %8797 = vtanh.f32 %v3930_v9  ;;  %v4170_v42 = vmul.f32 %v8776_v26, %v12164_v5  ;;  %v8248_v14 = vmul.f32 -1.442695, %v3886_v38  ;;  %v3845_v13 = vadd.f32 %v3844_v6, %v11139_v33 }
 0x522   : > { %v3846_v8 = vpop.f32.mrb[117].mxu1  ;;  %v12220_v0 = vpop.f32.mrb[119].mxu0  ;;  %8799 = vtanh.f32 %v3932_v55  ;;  %v4172_v12 = vmul.f32 %v8778_v57, %v12168_v23  ;;  %v3893_v26 = vadd.f32 %v3772_v25, %v11387_v50  ;;  %v4161_v5 = vmul.f32 %v8764_v16, %v12138_v29 }
 0x523   : > { %v12222_v32 = vpop.eup %8779  ;;  %v12226_v49 = vpop.f32.mrb[118].mxu1  ;;  %8801 = vpow2.f32 %v8239_v35  ;;  %v4194_v3 = vpack.c.bf16 %v4170_v42, %v4162_v43  ;;  %v3895_v23 = vadd.f32 %v3845_v13, %v11421_v4  ;;  %v4169_v22 = vmul.f32 %v8772_v19, %v12156_v44 }
 0x524   : > { %v12228_v9 = vpop.eup %8781  ;;  %v12232_v47 = vpop.f32.mrb[119].mxu1  ;;  %8803 = vpow2.f32 %v8241_v21  ;;  %v4196_v55 = vpack.c.bf16 %v4172_v12, %v4164_v28  ;;  %v8250_v6 = vmul.f32 -1.442695, %v3888_v62  ;;  %v4163_v35 = vmul.f32 %v12203_v45, %v12145_v34 }
 0x525   : > { %v12234_v7 = vpop.eup %8783  ;;  %8805 = vpow2.f32 %v8240_v41  ;;  %4209 = vmatprep.subr.bf16.mxu0 %v4194_v3  ;;  %v4171_v43 = vmul.f32 %v8774_v30, %v12159_v11  ;;  %v8255_v16 = vmul.f32 -1.442695, %v3893_v26  ;;  %v4193_v57 = vpack.c.bf16 %v4169_v22, %v4161_v5 }
 0x526   : > { %v8786_v38 = vpop.eup %8785  ;;  %8807 = vpow2.f32 %v8242_v54  ;;  %4262 = vmatprep.subr.bf16.mxu1 %v4196_v55  ;;  %v3774_v21 = vadd.f32 %v3773_v52, %v11139_v33  ;;  %v12242_v28 = vpop.f32.mrb[120].mxu0  ;;  %v3847_v41 = vadd.f32 %v3846_v8, %v11139_v33  ;;  %v3776_v19 = vadd.f32 %v3775_v39, %v14604_v20  ;;  %v14741_v8 = vld [vmem:[#allocation51_spill] sm:$0xff] }
 0x527   : > { %v8788_v29 = vpop.eup %8787  ;;  %8809 = vpow2.f32 %v8247_v2  ;;  %v4195_v44 = vpack.c.bf16 %v4171_v43, %v4163_v35  ;;  %v12246_v62 = vpop.f32.mrb[121].mxu0  ;;  %v8257_v11 = vmul.f32 -1.442695, %v3895_v23  ;;  %4210 = vmatpush1.bf16.msra.mxu0 %v4193_v57  ;;  %v14740_v2 = vld [vmem:[#allocation40_spill] sm:$0xff] }
 0x528   : > { %v8790_v42 = vpop.eup %8789  ;;  %8811 = vpow2.f32 %v8249_v15  ;;  %v3894_v45 = vadd.f32 %v3774_v21, %v11403_v18  ;;  %v12249_v30 = vpop.f32.mrb[120].mxu1  ;;  %v3896_v25 = vadd.f32 %v3847_v41, %v14740_v2  ;;  %v3901_v12 = vadd.f32 %v3776_v19, %v14741_v8 }
 0x529   : > { %v8792_v34 = vpop.eup %8791  ;;  %v12251_v54 = vpop.f32.mrb[122].mxu0  ;;  %8813 = vpow2.f32 %v8248_v14  ;;  %4263 = vmatpush1.bf16.msra.mxu1 %v4195_v44  ;;  %v4178_v35 = vmul.f32 %v8790_v42, %v12178_v61 }
 0x52a   : > { %v8794_v52 = vpop.eup %8793  ;;  %v12255_v39 = vpop.f32.mrb[121].mxu1  ;;  %8815 = vpow2.f32 %v8250_v6  ;;  %v8256_v3 = vmul.f32 -1.442695, %v3894_v45  ;;  %v8258_v55 = vmul.f32 -1.442695, %v3896_v25  ;;  %v4180_v21 = vmul.f32 %v8792_v34, %v12186_v60 }
 0x52b   : > { %v12257_v13 = vpop.f32.mrb[123].mxu0  ;;  %v8796_v15 = vpop.eup %8795  ;;  %8817 = vpow2.f32 %v8255_v16  ;;  %v8263_v23 = vmul.f32 -1.442695, %v3901_v12 }
 0x52c   : > { %v12259_v26 = vpop.f32.mrb[122].mxu1  ;;  %v8798_v5 = vpop.eup %8797  ;;  %8819 = vpow2.f32 %v8257_v11 }
 0x52d   : > { %v12261_v22 = vpop.f32.mrb[123].mxu1  ;;  %v8800_v14 = vpop.eup %8799  ;;  %8821 = vpow2.f32 %v8256_v3  ;;  %v4186_v57 = vmul.f32 %v8798_v5, %v8786_v38  ;;  %v3849_v38 = vadd.f32 %v12226_v49, %v14604_v20  ;;  %v3778_v5 = vadd.f32 %v12220_v0, %v14604_v20 }
 0x52e   : > { %v8802_v43 = vpop.eup %8801  ;;  %8823 = vpow2.f32 %v8258_v55  ;;  %v4188_v41 = vmul.f32 %v8800_v14, %v8788_v29  ;;  %v12265_v19 = vpop.f32.mrb[124].mxu0  ;;  %v4177_v55 = vmul.f32 %v12222_v32, %v12173_v58  ;;  %v3851_v58 = vadd.f32 %v12232_v47, %v14604_v20 }
 0x52f   : > { %v8804_v44 = vpop.eup %8803  ;;  %v4037_v6 = vadd.f32 1.0, %v8802_v43  ;;  %8825 = vpow2.f32 %v8263_v23  ;;  %v4202_v25 = vpack.c.bf16 %v4186_v57, %v4178_v35  ;;  %v12267_v12 = vpop.f32.mrb[125].mxu0  ;;  %v4185_v43 = vmul.f32 %v8794_v52, %v12189_v37 }
 0x530   : > { %v8806_v16 = vpop.eup %8805  ;;  %v4039_v45 = vadd.f32 1.0, %v8804_v44  ;;  %v4204_v42 = vpack.c.bf16 %v4188_v41, %v4180_v21  ;;  %v12271_v60 = vpop.f32.mrb[124].mxu1  ;;  %v4179_v57 = vmul.f32 %v12228_v9, %v12182_v56  ;;  %v4187_v32 = vmul.f32 %v8796_v15, %v12234_v7  ;;  %v14742_v56 = vld [vmem:[#allocation83_spill] sm:$0xff]  ;;  %v14744_v15 = vld [vmem:[#allocation5_spill] sm:$0xff] }
 0x531   : > { %v8808_v11 = vpop.eup %8807  ;;  %8827 = vrcp.f32 %v4037_v6  ;;  %v4038_v61 = vadd.f32 1.0, %v8806_v16  ;;  %v12273_v34 = vpop.f32.mrb[126].mxu0  ;;  %4211 = vmatprep.subr.bf16.mxu0 %v4202_v25  ;;  %v3903_v9 = vadd.f32 %v3849_v38, %v14742_v56 }
 0x532   : > { %v8810_v29 = vpop.eup %8809  ;;  %8829 = vrcp.f32 %v4039_v45  ;;  %v4040_v3 = vadd.f32 1.0, %v8808_v11  ;;  %v12279_v23 = vpop.f32.mrb[125].mxu1  ;;  %4264 = vmatprep.subr.bf16.mxu1 %v4204_v42  ;;  %v4201_v45 = vpack.c.bf16 %v4185_v43, %v4177_v55  ;;  %v4203_v25 = vpack.c.bf16 %v4187_v32, %v4179_v57  ;;  %v14743_v42 = vld [vmem:[#allocation4_spill] sm:$0xff] }
 0x533   : > { %v12281_v14 = vpop.f32.mrb[127].mxu0  ;;  %v8812_v49 = vpop.eup %8811  ;;  %8831 = vrcp.f32 %v4038_v61  ;;  %v4045_v35 = vadd.f32 1.0, %v8810_v29  ;;  %v3902_v29 = vadd.f32 %v3778_v5, %v14743_v42  ;;  %v8265_v57 = vmul.f32 -1.442695, %v3903_v9 }
 0x534   : > { %v12286_v21 = vpop.f32.mrb[126].mxu1  ;;  %v8814_v0 = vpop.eup %8813  ;;  %8833 = vrcp.f32 %v4040_v3  ;;  %v4047_v44 = vadd.f32 1.0, %v8812_v49  ;;  %4212 = vmatpush1.bf16.msra.mxu0 %v4201_v45  ;;  %v3904_v3 = vadd.f32 %v3851_v58, %v14744_v15  ;;  %4265 = vmatpush1.bf16.msra.mxu1 %v4203_v25  ;;  %v3855_v5 = vadd.f32 %v12249_v30, %v11202_v27  ;;  %v14746_v25 = vld [vmem:[#allocation57_spill] sm:$0xff] }
 0x535   : > { %v12291_v6 = vpop.f32.mrb[127].mxu1  ;;  %v8816_v41 = vpop.eup %8815  ;;  %8835 = vrcp.f32 %v4045_v35  ;;  %v4046_v16 = vadd.f32 1.0, %v8814_v0  ;;  %v3782_v35 = vadd.f32 %v12242_v28, %v11202_v27  ;;  %v12303_v0 = vld [vmem:[%s14044_s3 + $0x40] sm:$0xff]   ;;  %v8264_v28 = vmul.f32 -1.442695, %v3902_v29 }
 0x536   : > { %v8818_v37 = vpop.eup %8817  ;;  %8837 = vrcp.f32 %v4047_v44  ;;  %v4048_v52 = vadd.f32 1.0, %v8816_v41  ;;  %v3784_v32 = vadd.f32 %v12246_v62, %v11202_v27  ;;  %v8266_v41 = vmul.f32 -1.442695, %v3904_v3 }
 0x537   : > { %v8820_v11 = vpop.eup %8819  ;;  %8839 = vrcp.f32 %v4046_v16  ;;  %v4053_v61 = vadd.f32 1.0, %v8818_v37  ;;  %8267 = vmatmul.mubr.msk.bf16.vlgmr.msra.gmra.mrb[128].mxu0 %vm1784_vm8, %v12303_v0  ;;  %8269 = vmatmul.mubr.msk.bf16.vlgmr.msra.gmra.mrb[128].mxu1 %vm1784_vm8, %v12303_v0  ;;  %v3857_v16 = vadd.f32 %v12255_v39, %v11202_v27  ;;  %v14745_v37 = vld [vmem:[#allocation53_spill] sm:$0xff]  ;;  %v3786_v62 = vadd.f32 %v12251_v54, %v11241_v53  ;;  %v14747_v39 = vld [vmem:[#allocation86_spill] sm:$0xff]  ;;  %v14748_v54 = vld [vmem:[#allocation7_spill] sm:$0xff] }
 0x538   : > { %v8822_v47 = vpop.eup %8821  ;;  %8841 = vrcp.f32 %v4048_v52  ;;  %v4055_v7 = vadd.f32 1.0, %v8820_v11  ;;  %4251 = vmatprep.mubr.bf16.mxu0 %v14616_v59  ;;  %4304 = vmatprep.mubr.bf16.mxu1 %v14616_v59  ;;  %v3909_v52 = vadd.f32 %v3782_v35, %v14745_v37  ;;  %v3911_v11 = vadd.f32 %v3855_v5, %v14746_v25 }
 0x539   : > { %v8824_v49 = vpop.eup %8823  ;;  %8843 = vrcp.f32 %v4053_v61  ;;  %v4054_v55 = vadd.f32 1.0, %v8822_v47  ;;  %v3859_v61 = vadd.f32 %v12259_v26, %v11241_v53  ;;  %v3910_v47 = vadd.f32 %v3784_v32, %v14747_v39  ;;  %v14749_v26 = vld [vmem:[#allocation61_spill] sm:$0xff] }
 0x53a   : > { %v8826_v38 = vpop.eup %8825  ;;  %8845 = vrcp.f32 %v4055_v7  ;;  %v4056_v43 = vadd.f32 1.0, %v8824_v49  ;;  %v3788_v7 = vadd.f32 %v12257_v13, %v11241_v53  ;;  %v3912_v49 = vadd.f32 %v3857_v16, %v14748_v54  ;;  %v14750_v13 = vld [vmem:[#allocation58_spill] sm:$0xff] }
 0x53b   : > { %v12307_v44 = vpop.eup %8827  ;;  %8847 = vrcp.f32 %v4054_v55  ;;  %v4061_v58 = vadd.f32 1.0, %v8826_v38  ;;  %v3861_v55 = vadd.f32 %v12261_v22, %v11241_v53  ;;  %v3917_v38 = vadd.f32 %v3786_v62, %v14749_v26  ;;  %v12352_v22 = vld [vmem:[%s14044_s3 + $0x48] sm:$0xff]   ;;  %v14756_v26 = vld [vmem:[#allocation64_spill] sm:$0xff] }
 0x53c   : > { %v12314_v30 = vpop.eup %8829  ;;  %8849 = vrcp.f32 %v4056_v43  ;;  %v3792_v43 = vadd.f32 %v12265_v19, %v11379_v1  ;;  %v3919_v5 = vadd.f32 %v3859_v61, %v14750_v13  ;;  %v14751_v19 = vld [vmem:[#allocation62_spill] sm:$0xff]  ;;  %v14753_v62 = vld [vmem:[#allocation59_spill] sm:$0xff] }
 0x53d   : > { %v12319_v45 = vpop.eup %8831  ;;  %8851 = vrcp.f32 %v4061_v58  ;;  %v3865_v58 = vadd.f32 %v12271_v60, %v11379_v1  ;;  %v3918_v32 = vadd.f32 %v3788_v7, %v14751_v19  ;;  %v14752_v60 = vld [vmem:[#allocation87_spill] sm:$0xff]  ;;  %v3794_v19 = vadd.f32 %v12267_v12, %v11379_v1  ;;  %v14755_v12 = vld [vmem:[#allocation60_spill] sm:$0xff] }
 0x53e   : > { %v12324_v9 = vpop.eup %8833  ;;  %8853 = vpow2.f32 %v8265_v57  ;;  %v3920_v16 = vadd.f32 %v3861_v55, %v14752_v60 }
 0x53f   : > { %v12329_v29 = vpop.eup %8835  ;;  %8855 = vpow2.f32 %v8264_v28  ;;  %8268 = vmatmul.mubr.msk.bf16.gmra.mrb[132].mxu0 %vm1784_vm8, %v12352_v22  ;;  %8270 = vmatmul.mubr.msk.bf16.gmra.mrb[132].mxu1 %vm1784_vm8, %v12352_v22  ;;  %v3926_v60 = vadd.f32 %v3794_v19, %v14755_v12  ;;  %v14758_v19 = vld [vmem:[#allocation65_spill] sm:$0xff] }
 0x540   : > { %v12334_v3 = vpop.eup %8837  ;;  %8857 = vpow2.f32 %v8266_v41  ;;  %4347 = vmatprep.mubr.bf16.mxu0 %v14616_v59  ;;  %4400 = vmatprep.mubr.bf16.mxu1 %v14616_v59 }
 0x541   : > { %v12339_v35 = vpop.eup %8839  ;;  %8859 = vtanh.f32 %v3909_v52 }
 0x542   : > { %v12344_v57 = vpop.eup %8841  ;;  %8861 = vtanh.f32 %v3911_v11  ;;  %v3925_v11 = vadd.f32 %v3792_v43, %v14753_v62 }
 0x543   : > { %v12356_v28 = vpop.eup %8843  ;;  %8863 = vtanh.f32 %v3910_v47  ;;  %v14754_v47 = vld [vmem:[#allocation63_spill] sm:$0xff] }
 0x544   : > { %v12362_v41 = vpop.eup %8845  ;;  %8865 = vtanh.f32 %v3912_v49  ;;  %v3927_v7 = vadd.f32 %v3865_v58, %v14754_v47  ;;  %v3867_v49 = vadd.f32 %v12279_v23, %v11379_v1 }
 0x545   : > { %v12366_v52 = vpop.eup %8847  ;;  %8867 = vtanh.f32 %v3917_v38  ;;  %v3796_v38 = vadd.f32 %v12273_v34, %v11392_v63  ;;  %v3871_v34 = vadd.f32 %v12291_v6, %v11392_v63  ;;  %v14760_v6 = vld [vmem:[#allocation66_spill] sm:$0xff] }
 0x546   : > { %v12369_v61 = vpop.eup %8849  ;;  %8869 = vtanh.f32 %v3919_v5  ;;  %v3869_v5 = vadd.f32 %v12286_v21, %v11392_v63  ;;  %v3928_v54 = vadd.f32 %v3867_v49, %v14756_v26 }
 0x547   : > { %v12374_v13 = vpop.eup %8851  ;;  %8871 = vtanh.f32 %v3918_v32  ;;  %v3798_v32 = vadd.f32 %v12281_v14, %v11392_v63 }
 0x548   : > { %v8854_v55 = vpop.eup %8853  ;;  %8873 = vtanh.f32 %v3920_v16  ;;  %v3935_v12 = vadd.f32 %v3869_v5, %v14758_v19  ;;  %v14859_v19 = vld [vmem:[#allocation116_spill] sm:$0xff] }
 0x549   : > { %v8856_v43 = vpop.eup %8855  ;;  %v4063_v62 = vadd.f32 1.0, %v8854_v55  ;;  %8875 = vtanh.f32 %v3925_v11  ;;  %v14757_v55 = vld [vmem:[#allocation99_spill] sm:$0xff] }
 0x54a   : > { %v8858_v58 = vpop.eup %8857  ;;  %v4062_v47 = vadd.f32 1.0, %v8856_v43  ;;  %8877 = vtanh.f32 %v3927_v7  ;;  %v3933_v21 = vadd.f32 %v3796_v38, %v14757_v55 }
 0x54b   : > { %v8860_v23 = vpop.eup %8859  ;;  %8879 = vrcp.f32 %v4063_v62  ;;  %v4064_v16 = vadd.f32 1.0, %v8858_v58  ;;  %v14759_v62 = vld [vmem:[#allocation69_spill] sm:$0xff] }
 0x54c   : > { %v8862_v11 = vpop.eup %8861  ;;  %8881 = vrcp.f32 %v4062_v47  ;;  %v4165_v43 = vmul.f32 %v8860_v23, %v12307_v44  ;;  %v3934_v58 = vadd.f32 %v3798_v32, %v14759_v62  ;;  %v3936_v47 = vadd.f32 %v3871_v34, %v14760_v6 }
 0x54d   : > { %v8864_v7 = vpop.eup %8863  ;;  %8883 = vrcp.f32 %v4064_v16  ;;  %v4167_v14 = vmul.f32 %v8862_v11, %v12314_v30 }
 0x54e   : > { %v8866_v39 = vpop.eup %8865  ;;  %8885 = vtanh.f32 %v3926_v60  ;;  %v4166_v49 = vmul.f32 %v8864_v7, %v12319_v45 }
 0x54f   : > { %v8868_v26 = vpop.eup %8867  ;;  %8887 = vtanh.f32 %v3928_v54  ;;  %v4168_v38 = vmul.f32 %v8866_v39, %v12324_v9 }
 0x550   : > { %v8870_v55 = vpop.eup %8869  ;;  %8889 = vtanh.f32 %v3933_v21  ;;  %v4173_v44 = vmul.f32 %v8868_v26, %v12329_v29 }
 0x551   : > { %v8872_v23 = vpop.eup %8871  ;;  %8891 = vtanh.f32 %v3935_v12  ;;  %v4175_v30 = vmul.f32 %v8870_v55, %v12334_v3 }
 0x552   : > { %v8874_v5 = vpop.eup %8873  ;;  %8893 = vtanh.f32 %v3934_v58  ;;  %v4174_v60 = vmul.f32 %v8872_v23, %v12339_v35  ;;  %v4197_v32 = vpack.c.bf16 %v4173_v44, %v4165_v43 }
 0x553   : > { %v8876_v45 = vpop.eup %8875  ;;  %8895 = vtanh.f32 %v3936_v47  ;;  %v4176_v54 = vmul.f32 %v8874_v5, %v12344_v57  ;;  %v4199_v16 = vpack.c.bf16 %v4175_v30, %v4167_v14 }
 0x554   : > { %v8878_v34 = vpop.eup %8877  ;;  %v4198_v9 = vpack.c.bf16 %v4174_v60, %v4166_v49  ;;  %v4181_v39 = vmul.f32 %v8876_v45, %v12356_v28 }
 0x555   : > { %v8880_v11 = vpop.eup %8879  ;;  %v4200_v29 = vpack.c.bf16 %v4176_v54, %v4168_v38  ;;  %v4183_v26 = vmul.f32 %v8878_v34, %v12362_v41 }
 0x556   : > { %v8882_v12 = vpop.eup %8881  ;;  %4315 = vmatprep.subr.bf16.mxu0 %v4198_v9 }
 0x557   : > { %v8884_v3 = vpop.eup %8883  ;;  %4368 = vmatprep.subr.bf16.mxu1 %v4200_v29  ;;  %4316 = vmatpush1.bf16.msra.mxu0 %v4197_v32 }
 0x558   : > { %v8886_v35 = vpop.eup %8885  ;;  %4369 = vmatpush1.bf16.msra.mxu1 %v4199_v16  ;;  %v14762_v16 = vld [vmem:[#allocation72_spill] sm:$0xff] }
 0x559   : > { %v8888_v55 = vpop.eup %8887  ;;  %v4182_v21 = vmul.f32 %v8886_v35, %v12366_v52  ;;  %v14761_v52 = vld [vmem:[#allocation105_spill] sm:$0xff] }
 0x55a   : > { %v8890_v57 = vpop.eup %8889  ;;  %v4184_v43 = vmul.f32 %v8888_v55, %v12369_v61 }
 0x55b   : > { %v8892_v7 = vpop.eup %8891  ;;  %v4189_v28 = vmul.f32 %v8890_v57, %v12374_v13 }
 0x55c   : > { %v8894_v14 = vpop.eup %8893  ;;  %v4191_v58 = vmul.f32 %v8892_v7, %v8880_v11 }
 0x55d   : > { %v8896_v49 = vpop.eup %8895  ;;  %v4190_v41 = vmul.f32 %v8894_v14, %v8882_v12  ;;  %v4205_v47 = vpack.c.bf16 %v4189_v28, %v4181_v39  ;;  %v14767_v28 = vld [vmem:[#allocation68_spill] sm:$0xff] }
 0x55e   : > { %v4192_v38 = vmul.f32 %v8896_v49, %v8884_v3  ;;  %v4207_v44 = vpack.c.bf16 %v4191_v58, %v4183_v26  ;;  %v14764_v26 = vld [vmem:[#allocation15_spill] sm:$0xff]  ;;  %v14765_v3 = vld [vmem:[#allocation13_spill] sm:$0xff] }
 0x55f   : > { %v4206_v23 = vpack.c.bf16 %v4190_v41, %v4182_v21  ;;  %v14768_v41 = vld [vmem:[#allocation46_spill] sm:$0xff] }
 0x560   : > { %v4208_v30 = vpack.c.bf16 %v4192_v38, %v4184_v43  ;;  %v14766_v43 = vld [vmem:[#allocation42_spill] sm:$0xff]  ;;  %v14769_v38 = vld [vmem:[#allocation44_spill] sm:$0xff] }
 0x561   : > { %4317 = vmatprep.subr.bf16.mxu0 %v4206_v23 }
 0x562   : > { %4370 = vmatprep.subr.bf16.mxu1 %v4208_v30  ;;  %4318 = vmatpush1.bf16.msra.mxu0 %v4205_v47 }
 0x563   : > { %4371 = vmatpush1.bf16.msra.mxu1 %v4207_v44 }
 0x565   : > { %8271 = vmatmul.mubr.msk.bf16.vlgmr.msra.gmra.mrb[136].mxu0 %vm1784_vm8, %v12303_v0 }
 0x566   : > { %8273 = vmatmul.mubr.msk.bf16.vlgmr.msra.gmra.mrb[136].mxu1 %vm1784_vm8, %v12303_v0  ;;  %4357 = vmatprep.mubr.bf16.mxu0 %v14616_v59 }
 0x567   : > { %4410 = vmatprep.mubr.bf16.mxu1 %v14616_v59 }
 0x56d   : > { %8272 = vmatmul.mubr.msk.bf16.gmra.mrb[140].mxu0 %vm1784_vm8, %v12352_v22 }
 0x56e   : > { %8274 = vmatmul.mubr.msk.bf16.gmra.mrb[140].mxu1 %vm1784_vm8, %v12352_v22  ;;  %4577 = vmatprep.mubr.bf16.mxu0 %v14616_v59  ;;  %v14763_v22 = vld [vmem:[#allocation70_spill] sm:$0xff] }
 0x56f   : > { %4630 = vmatprep.mubr.bf16.mxu1 %v14616_v59 }
 0x60a   : > { %v4243_v13 = vpop.f32.mrb[128].mxu0  ;;  %v4296_v5 = vpop.f32.mrb[128].mxu1 }
 0x60b   : > { %v4244_v61 = vadd.f32 %v4243_v13, %v14761_v52  ;;  %v4245_v60 = vpop.f32.mrb[129].mxu0  ;;  %v4297_v0 = vadd.f32 %v4296_v5, %v14761_v52  ;;  %v4298_v45 = vpop.f32.mrb[129].mxu1 }
 0x60c   : > { %v4246_v32 = vadd.f32 %v4245_v60, %v14761_v52  ;;  %v4247_v54 = vpop.f32.mrb[130].mxu0  ;;  %v4299_v9 = vadd.f32 %v4298_v45, %v14761_v52  ;;  %v4300_v11 = vpop.f32.mrb[130].mxu1 }
 0x60d   : > { %v4421_v34 = vadd.f32 %v4244_v61, %v14762_v16  ;;  %v4248_v39 = vadd.f32 %v4247_v54, %v14763_v22  ;;  %v4249_v29 = vpop.f32.mrb[131].mxu0  ;;  %v4423_v12 = vadd.f32 %v4297_v0, %v14764_v26  ;;  %v4301_v55 = vadd.f32 %v4300_v11, %v14763_v22  ;;  %v4302_v57 = vpop.f32.mrb[131].mxu1  ;;  %v14770_v61 = vld [vmem:[#allocation55_spill] sm:$0xff] }
 0x60e   : > { %v4422_v35 = vadd.f32 %v4246_v32, %v14765_v3  ;;  %v4250_v21 = vadd.f32 %v4249_v29, %v14763_v22  ;;  %v4424_v7 = vadd.f32 %v4299_v9, %v14766_v43  ;;  %v4303_v58 = vadd.f32 %v4302_v57, %v14763_v22  ;;  %v14771_v9 = vld [vmem:[#allocation71_spill] sm:$0xff] }
 0x60f   : > { %v4429_v14 = vadd.f32 %v4248_v39, %v14767_v28  ;;  %v4453_v49 = vmul.f32 0.70710677, %v4421_v34  ;;  %v4431_v47 = vadd.f32 %v4301_v55, %v14768_v41  ;;  %v4455_v23 = vmul.f32 0.70710677, %v4423_v12  ;;  %v14773_v28 = vld [vmem:[#allocation67_spill] sm:$0xff]  ;;  %v14774_v41 = vld [vmem:[#allocation14_spill] sm:$0xff] }
 0x610   : > { %v4430_v44 = vadd.f32 %v4250_v21, %v14769_v38  ;;  %v4454_v30 = vmul.f32 0.70710677, %v4422_v35  ;;  %v4432_v5 = vadd.f32 %v4303_v58, %v14770_v61  ;;  %v4456_v45 = vmul.f32 0.70710677, %v4424_v7  ;;  %v14772_v21 = vld [vmem:[#allocation49_spill] sm:$0xff]  ;;  %v14775_v38 = vld [vmem:[#allocation43_spill] sm:$0xff] }
 0x611   : > { %v4461_v13 = vmul.f32 0.70710677, %v4429_v14  ;;  %v4463_v60 = vmul.f32 0.70710677, %v4431_v47 }
 0x612   : > { %v4462_v0 = vmul.f32 0.70710677, %v4430_v44  ;;  %v4253_v32 = vpop.f32.mrb[132].mxu0  ;;  %v4464_v16 = vmul.f32 0.70710677, %v4432_v5  ;;  %v4306_v11 = vpop.f32.mrb[132].mxu1 }
 0x613   : > { %v4489_v54 = vpack.c.bf16 %v4461_v13, %v4453_v49  ;;  %v4254_v39 = vadd.f32 %v4253_v32, %v14771_v9  ;;  %v4255_v29 = vpop.f32.mrb[133].mxu0  ;;  %v4491_v34 = vpack.c.bf16 %v4463_v60, %v4455_v23  ;;  %v4307_v26 = vadd.f32 %v4306_v11, %v14771_v9  ;;  %v4308_v12 = vpop.f32.mrb[133].mxu1  ;;  %v14777_v60 = vld [vmem:[#allocation45_spill] sm:$0xff] }
 0x614   : > { %v4256_v3 = vadd.f32 %v4255_v29, %v14771_v9  ;;  %v4257_v35 = vpop.f32.mrb[134].mxu0  ;;  %v4490_v55 = vpack.c.bf16 %v4462_v0, %v4454_v30  ;;  %v4309_v43 = vadd.f32 %v4308_v12, %v14771_v9  ;;  %v4310_v14 = vpop.f32.mrb[134].mxu1  ;;  %v4492_v49 = vpack.c.bf16 %v4464_v16, %v4456_v45  ;;  %v14776_v30 = vld [vmem:[#allocation9_spill] sm:$0xff]  ;;  %v14779_v16 = vld [vmem:[#allocation10_spill] sm:$0xff]  ;;  %v14780_v12 = vld [vmem:[#allocation48_spill] sm:$0xff] }
 0x615   : > { %v4437_v57 = vadd.f32 %v4254_v39, %v14772_v21  ;;  %v4258_v7 = vadd.f32 %v4257_v35, %v14773_v28  ;;  %v4259_v58 = vpop.f32.mrb[135].mxu0  ;;  %v4439_v47 = vadd.f32 %v4307_v26, %v14774_v41  ;;  %v4311_v23 = vadd.f32 %v4310_v14, %v14773_v28  ;;  %v4312_v61 = vpop.f32.mrb[135].mxu1  ;;  %v14778_v39 = vld [vmem:[#allocation56_spill] sm:$0xff] }
 0x616   : > { %v4438_v44 = vadd.f32 %v4256_v3, %v14775_v38  ;;  %v4260_v13 = vadd.f32 %v4259_v58, %v14773_v28  ;;  %4545 = vmatprep.subr.bf16.mxu0 %v4490_v55  ;;  %v4440_v5 = vadd.f32 %v4309_v43, %v14776_v30  ;;  %v4313_v32 = vadd.f32 %v4312_v61, %v14773_v28 }
 0x617   : > { %v4445_v0 = vadd.f32 %v4258_v7, %v14777_v60  ;;  %4598 = vmatprep.subr.bf16.mxu1 %v4492_v49  ;;  %4546 = vmatpush1.bf16.msra.mxu0 %v4489_v54  ;;  %v4447_v45 = vadd.f32 %v4311_v23, %v14778_v39  ;;  %v4469_v29 = vmul.f32 0.70710677, %v4437_v57  ;;  %v4471_v26 = vmul.f32 0.70710677, %v4439_v47  ;;  %v12452_v54 = vld [vmem:[%s14044_s3 + $0x60] sm:$0xff]  }
 0x618   : > { %v4446_v11 = vadd.f32 %v4260_v13, %v14779_v16  ;;  %4599 = vmatpush1.bf16.msra.mxu1 %v4491_v34  ;;  %v4448_v35 = vadd.f32 %v4313_v32, %v14780_v12  ;;  %v4470_v21 = vmul.f32 0.70710677, %v4438_v44  ;;  %v4472_v43 = vmul.f32 0.70710677, %v4440_v5  ;;  %v12463_v34 = vld [vmem:[%s14044_s3 + $0x68] sm:$0xff]  }
 0x619   : > { %v4477_v3 = vmul.f32 0.70710677, %v4445_v0  ;;  %v4479_v55 = vmul.f32 0.70710677, %v4447_v45 }
 0x61a   : > { %v4478_v14 = vmul.f32 0.70710677, %v4446_v11  ;;  %v4480_v7 = vmul.f32 0.70710677, %v4448_v35 }
 0x61b   : > { %v4497_v58 = vpack.c.bf16 %v4477_v3, %v4469_v29  ;;  %v4499_v41 = vpack.c.bf16 %v4479_v55, %v4471_v26  ;;  %v14781_v55 = vld [vmem:[#allocation8_spill] sm:$0xff] }
 0x61c   : > { %v4498_v38 = vpack.c.bf16 %v4478_v14, %v4470_v21  ;;  %v4500_v49 = vpack.c.bf16 %v4480_v7, %v4472_v43  ;;  %v14782_v43 = vld [vmem:[#allocation47_spill] sm:$0xff] }
 0x61e   : > { %4547 = vmatprep.subr.bf16.mxu0 %v4498_v38  ;;  %4600 = vmatprep.subr.bf16.mxu1 %v4500_v49 }
 0x61f   : > { %4548 = vmatpush1.bf16.msra.mxu0 %v4497_v58  ;;  %4601 = vmatpush1.bf16.msra.mxu1 %v4499_v41 }
 0x622   : > { %8277 = vmatmul.mubr.msk.bf16.vlgmr.msra.gmra.mrb[144].mxu0 %vm1784_vm8, %v12452_v54  ;;  %8279 = vmatmul.mubr.msk.bf16.vlgmr.msra.gmra.mrb[144].mxu1 %vm1784_vm8, %v12452_v54 }
 0x623   : > { %4587 = vmatprep.mubr.bf16.mxu0 %v14616_v59  ;;  %4640 = vmatprep.mubr.bf16.mxu1 %v14616_v59 }
 0x62a   : > { %8278 = vmatmul.mubr.msk.bf16.gmra.mrb[148].mxu0 %vm1784_vm8, %v12463_v34  ;;  %8280 = vmatmul.mubr.msk.bf16.gmra.mrb[148].mxu1 %vm1784_vm8, %v12463_v34 }
 0x62b   : > { %4683 = vmatprep.mubr.bf16.mxu0 %v14616_v59  ;;  %4736 = vmatprep.mubr.bf16.mxu1 %v14616_v59 }
 0x638   : > { %v4349_v57 = vpop.f32.mrb[136].mxu0 }
 0x639   : > { %v4350_v47 = vadd.f32 %v4349_v57, %v14761_v52  ;;  %v4402_v44 = vpop.f32.mrb[136].mxu1  ;;  %v4351_v23 = vpop.f32.mrb[137].mxu0 }
 0x63a   : > { %v4403_v13 = vadd.f32 %v4402_v44, %v14761_v52  ;;  %v4352_v61 = vadd.f32 %v4351_v23, %v14761_v52  ;;  %v4404_v30 = vpop.f32.mrb[137].mxu1  ;;  %v4353_v5 = vpop.f32.mrb[138].mxu0 }
 0x63b   : > { %v4425_v60 = vadd.f32 %v4350_v47, %v11997_v48  ;;  %v4405_v0 = vadd.f32 %v4404_v30, %v14761_v52  ;;  %v4354_v32 = vadd.f32 %v4353_v5, %v14763_v22  ;;  %v4406_v39 = vpop.f32.mrb[138].mxu1  ;;  %v4355_v45 = vpop.f32.mrb[139].mxu0 }
 0x63c   : > { %v4427_v16 = vadd.f32 %v4403_v13, %v12001_v10  ;;  %v4426_v11 = vadd.f32 %v4352_v61, %v12003_v40  ;;  %v4407_v29 = vadd.f32 %v4406_v39, %v14763_v22  ;;  %v4356_v26 = vadd.f32 %v4355_v45, %v14763_v22  ;;  %v4408_v3 = vpop.f32.mrb[139].mxu1  ;;  %v14783_v40 = vld [vmem:[#allocation34_spill] sm:$0xff] }
 0x63d   : > { %v4428_v12 = vadd.f32 %v4405_v0, %v12014_v51  ;;  %v4433_v35 = vadd.f32 %v4354_v32, %v11993_v31  ;;  %v4409_v48 = vadd.f32 %v4408_v3, %v14763_v22  ;;  %v4457_v21 = vmul.f32 0.70710677, %v4425_v60 }
 0x63e   : > { %v4435_v14 = vadd.f32 %v4407_v29, %v14781_v55  ;;  %v4434_v58 = vadd.f32 %v4356_v26, %v14782_v43  ;;  %v4459_v7 = vmul.f32 0.70710677, %v4427_v16  ;;  %v4458_v10 = vmul.f32 0.70710677, %v4426_v11 }
 0x63f   : > { %v4465_v41 = vmul.f32 0.70710677, %v4433_v35  ;;  %v4436_v38 = vadd.f32 %v4409_v48, %v14783_v40  ;;  %v4460_v44 = vmul.f32 0.70710677, %v4428_v12  ;;  %v14784_v12 = vld [vmem:[#allocation30_spill] sm:$0xff]  ;;  %v14785_v48 = vld [vmem:[#allocation23_spill] sm:$0xff] }
 0x640   : > { %v4467_v49 = vmul.f32 0.70710677, %v4435_v14  ;;  %v4466_v57 = vmul.f32 0.70710677, %v4434_v58  ;;  %v4359_v47 = vpop.f32.mrb[140].mxu0  ;;  %v14786_v58 = vld [vmem:[#allocation35_spill] sm:$0xff] }
 0x641   : > { %v4493_v23 = vpack.c.bf16 %v4465_v41, %v4457_v21  ;;  %v4468_v51 = vmul.f32 0.70710677, %v4436_v38  ;;  %v4360_v31 = vadd.f32 %v4359_v47, %v14771_v9  ;;  %v4412_v13 = vpop.f32.mrb[140].mxu1  ;;  %v4361_v61 = vpop.f32.mrb[141].mxu0  ;;  %v14788_v40 = vld [vmem:[#allocation26_spill] sm:$0xff] }
 0x642   : > { %v4495_v30 = vpack.c.bf16 %v4467_v49, %v4459_v7  ;;  %v4413_v5 = vadd.f32 %v4412_v13, %v14771_v9  ;;  %v4362_v60 = vadd.f32 %v4361_v61, %v14771_v9  ;;  %v4414_v0 = vpop.f32.mrb[141].mxu1  ;;  %v4363_v32 = vpop.f32.mrb[142].mxu0  ;;  %v4494_v39 = vpack.c.bf16 %v4466_v57, %v4458_v10  ;;  %v14789_v49 = vld [vmem:[#allocation25_spill] sm:$0xff] }
 0x643   : > { %v4441_v45 = vadd.f32 %v4360_v31, %v12054_v36  ;;  %v4415_v16 = vadd.f32 %v4414_v0, %v14771_v9  ;;  %v4364_v11 = vadd.f32 %v4363_v32, %v14773_v28  ;;  %v4416_v29 = vpop.f32.mrb[142].mxu1  ;;  %v4365_v26 = vpop.f32.mrb[143].mxu0  ;;  %v4496_v3 = vpack.c.bf16 %v4468_v51, %v4460_v44  ;;  %v14787_v36 = vld [vmem:[#allocation31_spill] sm:$0xff]  ;;  %v14790_v31 = vld [vmem:[#allocation29_spill] sm:$0xff] }
 0x644   : > { %v4443_v35 = vadd.f32 %v4413_v5, %v14784_v12  ;;  %v4442_v21 = vadd.f32 %v4362_v60, %v14785_v48  ;;  %v4417_v55 = vadd.f32 %v4416_v29, %v14773_v28  ;;  %v4366_v14 = vadd.f32 %v4365_v26, %v14773_v28  ;;  %v4418_v43 = vpop.f32.mrb[143].mxu1  ;;  %4651 = vmatprep.subr.bf16.mxu0 %v4494_v39 }
 0x645   : > { %v4444_v7 = vadd.f32 %v4415_v16, %v14786_v58  ;;  %v4449_v10 = vadd.f32 %v4364_v11, %v14787_v36  ;;  %v4419_v41 = vadd.f32 %v4418_v43, %v14773_v28  ;;  %4704 = vmatprep.subr.bf16.mxu1 %v4496_v3  ;;  %4652 = vmatpush1.bf16.msra.mxu0 %v4493_v23  ;;  %v4473_v47 = vmul.f32 0.70710677, %v4441_v45  ;;  %v12515_v23 = vpop.permute.xlu0 %4516 }
 0x646   : > { %v4451_v38 = vadd.f32 %v4417_v55, %v14788_v40  ;;  %v4450_v57 = vadd.f32 %v4366_v14, %v14789_v49  ;;  %4705 = vmatpush1.bf16.msra.mxu1 %v4495_v30  ;;  %v4475_v44 = vmul.f32 0.70710677, %v4443_v35  ;;  %v4474_v61 = vmul.f32 0.70710677, %v4442_v21  ;;  %v12517_v30 = vpop.permute.xlu1 %4511 }
 0x647   : > { %v4481_v51 = vmul.f32 0.70710677, %v4449_v10  ;;  %v4452_v13 = vadd.f32 %v4419_v41, %v14790_v31  ;;  %v4476_v0 = vmul.f32 0.70710677, %v4444_v7 }
 0x648   : > { %v4483_v5 = vmul.f32 0.70710677, %v4451_v38  ;;  %v4482_v60 = vmul.f32 0.70710677, %v4450_v57 }
 0x649   : > { %v4501_v32 = vpack.c.bf16 %v4481_v51, %v4473_v47  ;;  %v4484_v39 = vmul.f32 0.70710677, %v4452_v13  ;;  %v12519_v45 = vpop.permute.xlu0 %4526 }
 0x64a   : > { %v4503_v16 = vpack.c.bf16 %v4483_v5, %v4475_v44  ;;  %v4502_v11 = vpack.c.bf16 %v4482_v60, %v4474_v61 }
 0x64b   : > { %v4504_v29 = vpack.c.bf16 %v4484_v39, %v4476_v0 }
 0x64c   : > { %4653 = vmatprep.subr.bf16.mxu0 %v4502_v11 }
 0x64d   : > { %4706 = vmatprep.subr.bf16.mxu1 %v4504_v29  ;;  %4654 = vmatpush1.bf16.msra.mxu0 %v4501_v32  ;;  %v12529_v47 = vpop.permute.xlu0 %4832 }
 0x64e   : > { %4707 = vmatpush1.bf16.msra.mxu1 %v4503_v16 }
 0x650   : > { %8281 = vmatmul.mubr.msk.bf16.vlgmr.msra.gmra.mrb[152].mxu0 %vm1784_vm8, %v12452_v54 }
 0x651   : > { %8283 = vmatmul.mubr.msk.bf16.vlgmr.msra.gmra.mrb[152].mxu1 %vm1784_vm8, %v12452_v54  ;;  %4693 = vmatprep.mubr.bf16.mxu0 %v14616_v59  ;;  %v12521_v54 = vpop.permute.xlu1 %4521 }
 0x652   : > { %4746 = vmatprep.mubr.bf16.mxu1 %v14616_v59 }
 0x655   : > { %v12531_v44 = vpop.permute.xlu1 %4827 }
 0x658   : > { %8282 = vmatmul.mubr.msk.bf16.gmra.mrb[156].mxu0 %vm1784_vm8, %v12463_v34 }
 0x659   : > { %8284 = vmatmul.mubr.msk.bf16.gmra.mrb[156].mxu1 %vm1784_vm8, %v12463_v34  ;;  %4957 = vmatprep.mubr.bf16.mxu0 %v14616_v59 }
 0x65a   : > { %5030 = vmatprep.mubr.bf16.mxu1 %v14616_v59 }
 0x6f5   : > { %v4579_v26 = vpop.f32.mrb[144].mxu0  ;;  %v4632_v12 = vpop.f32.mrb[144].mxu1 }
 0x6f6   : > { %v4580_v3 = vadd.f32 %v4579_v26, %v12517_v30  ;;  %v4581_v35 = vpop.f32.mrb[145].mxu0  ;;  %v4633_v48 = vadd.f32 %v4632_v12, %v12517_v30  ;;  %v4634_v21 = vpop.f32.mrb[145].mxu1 }
 0x6f7   : > { %v4582_v34 = vadd.f32 %v4581_v35, %v12517_v30  ;;  %v4583_v55 = vpop.f32.mrb[146].mxu0  ;;  %v4635_v14 = vadd.f32 %v4634_v21, %v12517_v30  ;;  %v4636_v58 = vpop.f32.mrb[146].mxu1 }
 0x6f8   : > { %v4584_v43 = vadd.f32 %v4583_v55, %v12515_v23  ;;  %v4585_v7 = vpop.f32.mrb[147].mxu0  ;;  %v4793_v36 = vmin.f32 %v4580_v3, 0.0  ;;  %v4638_v10 = vpop.f32.mrb[147].mxu1  ;;  %v4795_v41 = vmin.f32 %v4633_v48, 0.0  ;;  %v4637_v57 = vadd.f32 %v4636_v58, %v12515_v23 }
 0x6f9   : > { %v4794_v40 = vmin.f32 %v4582_v34, 0.0  ;;  %v4796_v38 = vmin.f32 %v4635_v14, 0.0  ;;  %v4761_v51 = vmax.f32 %v4580_v3, 0.0  ;;  %v4586_v31 = vadd.f32 %v4585_v7, %v12515_v23 }
 0x6fa   : > { %v4801_v49 = vmin.f32 %v4584_v43, 0.0  ;;  %v4639_v13 = vadd.f32 %v4638_v10, %v12515_v23  ;;  %v4845_v61 = vmul.f32 %v12531_v44, %v4793_v36  ;;  %v4763_v5 = vmax.f32 %v4633_v48, 0.0 }
 0x6fb   : > { %v4769_v60 = vmax.f32 %v4584_v43, 0.0  ;;  %v4847_v39 = vmul.f32 %v12531_v44, %v4795_v41  ;;  %v4846_v16 = vmul.f32 %v12531_v44, %v4794_v40  ;;  %v4803_v11 = vmin.f32 %v4637_v57, 0.0 }
 0x6fc   : > { %v4853_v0 = vmul.f32 %v12529_v47, %v4801_v49  ;;  %v4802_v29 = vmin.f32 %v4586_v31, 0.0  ;;  %v4762_v3 = vmax.f32 %v4582_v34, 0.0  ;;  %v4848_v35 = vmul.f32 %v12531_v44, %v4796_v38 }
 0x6fd   : > { %v4589_v32 = vpop.f32.mrb[148].mxu0  ;;  %v4642_v26 = vpop.f32.mrb[148].mxu1  ;;  %v4804_v21 = vmin.f32 %v4639_v13, 0.0  ;;  %v4764_v58 = vmax.f32 %v4635_v14, 0.0  ;;  %v4855_v36 = vmul.f32 %v12529_v47, %v4803_v11  ;;  %v12547_v49 = vadd.f32 %v4845_v61, %v4761_v51 }
 0x6fe   : > { %v4591_v12 = vpop.f32.mrb[149].mxu0  ;;  %v12541_v55 = vadd.f32 %v4589_v32, %v12521_v54  ;;  %v4644_v48 = vpop.f32.mrb[149].mxu1  ;;  %v12543_v7 = vadd.f32 %v4853_v0, %v4769_v60  ;;  %v4771_v34 = vmax.f32 %v4637_v57, 0.0  ;;  %v4854_v38 = vmul.f32 %v12529_v47, %v4802_v29 }
 0x6ff   : > { %v4593_v43 = vpop.f32.mrb[150].mxu0  ;;  %v4592_v10 = vadd.f32 %v4591_v12, %v12521_v54  ;;  %v4646_v41 = vpop.f32.mrb[150].mxu1  ;;  %14792 = vst [vmem:[#allocation39_spill] sm:$0xff] %v12547_v49  ;;  %v4856_v28 = vmul.f32 %v12529_v47, %v4804_v21  ;;  %v12551_v9 = vadd.f32 %v4847_v39, %v4763_v5  ;;  %v12553_v22 = vadd.f32 %v4846_v16, %v4762_v3 }
 0x700   : > { %14791 = vst [vmem:[#allocation38_spill] sm:$0xff] %v12543_v7  ;;  %v4595_v40 = vpop.f32.mrb[151].mxu0  ;;  %v4648_v32 = vpop.f32.mrb[151].mxu1  ;;  %v4809_v14 = vmin.f32 %v12541_v55, 0.0  ;;  %v4643_v60 = vadd.f32 %v4642_v26, %v12521_v54  ;;  %v12557_v0 = vadd.f32 %v4848_v35, %v4764_v58  ;;  %v12559_v11 = vadd.f32 %v4855_v36, %v4771_v34 }
 0x701   : > { %14793 = vst [vmem:[#allocation27_spill] sm:$0xff] %v12551_v9  ;;  %14794 = vst [vmem:[#allocation37_spill] sm:$0xff] %v12553_v22  ;;  %v4770_v51 = vmax.f32 %v4586_v31, 0.0  ;;  %v4772_v61 = vmax.f32 %v4639_v13, 0.0  ;;  %v4909_v57 = vpack.c.bf16 %v12543_v7, %v12547_v49  ;;  %v4810_v29 = vmin.f32 %v4592_v10, 0.0  ;;  %v12565_v39 = vpop.permute.xlu1 %4837 }
 0x702   : > { %14795 = vst [vmem:[#allocation3_spill] sm:$0xff] %v12557_v0  ;;  %14796 = vst [vmem:[#allocation6_spill] sm:$0xff] %v12559_v11  ;;  %v4645_v12 = vadd.f32 %v4644_v48, %v12521_v54  ;;  %v4594_v5 = vadd.f32 %v4593_v43, %v12519_v45  ;;  %v4647_v26 = vadd.f32 %v4646_v41, %v12519_v45  ;;  %v4777_v31 = vmax.f32 %v12541_v55, 0.0 }
 0x703   : > { %v12567_v16 = vadd.f32 %v4854_v38, %v4770_v51  ;;  %v12569_v3 = vadd.f32 %v4856_v28, %v4772_v61  ;;  %v4596_v35 = vadd.f32 %v4595_v40, %v12519_v45  ;;  %v4861_v13 = vmul.f32 %v12565_v39, %v4809_v14  ;;  %v12577_v38 = vpop.permute.xlu0 %4842 }
 0x704   : > { %v4811_v21 = vmin.f32 %v4643_v60, 0.0  ;;  %v4812_v58 = vmin.f32 %v4645_v12, 0.0  ;;  %v4911_v48 = vpack.c.bf16 %v12559_v11, %v12551_v9  ;;  %v4778_v43 = vmax.f32 %v4592_v10, 0.0 }
 0x705   : > { %14797 = vst [vmem:[#allocation36_spill] sm:$0xff] %v12567_v16  ;;  %14798 = vst [vmem:[#allocation32_spill] sm:$0xff] %v12569_v3  ;;  %v4817_v36 = vmin.f32 %v4594_v5, 0.0  ;;  %v4819_v34 = vmin.f32 %v4647_v26, 0.0  ;;  %v4862_v28 = vmul.f32 %v12565_v39, %v4810_v29  ;;  %v4785_v51 = vmax.f32 %v4594_v5, 0.0 }
 0x706   : > { %v4818_v41 = vmin.f32 %v4596_v35, 0.0  ;;  %v4649_v40 = vadd.f32 %v4648_v32, %v12519_v45  ;;  %v4910_v61 = vpack.c.bf16 %v12567_v16, %v12553_v22  ;;  %v4912_v10 = vpack.c.bf16 %v12569_v3, %v12557_v0 }
 0x707   : > { %v4869_v55 = vmul.f32 %v12577_v38, %v4817_v36  ;;  %v4871_v14 = vmul.f32 %v12577_v38, %v4819_v34  ;;  %v4864_v11 = vmul.f32 %v12565_v39, %v4812_v58  ;;  %v4786_v7 = vmax.f32 %v4596_v35, 0.0 }
 0x708   : > { %v4870_v9 = vmul.f32 %v12577_v38, %v4818_v41  ;;  %v4820_v29 = vmin.f32 %v4649_v40, 0.0  ;;  %v4863_v5 = vmul.f32 %v12565_v39, %v4811_v21  ;;  %v4780_v49 = vmax.f32 %v4645_v12, 0.0  ;;  %4925 = vmatprep.subr.bf16.mxu0 %v4910_v61  ;;  %4998 = vmatprep.subr.bf16.mxu1 %v4912_v10 }
 0x709   : > { %v12590_v32 = vadd.f32 %v4869_v55, %v4785_v51  ;;  %v4787_v36 = vmax.f32 %v4647_v26, 0.0  ;;  %v12592_v34 = vadd.f32 %v4862_v28, %v4778_v43  ;;  %v4788_v22 = vmax.f32 %v4649_v40, 0.0  ;;  %4926 = vmatpush1.bf16.msra.mxu0 %v4909_v57  ;;  %4999 = vmatpush1.bf16.msra.mxu1 %v4911_v48 }
 0x70a   : > { %v12594_v16 = vadd.f32 %v4870_v9, %v4786_v7  ;;  %v4872_v3 = vmul.f32 %v12577_v38, %v4820_v29  ;;  %v12597_v35 = vadd.f32 %v4861_v13, %v4777_v31  ;;  %v4779_v58 = vmax.f32 %v4643_v60, 0.0 }
 0x70b   : > { %14799 = vst [vmem:[#allocation117_spill] sm:$0xff] %v12590_v32  ;;  %14800 = vst [vmem:[#allocation40_spill] sm:$0xff] %v12592_v34  ;;  %v12599_v41 = vadd.f32 %v4871_v14, %v4787_v36  ;;  %v12601_v12 = vadd.f32 %v4864_v11, %v4780_v49  ;;  %v12629_v49 = vld [vmem:[%s14044_s3 + $0x8] sm:$0xff]  }
 0x70c   : > { %14801 = vst [vmem:[#allocation51_spill] sm:$0xff] %v12594_v16  ;;  %14802 = vst [vmem:[#allocation83_spill] sm:$0xff] %v12597_v35  ;;  %v12603_v21 = vadd.f32 %v4872_v3, %v4788_v22  ;;  %v4918_v26 = vpack.c.bf16 %v12594_v16, %v12592_v34  ;;  %v12607_v43 = vadd.f32 %v4863_v5, %v4779_v58  ;;  %v12618_v22 = vld [vmem:[%s14044_s3] sm:$0xff]   ;;  %v12645_v5 = vld [vmem:[%s14044_s3 + $0x10] sm:$0xff]  }
 0x70d   : > { %14803 = vst [vmem:[#allocation4_spill] sm:$0xff] %v12599_v41  ;;  %14804 = vst [vmem:[#allocation5_spill] sm:$0xff] %v12601_v12  ;;  %v4917_v9 = vpack.c.bf16 %v12590_v32, %v12597_v35 }
 0x70e   : > { %14805 = vst [vmem:[#allocation53_spill] sm:$0xff] %v12603_v21  ;;  %14806 = vst [vmem:[#allocation57_spill] sm:$0xff] %v12607_v43  ;;  %4927 = vmatprep.subr.bf16.mxu0 %v4918_v26  ;;  %v4920_v7 = vpack.c.bf16 %v12603_v21, %v12601_v12  ;;  %v4919_v60 = vpack.c.bf16 %v12599_v41, %v12607_v43 }
 0x70f   : > { %4928 = vmatpush1.bf16.msra.mxu0 %v4917_v9 }
 0x710   : > { %5000 = vmatprep.subr.bf16.mxu1 %v4920_v7 }
 0x711   : > { %5001 = vmatpush1.bf16.msra.mxu1 %v4919_v60 }
 0x712   : > { %8285 = vmatmul.mubr.msk.bf16.vlgmr.msra.gmra.mrb[160].mxu0 %vm1784_vm8, %v12618_v22 }
 0x713   : > { %4967 = vmatprep.mubr.bf16.mxu0 %v14616_v59 }
 0x714   : > { %8289 = vmatmul.mubr.msk.bf16.vlgmr.msra.gmra.mrb[160].mxu1 %vm1784_vm8, %v12618_v22 }
 0x715   : > { %5040 = vmatprep.mubr.bf16.mxu1 %v14616_v59 }
 0x71a   : > { %8286 = vmatmul.mubr.msk.bf16.gmra.mrb[164].mxu0 %vm1784_vm8, %v12629_v49 }
 0x71b   : > { %4977 = vmatprep.mubr.bf16.mxu0 %v14616_v59 }
 0x71c   : > { %8290 = vmatmul.mubr.msk.bf16.gmra.mrb[164].mxu1 %vm1784_vm8, %v12629_v49 }
 0x71d   : > { %5050 = vmatprep.mubr.bf16.mxu1 %v14616_v59 }
 0x722   : > { %8287 = vmatmul.mubr.msk.bf16.gmra.mrb[168].mxu0 %vm1784_vm8, %v12645_v5 }
 0x723   : > { %v4685_v11 = vpop.f32.mrb[152].mxu0  ;;  %4987 = vmatprep.mubr.bf16.mxu0 %v14616_v59 }
 0x724   : > { %v4686_v57 = vadd.f32 %v4685_v11, %v12517_v30  ;;  %v4738_v3 = vpop.f32.mrb[152].mxu1  ;;  %v4687_v31 = vpop.f32.mrb[153].mxu0  ;;  %8291 = vmatmul.mubr.msk.bf16.gmra.mrb[168].mxu1 %vm1784_vm8, %v12645_v5 }
 0x725   : > { %v4739_v13 = vadd.f32 %v4738_v3, %v12517_v30  ;;  %v4688_v48 = vadd.f32 %v4687_v31, %v12517_v30  ;;  %v4740_v28 = vpop.f32.mrb[153].mxu1  ;;  %v4689_v51 = vpop.f32.mrb[154].mxu0  ;;  %5060 = vmatprep.mubr.bf16.mxu1 %v14616_v59 }
 0x726   : > { %v4741_v40 = vadd.f32 %v4740_v28, %v12517_v30  ;;  %v4690_v55 = vadd.f32 %v4689_v51, %v12515_v23  ;;  %v4742_v14 = vpop.f32.mrb[154].mxu1  ;;  %v4691_v61 = vpop.f32.mrb[155].mxu0  ;;  %v4797_v10 = vmin.f32 %v4686_v57, 0.0  ;;  %v4765_v7 = vmax.f32 %v4686_v57, 0.0 }
 0x727   : > { %v4744_v29 = vpop.f32.mrb[155].mxu1  ;;  %v4799_v36 = vmin.f32 %v4739_v13, 0.0  ;;  %v4798_v58 = vmin.f32 %v4688_v48, 0.0  ;;  %v4743_v9 = vadd.f32 %v4742_v14, %v12515_v23  ;;  %v4692_v60 = vadd.f32 %v4691_v61, %v12515_v23 }
 0x728   : > { %v4800_v26 = vmin.f32 %v4741_v40, 0.0  ;;  %v4805_v30 = vmin.f32 %v4690_v55, 0.0  ;;  %v4745_v11 = vadd.f32 %v4744_v29, %v12515_v23  ;;  %v4849_v3 = vmul.f32 %v12531_v44, %v4797_v10 }
 0x729   : > { %v4767_v31 = vmax.f32 %v4739_v13, 0.0  ;;  %v4773_v28 = vmax.f32 %v4690_v55, 0.0  ;;  %v4851_v16 = vmul.f32 %v12531_v44, %v4799_v36  ;;  %v4850_v14 = vmul.f32 %v12531_v44, %v4798_v58 }
 0x72a   : > { %v4857_v51 = vmul.f32 %v12529_v47, %v4805_v30  ;;  %v4807_v41 = vmin.f32 %v4743_v9, 0.0  ;;  %v4806_v32 = vmin.f32 %v4692_v60, 0.0  ;;  %v4766_v61 = vmax.f32 %v4688_v48, 0.0 }
 0x72b   : > { %v4695_v21 = vpop.f32.mrb[156].mxu0  ;;  %v4852_v23 = vmul.f32 %v12531_v44, %v4800_v26  ;;  %v4808_v29 = vmin.f32 %v4745_v11, 0.0  ;;  %v4768_v10 = vmax.f32 %v4741_v40, 0.0  ;;  %v12668_v0 = vadd.f32 %v4849_v3, %v4765_v7  ;;  %v12675_v40 = vld [vmem:[%s14044_s3 + $0x18] sm:$0xff]  }
 0x72c   : > { %v4748_v57 = vpop.f32.mrb[156].mxu1  ;;  %v4697_v12 = vpop.f32.mrb[157].mxu0  ;;  %v12662_v34 = vadd.f32 %v4695_v21, %v12521_v54  ;;  %v12664_v30 = vadd.f32 %v4857_v51, %v4773_v28  ;;  %v4859_v36 = vmul.f32 %v12529_v47, %v4807_v41  ;;  %v4775_v48 = vmax.f32 %v4743_v9, 0.0  ;;  %8288 = vmatmul.mubr.msk.bf16.gmra.mrb[172].mxu0 %vm1784_vm8, %v12675_v40  ;;  %8292 = vmatmul.mubr.msk.bf16.gmra.mrb[172].mxu1 %vm1784_vm8, %v12675_v40 }
 0x72d   : > { %v4750_v13 = vpop.f32.mrb[157].mxu1  ;;  %v4699_v55 = vpop.f32.mrb[158].mxu0  ;;  %v4698_v58 = vadd.f32 %v4697_v12, %v12521_v54  ;;  %14808 = vst [vmem:[#allocation15_spill] sm:$0xff] %v12668_v0  ;;  %v4858_v44 = vmul.f32 %v12529_v47, %v4806_v32  ;;  %v4860_v26 = vmul.f32 %v12529_v47, %v4808_v29  ;;  %v12679_v41 = vadd.f32 %v4851_v16, %v4767_v31 }
 0x72e   : > { %14807 = vst [vmem:[#allocation72_spill] sm:$0xff] %v12664_v30  ;;  %v4752_v43 = vpop.f32.mrb[158].mxu1  ;;  %v4701_v35 = vpop.f32.mrb[159].mxu0  ;;  %v12681_v12 = vadd.f32 %v4850_v14, %v4766_v61  ;;  %v4813_v7 = vmin.f32 %v12662_v34, 0.0  ;;  %v4749_v9 = vadd.f32 %v4748_v57, %v12521_v54  ;;  %5103 = vmatprep.mubr.bf16.mxu0 %v14616_v59  ;;  %v12686_v47 = vadd.f32 %v4852_v23, %v4768_v10 }
 0x72f   : > { %v4754_v21 = vpop.f32.mrb[159].mxu1  ;;  %14809 = vst [vmem:[#allocation13_spill] sm:$0xff] %v12679_v41  ;;  %v12688_v32 = vadd.f32 %v4859_v36, %v4775_v48  ;;  %v4774_v3 = vmax.f32 %v4692_v60, 0.0  ;;  %v4776_v28 = vmax.f32 %v4745_v11, 0.0  ;;  %v4913_v16 = vpack.c.bf16 %v12664_v30, %v12668_v0  ;;  %5176 = vmatprep.mubr.bf16.mxu1 %v14616_v59 }
 0x730   : > { %14810 = vst [vmem:[#allocation42_spill] sm:$0xff] %v12681_v12  ;;  %14811 = vst [vmem:[#allocation68_spill] sm:$0xff] %v12686_v47  ;;  %v4814_v31 = vmin.f32 %v4698_v58, 0.0  ;;  %v4751_v51 = vadd.f32 %v4750_v13, %v12521_v54  ;;  %v4700_v14 = vadd.f32 %v4699_v55, %v12519_v45  ;;  %v4753_v60 = vadd.f32 %v4752_v43, %v12519_v45 }
 0x731   : > { %14812 = vst [vmem:[#allocation46_spill] sm:$0xff] %v12688_v32  ;;  %v12697_v57 = vadd.f32 %v4858_v44, %v4774_v3  ;;  %v12699_v61 = vadd.f32 %v4860_v26, %v4776_v28  ;;  %v4702_v11 = vadd.f32 %v4701_v35, %v12519_v45  ;;  %v4781_v23 = vmax.f32 %v12662_v34, 0.0 }
 0x732   : > { %v4865_v29 = vmul.f32 %v12565_v39, %v4813_v7  ;;  %v4815_v10 = vmin.f32 %v4749_v9, 0.0  ;;  %v4816_v36 = vmin.f32 %v4751_v51, 0.0  ;;  %v4915_v54 = vpack.c.bf16 %v12688_v32, %v12679_v41 }
 0x733   : > { %14813 = vst [vmem:[#allocation44_spill] sm:$0xff] %v12697_v57  ;;  %14814 = vst [vmem:[#allocation55_spill] sm:$0xff] %v12699_v61  ;;  %v4782_v13 = vmax.f32 %v4698_v58, 0.0  ;;  %v4821_v55 = vmin.f32 %v4700_v14, 0.0  ;;  %v4823_v48 = vmin.f32 %v4753_v60, 0.0  ;;  %v4866_v44 = vmul.f32 %v12565_v39, %v4814_v31 }
 0x734   : > { %v4789_v26 = vmax.f32 %v4700_v14, 0.0  ;;  %v4822_v3 = vmin.f32 %v4702_v11, 0.0  ;;  %v4755_v43 = vadd.f32 %v4754_v21, %v12519_v45  ;;  %v4914_v7 = vpack.c.bf16 %v12697_v57, %v12681_v12 }
 0x735   : > { %v4873_v35 = vmul.f32 %v12577_v38, %v4821_v55  ;;  %v4875_v34 = vmul.f32 %v12577_v38, %v4823_v48  ;;  %v4916_v28 = vpack.c.bf16 %v12699_v61, %v12686_v47  ;;  %v4868_v58 = vmul.f32 %v12565_v39, %v4816_v36 }
 0x736   : > { %v4790_v32 = vmax.f32 %v4702_v11, 0.0  ;;  %v4874_v30 = vmul.f32 %v12577_v38, %v4822_v3  ;;  %v4824_v31 = vmin.f32 %v4755_v43, 0.0  ;;  %v4867_v14 = vmul.f32 %v12565_v39, %v4815_v10  ;;  %5071 = vmatprep.subr.bf16.mxu0 %v4914_v7 }
 0x737   : > { %v4784_v41 = vmax.f32 %v4751_v51, 0.0  ;;  %v12718_v45 = vadd.f32 %v4873_v35, %v4789_v26  ;;  %v4791_v21 = vmax.f32 %v4753_v60, 0.0  ;;  %5144 = vmatprep.subr.bf16.mxu1 %v4916_v28  ;;  %v12720_v55 = vadd.f32 %v4866_v44, %v4782_v13  ;;  %5072 = vmatpush1.bf16.msra.mxu0 %v4913_v16  ;;  %v14825_v26 = vld [vmem:[#allocation75_spill] sm:$0xff]  ;;  %v14826_v28 = vld [vmem:[#allocation77_spill] sm:$0xff] }
 0x738   : > { %v12722_v48 = vadd.f32 %v4874_v30, %v4790_v32  ;;  %v4792_v57 = vmax.f32 %v4755_v43, 0.0  ;;  %v4876_v61 = vmul.f32 %v12577_v38, %v4824_v31  ;;  %5145 = vmatpush1.bf16.msra.mxu1 %v4915_v54  ;;  %v12725_v11 = vadd.f32 %v4865_v29, %v4781_v23  ;;  %v14827_v31 = vld [vmem:[#allocation76_spill] sm:$0xff] }
 0x739   : > { %14815 = vst [vmem:[#allocation49_spill] sm:$0xff] %v12718_v45  ;;  %14816 = vst [vmem:[#allocation14_spill] sm:$0xff] %v12720_v55  ;;  %v4783_v36 = vmax.f32 %v4749_v9, 0.0  ;;  %v12727_v3 = vadd.f32 %v4875_v34, %v4791_v21  ;;  %v12729_v39 = vadd.f32 %v4868_v58, %v4784_v41 }
 0x73a   : > { %14817 = vst [vmem:[#allocation43_spill] sm:$0xff] %v12722_v48  ;;  %14818 = vst [vmem:[#allocation9_spill] sm:$0xff] %v12725_v11  ;;  %v12731_v51 = vadd.f32 %v4876_v61, %v4792_v57  ;;  %v4922_v60 = vpack.c.bf16 %v12722_v48, %v12720_v55  ;;  %v4921_v30 = vpack.c.bf16 %v12718_v45, %v12725_v11  ;;  %v14824_v61 = vld [vmem:[#allocation74_spill] sm:$0xff] }
 0x73b   : > { %14819 = vst [vmem:[#allocation45_spill] sm:$0xff] %v12727_v3  ;;  %14820 = vst [vmem:[#allocation56_spill] sm:$0xff] %v12729_v39  ;;  %v12735_v10 = vadd.f32 %v4867_v14, %v4783_v36 }
 0x73c   : > { %14821 = vst [vmem:[#allocation10_spill] sm:$0xff] %v12731_v51  ;;  %5073 = vmatprep.subr.bf16.mxu0 %v4922_v60  ;;  %v4924_v38 = vpack.c.bf16 %v12731_v51, %v12729_v39 }
 0x73d   : > { %14822 = vst [vmem:[#allocation48_spill] sm:$0xff] %v12735_v10  ;;  %v4923_v9 = vpack.c.bf16 %v12727_v3, %v12735_v10  ;;  %5074 = vmatpush1.bf16.msra.mxu0 %v4921_v30  ;;  %v14828_v30 = vld [vmem:[#allocation79_spill] sm:$0xff]  ;;  %v14839_v3 = vld [vmem:[#allocation92_spill] sm:$0xff] }
 0x73e   : > { %5146 = vmatprep.subr.bf16.mxu1 %v4924_v38 }
 0x73f   : > { %5147 = vmatpush1.bf16.msra.mxu1 %v4923_v9  ;;  %v14829_v9 = vld [vmem:[#allocation78_spill] sm:$0xff] }
 0x740   : > { %8293 = vmatmul.mubr.msk.bf16.vlgmr.msra.gmra.mrb[176].mxu0 %vm1784_vm8, %v12618_v22 }
 0x741   : > { %5113 = vmatprep.mubr.bf16.mxu0 %v14616_v59 }
 0x742   : > { %8297 = vmatmul.mubr.msk.bf16.vlgmr.msra.gmra.mrb[176].mxu1 %vm1784_vm8, %v12618_v22 }
 0x743   : > { %5186 = vmatprep.mubr.bf16.mxu1 %v14616_v59 }
 0x748   : > { %8294 = vmatmul.mubr.msk.bf16.gmra.mrb[180].mxu0 %vm1784_vm8, %v12629_v49 }
 0x749   : > { %5123 = vmatprep.mubr.bf16.mxu0 %v14616_v59 }
 0x74a   : > { %8298 = vmatmul.mubr.msk.bf16.gmra.mrb[180].mxu1 %vm1784_vm8, %v12629_v49  ;;  %v14823_v49 = vld [vmem:[#allocation73_spill] sm:$0xff] }
 0x74b   : > { %5196 = vmatprep.mubr.bf16.mxu1 %v14616_v59 }
 0x750   : > { %8295 = vmatmul.mubr.msk.bf16.gmra.mrb[184].mxu0 %vm1784_vm8, %v12645_v5 }
 0x751   : > { %5133 = vmatprep.mubr.bf16.mxu0 %v14616_v59 }
 0x752   : > { %8299 = vmatmul.mubr.msk.bf16.gmra.mrb[184].mxu1 %vm1784_vm8, %v12645_v5 }
 0x753   : > { %5206 = vmatprep.mubr.bf16.mxu1 %v14616_v59 }
 0x758   : > { %8296 = vmatmul.mubr.msk.bf16.gmra.mrb[188].mxu0 %vm1784_vm8, %v12675_v40 }
 0x759   : > { %5585 = vmatprep.mubr.bf16.mxu0 %v14616_v59 }
 0x75a   : > { %8300 = vmatmul.mubr.msk.bf16.gmra.mrb[188].mxu1 %vm1784_vm8, %v12675_v40 }
 0x75b   : > { %5638 = vmatprep.mubr.bf16.mxu1 %v14616_v59 }
 0x7e5   : > { %v4959_v22 = vpop.f32.mrb[160].mxu0 }
 0x7e6   : > { %v4960_v41 = vadd.f32 %v4959_v22, %v14823_v49  ;;  %v4961_v32 = vpop.f32.mrb[161].mxu0 }
 0x7e7   : > { %v5032_v16 = vpop.f32.mrb[160].mxu1  ;;  %v4962_v57 = vadd.f32 %v4961_v32, %v14823_v49  ;;  %v4963_v5 = vpop.f32.mrb[162].mxu0 }
 0x7e8   : > { %v5217_v23 = vadd.f32 %v4960_v41, %v14824_v61  ;;  %v5033_v29 = vadd.f32 %v5032_v16, %v14823_v49  ;;  %v5034_v54 = vpop.f32.mrb[161].mxu1  ;;  %v4964_v13 = vadd.f32 %v4963_v5, %v11117_v24  ;;  %v4965_v44 = vpop.f32.mrb[163].mxu0 }
 0x7e9   : > { %v5218_v40 = vadd.f32 %v4962_v57, %v14825_v26  ;;  %v5035_v43 = vadd.f32 %v5034_v54, %v14823_v49  ;;  %v5036_v35 = vpop.f32.mrb[162].mxu1  ;;  %v4966_v34 = vadd.f32 %v4965_v44, %v11117_v24  ;;  %v14830_v57 = vld [vmem:[#allocation80_spill] sm:$0xff] }
 0x7ea   : > { %v8301_v7 = vmul.f32 -1.442695, %v5217_v23  ;;  %v5219_v58 = vadd.f32 %v5033_v29, %v14826_v28  ;;  %v5225_v14 = vadd.f32 %v4964_v13, %v14827_v31  ;;  %v5037_v21 = vadd.f32 %v5036_v35, %v11117_v24  ;;  %v5038_v36 = vpop.f32.mrb[163].mxu1  ;;  %v14831_v29 = vld [vmem:[#allocation81_spill] sm:$0xff] }
 0x7eb   : > { %v8302_v60 = vmul.f32 -1.442695, %v5218_v40  ;;  %v5220_v38 = vadd.f32 %v5035_v43, %v14828_v30  ;;  %v5226_v22 = vadd.f32 %v4966_v34, %v14829_v9  ;;  %v5039_v41 = vadd.f32 %v5038_v36, %v11117_v24 }
 0x7ec   : > { %8897 = vpow2.f32 %v8301_v7  ;;  %v8303_v32 = vmul.f32 -1.442695, %v5219_v58  ;;  %v8309_v16 = vmul.f32 -1.442695, %v5225_v14  ;;  %v5227_v5 = vadd.f32 %v5037_v21, %v14830_v57  ;;  %v14832_v14 = vld [vmem:[#allocation82_spill] sm:$0xff] }
 0x7ed   : > { %8899 = vpow2.f32 %v8302_v60  ;;  %v8304_v23 = vmul.f32 -1.442695, %v5220_v38  ;;  %v5228_v54 = vadd.f32 %v5039_v41, %v14831_v29  ;;  %v4969_v13 = vpop.f32.mrb[164].mxu0  ;;  %v8310_v35 = vmul.f32 -1.442695, %v5226_v22  ;;  %v14833_v22 = vld [vmem:[#allocation84_spill] sm:$0xff] }
 0x7ee   : > { %8901 = vpow2.f32 %v8303_v32  ;;  %v8311_v44 = vmul.f32 -1.442695, %v5227_v5  ;;  %v4970_v40 = vadd.f32 %v4969_v13, %v11139_v33  ;;  %v4971_v43 = vpop.f32.mrb[165].mxu0  ;;  %v14834_v13 = vld [vmem:[#allocation88_spill] sm:$0xff]  ;;  %v14835_v29 = vld [vmem:[#allocation85_spill] sm:$0xff] }
 0x7ef   : > { %8903 = vpow2.f32 %v8304_v23  ;;  %v8312_v34 = vmul.f32 -1.442695, %v5228_v54  ;;  %v5042_v9 = vpop.f32.mrb[164].mxu1  ;;  %v4972_v7 = vadd.f32 %v4971_v43, %v11139_v33  ;;  %v4973_v58 = vpop.f32.mrb[166].mxu0 }
 0x7f0   : > { %8905 = vpow2.f32 %v8309_v16  ;;  %v5233_v21 = vadd.f32 %v4970_v40, %v14832_v14  ;;  %v5043_v36 = vadd.f32 %v5042_v9, %v11139_v33  ;;  %v5044_v60 = vpop.f32.mrb[165].mxu1  ;;  %v4974_v38 = vadd.f32 %v4973_v58, %v14604_v20  ;;  %v4975_v41 = vpop.f32.mrb[167].mxu0  ;;  %v14836_v9 = vld [vmem:[#allocation89_spill] sm:$0xff] }
 0x7f1   : > { %8907 = vpow2.f32 %v8311_v44  ;;  %v5234_v32 = vadd.f32 %v4972_v7, %v14833_v22  ;;  %v5045_v5 = vadd.f32 %v5044_v60, %v11139_v33  ;;  %v5046_v23 = vpop.f32.mrb[166].mxu1 }
 0x7f2   : > { %8909 = vpow2.f32 %v8310_v35  ;;  %v8317_v54 = vmul.f32 -1.442695, %v5233_v21  ;;  %v5235_v43 = vadd.f32 %v5043_v36, %v14834_v13  ;;  %v5241_v16 = vadd.f32 %v4974_v38, %v14835_v29  ;;  %v5048_v57 = vpop.f32.mrb[167].mxu1 }
 0x7f3   : > { %8911 = vpow2.f32 %v8312_v34  ;;  %v8318_v40 = vmul.f32 -1.442695, %v5234_v32  ;;  %v5236_v14 = vadd.f32 %v5045_v5, %v14836_v9  ;;  %v5047_v9 = vadd.f32 %v5046_v23, %v14604_v20 }
 0x7f4   : > { %8913 = vpow2.f32 %v8317_v54  ;;  %v8319_v58 = vmul.f32 -1.442695, %v5235_v43  ;;  %v8325_v30 = vmul.f32 -1.442695, %v5241_v16  ;;  %v4976_v13 = vadd.f32 %v4975_v41, %v14604_v20 }
 0x7f5   : > { %8915 = vpow2.f32 %v8318_v40  ;;  %v8320_v44 = vmul.f32 -1.442695, %v5236_v14  ;;  %v4979_v7 = vpop.f32.mrb[168].mxu0  ;;  %v5049_v31 = vadd.f32 %v5048_v57, %v14604_v20 }
 0x7f6   : > { %v8898_v22 = vpop.eup %8897  ;;  %8917 = vpow2.f32 %v8319_v58  ;;  %v12793_v60 = vpop.f32.mrb[169].mxu0 }
 0x7f7   : > { %v8900_v35 = vpop.eup %8899  ;;  %v5377_v21 = vadd.f32 1.0, %v8898_v22  ;;  %8919 = vpow2.f32 %v8320_v44  ;;  %v5052_v36 = vpop.f32.mrb[168].mxu1 }
 0x7f8   : > { %v12795_v38 = vpop.f32.mrb[170].mxu0  ;;  %v8902_v34 = vpop.eup %8901  ;;  %v5378_v32 = vadd.f32 1.0, %v8900_v35  ;;  %8921 = vpow2.f32 %v8325_v30 }
 0x7f9   : > { %v5054_v5 = vpop.f32.mrb[169].mxu1  ;;  %v12797_v54 = vpop.f32.mrb[171].mxu0  ;;  %8923 = vrcp.f32 %v5377_v21  ;;  %v5379_v14 = vadd.f32 1.0, %v8902_v34 }
 0x7fa   : > { %v8904_v43 = vpop.eup %8903  ;;  %v5056_v16 = vpop.f32.mrb[170].mxu1  ;;  %8925 = vrcp.f32 %v5378_v32 }
 0x7fb   : > { %v8906_v40 = vpop.eup %8905  ;;  %v5380_v58 = vadd.f32 1.0, %v8904_v43  ;;  %v5058_v22 = vpop.f32.mrb[171].mxu1  ;;  %8927 = vrcp.f32 %v5379_v14  ;;  %v14837_v43 = vld [vmem:[#allocation90_spill] sm:$0xff] }
 0x7fc   : > { %v8908_v44 = vpop.eup %8907  ;;  %v5385_v29 = vadd.f32 1.0, %v8906_v40  ;;  %v5243_v23 = vadd.f32 %v5047_v9, %v14837_v43  ;;  %v14838_v40 = vld [vmem:[#allocation91_spill] sm:$0xff]  ;;  %v4980_v9 = vadd.f32 %v4979_v7, %v11202_v27 }
 0x7fd   : > { %v8910_v35 = vpop.eup %8909  ;;  %8929 = vrcp.f32 %v5380_v58  ;;  %v5387_v30 = vadd.f32 1.0, %v8908_v44  ;;  %v5242_v41 = vadd.f32 %v4976_v13, %v14838_v40  ;;  %v5053_v13 = vadd.f32 %v5052_v36, %v11202_v27 }
 0x7fe   : > { %v8912_v28 = vpop.eup %8911  ;;  %8931 = vrcp.f32 %v5385_v29  ;;  %v5386_v21 = vadd.f32 1.0, %v8910_v35  ;;  %v5244_v29 = vadd.f32 %v5049_v31, %v14839_v3 }
 0x7ff   : > { %v4989_v34 = vpop.f32.mrb[172].mxu0  ;;  %v8914_v26 = vpop.eup %8913  ;;  %8933 = vrcp.f32 %v5387_v30  ;;  %v5388_v32 = vadd.f32 1.0, %v8912_v28  ;;  %v8326_v31 = vmul.f32 -1.442695, %v5242_v41 }
 0x800   : > { %v4991_v61 = vpop.f32.mrb[173].mxu0  ;;  %v8916_v51 = vpop.eup %8915  ;;  %8935 = vrcp.f32 %v5386_v21  ;;  %v5393_v14 = vadd.f32 1.0, %v8914_v26  ;;  %v8327_v21 = vmul.f32 -1.442695, %v5243_v23  ;;  %v8328_v7 = vmul.f32 -1.442695, %v5244_v29 }
 0x801   : > { %v5062_v48 = vpop.f32.mrb[172].mxu1  ;;  %v4993_v58 = vpop.f32.mrb[174].mxu0  ;;  %8937 = vrcp.f32 %v5388_v32  ;;  %v5394_v57 = vadd.f32 1.0, %v8916_v51  ;;  %v4982_v32 = vadd.f32 %v12793_v60, %v11202_v27  ;;  %v4984_v23 = vadd.f32 %v12795_v38, %v11241_v53  ;;  %v14842_v29 = vld [vmem:[#allocation95_spill] sm:$0xff]  ;;  %v14843_v38 = vld [vmem:[#allocation96_spill] sm:$0xff] }
 0x802   : > { %v8918_v44 = vpop.eup %8917  ;;  %v5064_v35 = vpop.f32.mrb[173].mxu1  ;;  %8939 = vrcp.f32 %v5393_v14  ;;  %v5057_v60 = vadd.f32 %v5056_v16, %v11241_v53 }
 0x803   : > { %v4995_v45 = vpop.f32.mrb[175].mxu0  ;;  %v8920_v39 = vpop.eup %8919  ;;  %v5395_v28 = vadd.f32 1.0, %v8918_v44  ;;  %8941 = vrcp.f32 %v5394_v57  ;;  %v5055_v44 = vadd.f32 %v5054_v5, %v11202_v27  ;;  %v5250_v5 = vadd.f32 %v4982_v32, %v14842_v29  ;;  %v14845_v32 = vld [vmem:[#allocation98_spill] sm:$0xff] }
 0x804   : > { %v5066_v30 = vpop.f32.mrb[174].mxu1  ;;  %v8922_v43 = vpop.eup %8921  ;;  %v5396_v26 = vadd.f32 1.0, %v8920_v39  ;;  %v14840_v39 = vld [vmem:[#allocation93_spill] sm:$0xff]  ;;  %v5259_v29 = vadd.f32 %v5057_v60, %v14845_v32  ;;  %v14851_v32 = vld [vmem:[#allocation106_spill] sm:$0xff] }
 0x805   : > { %v5068_v40 = vpop.f32.mrb[175].mxu1  ;;  %v12807_v55 = vpop.eup %8923  ;;  %8943 = vrcp.f32 %v5395_v28  ;;  %v5401_v51 = vadd.f32 1.0, %v8922_v43  ;;  %v5249_v36 = vadd.f32 %v4980_v9, %v14840_v39  ;;  %v14841_v43 = vld [vmem:[#allocation94_spill] sm:$0xff]  ;;  %v5059_v9 = vadd.f32 %v5058_v22, %v11241_v53 }
 0x806   : > { %v12811_v14 = vpop.eup %8925  ;;  %8945 = vrcp.f32 %v5396_v26  ;;  %v5251_v41 = vadd.f32 %v5053_v13, %v14841_v43  ;;  %v4986_v26 = vadd.f32 %v12797_v54, %v11241_v53  ;;  %v5252_v39 = vadd.f32 %v5055_v44, %v14843_v38  ;;  %v14844_v13 = vld [vmem:[#allocation97_spill] sm:$0xff] }
 0x807   : > { %v12814_v57 = vpop.eup %8927  ;;  %8947 = vrcp.f32 %v5401_v51  ;;  %v5257_v16 = vadd.f32 %v4984_v23, %v14844_v13  ;;  %v4990_v43 = vadd.f32 %v4989_v34, %v11379_v1  ;;  %v5063_v54 = vadd.f32 %v5062_v48, %v11379_v1  ;;  %v14847_v44 = vld [vmem:[#allocation101_spill] sm:$0xff]  ;;  %v14848_v48 = vld [vmem:[#allocation102_spill] sm:$0xff]  ;;  %v14852_v13 = vld [vmem:[#allocation107_spill] sm:$0xff] }
 0x808   : > { %v12819_v28 = vpop.eup %8929  ;;  %8949 = vpow2.f32 %v8327_v21  ;;  %v5260_v38 = vadd.f32 %v5059_v9, %v14847_v44  ;;  %v5065_v34 = vadd.f32 %v5064_v35, %v11379_v1  ;;  %v4994_v23 = vadd.f32 %v4993_v58, %v11392_v63  ;;  %v14850_v58 = vld [vmem:[#allocation104_spill] sm:$0xff] }
 0x809   : > { %v12823_v3 = vpop.eup %8931  ;;  %8951 = vpow2.f32 %v8326_v31 }
 0x80a   : > { %v12829_v51 = vpop.eup %8933  ;;  %8953 = vpow2.f32 %v8328_v7  ;;  %v14846_v7 = vld [vmem:[#allocation100_spill] sm:$0xff] }
 0x80b   : > { %v12832_v21 = vpop.eup %8935  ;;  %8955 = vtanh.f32 %v5249_v36  ;;  %v5258_v10 = vadd.f32 %v4986_v26, %v14846_v7  ;;  %v4992_v36 = vadd.f32 %v4991_v61, %v11379_v1  ;;  %v4996_v26 = vadd.f32 %v4995_v45, %v11392_v63  ;;  %v14849_v61 = vld [vmem:[#allocation103_spill] sm:$0xff] }
 0x80c   : > { %v12836_v31 = vpop.eup %8937  ;;  %8957 = vtanh.f32 %v5251_v41  ;;  %v5067_v41 = vadd.f32 %v5066_v30, %v11392_v63  ;;  %v5267_v9 = vadd.f32 %v5063_v54, %v14849_v61  ;;  %v14854_v54 = vld [vmem:[#allocation109_spill] sm:$0xff] }
 0x80d   : > { %v12840_v22 = vpop.eup %8939  ;;  %8959 = vtanh.f32 %v5250_v5  ;;  %v5265_v5 = vadd.f32 %v4990_v43, %v14848_v48  ;;  %v5266_v35 = vadd.f32 %v4992_v36, %v14850_v58  ;;  %v5273_v43 = vadd.f32 %v4994_v23, %v14852_v13  ;;  %v14853_v48 = vld [vmem:[#allocation108_spill] sm:$0xff]  ;;  %v14855_v36 = vld [vmem:[#allocation110_spill] sm:$0xff] }
 0x80e   : > { %v12845_v11 = vpop.eup %8941  ;;  %8961 = vtanh.f32 %v5252_v39  ;;  %v5069_v39 = vadd.f32 %v5068_v40, %v11392_v63  ;;  %v5275_v45 = vadd.f32 %v5067_v41, %v14853_v48  ;;  %v5274_v61 = vadd.f32 %v4996_v26, %v14854_v54  ;;  %v14860_v63 = vld [vmem:[#allocation113_spill] sm:$0xff] }
 0x80f   : > { %v12850_v60 = vpop.eup %8943  ;;  %8963 = vtanh.f32 %v5257_v16  ;;  %v5268_v16 = vadd.f32 %v5065_v34, %v14851_v32 }
 0x810   : > { %v12854_v7 = vpop.eup %8945  ;;  %8965 = vtanh.f32 %v5259_v29 }
 0x811   : > { %v12858_v44 = vpop.eup %8947  ;;  %8967 = vtanh.f32 %v5258_v10 }
 0x812   : > { %v8950_v30 = vpop.eup %8949  ;;  %8969 = vtanh.f32 %v5260_v38  ;;  %v5276_v38 = vadd.f32 %v5069_v39, %v14855_v36 }
 0x813   : > { %v5105_v47 = vpop.f32.mrb[176].mxu0  ;;  %v8952_v12 = vpop.eup %8951  ;;  %v5403_v29 = vadd.f32 1.0, %v8950_v30  ;;  %8971 = vtanh.f32 %v5265_v5  ;;  %v14856_v30 = vld [vmem:[#allocation111_spill] sm:$0xff] }
 0x814   : > { %v5106_v40 = vadd.f32 %v5105_v47, %v14823_v49  ;;  %v5107_v0 = vpop.f32.mrb[177].mxu0  ;;  %v8954_v10 = vpop.eup %8953  ;;  %v5402_v52 = vadd.f32 1.0, %v8952_v12  ;;  %8973 = vtanh.f32 %v5267_v9  ;;  %v14857_v12 = vld [vmem:[#allocation112_spill] sm:$0xff] }
 0x815   : > { %v5178_v58 = vpop.f32.mrb[176].mxu1  ;;  %v5108_v34 = vadd.f32 %v5107_v0, %v14823_v49  ;;  %v5109_v23 = vpop.f32.mrb[178].mxu0  ;;  %8975 = vrcp.f32 %v5403_v29  ;;  %v5404_v41 = vadd.f32 1.0, %v8954_v10  ;;  %v14858_v10 = vld [vmem:[#allocation115_spill] sm:$0xff] }
 0x816   : > { %v12868_v13 = vpop.eup %8955  ;;  %v5221_v5 = vadd.f32 %v5106_v40, %v14856_v30  ;;  %v5179_v26 = vadd.f32 %v5178_v58, %v14823_v49  ;;  %v5180_v54 = vpop.f32.mrb[177].mxu1  ;;  %8977 = vrcp.f32 %v5402_v52  ;;  %v5110_v0 = vadd.f32 %v5109_v23, %v11117_v24 }
 0x817   : > { %v5111_v47 = vpop.f32.mrb[179].mxu0  ;;  %v12872_v48 = vpop.eup %8957  ;;  %v5222_v9 = vadd.f32 %v5108_v34, %v14857_v12  ;;  %v5181_v39 = vadd.f32 %v5180_v54, %v14823_v49  ;;  %8979 = vrcp.f32 %v5404_v41 }
 0x818   : > { %v5182_v36 = vpop.f32.mrb[178].mxu1  ;;  %v8960_v32 = vpop.eup %8959  ;;  %v8305_v29 = vmul.f32 -1.442695, %v5221_v5  ;;  %v5223_v6 = vadd.f32 %v5179_v26, %v14858_v10  ;;  %8981 = vtanh.f32 %v5266_v35  ;;  %v5229_v34 = vadd.f32 %v5110_v0, %v14860_v63 }
 0x819   : > { %v5183_v40 = vadd.f32 %v5182_v36, %v11117_v24  ;;  %v5184_v58 = vpop.f32.mrb[179].mxu1  ;;  %v8962_v30 = vpop.eup %8961  ;;  %v8306_v62 = vmul.f32 -1.442695, %v5222_v9  ;;  %v5224_v52 = vadd.f32 %v5181_v39, %v14859_v19  ;;  %8983 = vtanh.f32 %v5268_v16  ;;  %v14861_v39 = vld [vmem:[#allocation114_spill] sm:$0xff] }
 0x81a   : > { %v8964_v12 = vpop.eup %8963  ;;  %v8307_v54 = vmul.f32 -1.442695, %v5223_v6  ;;  %v5112_v41 = vadd.f32 %v5111_v47, %v11117_v24  ;;  %8985 = vtanh.f32 %v5273_v43  ;;  %v8313_v10 = vmul.f32 -1.442695, %v5229_v34 }
 0x81b   : > { %v5231_v23 = vadd.f32 %v5183_v40, %v14738_v46  ;;  %v8966_v5 = vpop.eup %8965  ;;  %v8308_v26 = vmul.f32 -1.442695, %v5224_v52  ;;  %v5185_v36 = vadd.f32 %v5184_v58, %v11117_v24  ;;  %v5115_v49 = vpop.f32.mrb[180].mxu0  ;;  %8987 = vtanh.f32 %v5275_v45 }
 0x81c   : > { %v8968_v35 = vpop.eup %8967  ;;  %v5230_v19 = vadd.f32 %v5112_v41, %v14861_v39  ;;  %v5506_v0 = vmul.f32 %v8960_v32, %v12811_v14  ;;  %v5117_v16 = vpop.f32.mrb[181].mxu0  ;;  %8989 = vtanh.f32 %v5274_v61  ;;  %v5508_v43 = vmul.f32 %v8962_v30, %v12819_v28 }
 0x81d   : > { %v8315_v9 = vmul.f32 -1.442695, %v5231_v23  ;;  %v8970_v6 = vpop.eup %8969  ;;  %v5232_v40 = vadd.f32 %v5185_v36, %v11383_v17  ;;  %v5514_v47 = vmul.f32 %v8968_v35, %v12832_v21  ;;  %v5188_v52 = vpop.f32.mrb[180].mxu1  ;;  %8991 = vtanh.f32 %v5276_v38 }
 0x81e   : > { %v5119_v34 = vpop.f32.mrb[182].mxu0  ;;  %v12889_v58 = vpop.eup %8971  ;;  %v8314_v45 = vmul.f32 -1.442695, %v5230_v19  ;;  %v5516_v23 = vmul.f32 %v8970_v6, %v12836_v31  ;;  %v5116_v41 = vadd.f32 %v5115_v49, %v11139_v33  ;;  %8993 = vpow2.f32 %v8305_v29 }
 0x81f   : > { %v5190_v14 = vpop.f32.mrb[181].mxu1  ;;  %v12893_v32 = vpop.f32.mrb[183].mxu0  ;;  %v8316_v36 = vmul.f32 -1.442695, %v5232_v40  ;;  %v5538_v21 = vpack.c.bf16 %v5514_v47, %v5506_v0  ;;  %v5189_v28 = vadd.f32 %v5188_v52, %v11139_v33  ;;  %8995 = vpow2.f32 %v8307_v54 }
 0x820   : > { %v12895_v61 = vpop.eup %8973  ;;  %v12898_v30 = vpop.f32.mrb[182].mxu1  ;;  %v5540_v19 = vpack.c.bf16 %v5516_v23, %v5508_v43  ;;  %v5237_v31 = vadd.f32 %v5116_v41, %v11387_v50  ;;  %v5505_v49 = vmul.f32 %v12868_v13, %v12807_v55  ;;  %8997 = vpow2.f32 %v8306_v62 }
 0x821   : > { %v12900_v35 = vpop.eup %8975  ;;  %v12905_v38 = vpop.f32.mrb[183].mxu1  ;;  %5553 = vmatprep.subr.bf16.mxu0 %v5538_v21  ;;  %v5239_v29 = vadd.f32 %v5189_v28, %v11421_v4  ;;  %v5513_v0 = vmul.f32 %v8964_v12, %v12823_v3  ;;  %v5507_v40 = vmul.f32 %v12872_v48, %v12814_v57  ;;  %8999 = vpow2.f32 %v8308_v26 }
 0x822   : > { %v8978_v6 = vpop.eup %8977  ;;  %5606 = vmatprep.subr.bf16.mxu1 %v5540_v19  ;;  %v8321_v54 = vmul.f32 -1.442695, %v5237_v31  ;;  %v5515_v43 = vmul.f32 %v8966_v5, %v12829_v51  ;;  %v5118_v55 = vadd.f32 %v5117_v16, %v11139_v33  ;;  %9001 = vpow2.f32 %v8313_v10 }
 0x823   : > { %v8980_v47 = vpop.eup %8979  ;;  %v8323_v52 = vmul.f32 -1.442695, %v5239_v29  ;;  %v5537_v62 = vpack.c.bf16 %v5513_v0, %v5505_v49  ;;  %v5191_v23 = vadd.f32 %v5190_v14, %v11139_v33  ;;  %v12914_v41 = vpop.f32.mrb[184].mxu0  ;;  %9003 = vpow2.f32 %v8315_v9 }
 0x824   : > { %v8982_v13 = vpop.eup %8981  ;;  %v5539_v12 = vpack.c.bf16 %v5515_v43, %v5507_v40  ;;  %v5238_v57 = vadd.f32 %v5118_v55, %v11403_v18  ;;  %v5120_v48 = vadd.f32 %v5119_v34, %v14604_v20  ;;  %v12918_v26 = vpop.f32.mrb[185].mxu0  ;;  %9005 = vpow2.f32 %v8314_v45 }
 0x825   : > { %v8984_v3 = vpop.eup %8983  ;;  %5554 = vmatpush1.bf16.msra.mxu0 %v5537_v62  ;;  %v5240_v10 = vadd.f32 %v5191_v23, %v14740_v2  ;;  %v12921_v5 = vpop.f32.mrb[184].mxu1  ;;  %9007 = vpow2.f32 %v8316_v36  ;;  %v5522_v0 = vmul.f32 %v8982_v13, %v12845_v11  ;;  %v5193_v13 = vadd.f32 %v12898_v30, %v14604_v20 }
 0x826   : > { %v8986_v51 = vpop.eup %8985  ;;  %v12923_v16 = vpop.f32.mrb[186].mxu0  ;;  %5607 = vmatpush1.bf16.msra.mxu1 %v5539_v12  ;;  %v8322_v9 = vmul.f32 -1.442695, %v5238_v57  ;;  %v5245_v21 = vadd.f32 %v5120_v48, %v14741_v8  ;;  %9009 = vpow2.f32 %v8321_v54  ;;  %v5524_v23 = vmul.f32 %v8984_v3, %v12854_v7 }
 0x827   : > { %v8988_v14 = vpop.eup %8987  ;;  %v12926_v28 = vpop.f32.mrb[185].mxu1  ;;  %v8324_v45 = vmul.f32 -1.442695, %v5240_v10  ;;  %9011 = vpow2.f32 %v8323_v52  ;;  %v5521_v3 = vmul.f32 %v12889_v58, %v12840_v22  ;;  %v5122_v30 = vadd.f32 %v12893_v32, %v14604_v20 }
 0x828   : > { %v12928_v34 = vpop.f32.mrb[187].mxu0  ;;  %v8990_v19 = vpop.eup %8989  ;;  %v8329_v29 = vmul.f32 -1.442695, %v5245_v21  ;;  %9013 = vpow2.f32 %v8322_v9  ;;  %v5529_v58 = vmul.f32 %v8986_v51, %v12858_v44 }
 0x829   : > { %v12930_v31 = vpop.f32.mrb[186].mxu1  ;;  %v8992_v49 = vpop.eup %8991  ;;  %v5530_v43 = vmul.f32 %v8990_v19, %v8978_v6  ;;  %9015 = vpow2.f32 %v8324_v45 }
 0x82a   : > { %v12933_v40 = vpop.f32.mrb[187].mxu1  ;;  %v8994_v36 = vpop.eup %8993  ;;  %9017 = vpow2.f32 %v8329_v29  ;;  %v5532_v48 = vmul.f32 %v8992_v49, %v8980_v47  ;;  %v5195_v29 = vadd.f32 %v12905_v38, %v14604_v20  ;;  %v5531_v38 = vmul.f32 %v8988_v14, %v12900_v35 }
 0x82b   : > { %v8996_v55 = vpop.eup %8995  ;;  %v5381_v62 = vadd.f32 1.0, %v8994_v36  ;;  %v5546_v57 = vpack.c.bf16 %v5530_v43, %v5522_v0  ;;  %v12936_v10 = vpop.f32.mrb[188].mxu0 }
 0x82c   : > { %v8998_v12 = vpop.eup %8997  ;;  %v5383_v54 = vadd.f32 1.0, %v8996_v55  ;;  %v12940_v9 = vpop.f32.mrb[189].mxu0  ;;  %v5548_v7 = vpack.c.bf16 %v5532_v48, %v5524_v23  ;;  %v5523_v55 = vmul.f32 %v12895_v61, %v12850_v60  ;;  %v5247_v48 = vadd.f32 %v5193_v13, %v14742_v56 }
 0x82d   : > { %v9000_v52 = vpop.eup %8999  ;;  %9019 = vrcp.f32 %v5381_v62  ;;  %v5382_v11 = vadd.f32 1.0, %v8998_v12  ;;  %5555 = vmatprep.subr.bf16.mxu0 %v5546_v57  ;;  %v12944_v19 = vpop.f32.mrb[188].mxu1  ;;  %v5246_v60 = vadd.f32 %v5122_v30, %v14743_v42 }
 0x82e   : > { %v9002_v6 = vpop.eup %9001  ;;  %9021 = vrcp.f32 %v5383_v54  ;;  %v5384_v21 = vadd.f32 1.0, %v9000_v52  ;;  %v12946_v47 = vpop.f32.mrb[190].mxu0  ;;  %5608 = vmatprep.subr.bf16.mxu1 %v5548_v7  ;;  %v5545_v52 = vpack.c.bf16 %v5529_v58, %v5521_v3  ;;  %v5547_v61 = vpack.c.bf16 %v5531_v38, %v5523_v55 }
 0x82f   : > { %v9004_v45 = vpop.eup %9003  ;;  %9023 = vrcp.f32 %v5382_v11  ;;  %v5389_v49 = vadd.f32 1.0, %v9002_v6  ;;  %v12952_v0 = vpop.f32.mrb[189].mxu1  ;;  %v5126_v7 = vadd.f32 %v12914_v41, %v11202_v27  ;;  %v12978_v41 = vld [vmem:[%s14044_s3 + $0x40] sm:$0xff]   ;;  %v5201_v55 = vadd.f32 %v12926_v28, %v11202_v27 }
 0x830   : > { %v12954_v36 = vpop.f32.mrb[191].mxu0  ;;  %v9006_v43 = vpop.eup %9005  ;;  %9025 = vrcp.f32 %v5384_v21  ;;  %v5391_v22 = vadd.f32 1.0, %v9004_v45  ;;  %v5248_v21 = vadd.f32 %v5195_v29, %v14744_v15  ;;  %5556 = vmatpush1.bf16.msra.mxu0 %v5545_v52  ;;  %5609 = vmatpush1.bf16.msra.mxu1 %v5547_v61  ;;  %v8331_v45 = vmul.f32 -1.442695, %v5247_v48  ;;  %v14862_v48 = vld [vmem:[#allocation86_spill] sm:$0xff] }
 0x831   : > { %v12959_v62 = vpop.f32.mrb[190].mxu1  ;;  %v9008_v23 = vpop.eup %9007  ;;  %9027 = vrcp.f32 %v5389_v49  ;;  %v5390_v32 = vadd.f32 1.0, %v9006_v43  ;;  %v5199_v49 = vadd.f32 %v12921_v5, %v11202_v27  ;;  %v8330_v29 = vmul.f32 -1.442695, %v5246_v60 }
 0x832   : > { %v12962_v12 = vpop.f32.mrb[191].mxu1  ;;  %v9010_v54 = vpop.eup %9009  ;;  %9029 = vrcp.f32 %v5391_v22  ;;  %v5392_v57 = vadd.f32 1.0, %v9008_v23  ;;  %v5128_v22 = vadd.f32 %v12918_v26, %v11202_v27  ;;  %v8332_v5 = vmul.f32 -1.442695, %v5248_v21 }
 0x833   : > { %v9012_v11 = vpop.eup %9011  ;;  %9031 = vrcp.f32 %v5390_v32  ;;  %v5397_v44 = vadd.f32 1.0, %v9010_v54  ;;  %8333 = vmatmul.mubr.msk.bf16.vlgmr.msra.gmra.mrb[192].mxu0 %vm1784_vm8, %v12978_v41  ;;  %8335 = vmatmul.mubr.msk.bf16.vlgmr.msra.gmra.mrb[192].mxu1 %vm1784_vm8, %v12978_v41  ;;  %v5253_v23 = vadd.f32 %v5126_v7, %v14745_v37  ;;  %v5130_v32 = vadd.f32 %v12923_v16, %v11241_v53  ;;  %v14863_v16 = vld [vmem:[#allocation7_spill] sm:$0xff] }
 0x834   : > { %v9014_v51 = vpop.eup %9013  ;;  %9033 = vrcp.f32 %v5392_v57  ;;  %v5399_v6 = vadd.f32 1.0, %v9012_v11  ;;  %5595 = vmatprep.mubr.bf16.mxu0 %v14616_v59  ;;  %5648 = vmatprep.mubr.bf16.mxu1 %v14616_v59  ;;  %v5255_v28 = vadd.f32 %v5199_v49, %v14746_v25  ;;  %v5203_v54 = vadd.f32 %v12930_v31, %v11241_v53  ;;  %v14864_v31 = vld [vmem:[#allocation61_spill] sm:$0xff]  ;;  %v14867_v49 = vld [vmem:[#allocation87_spill] sm:$0xff] }
 0x835   : > { %v9016_v35 = vpop.eup %9015  ;;  %9035 = vrcp.f32 %v5397_v44  ;;  %v5398_v14 = vadd.f32 1.0, %v9014_v51  ;;  %v5254_v52 = vadd.f32 %v5128_v22, %v14862_v48  ;;  %v5132_v11 = vadd.f32 %v12928_v34, %v11241_v53  ;;  %v14865_v34 = vld [vmem:[#allocation58_spill] sm:$0xff] }
 0x836   : > { %v9018_v13 = vpop.eup %9017  ;;  %9037 = vrcp.f32 %v5399_v6  ;;  %v5400_v3 = vadd.f32 1.0, %v9016_v35  ;;  %v5256_v60 = vadd.f32 %v5201_v55, %v14863_v16  ;;  %v5205_v61 = vadd.f32 %v12933_v40, %v11241_v53  ;;  %v14866_v40 = vld [vmem:[#allocation62_spill] sm:$0xff]  ;;  %v14869_v55 = vld [vmem:[#allocation63_spill] sm:$0xff] }
 0x837   : > { %v12971_v30 = vpop.eup %9019  ;;  %9039 = vrcp.f32 %v5398_v14  ;;  %v5405_v43 = vadd.f32 1.0, %v9018_v13  ;;  %v5261_v6 = vadd.f32 %v5130_v32, %v14864_v31  ;;  %v5136_v21 = vadd.f32 %v12936_v10, %v11379_v1 }
 0x838   : > { %v12982_v58 = vpop.eup %9021  ;;  %9041 = vrcp.f32 %v5400_v3  ;;  %v5263_v14 = vadd.f32 %v5203_v54, %v14865_v34  ;;  %v5209_v7 = vadd.f32 %v12944_v19, %v11379_v1  ;;  %v5262_v3 = vadd.f32 %v5132_v11, %v14866_v40  ;;  %v14870_v11 = vld [vmem:[#allocation119_spill] sm:$0xff] }
 0x839   : > { %v12989_v26 = vpop.eup %9023  ;;  %9043 = vrcp.f32 %v5405_v43  ;;  %v5264_v43 = vadd.f32 %v5205_v61, %v14867_v49  ;;  %v5138_v32 = vadd.f32 %v12940_v9, %v11379_v1  ;;  %v5211_v54 = vadd.f32 %v12952_v0, %v11379_v1  ;;  %v14871_v9 = vld [vmem:[#allocation60_spill] sm:$0xff] }
 0x83a   : > { %v12995_v38 = vpop.eup %9025  ;;  %9045 = vpow2.f32 %v8331_v45  ;;  %v13026_v45 = vld [vmem:[%s14044_s3 + $0x48] sm:$0xff]  }
 0x83b   : > { %v13000_v57 = vpop.eup %9027  ;;  %9047 = vpow2.f32 %v8330_v29  ;;  %8334 = vmatmul.mubr.msk.bf16.gmra.mrb[196].mxu0 %vm1784_vm8, %v13026_v45  ;;  %8336 = vmatmul.mubr.msk.bf16.gmra.mrb[196].mxu1 %vm1784_vm8, %v13026_v45  ;;  %v14868_v29 = vld [vmem:[#allocation59_spill] sm:$0xff] }
 0x83c   : > { %v13005_v44 = vpop.eup %9029  ;;  %9049 = vpow2.f32 %v8332_v5  ;;  %5691 = vmatprep.mubr.bf16.mxu0 %v14616_v59  ;;  %v5269_v22 = vadd.f32 %v5136_v21, %v14868_v29  ;;  %5744 = vmatprep.mubr.bf16.mxu1 %v14616_v59  ;;  %v5213_v21 = vadd.f32 %v12959_v62, %v14870_v11  ;;  %v14872_v29 = vld [vmem:[#allocation64_spill] sm:$0xff] }
 0x83d   : > { %v13010_v51 = vpop.eup %9031  ;;  %9051 = vtanh.f32 %v5253_v23  ;;  %v5271_v23 = vadd.f32 %v5209_v7, %v14869_v55  ;;  %v5270_v55 = vadd.f32 %v5138_v32, %v14871_v9  ;;  %v5272_v49 = vadd.f32 %v5211_v54, %v14872_v29  ;;  %v14874_v32 = vld [vmem:[#allocation65_spill] sm:$0xff] }
 0x83e   : > { %v13015_v35 = vpop.eup %9033  ;;  %9053 = vtanh.f32 %v5255_v28  ;;  %v5279_v9 = vadd.f32 %v5213_v21, %v14874_v32 }
 0x83f   : > { %v13020_v13 = vpop.eup %9035  ;;  %9055 = vtanh.f32 %v5254_v52 }
 0x840   : > { %v13030_v10 = vpop.eup %9037  ;;  %9057 = vtanh.f32 %v5256_v60  ;;  %v5140_v60 = vadd.f32 %v12946_v47, %v14870_v11  ;;  %v5215_v47 = vadd.f32 %v12962_v12, %v14870_v11  ;;  %v14876_v12 = vld [vmem:[#allocation66_spill] sm:$0xff] }
 0x841   : > { %v13036_v19 = vpop.eup %9039  ;;  %9059 = vtanh.f32 %v5261_v6 }
 0x842   : > { %v13040_v5 = vpop.eup %9041  ;;  %9061 = vtanh.f32 %v5263_v14 }
 0x843   : > { %v13045_v28 = vpop.eup %9043  ;;  %9063 = vtanh.f32 %v5262_v3  ;;  %v5142_v3 = vadd.f32 %v12954_v36, %v14870_v11 }
 0x844   : > { %v9046_v52 = vpop.eup %9045  ;;  %9065 = vtanh.f32 %v5264_v43 }
 0x845   : > { %v9048_v61 = vpop.eup %9047  ;;  %v5407_v6 = vadd.f32 1.0, %v9046_v52  ;;  %9067 = vtanh.f32 %v5269_v22  ;;  %v14873_v52 = vld [vmem:[#allocation99_spill] sm:$0xff] }
 0x846   : > { %v9050_v14 = vpop.eup %9049  ;;  %v5406_v7 = vadd.f32 1.0, %v9048_v61  ;;  %9069 = vtanh.f32 %v5271_v23  ;;  %v5277_v62 = vadd.f32 %v5140_v60, %v14873_v52 }
 0x847   : > { %v9052_v0 = vpop.eup %9051  ;;  %9071 = vrcp.f32 %v5407_v6  ;;  %v5408_v43 = vadd.f32 1.0, %v9050_v14  ;;  %v14875_v6 = vld [vmem:[#allocation69_spill] sm:$0xff] }
 0x848   : > { %v9054_v22 = vpop.eup %9053  ;;  %9073 = vrcp.f32 %v5406_v7  ;;  %v5509_v61 = vmul.f32 %v9052_v0, %v12971_v30  ;;  %v5278_v14 = vadd.f32 %v5142_v3, %v14875_v6  ;;  %v5280_v7 = vadd.f32 %v5215_v47, %v14876_v12 }
 0x849   : > { %v9056_v23 = vpop.eup %9055  ;;  %9075 = vrcp.f32 %v5408_v43  ;;  %v5511_v36 = vmul.f32 %v9054_v22, %v12982_v58 }
 0x84a   : > { %v9058_v40 = vpop.eup %9057  ;;  %9077 = vtanh.f32 %v5270_v55  ;;  %v5510_v54 = vmul.f32 %v9056_v23, %v12989_v26 }
 0x84b   : > { %v9060_v29 = vpop.eup %9059  ;;  %9079 = vtanh.f32 %v5272_v49  ;;  %v5512_v60 = vmul.f32 %v9058_v40, %v12995_v38 }
 0x84c   : > { %v9062_v52 = vpop.eup %9061  ;;  %9081 = vtanh.f32 %v5277_v62  ;;  %v5517_v30 = vmul.f32 %v9060_v29, %v13000_v57 }
 0x84d   : > { %v9064_v0 = vpop.eup %9063  ;;  %9083 = vtanh.f32 %v5279_v9  ;;  %v5519_v58 = vmul.f32 %v9062_v52, %v13005_v44 }
 0x84e   : > { %v9066_v21 = vpop.eup %9065  ;;  %9085 = vtanh.f32 %v5278_v14  ;;  %v5518_v55 = vmul.f32 %v9064_v0, %v13010_v51  ;;  %v5541_v3 = vpack.c.bf16 %v5517_v30, %v5509_v61 }
 0x84f   : > { %v9068_v26 = vpop.eup %9067  ;;  %9087 = vtanh.f32 %v5280_v7  ;;  %v5520_v49 = vmul.f32 %v9066_v21, %v13015_v35  ;;  %v5543_v43 = vpack.c.bf16 %v5519_v58, %v5511_v36 }
 0x850   : > { %v9070_v47 = vpop.eup %9069  ;;  %v5542_v38 = vpack.c.bf16 %v5518_v55, %v5510_v54  ;;  %v5525_v40 = vmul.f32 %v9068_v26, %v13020_v13 }
 0x851   : > { %v9072_v22 = vpop.eup %9071  ;;  %v5544_v57 = vpack.c.bf16 %v5520_v49, %v5512_v60  ;;  %v5527_v29 = vmul.f32 %v9070_v47, %v13030_v10 }
 0x852   : > { %v9074_v9 = vpop.eup %9073  ;;  %5659 = vmatprep.subr.bf16.mxu0 %v5542_v38 }
 0x853   : > { %v9076_v44 = vpop.eup %9075  ;;  %5712 = vmatprep.subr.bf16.mxu1 %v5544_v57  ;;  %5660 = vmatpush1.bf16.msra.mxu0 %v5541_v3 }
 0x854   : > { %v9078_v51 = vpop.eup %9077  ;;  %5713 = vmatpush1.bf16.msra.mxu1 %v5543_v43  ;;  %v14878_v43 = vld [vmem:[#allocation39_spill] sm:$0xff] }
 0x855   : > { %v9080_v52 = vpop.eup %9079  ;;  %v5526_v62 = vmul.f32 %v9078_v51, %v13036_v19 }
 0x856   : > { %v9082_v35 = vpop.eup %9081  ;;  %v5528_v61 = vmul.f32 %v9080_v52, %v13040_v5  ;;  %v14877_v5 = vld [vmem:[#allocation105_spill] sm:$0xff] }
 0x857   : > { %v9084_v23 = vpop.eup %9083  ;;  %v5533_v13 = vmul.f32 %v9082_v35, %v13045_v28 }
 0x858   : > { %v9086_v36 = vpop.eup %9085  ;;  %v5535_v14 = vmul.f32 %v9084_v23, %v9072_v22 }
 0x859   : > { %v9088_v54 = vpop.eup %9087  ;;  %v5534_v10 = vmul.f32 %v9086_v36, %v9074_v9  ;;  %v5549_v7 = vpack.c.bf16 %v5533_v13, %v5525_v40  ;;  %v14883_v13 = vld [vmem:[#allocation38_spill] sm:$0xff] }
 0x85a   : > { %v5536_v60 = vmul.f32 %v9088_v54, %v9076_v44  ;;  %v5551_v30 = vpack.c.bf16 %v5535_v14, %v5527_v29  ;;  %v14880_v29 = vld [vmem:[#allocation27_spill] sm:$0xff]  ;;  %v14881_v44 = vld [vmem:[#allocation37_spill] sm:$0xff] }
 0x85b   : > { %v5550_v0 = vpack.c.bf16 %v5534_v10, %v5526_v62  ;;  %v14884_v10 = vld [vmem:[#allocation6_spill] sm:$0xff] }
 0x85c   : > { %v5552_v58 = vpack.c.bf16 %v5536_v60, %v5528_v61  ;;  %v14882_v61 = vld [vmem:[#allocation3_spill] sm:$0xff]  ;;  %v14885_v60 = vld [vmem:[#allocation36_spill] sm:$0xff] }
 0x85d   : > { %5661 = vmatprep.subr.bf16.mxu0 %v5550_v0 }
 0x85e   : > { %5714 = vmatprep.subr.bf16.mxu1 %v5552_v58  ;;  %5662 = vmatpush1.bf16.msra.mxu0 %v5549_v7 }
 0x85f   : > { %5715 = vmatpush1.bf16.msra.mxu1 %v5551_v30 }
 0x861   : > { %8337 = vmatmul.mubr.msk.bf16.vlgmr.msra.gmra.mrb[200].mxu0 %vm1784_vm8, %v12978_v41 }
 0x862   : > { %8339 = vmatmul.mubr.msk.bf16.vlgmr.msra.gmra.mrb[200].mxu1 %vm1784_vm8, %v12978_v41  ;;  %5701 = vmatprep.mubr.bf16.mxu0 %v14616_v59 }
 0x863   : > { %5754 = vmatprep.mubr.bf16.mxu1 %v14616_v59 }
 0x869   : > { %8338 = vmatmul.mubr.msk.bf16.gmra.mrb[204].mxu0 %vm1784_vm8, %v13026_v45 }
 0x86a   : > { %8340 = vmatmul.mubr.msk.bf16.gmra.mrb[204].mxu1 %vm1784_vm8, %v13026_v45  ;;  %5921 = vmatprep.mubr.bf16.mxu0 %v14616_v59  ;;  %v14879_v45 = vld [vmem:[#allocation70_spill] sm:$0xff] }
 0x86b   : > { %5974 = vmatprep.mubr.bf16.mxu1 %v14616_v59 }
 0x906   : > { %v5587_v19 = vpop.f32.mrb[192].mxu0  ;;  %v5640_v21 = vpop.f32.mrb[192].mxu1 }
 0x907   : > { %v5588_v28 = vadd.f32 %v5587_v19, %v14877_v5  ;;  %v5589_v55 = vpop.f32.mrb[193].mxu0  ;;  %v5641_v41 = vadd.f32 %v5640_v21, %v14877_v5  ;;  %v5642_v26 = vpop.f32.mrb[193].mxu1 }
 0x908   : > { %v5590_v3 = vadd.f32 %v5589_v55, %v14877_v5  ;;  %v5591_v49 = vpop.f32.mrb[194].mxu0  ;;  %v5643_v38 = vadd.f32 %v5642_v26, %v14877_v5  ;;  %v5644_v22 = vpop.f32.mrb[194].mxu1 }
 0x909   : > { %v5765_v47 = vadd.f32 %v5588_v28, %v14878_v43  ;;  %v5592_v40 = vadd.f32 %v5591_v49, %v14879_v45  ;;  %v5593_v57 = vpop.f32.mrb[195].mxu0  ;;  %v5767_v9 = vadd.f32 %v5641_v41, %v14880_v29  ;;  %v5645_v52 = vadd.f32 %v5644_v22, %v14879_v45  ;;  %v5646_v35 = vpop.f32.mrb[195].mxu1  ;;  %v14886_v28 = vld [vmem:[#allocation32_spill] sm:$0xff] }
 0x90a   : > { %v5766_v51 = vadd.f32 %v5590_v3, %v14881_v44  ;;  %v5594_v62 = vadd.f32 %v5593_v57, %v14879_v45  ;;  %v5768_v23 = vadd.f32 %v5643_v38, %v14882_v61  ;;  %v5647_v14 = vadd.f32 %v5646_v35, %v14879_v45  ;;  %v14887_v38 = vld [vmem:[#allocation71_spill] sm:$0xff] }
 0x90b   : > { %v5773_v36 = vadd.f32 %v5592_v40, %v14883_v13  ;;  %v5797_v54 = vmul.f32 0.70710677, %v5765_v47  ;;  %v5775_v7 = vadd.f32 %v5645_v52, %v14884_v10  ;;  %v5799_v0 = vmul.f32 0.70710677, %v5767_v9  ;;  %v14889_v13 = vld [vmem:[#allocation67_spill] sm:$0xff]  ;;  %v14890_v10 = vld [vmem:[#allocation57_spill] sm:$0xff] }
 0x90c   : > { %v5774_v30 = vadd.f32 %v5594_v62, %v14885_v60  ;;  %v5798_v58 = vmul.f32 0.70710677, %v5766_v51  ;;  %v5776_v21 = vadd.f32 %v5647_v14, %v14886_v28  ;;  %v5800_v26 = vmul.f32 0.70710677, %v5768_v23  ;;  %v14888_v62 = vld [vmem:[#allocation83_spill] sm:$0xff]  ;;  %v14891_v60 = vld [vmem:[#allocation40_spill] sm:$0xff] }
 0x90d   : > { %v5805_v19 = vmul.f32 0.70710677, %v5773_v36  ;;  %v5807_v55 = vmul.f32 0.70710677, %v5775_v7 }
 0x90e   : > { %v5806_v41 = vmul.f32 0.70710677, %v5774_v30  ;;  %v5597_v3 = vpop.f32.mrb[196].mxu0  ;;  %v5808_v43 = vmul.f32 0.70710677, %v5776_v21  ;;  %v5650_v22 = vpop.f32.mrb[196].mxu1 }
 0x90f   : > { %v5833_v49 = vpack.c.bf16 %v5805_v19, %v5797_v54  ;;  %v5598_v40 = vadd.f32 %v5597_v3, %v14887_v38  ;;  %v5599_v57 = vpop.f32.mrb[197].mxu0  ;;  %v5835_v47 = vpack.c.bf16 %v5807_v55, %v5799_v0  ;;  %v5651_v29 = vadd.f32 %v5650_v22, %v14887_v38  ;;  %v5652_v9 = vpop.f32.mrb[197].mxu1  ;;  %v14893_v55 = vld [vmem:[#allocation117_spill] sm:$0xff] }
 0x910   : > { %v5600_v44 = vadd.f32 %v5599_v57, %v14887_v38  ;;  %v5601_v51 = vpop.f32.mrb[198].mxu0  ;;  %v5834_v52 = vpack.c.bf16 %v5806_v41, %v5798_v58  ;;  %v5653_v61 = vadd.f32 %v5652_v9, %v14887_v38  ;;  %v5654_v36 = vpop.f32.mrb[198].mxu1  ;;  %v5836_v54 = vpack.c.bf16 %v5808_v43, %v5800_v26  ;;  %v14892_v58 = vld [vmem:[#allocation5_spill] sm:$0xff]  ;;  %v14895_v43 = vld [vmem:[#allocation51_spill] sm:$0xff] }
 0x911   : > { %v5781_v35 = vadd.f32 %v5598_v40, %v14888_v62  ;;  %v5602_v23 = vadd.f32 %v5601_v51, %v14889_v13  ;;  %v5603_v14 = vpop.f32.mrb[199].mxu0  ;;  %v5783_v7 = vadd.f32 %v5651_v29, %v14890_v10  ;;  %v5655_v0 = vadd.f32 %v5654_v36, %v14889_v13  ;;  %v5656_v28 = vpop.f32.mrb[199].mxu1  ;;  %v14894_v40 = vld [vmem:[#allocation4_spill] sm:$0xff]  ;;  %v14896_v9 = vld [vmem:[#allocation53_spill] sm:$0xff] }
 0x912   : > { %v5782_v30 = vadd.f32 %v5600_v44, %v14891_v60  ;;  %v5604_v19 = vadd.f32 %v5603_v14, %v14889_v13  ;;  %5889 = vmatprep.subr.bf16.mxu0 %v5834_v52  ;;  %v5784_v21 = vadd.f32 %v5653_v61, %v14892_v58  ;;  %v5657_v3 = vadd.f32 %v5656_v28, %v14889_v13 }
 0x913   : > { %v5789_v41 = vadd.f32 %v5602_v23, %v14893_v55  ;;  %5942 = vmatprep.subr.bf16.mxu1 %v5836_v54  ;;  %5890 = vmatpush1.bf16.msra.mxu0 %v5833_v49  ;;  %v5791_v26 = vadd.f32 %v5655_v0, %v14894_v40  ;;  %v5813_v57 = vmul.f32 0.70710677, %v5781_v35  ;;  %v5815_v29 = vmul.f32 0.70710677, %v5783_v7  ;;  %v13123_v49 = vld [vmem:[%s14044_s3 + $0x70] sm:$0xff]   ;;  %v14897_v55 = vld [vmem:[#allocation15_spill] sm:$0xff] }
 0x914   : > { %v5790_v22 = vadd.f32 %v5604_v19, %v14895_v43  ;;  %5943 = vmatpush1.bf16.msra.mxu1 %v5835_v47  ;;  %v5792_v51 = vadd.f32 %v5657_v3, %v14896_v9  ;;  %v5814_v62 = vmul.f32 0.70710677, %v5782_v30  ;;  %v5816_v61 = vmul.f32 0.70710677, %v5784_v21  ;;  %v13134_v47 = vld [vmem:[%s14044_s3 + $0x78] sm:$0xff]  }
 0x915   : > { %v5821_v44 = vmul.f32 0.70710677, %v5789_v41  ;;  %v5823_v52 = vmul.f32 0.70710677, %v5791_v26 }
 0x916   : > { %v5822_v36 = vmul.f32 0.70710677, %v5790_v22  ;;  %v5824_v23 = vmul.f32 0.70710677, %v5792_v51  ;;  %v14898_v22 = vld [vmem:[#allocation13_spill] sm:$0xff] }
 0x917   : > { %v5841_v14 = vpack.c.bf16 %v5821_v44, %v5813_v57  ;;  %v5843_v10 = vpack.c.bf16 %v5823_v52, %v5815_v29  ;;  %v14899_v29 = vld [vmem:[#allocation42_spill] sm:$0xff]  ;;  %v14900_v52 = vld [vmem:[#allocation68_spill] sm:$0xff] }
 0x918   : > { %v5842_v60 = vpack.c.bf16 %v5822_v36, %v5814_v62  ;;  %v5844_v54 = vpack.c.bf16 %v5824_v23, %v5816_v61  ;;  %v14901_v61 = vld [vmem:[#allocation72_spill] sm:$0xff] }
 0x91a   : > { %5891 = vmatprep.subr.bf16.mxu0 %v5842_v60  ;;  %5944 = vmatprep.subr.bf16.mxu1 %v5844_v54  ;;  %v14902_v60 = vld [vmem:[#allocation46_spill] sm:$0xff] }
 0x91b   : > { %5892 = vmatpush1.bf16.msra.mxu0 %v5841_v14  ;;  %5945 = vmatpush1.bf16.msra.mxu1 %v5843_v10 }
 0x91e   : > { %8343 = vmatmul.mubr.msk.bf16.vlgmr.msra.gmra.mrb[208].mxu0 %vm1784_vm8, %v13123_v49  ;;  %8345 = vmatmul.mubr.msk.bf16.vlgmr.msra.gmra.mrb[208].mxu1 %vm1784_vm8, %v13123_v49 }
 0x91f   : > { %5931 = vmatprep.mubr.bf16.mxu0 %v14616_v59  ;;  %5984 = vmatprep.mubr.bf16.mxu1 %v14616_v59 }
 0x926   : > { %8344 = vmatmul.mubr.msk.bf16.gmra.mrb[212].mxu0 %vm1784_vm8, %v13134_v47  ;;  %8346 = vmatmul.mubr.msk.bf16.gmra.mrb[212].mxu1 %vm1784_vm8, %v13134_v47 }
 0x927   : > { %6027 = vmatprep.mubr.bf16.mxu0 %v14616_v59  ;;  %6080 = vmatprep.mubr.bf16.mxu1 %v14616_v59 }
 0x934   : > { %v5693_v35 = vpop.f32.mrb[200].mxu0 }
 0x935   : > { %v5694_v7 = vadd.f32 %v5693_v35, %v14877_v5  ;;  %v5746_v30 = vpop.f32.mrb[200].mxu1  ;;  %v5695_v0 = vpop.f32.mrb[201].mxu0  ;;  %v14903_v35 = vld [vmem:[#allocation44_spill] sm:$0xff] }
 0x936   : > { %v5747_v19 = vadd.f32 %v5746_v30, %v14877_v5  ;;  %v5696_v28 = vadd.f32 %v5695_v0, %v14877_v5  ;;  %v5748_v58 = vpop.f32.mrb[201].mxu1  ;;  %v5697_v21 = vpop.f32.mrb[202].mxu0 }
 0x937   : > { %v5769_v41 = vadd.f32 %v5694_v7, %v14897_v55  ;;  %v5749_v3 = vadd.f32 %v5748_v58, %v14877_v5  ;;  %v5698_v40 = vadd.f32 %v5697_v21, %v14879_v45  ;;  %v5750_v26 = vpop.f32.mrb[202].mxu1  ;;  %v5699_v43 = vpop.f32.mrb[203].mxu0 }
 0x938   : > { %v5771_v57 = vadd.f32 %v5747_v19, %v14898_v22  ;;  %v5770_v44 = vadd.f32 %v5696_v28, %v14899_v29  ;;  %v5751_v9 = vadd.f32 %v5750_v26, %v14879_v45  ;;  %v5700_v51 = vadd.f32 %v5699_v43, %v14879_v45  ;;  %v5752_v62 = vpop.f32.mrb[203].mxu1  ;;  %v14904_v28 = vld [vmem:[#allocation55_spill] sm:$0xff] }
 0x939   : > { %v5772_v36 = vadd.f32 %v5749_v3, %v14900_v52  ;;  %v5777_v14 = vadd.f32 %v5698_v40, %v14901_v61  ;;  %v5753_v23 = vadd.f32 %v5752_v62, %v14879_v45  ;;  %v5801_v10 = vmul.f32 0.70710677, %v5769_v41  ;;  %v14905_v61 = vld [vmem:[#allocation9_spill] sm:$0xff] }
 0x93a   : > { %v5779_v54 = vadd.f32 %v5751_v9, %v14902_v60  ;;  %v5778_v7 = vadd.f32 %v5700_v51, %v14903_v35  ;;  %v5803_v30 = vmul.f32 0.70710677, %v5771_v57  ;;  %v5802_v0 = vmul.f32 0.70710677, %v5770_v44  ;;  %v14906_v35 = vld [vmem:[#allocation48_spill] sm:$0xff] }
 0x93b   : > { %v5809_v19 = vmul.f32 0.70710677, %v5777_v14  ;;  %v5780_v58 = vadd.f32 %v5753_v23, %v14904_v28  ;;  %v5804_v43 = vmul.f32 0.70710677, %v5772_v36 }
 0x93c   : > { %v5811_v21 = vmul.f32 0.70710677, %v5779_v54  ;;  %v5810_v55 = vmul.f32 0.70710677, %v5778_v7  ;;  %v5703_v26 = vpop.f32.mrb[204].mxu0 }
 0x93d   : > { %v5837_v22 = vpack.c.bf16 %v5809_v19, %v5801_v10  ;;  %v5812_v3 = vmul.f32 0.70710677, %v5780_v58  ;;  %v5704_v40 = vadd.f32 %v5703_v26, %v14887_v38  ;;  %v5756_v29 = vpop.f32.mrb[204].mxu1  ;;  %v5705_v62 = vpop.f32.mrb[205].mxu0  ;;  %v14907_v19 = vld [vmem:[#allocation14_spill] sm:$0xff]  ;;  %v14909_v26 = vld [vmem:[#allocation49_spill] sm:$0xff] }
 0x93e   : > { %v5839_v41 = vpack.c.bf16 %v5811_v21, %v5803_v30  ;;  %v5757_v9 = vadd.f32 %v5756_v29, %v14887_v38  ;;  %v5706_v51 = vadd.f32 %v5705_v62, %v14887_v38  ;;  %v5758_v57 = vpop.f32.mrb[205].mxu1  ;;  %v5707_v44 = vpop.f32.mrb[206].mxu0  ;;  %v5838_v52 = vpack.c.bf16 %v5810_v55, %v5802_v0  ;;  %v14908_v0 = vld [vmem:[#allocation56_spill] sm:$0xff]  ;;  %v14910_v62 = vld [vmem:[#allocation45_spill] sm:$0xff] }
 0x93f   : > { %v5785_v14 = vadd.f32 %v5704_v40, %v14905_v61  ;;  %v5759_v23 = vadd.f32 %v5758_v57, %v14887_v38  ;;  %v5708_v36 = vadd.f32 %v5707_v44, %v14889_v13  ;;  %v5760_v10 = vpop.f32.mrb[206].mxu1  ;;  %v5709_v60 = vpop.f32.mrb[207].mxu0  ;;  %v5840_v54 = vpack.c.bf16 %v5812_v3, %v5804_v43  ;;  %v14911_v3 = vld [vmem:[#allocation43_spill] sm:$0xff]  ;;  %v14912_v61 = vld [vmem:[#allocation10_spill] sm:$0xff] }
 0x940   : > { %v5787_v7 = vadd.f32 %v5757_v9, %v14906_v35  ;;  %v5786_v30 = vadd.f32 %v5706_v51, %v14907_v19  ;;  %v5761_v28 = vadd.f32 %v5760_v10, %v14889_v13  ;;  %v5710_v58 = vadd.f32 %v5709_v60, %v14889_v13  ;;  %v5762_v21 = vpop.f32.mrb[207].mxu1  ;;  %5995 = vmatprep.subr.bf16.mxu0 %v5838_v52 }
 0x941   : > { %v5788_v55 = vadd.f32 %v5759_v23, %v14908_v0  ;;  %v5793_v40 = vadd.f32 %v5708_v36, %v14909_v26  ;;  %v5763_v29 = vadd.f32 %v5762_v21, %v14889_v13  ;;  %6048 = vmatprep.subr.bf16.mxu1 %v5840_v54  ;;  %5996 = vmatpush1.bf16.msra.mxu0 %v5837_v22  ;;  %v5817_v51 = vmul.f32 0.70710677, %v5785_v14  ;;  %v13186_v22 = vpop.permute.xlu0 %5860 }
 0x942   : > { %v5795_v43 = vadd.f32 %v5761_v28, %v14910_v62  ;;  %v5794_v9 = vadd.f32 %v5710_v58, %v14911_v3  ;;  %6049 = vmatpush1.bf16.msra.mxu1 %v5839_v41  ;;  %v5819_v57 = vmul.f32 0.70710677, %v5787_v7  ;;  %v5818_v60 = vmul.f32 0.70710677, %v5786_v30  ;;  %v13188_v41 = vpop.permute.xlu1 %5855 }
 0x943   : > { %v5825_v44 = vmul.f32 0.70710677, %v5793_v40  ;;  %v5796_v10 = vadd.f32 %v5763_v29, %v14912_v61  ;;  %v5820_v23 = vmul.f32 0.70710677, %v5788_v55 }
 0x944   : > { %v5827_v52 = vmul.f32 0.70710677, %v5795_v43  ;;  %v5826_v35 = vmul.f32 0.70710677, %v5794_v9 }
 0x945   : > { %v5845_v19 = vpack.c.bf16 %v5825_v44, %v5817_v51  ;;  %v5828_v36 = vmul.f32 0.70710677, %v5796_v10  ;;  %v13190_v14 = vpop.permute.xlu0 %5870 }
 0x946   : > { %v5847_v0 = vpack.c.bf16 %v5827_v52, %v5819_v57  ;;  %v5846_v21 = vpack.c.bf16 %v5826_v35, %v5818_v60 }
 0x947   : > { %v5848_v54 = vpack.c.bf16 %v5828_v36, %v5820_v23 }
 0x948   : > { %5997 = vmatprep.subr.bf16.mxu0 %v5846_v21 }
 0x949   : > { %6050 = vmatprep.subr.bf16.mxu1 %v5848_v54  ;;  %5998 = vmatpush1.bf16.msra.mxu0 %v5845_v19  ;;  %v13200_v52 = vpop.permute.xlu0 %6176 }
 0x94a   : > { %6051 = vmatpush1.bf16.msra.mxu1 %v5847_v0 }
 0x94c   : > { %8347 = vmatmul.mubr.msk.bf16.vlgmr.msra.gmra.mrb[216].mxu0 %vm1784_vm8, %v13123_v49 }
 0x94d   : > { %8349 = vmatmul.mubr.msk.bf16.vlgmr.msra.gmra.mrb[216].mxu1 %vm1784_vm8, %v13123_v49  ;;  %6037 = vmatprep.mubr.bf16.mxu0 %v14616_v59  ;;  %v13192_v49 = vpop.permute.xlu1 %5865 }
 0x94e   : > { %6090 = vmatprep.mubr.bf16.mxu1 %v14616_v59 }
 0x951   : > { %v13202_v35 = vpop.permute.xlu1 %6171 }
 0x954   : > { %8348 = vmatmul.mubr.msk.bf16.gmra.mrb[220].mxu0 %vm1784_vm8, %v13134_v47 }
 0x955   : > { %8350 = vmatmul.mubr.msk.bf16.gmra.mrb[220].mxu1 %vm1784_vm8, %v13134_v47  ;;  %6301 = vmatprep.mubr.bf16.mxu0 %v14616_v59 }
 0x956   : > { %6374 = vmatprep.mubr.bf16.mxu1 %v14616_v59 }
 0x9f1   : > { %v5923_v7 = vpop.f32.mrb[208].mxu0  ;;  %v5976_v28 = vpop.f32.mrb[208].mxu1 }
 0x9f2   : > { %v5924_v30 = vadd.f32 %v5923_v7, %v13188_v41  ;;  %v5925_v58 = vpop.f32.mrb[209].mxu0  ;;  %v5977_v55 = vadd.f32 %v5976_v28, %v13188_v41  ;;  %v5978_v26 = vpop.f32.mrb[209].mxu1 }
 0x9f3   : > { %v5926_v47 = vadd.f32 %v5925_v58, %v13188_v41  ;;  %v5927_v40 = vpop.f32.mrb[210].mxu0  ;;  %v5979_v29 = vadd.f32 %v5978_v26, %v13188_v41  ;;  %v5980_v43 = vpop.f32.mrb[210].mxu1 }
 0x9f4   : > { %v5928_v62 = vadd.f32 %v5927_v40, %v13186_v22  ;;  %v5929_v3 = vpop.f32.mrb[211].mxu0  ;;  %v6137_v9 = vmin.f32 %v5924_v30, 0.0  ;;  %v5982_v51 = vpop.f32.mrb[211].mxu1  ;;  %v6139_v57 = vmin.f32 %v5977_v55, 0.0  ;;  %v5981_v60 = vadd.f32 %v5980_v43, %v13186_v22 }
 0x9f5   : > { %v6138_v44 = vmin.f32 %v5926_v47, 0.0  ;;  %v6140_v61 = vmin.f32 %v5979_v29, 0.0  ;;  %v6105_v23 = vmax.f32 %v5924_v30, 0.0  ;;  %v5930_v19 = vadd.f32 %v5929_v3, %v13186_v22 }
 0x9f6   : > { %v6145_v10 = vmin.f32 %v5928_v62, 0.0  ;;  %v5983_v36 = vadd.f32 %v5982_v51, %v13186_v22  ;;  %v6189_v0 = vmul.f32 %v13202_v35, %v6137_v9  ;;  %v6107_v21 = vmax.f32 %v5977_v55, 0.0 }
 0x9f7   : > { %v6113_v54 = vmax.f32 %v5928_v62, 0.0  ;;  %v6191_v58 = vmul.f32 %v13202_v35, %v6139_v57  ;;  %v6190_v26 = vmul.f32 %v13202_v35, %v6138_v44  ;;  %v6147_v40 = vmin.f32 %v5981_v60, 0.0 }
 0x9f8   : > { %v6197_v7 = vmul.f32 %v13200_v52, %v6145_v10  ;;  %v6146_v43 = vmin.f32 %v5930_v19, 0.0  ;;  %v6106_v30 = vmax.f32 %v5926_v47, 0.0  ;;  %v6192_v3 = vmul.f32 %v13202_v35, %v6140_v61 }
 0x9f9   : > { %v5933_v28 = vpop.f32.mrb[212].mxu0  ;;  %v5986_v13 = vpop.f32.mrb[212].mxu1  ;;  %v6148_v45 = vmin.f32 %v5983_v36, 0.0  ;;  %v6108_v9 = vmax.f32 %v5979_v29, 0.0  ;;  %v6199_v57 = vmul.f32 %v13200_v52, %v6147_v40  ;;  %v13218_v6 = vadd.f32 %v6189_v0, %v6105_v23 }
 0x9fa   : > { %v5935_v38 = vpop.f32.mrb[213].mxu0  ;;  %v13212_v51 = vadd.f32 %v5933_v28, %v13192_v49  ;;  %v5988_v55 = vpop.f32.mrb[213].mxu1  ;;  %v13214_v10 = vadd.f32 %v6197_v7, %v6113_v54  ;;  %v6115_v47 = vmax.f32 %v5981_v60, 0.0  ;;  %v6198_v61 = vmul.f32 %v13200_v52, %v6146_v43 }
 0x9fb   : > { %v5937_v62 = vpop.f32.mrb[214].mxu0  ;;  %v5936_v44 = vadd.f32 %v5935_v38, %v13192_v49  ;;  %v5990_v5 = vpop.f32.mrb[214].mxu1  ;;  %14914 = vst [vmem:[#allocation47_spill] sm:$0xff] %v13218_v6  ;;  %v6200_v32 = vmul.f32 %v13200_v52, %v6148_v45  ;;  %v13222_v34 = vadd.f32 %v6191_v58, %v6107_v21  ;;  %v13224_v31 = vadd.f32 %v6190_v26, %v6106_v30 }
 0x9fc   : > { %14913 = vst [vmem:[#allocation8_spill] sm:$0xff] %v13214_v10  ;;  %v5939_v12 = vpop.f32.mrb[215].mxu0  ;;  %v5992_v28 = vpop.f32.mrb[215].mxu1  ;;  %v6153_v29 = vmin.f32 %v13212_v51, 0.0  ;;  %v5987_v54 = vadd.f32 %v5986_v13, %v13192_v49  ;;  %v13228_v7 = vadd.f32 %v6192_v3, %v6108_v9  ;;  %v13230_v38 = vadd.f32 %v6199_v57, %v6115_v47 }
 0x9fd   : > { %14915 = vst [vmem:[#allocation34_spill] sm:$0xff] %v13222_v34  ;;  %14916 = vst [vmem:[#allocation30_spill] sm:$0xff] %v13224_v31  ;;  %v6114_v23 = vmax.f32 %v5930_v19, 0.0  ;;  %v6116_v0 = vmax.f32 %v5983_v36, 0.0  ;;  %v6253_v60 = vpack.c.bf16 %v13214_v10, %v13218_v6  ;;  %v6154_v40 = vmin.f32 %v5936_v44, 0.0  ;;  %v13236_v58 = vpop.permute.xlu1 %6181 }
 0x9fe   : > { %14917 = vst [vmem:[#allocation23_spill] sm:$0xff] %v13228_v7  ;;  %14918 = vst [vmem:[#allocation35_spill] sm:$0xff] %v13230_v38  ;;  %v5989_v45 = vadd.f32 %v5988_v55, %v13192_v49  ;;  %v5938_v21 = vadd.f32 %v5937_v62, %v13190_v14  ;;  %v5991_v13 = vadd.f32 %v5990_v5, %v13190_v14  ;;  %v6121_v19 = vmax.f32 %v13212_v51, 0.0 }
 0x9ff   : > { %v13238_v26 = vadd.f32 %v6198_v61, %v6114_v23  ;;  %v13240_v43 = vadd.f32 %v6200_v32, %v6116_v0  ;;  %v5940_v30 = vadd.f32 %v5939_v12, %v13190_v14  ;;  %v6205_v36 = vmul.f32 %v13236_v58, %v6153_v29  ;;  %v13248_v61 = vpop.permute.xlu0 %6186 }
 0xa00   : > { %v6155_v3 = vmin.f32 %v5987_v54, 0.0  ;;  %v6156_v9 = vmin.f32 %v5989_v45, 0.0  ;;  %v6255_v55 = vpack.c.bf16 %v13230_v38, %v13222_v34  ;;  %v6122_v62 = vmax.f32 %v5936_v44, 0.0 }
 0xa01   : > { %14919 = vst [vmem:[#allocation31_spill] sm:$0xff] %v13238_v26  ;;  %14920 = vst [vmem:[#allocation26_spill] sm:$0xff] %v13240_v43  ;;  %v6161_v57 = vmin.f32 %v5938_v21, 0.0  ;;  %v6163_v47 = vmin.f32 %v5991_v13, 0.0  ;;  %v6206_v32 = vmul.f32 %v13236_v58, %v6154_v40  ;;  %v6129_v23 = vmax.f32 %v5938_v21, 0.0 }
 0xa02   : > { %v6162_v5 = vmin.f32 %v5940_v30, 0.0  ;;  %v5993_v12 = vadd.f32 %v5992_v28, %v13190_v14  ;;  %v6254_v0 = vpack.c.bf16 %v13238_v26, %v13224_v31  ;;  %v6256_v44 = vpack.c.bf16 %v13240_v43, %v13228_v7 }
 0xa03   : > { %v6213_v51 = vmul.f32 %v13248_v61, %v6161_v57  ;;  %v6215_v29 = vmul.f32 %v13248_v61, %v6163_v47  ;;  %v6208_v38 = vmul.f32 %v13236_v58, %v6156_v9  ;;  %v6130_v10 = vmax.f32 %v5940_v30, 0.0 }
 0xa04   : > { %v6214_v34 = vmul.f32 %v13248_v61, %v6162_v5  ;;  %v6164_v40 = vmin.f32 %v5993_v12, 0.0  ;;  %v6207_v21 = vmul.f32 %v13236_v58, %v6155_v3  ;;  %v6124_v6 = vmax.f32 %v5989_v45, 0.0  ;;  %6269 = vmatprep.subr.bf16.mxu0 %v6254_v0  ;;  %6342 = vmatprep.subr.bf16.mxu1 %v6256_v44 }
 0xa05   : > { %v13261_v28 = vadd.f32 %v6213_v51, %v6129_v23  ;;  %v6131_v57 = vmax.f32 %v5991_v13, 0.0  ;;  %v13263_v47 = vadd.f32 %v6206_v32, %v6122_v62  ;;  %v6132_v31 = vmax.f32 %v5993_v12, 0.0  ;;  %6270 = vmatpush1.bf16.msra.mxu0 %v6253_v60  ;;  %6343 = vmatpush1.bf16.msra.mxu1 %v6255_v55 }
 0xa06   : > { %v13265_v26 = vadd.f32 %v6214_v34, %v6130_v10  ;;  %v6216_v43 = vmul.f32 %v13248_v61, %v6164_v40  ;;  %v13268_v30 = vadd.f32 %v6205_v36, %v6121_v19  ;;  %v6123_v9 = vmax.f32 %v5987_v54, 0.0 }
 0xa07   : > { %14921 = vst [vmem:[#allocation25_spill] sm:$0xff] %v13261_v28  ;;  %14922 = vst [vmem:[#allocation29_spill] sm:$0xff] %v13263_v47  ;;  %v13270_v5 = vadd.f32 %v6215_v29, %v6131_v57  ;;  %v13272_v45 = vadd.f32 %v6208_v38, %v6124_v6  ;;  %v13300_v6 = vld [vmem:[%s14044_s3 + $0x8] sm:$0xff]  }
 0xa08   : > { %14923 = vst [vmem:[#allocation113_spill] sm:$0xff] %v13265_v26  ;;  %14924 = vst [vmem:[#allocation114_spill] sm:$0xff] %v13268_v30  ;;  %v13274_v3 = vadd.f32 %v6216_v43, %v6132_v31  ;;  %v6262_v13 = vpack.c.bf16 %v13265_v26, %v13263_v47  ;;  %v13278_v62 = vadd.f32 %v6207_v21, %v6123_v9  ;;  %v13289_v31 = vld [vmem:[%s14044_s3] sm:$0xff]   ;;  %v13316_v9 = vld [vmem:[%s14044_s3 + $0x10] sm:$0xff]  }
 0xa09   : > { %14925 = vst [vmem:[#allocation39_spill] sm:$0xff] %v13270_v5  ;;  %14926 = vst [vmem:[#allocation27_spill] sm:$0xff] %v13272_v45  ;;  %v6261_v34 = vpack.c.bf16 %v13261_v28, %v13268_v30 }
 0xa0a   : > { %14927 = vst [vmem:[#allocation37_spill] sm:$0xff] %v13274_v3  ;;  %14928 = vst [vmem:[#allocation3_spill] sm:$0xff] %v13278_v62  ;;  %6271 = vmatprep.subr.bf16.mxu0 %v6262_v13  ;;  %v6264_v10 = vpack.c.bf16 %v13274_v3, %v13272_v45  ;;  %v6263_v54 = vpack.c.bf16 %v13270_v5, %v13278_v62 }
 0xa0b   : > { %6272 = vmatpush1.bf16.msra.mxu0 %v6261_v34 }
 0xa0c   : > { %6344 = vmatprep.subr.bf16.mxu1 %v6264_v10 }
 0xa0d   : > { %6345 = vmatpush1.bf16.msra.mxu1 %v6263_v54 }
 0xa0e   : > { %8351 = vmatmul.mubr.msk.bf16.vlgmr.msra.gmra.mrb[224].mxu0 %vm1784_vm8, %v13289_v31 }
 0xa0f   : > { %6311 = vmatprep.mubr.bf16.mxu0 %v14616_v59 }
 0xa10   : > { %8355 = vmatmul.mubr.msk.bf16.vlgmr.msra.gmra.mrb[224].mxu1 %vm1784_vm8, %v13289_v31 }
 0xa11   : > { %6384 = vmatprep.mubr.bf16.mxu1 %v14616_v59 }
 0xa16   : > { %8352 = vmatmul.mubr.msk.bf16.gmra.mrb[228].mxu0 %vm1784_vm8, %v13300_v6 }
 0xa17   : > { %6321 = vmatprep.mubr.bf16.mxu0 %v14616_v59 }
 0xa18   : > { %8356 = vmatmul.mubr.msk.bf16.gmra.mrb[228].mxu1 %vm1784_vm8, %v13300_v6 }
 0xa19   : > { %6394 = vmatprep.mubr.bf16.mxu1 %v14616_v59 }
 0xa1e   : > { %8353 = vmatmul.mubr.msk.bf16.gmra.mrb[232].mxu0 %vm1784_vm8, %v13316_v9 }
 0xa1f   : > { %v6029_v38 = vpop.f32.mrb[216].mxu0  ;;  %6331 = vmatprep.mubr.bf16.mxu0 %v14616_v59 }
 0xa20   : > { %v6030_v60 = vadd.f32 %v6029_v38, %v13188_v41  ;;  %v6082_v43 = vpop.f32.mrb[216].mxu1  ;;  %v6031_v19 = vpop.f32.mrb[217].mxu0  ;;  %8357 = vmatmul.mubr.msk.bf16.gmra.mrb[232].mxu1 %vm1784_vm8, %v13316_v9 }
 0xa21   : > { %v6083_v36 = vadd.f32 %v6082_v43, %v13188_v41  ;;  %v6032_v55 = vadd.f32 %v6031_v19, %v13188_v41  ;;  %v6084_v32 = vpop.f32.mrb[217].mxu1  ;;  %v6033_v23 = vpop.f32.mrb[218].mxu0  ;;  %6404 = vmatprep.mubr.bf16.mxu1 %v14616_v59 }
 0xa22   : > { %v6085_v12 = vadd.f32 %v6084_v32, %v13188_v41  ;;  %v6034_v51 = vadd.f32 %v6033_v23, %v13186_v22  ;;  %v6086_v29 = vpop.f32.mrb[218].mxu1  ;;  %v6035_v0 = vpop.f32.mrb[219].mxu0  ;;  %v6141_v44 = vmin.f32 %v6030_v60, 0.0  ;;  %v6109_v10 = vmax.f32 %v6030_v60, 0.0 }
 0xa23   : > { %v6088_v40 = vpop.f32.mrb[219].mxu1  ;;  %v6143_v21 = vmin.f32 %v6083_v36, 0.0  ;;  %v6142_v57 = vmin.f32 %v6032_v55, 0.0  ;;  %v6087_v41 = vadd.f32 %v6086_v29, %v13186_v22  ;;  %v6036_v54 = vadd.f32 %v6035_v0, %v13186_v22 }
 0xa24   : > { %v6144_v13 = vmin.f32 %v6085_v12, 0.0  ;;  %v6149_v34 = vmin.f32 %v6034_v51, 0.0  ;;  %v6089_v38 = vadd.f32 %v6088_v40, %v13186_v22  ;;  %v6193_v43 = vmul.f32 %v13202_v35, %v6141_v44 }
 0xa25   : > { %v6111_v19 = vmax.f32 %v6083_v36, 0.0  ;;  %v6117_v32 = vmax.f32 %v6034_v51, 0.0  ;;  %v6195_v29 = vmul.f32 %v13202_v35, %v6143_v21  ;;  %v6194_v60 = vmul.f32 %v13202_v35, %v6142_v57 }
 0xa26   : > { %v6201_v23 = vmul.f32 %v13200_v52, %v6149_v34  ;;  %v6151_v26 = vmin.f32 %v6087_v41, 0.0  ;;  %v6150_v0 = vmin.f32 %v6036_v54, 0.0  ;;  %v6110_v40 = vmax.f32 %v6032_v55, 0.0 }
 0xa27   : > { %v6039_v3 = vpop.f32.mrb[220].mxu0  ;;  %v6196_v28 = vmul.f32 %v13202_v35, %v6144_v13  ;;  %v6152_v45 = vmin.f32 %v6089_v38, 0.0  ;;  %v6112_v34 = vmax.f32 %v6085_v12, 0.0  ;;  %v13339_v7 = vadd.f32 %v6193_v43, %v6109_v10 }
 0xa28   : > { %v6092_v5 = vpop.f32.mrb[220].mxu1  ;;  %v6041_v22 = vpop.f32.mrb[221].mxu0  ;;  %v13333_v36 = vadd.f32 %v6039_v3, %v13192_v49  ;;  %v13335_v47 = vadd.f32 %v6201_v23, %v6117_v32  ;;  %v6203_v21 = vmul.f32 %v13200_v52, %v6151_v26  ;;  %v6119_v55 = vmax.f32 %v6087_v41, 0.0  ;;  %v13352_v32 = vld [vmem:[%s14044_s3 + $0x18] sm:$0xff]  }
 0xa29   : > { %v6094_v51 = vpop.f32.mrb[221].mxu1  ;;  %v6043_v44 = vpop.f32.mrb[222].mxu0  ;;  %v6042_v57 = vadd.f32 %v6041_v22, %v13192_v49  ;;  %14930 = vst [vmem:[#allocation6_spill] sm:$0xff] %v13339_v7  ;;  %v6202_v35 = vmul.f32 %v13200_v52, %v6150_v0  ;;  %v6204_v13 = vmul.f32 %v13200_v52, %v6152_v45  ;;  %v13343_v16 = vadd.f32 %v6195_v29, %v6111_v19 }
 0xa2a   : > { %14929 = vst [vmem:[#allocation38_spill] sm:$0xff] %v13335_v47  ;;  %v6096_v62 = vpop.f32.mrb[222].mxu1  ;;  %v6045_v30 = vpop.f32.mrb[223].mxu0  ;;  %v13345_v48 = vadd.f32 %v6194_v60, %v6110_v40  ;;  %v6157_v12 = vmin.f32 %v13333_v36, 0.0  ;;  %v6093_v26 = vadd.f32 %v6092_v5, %v13192_v49  ;;  %8354 = vmatmul.mubr.msk.bf16.gmra.mrb[236].mxu0 %vm1784_vm8, %v13352_v32  ;;  %v13356_v41 = vadd.f32 %v6196_v28, %v6112_v34 }
 0xa2b   : > { %v6098_v3 = vpop.f32.mrb[223].mxu1  ;;  %14931 = vst [vmem:[#allocation36_spill] sm:$0xff] %v13343_v16  ;;  %v13358_v52 = vadd.f32 %v6203_v21, %v6119_v55  ;;  %v6118_v45 = vmax.f32 %v6036_v54, 0.0  ;;  %v6120_v10 = vmax.f32 %v6089_v38, 0.0  ;;  %6447 = vmatprep.mubr.bf16.mxu0 %v14616_v59  ;;  %v6257_v43 = vpack.c.bf16 %v13335_v47, %v13339_v7  ;;  %8358 = vmatmul.mubr.msk.bf16.gmra.mrb[236].mxu1 %vm1784_vm8, %v13352_v32 }
 0xa2c   : > { %14932 = vst [vmem:[#allocation32_spill] sm:$0xff] %v13345_v48  ;;  %14933 = vst [vmem:[#allocation83_spill] sm:$0xff] %v13356_v41  ;;  %v6158_v5 = vmin.f32 %v6042_v57, 0.0  ;;  %v6095_v19 = vadd.f32 %v6094_v51, %v13192_v49  ;;  %v6044_v23 = vadd.f32 %v6043_v44, %v13190_v14  ;;  %v6097_v54 = vadd.f32 %v6096_v62, %v13190_v14 }
 0xa2d   : > { %14934 = vst [vmem:[#allocation57_spill] sm:$0xff] %v13358_v52  ;;  %v13367_v29 = vadd.f32 %v6202_v35, %v6118_v45  ;;  %v13369_v28 = vadd.f32 %v6204_v13, %v6120_v10  ;;  %v6046_v38 = vadd.f32 %v6045_v30, %v13190_v14  ;;  %6520 = vmatprep.mubr.bf16.mxu1 %v14616_v59  ;;  %v6125_v60 = vmax.f32 %v13333_v36, 0.0 }
 0xa2e   : > { %v6209_v0 = vmul.f32 %v13236_v58, %v6157_v12  ;;  %v6159_v49 = vmin.f32 %v6093_v26, 0.0  ;;  %v6160_v22 = vmin.f32 %v6095_v19, 0.0  ;;  %v6259_v40 = vpack.c.bf16 %v13358_v52, %v13343_v16 }
 0xa2f   : > { %14935 = vst [vmem:[#allocation40_spill] sm:$0xff] %v13367_v29  ;;  %14936 = vst [vmem:[#allocation5_spill] sm:$0xff] %v13369_v28  ;;  %v6126_v51 = vmax.f32 %v6042_v57, 0.0  ;;  %v6165_v44 = vmin.f32 %v6044_v23, 0.0  ;;  %v6167_v34 = vmin.f32 %v6097_v54, 0.0  ;;  %v6210_v21 = vmul.f32 %v13236_v58, %v6158_v5 }
 0xa30   : > { %v6133_v55 = vmax.f32 %v6044_v23, 0.0  ;;  %v6166_v62 = vmin.f32 %v6046_v38, 0.0  ;;  %v6099_v30 = vadd.f32 %v6098_v3, %v13190_v14  ;;  %v6258_v13 = vpack.c.bf16 %v13367_v29, %v13345_v48 }
 0xa31   : > { %v6217_v35 = vmul.f32 %v13248_v61, %v6165_v44  ;;  %v6219_v36 = vmul.f32 %v13248_v61, %v6167_v34  ;;  %v6260_v12 = vpack.c.bf16 %v13369_v28, %v13356_v41  ;;  %v6212_v57 = vmul.f32 %v13236_v58, %v6160_v22 }
 0xa32   : > { %v6134_v45 = vmax.f32 %v6046_v38, 0.0  ;;  %v6218_v10 = vmul.f32 %v13248_v61, %v6166_v62  ;;  %v6168_v5 = vmin.f32 %v6099_v30, 0.0  ;;  %v6211_v23 = vmul.f32 %v13236_v58, %v6159_v49  ;;  %6415 = vmatprep.subr.bf16.mxu0 %v6258_v13 }
 0xa33   : > { %v6128_v52 = vmax.f32 %v6095_v19, 0.0  ;;  %v13389_v14 = vadd.f32 %v6217_v35, %v6133_v55  ;;  %v6135_v3 = vmax.f32 %v6097_v54, 0.0  ;;  %6488 = vmatprep.subr.bf16.mxu1 %v6260_v12  ;;  %v13391_v44 = vadd.f32 %v6210_v21, %v6126_v51  ;;  %6416 = vmatpush1.bf16.msra.mxu0 %v6257_v43  ;;  %v14947_v35 = vld [vmem:[#allocation75_spill] sm:$0xff] }
 0xa34   : > { %v13393_v34 = vadd.f32 %v6218_v10, %v6134_v45  ;;  %v6136_v29 = vmax.f32 %v6099_v30, 0.0  ;;  %v6220_v28 = vmul.f32 %v13248_v61, %v6168_v5  ;;  %6489 = vmatpush1.bf16.msra.mxu1 %v6259_v40  ;;  %v13396_v38 = vadd.f32 %v6209_v0, %v6125_v60  ;;  %v14946_v60 = vld [vmem:[#allocation74_spill] sm:$0xff]  ;;  %v14948_v45 = vld [vmem:[#allocation77_spill] sm:$0xff]  ;;  %v14949_v5 = vld [vmem:[#allocation76_spill] sm:$0xff] }
 0xa35   : > { %14937 = vst [vmem:[#allocation117_spill] sm:$0xff] %v13389_v14  ;;  %14938 = vst [vmem:[#allocation4_spill] sm:$0xff] %v13391_v44  ;;  %v6127_v22 = vmax.f32 %v6093_v26, 0.0  ;;  %v13398_v62 = vadd.f32 %v6219_v36, %v6135_v3  ;;  %v13400_v58 = vadd.f32 %v6212_v57, %v6128_v52 }
 0xa36   : > { %14939 = vst [vmem:[#allocation51_spill] sm:$0xff] %v13393_v34  ;;  %14940 = vst [vmem:[#allocation53_spill] sm:$0xff] %v13396_v38  ;;  %v13402_v19 = vadd.f32 %v6220_v28, %v6136_v29  ;;  %v6266_v54 = vpack.c.bf16 %v13393_v34, %v13391_v44  ;;  %v6265_v51 = vpack.c.bf16 %v13389_v14, %v13396_v38 }
 0xa37   : > { %14941 = vst [vmem:[#allocation15_spill] sm:$0xff] %v13398_v62  ;;  %14942 = vst [vmem:[#allocation13_spill] sm:$0xff] %v13400_v58  ;;  %v13406_v49 = vadd.f32 %v6211_v23, %v6127_v22 }
 0xa38   : > { %14943 = vst [vmem:[#allocation42_spill] sm:$0xff] %v13402_v19  ;;  %6417 = vmatprep.subr.bf16.mxu0 %v6266_v54  ;;  %v6268_v61 = vpack.c.bf16 %v13402_v19, %v13400_v58 }
 0xa39   : > { %14944 = vst [vmem:[#allocation68_spill] sm:$0xff] %v13406_v49  ;;  %v6267_v26 = vpack.c.bf16 %v13398_v62, %v13406_v49  ;;  %6418 = vmatpush1.bf16.msra.mxu0 %v6265_v51  ;;  %v14950_v51 = vld [vmem:[#allocation79_spill] sm:$0xff]  ;;  %v14961_v62 = vld [vmem:[#allocation92_spill] sm:$0xff] }
 0xa3a   : > { %6490 = vmatprep.subr.bf16.mxu1 %v6268_v61 }
 0xa3b   : > { %6491 = vmatpush1.bf16.msra.mxu1 %v6267_v26  ;;  %v14951_v26 = vld [vmem:[#allocation78_spill] sm:$0xff] }
 0xa3c   : > { %8359 = vmatmul.mubr.msk.bf16.vlgmr.msra.gmra.mrb[240].mxu0 %vm1784_vm8, %v13289_v31 }
 0xa3d   : > { %6457 = vmatprep.mubr.bf16.mxu0 %v14616_v59 }
 0xa3e   : > { %8363 = vmatmul.mubr.msk.bf16.vlgmr.msra.gmra.mrb[240].mxu1 %vm1784_vm8, %v13289_v31 }
 0xa3f   : > { %6530 = vmatprep.mubr.bf16.mxu1 %v14616_v59 }
 0xa44   : > { %8360 = vmatmul.mubr.msk.bf16.gmra.mrb[244].mxu0 %vm1784_vm8, %v13300_v6 }
 0xa45   : > { %6467 = vmatprep.mubr.bf16.mxu0 %v14616_v59 }
 0xa46   : > { %8364 = vmatmul.mubr.msk.bf16.gmra.mrb[244].mxu1 %vm1784_vm8, %v13300_v6  ;;  %v14945_v6 = vld [vmem:[#allocation73_spill] sm:$0xff] }
 0xa47   : > { %6540 = vmatprep.mubr.bf16.mxu1 %v14616_v59 }
 0xa4c   : > { %8361 = vmatmul.mubr.msk.bf16.gmra.mrb[248].mxu0 %vm1784_vm8, %v13316_v9 }
 0xa4d   : > { %6477 = vmatprep.mubr.bf16.mxu0 %v14616_v59 }
 0xa4e   : > { %8365 = vmatmul.mubr.msk.bf16.gmra.mrb[248].mxu1 %vm1784_vm8, %v13316_v9 }
 0xa4f   : > { %6550 = vmatprep.mubr.bf16.mxu1 %v14616_v59 }
 0xa54   : > { %8362 = vmatmul.mubr.msk.bf16.gmra.mrb[252].mxu0 %vm1784_vm8, %v13352_v32 }
 0xa55   : > { %6929 = vmatprep.mubr.bf16.mxu0 %v14616_v59 }
 0xa56   : > { %8366 = vmatmul.mubr.msk.bf16.gmra.mrb[252].mxu1 %vm1784_vm8, %v13352_v32 }
 0xa57   : > { %6982 = vmatprep.mubr.bf16.mxu1 %v14616_v59 }
 0xae1   : > { %v6303_v31 = vpop.f32.mrb[224].mxu0 }
 0xae2   : > { %v6304_v52 = vadd.f32 %v6303_v31, %v14945_v6  ;;  %v6305_v43 = vpop.f32.mrb[225].mxu0 }
 0xae3   : > { %v6376_v29 = vpop.f32.mrb[224].mxu1  ;;  %v6306_v28 = vadd.f32 %v6305_v43, %v14945_v6  ;;  %v6307_v9 = vpop.f32.mrb[226].mxu0 }
 0xae4   : > { %v6561_v0 = vadd.f32 %v6304_v52, %v14946_v60  ;;  %v6377_v40 = vadd.f32 %v6376_v29, %v14945_v6  ;;  %v6378_v21 = vpop.f32.mrb[225].mxu1  ;;  %v6308_v55 = vadd.f32 %v6307_v9, %v11117_v24  ;;  %v6309_v30 = vpop.f32.mrb[227].mxu0 }
 0xae5   : > { %v6562_v32 = vadd.f32 %v6306_v28, %v14947_v35  ;;  %v6379_v36 = vadd.f32 %v6378_v21, %v14945_v6  ;;  %v6380_v13 = vpop.f32.mrb[226].mxu1  ;;  %v6310_v12 = vadd.f32 %v6309_v30, %v11117_v24  ;;  %v14952_v28 = vld [vmem:[#allocation80_spill] sm:$0xff] }
 0xae6   : > { %v8367_v57 = vmul.f32 -1.442695, %v6561_v0  ;;  %v6563_v10 = vadd.f32 %v6377_v40, %v14948_v45  ;;  %v6569_v23 = vadd.f32 %v6308_v55, %v14949_v5  ;;  %v6381_v3 = vadd.f32 %v6380_v13, %v11117_v24  ;;  %v6382_v22 = vpop.f32.mrb[227].mxu1  ;;  %v14953_v0 = vld [vmem:[#allocation81_spill] sm:$0xff]  ;;  %v14954_v45 = vld [vmem:[#allocation82_spill] sm:$0xff] }
 0xae7   : > { %v8368_v54 = vmul.f32 -1.442695, %v6562_v32  ;;  %v6564_v61 = vadd.f32 %v6379_v36, %v14950_v51  ;;  %v6570_v31 = vadd.f32 %v6310_v12, %v14951_v26  ;;  %v6383_v52 = vadd.f32 %v6382_v22, %v11117_v24 }
 0xae8   : > { %9089 = vpow2.f32 %v8367_v57  ;;  %v8369_v43 = vmul.f32 -1.442695, %v6563_v10  ;;  %v8375_v29 = vmul.f32 -1.442695, %v6569_v23  ;;  %v6571_v9 = vadd.f32 %v6381_v3, %v14952_v28  ;;  %v14957_v28 = vld [vmem:[#allocation85_spill] sm:$0xff] }
 0xae9   : > { %9091 = vpow2.f32 %v8368_v54  ;;  %v8370_v60 = vmul.f32 -1.442695, %v6564_v61  ;;  %v6572_v40 = vadd.f32 %v6383_v52, %v14953_v0  ;;  %v6313_v21 = vpop.f32.mrb[228].mxu0  ;;  %v8376_v30 = vmul.f32 -1.442695, %v6570_v31  ;;  %v14955_v54 = vld [vmem:[#allocation84_spill] sm:$0xff] }
 0xaea   : > { %9093 = vpow2.f32 %v8369_v43  ;;  %v8377_v55 = vmul.f32 -1.442695, %v6571_v9  ;;  %v6314_v35 = vadd.f32 %v6313_v21, %v11139_v33  ;;  %v6315_v32 = vpop.f32.mrb[229].mxu0  ;;  %v14956_v52 = vld [vmem:[#allocation88_spill] sm:$0xff]  ;;  %v14958_v0 = vld [vmem:[#allocation89_spill] sm:$0xff] }
 0xaeb   : > { %9095 = vpow2.f32 %v8370_v60  ;;  %v8378_v36 = vmul.f32 -1.442695, %v6572_v40  ;;  %v6386_v13 = vpop.f32.mrb[228].mxu1  ;;  %v6316_v12 = vadd.f32 %v6315_v32, %v11139_v33  ;;  %v6317_v57 = vpop.f32.mrb[230].mxu0 }
 0xaec   : > { %9097 = vpow2.f32 %v8375_v29  ;;  %v6577_v10 = vadd.f32 %v6314_v35, %v14954_v45  ;;  %v6387_v5 = vadd.f32 %v6386_v13, %v11139_v33  ;;  %v6388_v23 = vpop.f32.mrb[229].mxu1  ;;  %v6318_v3 = vadd.f32 %v6317_v57, %v14604_v20  ;;  %v6319_v22 = vpop.f32.mrb[231].mxu0 }
 0xaed   : > { %9099 = vpow2.f32 %v8377_v55  ;;  %v6578_v51 = vadd.f32 %v6316_v12, %v14955_v54  ;;  %v6389_v61 = vadd.f32 %v6388_v23, %v11139_v33  ;;  %v6390_v26 = vpop.f32.mrb[230].mxu1 }
 0xaee   : > { %9101 = vpow2.f32 %v8376_v30  ;;  %v8383_v31 = vmul.f32 -1.442695, %v6577_v10  ;;  %v6579_v43 = vadd.f32 %v6387_v5, %v14956_v52  ;;  %v6585_v29 = vadd.f32 %v6318_v3, %v14957_v28  ;;  %v6392_v9 = vpop.f32.mrb[231].mxu1 }
 0xaef   : > { %9103 = vpow2.f32 %v8378_v36  ;;  %v8384_v60 = vmul.f32 -1.442695, %v6578_v51  ;;  %v6580_v40 = vadd.f32 %v6389_v61, %v14958_v0  ;;  %v6320_v0 = vadd.f32 %v6319_v22, %v14604_v20 }
 0xaf0   : > { %9105 = vpow2.f32 %v8383_v31  ;;  %v8385_v21 = vmul.f32 -1.442695, %v6579_v43  ;;  %v8391_v35 = vmul.f32 -1.442695, %v6585_v29  ;;  %v6391_v43 = vadd.f32 %v6390_v26, %v14604_v20  ;;  %v14959_v26 = vld [vmem:[#allocation90_spill] sm:$0xff] }
 0xaf1   : > { %9107 = vpow2.f32 %v8384_v60  ;;  %v8386_v55 = vmul.f32 -1.442695, %v6580_v40  ;;  %v6323_v32 = vpop.f32.mrb[232].mxu0 }
 0xaf2   : > { %v9090_v13 = vpop.eup %9089  ;;  %9109 = vpow2.f32 %v8385_v21  ;;  %v13464_v12 = vpop.f32.mrb[233].mxu0 }
 0xaf3   : > { %v9092_v30 = vpop.eup %9091  ;;  %v6721_v57 = vadd.f32 1.0, %v9090_v13  ;;  %9111 = vpow2.f32 %v8386_v55  ;;  %v6396_v45 = vpop.f32.mrb[232].mxu1 }
 0xaf4   : > { %v13466_v10 = vpop.f32.mrb[234].mxu0  ;;  %v9094_v36 = vpop.eup %9093  ;;  %v6722_v5 = vadd.f32 1.0, %v9092_v30  ;;  %9113 = vpow2.f32 %v8391_v35  ;;  %v6393_v35 = vadd.f32 %v6392_v9, %v14604_v20 }
 0xaf5   : > { %v6398_v23 = vpop.f32.mrb[233].mxu1  ;;  %v13468_v3 = vpop.f32.mrb[235].mxu0  ;;  %9115 = vrcp.f32 %v6721_v57  ;;  %v6723_v51 = vadd.f32 1.0, %v9094_v36 }
 0xaf6   : > { %v9096_v54 = vpop.eup %9095  ;;  %v6400_v61 = vpop.f32.mrb[234].mxu1  ;;  %9117 = vrcp.f32 %v6722_v5  ;;  %v6587_v5 = vadd.f32 %v6391_v43, %v14959_v26  ;;  %v6324_v43 = vadd.f32 %v6323_v32, %v11202_v27 }
 0xaf7   : > { %v9098_v31 = vpop.eup %9097  ;;  %v6724_v52 = vadd.f32 1.0, %v9096_v54  ;;  %v13471_v28 = vpop.f32.mrb[235].mxu1  ;;  %9119 = vrcp.f32 %v6723_v51 }
 0xaf8   : > { %v9100_v29 = vpop.eup %9099  ;;  %v6729_v60 = vadd.f32 1.0, %v9098_v31  ;;  %v14960_v31 = vld [vmem:[#allocation91_spill] sm:$0xff] }
 0xaf9   : > { %v9102_v40 = vpop.eup %9101  ;;  %9121 = vrcp.f32 %v6724_v52  ;;  %v6731_v21 = vadd.f32 1.0, %v9100_v29  ;;  %v6586_v22 = vadd.f32 %v6320_v0, %v14960_v31  ;;  %v6397_v0 = vadd.f32 %v6396_v45, %v11202_v27 }
 0xafa   : > { %v9104_v55 = vpop.eup %9103  ;;  %9123 = vrcp.f32 %v6729_v60  ;;  %v6730_v13 = vadd.f32 1.0, %v9102_v40  ;;  %v6588_v60 = vadd.f32 %v6393_v35, %v14961_v62  ;;  %v6326_v35 = vadd.f32 %v13464_v12, %v11202_v27 }
 0xafb   : > { %v9106_v57 = vpop.eup %9105  ;;  %9125 = vrcp.f32 %v6731_v21  ;;  %v6732_v36 = vadd.f32 1.0, %v9104_v55  ;;  %v8392_v62 = vmul.f32 -1.442695, %v6586_v22  ;;  %v14963_v22 = vld [vmem:[#allocation94_spill] sm:$0xff]  ;;  %v6401_v12 = vadd.f32 %v6400_v61, %v11241_v53  ;;  %v14966_v61 = vld [vmem:[#allocation97_spill] sm:$0xff] }
 0xafc   : > { %v9108_v19 = vpop.eup %9107  ;;  %9127 = vrcp.f32 %v6730_v13  ;;  %v6737_v51 = vadd.f32 1.0, %v9106_v57  ;;  %v8393_v57 = vmul.f32 -1.442695, %v6587_v5  ;;  %v8394_v32 = vmul.f32 -1.442695, %v6588_v60 }
 0xafd   : > { %v6333_v30 = vpop.f32.mrb[236].mxu0  ;;  %v9110_v29 = vpop.eup %9109  ;;  %9129 = vrcp.f32 %v6732_v36  ;;  %v6738_v9 = vadd.f32 1.0, %v9108_v19  ;;  %v6328_v5 = vadd.f32 %v13466_v10, %v11241_v53  ;;  %v6330_v60 = vadd.f32 %v13468_v3, %v11241_v53 }
 0xafe   : > { %v6335_v54 = vpop.f32.mrb[237].mxu0  ;;  %v6406_v34 = vpop.f32.mrb[236].mxu1  ;;  %9131 = vrcp.f32 %v6737_v51  ;;  %v6739_v21 = vadd.f32 1.0, %v9110_v29  ;;  %v6399_v51 = vadd.f32 %v6398_v23, %v11202_v27  ;;  %v14964_v23 = vld [vmem:[#allocation95_spill] sm:$0xff]  ;;  %v6334_v3 = vadd.f32 %v6333_v30, %v11379_v1  ;;  %v14969_v30 = vld [vmem:[#allocation101_spill] sm:$0xff] }
 0xaff   : > { %v6337_v52 = vpop.f32.mrb[238].mxu0  ;;  %v6408_v40 = vpop.f32.mrb[237].mxu1  ;;  %9133 = vrcp.f32 %v6738_v9 }
 0xb00   : > { %v6339_v14 = vpop.f32.mrb[239].mxu0  ;;  %v9112_v58 = vpop.eup %9111  ;;  %9135 = vrcp.f32 %v6739_v21  ;;  %v6595_v21 = vadd.f32 %v6397_v0, %v14963_v22  ;;  %v6601_v0 = vadd.f32 %v6328_v5, %v14966_v61  ;;  %v6338_v5 = vadd.f32 %v6337_v52, %v14870_v11 }
 0xb01   : > { %v6410_v55 = vpop.f32.mrb[238].mxu1  ;;  %v9114_v26 = vpop.eup %9113  ;;  %v6740_v13 = vadd.f32 1.0, %v9112_v58  ;;  %v14962_v58 = vld [vmem:[#allocation93_spill] sm:$0xff] }
 0xb02   : > { %v6412_v31 = vpop.f32.mrb[239].mxu1  ;;  %v13480_v44 = vpop.eup %9115  ;;  %v6745_v19 = vadd.f32 1.0, %v9114_v26  ;;  %v6593_v45 = vadd.f32 %v6324_v43, %v14962_v58  ;;  %v14965_v43 = vld [vmem:[#allocation96_spill] sm:$0xff] }
 0xb03   : > { %v13484_v36 = vpop.eup %9117  ;;  %9137 = vrcp.f32 %v6740_v13  ;;  %v6594_v13 = vadd.f32 %v6326_v35, %v14964_v23  ;;  %v6596_v10 = vadd.f32 %v6399_v51, %v14965_v43  ;;  %v14968_v23 = vld [vmem:[#allocation100_spill] sm:$0xff] }
 0xb04   : > { %v13487_v29 = vpop.eup %9119  ;;  %9139 = vrcp.f32 %v6745_v19  ;;  %v6602_v49 = vadd.f32 %v6330_v60, %v14968_v23 }
 0xb05   : > { %v13492_v9 = vpop.eup %9121  ;;  %9141 = vpow2.f32 %v8393_v57  ;;  %v6403_v57 = vadd.f32 %v13471_v28, %v11241_v53  ;;  %v6336_v28 = vadd.f32 %v6335_v54, %v11379_v1  ;;  %v14971_v54 = vld [vmem:[#allocation103_spill] sm:$0xff] }
 0xb06   : > { %v13498_v26 = vpop.eup %9123  ;;  %9143 = vpow2.f32 %v8392_v62  ;;  %v14967_v62 = vld [vmem:[#allocation98_spill] sm:$0xff] }
 0xb07   : > { %v13501_v19 = vpop.eup %9125  ;;  %9145 = vpow2.f32 %v8394_v32  ;;  %v6603_v35 = vadd.f32 %v6401_v12, %v14967_v62  ;;  %v6407_v32 = vadd.f32 %v6406_v34, %v11379_v1  ;;  %v6411_v12 = vadd.f32 %v6410_v55, %v14870_v11  ;;  %v14970_v34 = vld [vmem:[#allocation102_spill] sm:$0xff]  ;;  %v14974_v55 = vld [vmem:[#allocation107_spill] sm:$0xff] }
 0xb08   : > { %v13506_v58 = vpop.eup %9127  ;;  %9147 = vtanh.f32 %v6593_v45  ;;  %v6409_v45 = vadd.f32 %v6408_v40, %v11379_v1  ;;  %v6609_v60 = vadd.f32 %v6334_v3, %v14970_v34  ;;  %v6617_v38 = vadd.f32 %v6338_v5, %v14974_v55  ;;  %v14975_v3 = vld [vmem:[#allocation108_spill] sm:$0xff] }
 0xb09   : > { %v13510_v22 = vpop.eup %9129  ;;  %9149 = vtanh.f32 %v6595_v21  ;;  %v6604_v21 = vadd.f32 %v6403_v57, %v14969_v30  ;;  %v6611_v40 = vadd.f32 %v6407_v32, %v14971_v54  ;;  %v14973_v57 = vld [vmem:[#allocation106_spill] sm:$0xff]  ;;  %v6619_v34 = vadd.f32 %v6411_v12, %v14975_v3 }
 0xb0a   : > { %v13515_v51 = vpop.eup %9131  ;;  %9151 = vtanh.f32 %v6594_v13  ;;  %v6340_v13 = vadd.f32 %v6339_v14, %v14870_v11  ;;  %v6612_v30 = vadd.f32 %v6409_v45, %v14973_v57  ;;  %v6413_v14 = vadd.f32 %v6412_v31, %v14870_v11 }
 0xb0b   : > { %v13520_v43 = vpop.eup %9133  ;;  %9153 = vtanh.f32 %v6596_v10  ;;  %v14972_v10 = vld [vmem:[#allocation104_spill] sm:$0xff] }
 0xb0c   : > { %v13524_v61 = vpop.eup %9135  ;;  %9155 = vtanh.f32 %v6601_v0  ;;  %v6610_v23 = vadd.f32 %v6336_v28, %v14972_v10 }
 0xb0d   : > { %v13528_v62 = vpop.eup %9137  ;;  %9157 = vtanh.f32 %v6603_v35 }
 0xb0e   : > { %v13531_v52 = vpop.eup %9139  ;;  %9159 = vtanh.f32 %v6602_v49  ;;  %v14976_v49 = vld [vmem:[#allocation109_spill] sm:$0xff] }
 0xb0f   : > { %v6449_v47 = vpop.f32.mrb[240].mxu0  ;;  %v9142_v0 = vpop.eup %9141  ;;  %9161 = vtanh.f32 %v6604_v21  ;;  %v6618_v48 = vadd.f32 %v6340_v13, %v14976_v49  ;;  %v14977_v21 = vld [vmem:[#allocation111_spill] sm:$0xff] }
 0xb10   : > { %v6450_v35 = vadd.f32 %v6449_v47, %v14945_v6  ;;  %v6451_v41 = vpop.f32.mrb[241].mxu0  ;;  %v9144_v32 = vpop.eup %9143  ;;  %v6747_v54 = vadd.f32 1.0, %v9142_v0  ;;  %9163 = vtanh.f32 %v6609_v60  ;;  %v14978_v0 = vld [vmem:[#allocation112_spill] sm:$0xff] }
 0xb11   : > { %v6522_v28 = vpop.f32.mrb[240].mxu1  ;;  %v6452_v45 = vadd.f32 %v6451_v41, %v14945_v6  ;;  %v6453_v10 = vpop.f32.mrb[242].mxu0  ;;  %v6746_v57 = vadd.f32 1.0, %v9144_v32  ;;  %9165 = vtanh.f32 %v6611_v40  ;;  %v14979_v41 = vld [vmem:[#allocation110_spill] sm:$0xff]  ;;  %v14980_v40 = vld [vmem:[#allocation115_spill] sm:$0xff] }
 0xb12   : > { %v9146_v5 = vpop.eup %9145  ;;  %v6565_v55 = vadd.f32 %v6450_v35, %v14977_v21  ;;  %v6523_v12 = vadd.f32 %v6522_v28, %v14945_v6  ;;  %v6524_v31 = vpop.f32.mrb[241].mxu1  ;;  %9167 = vrcp.f32 %v6747_v54  ;;  %v6620_v32 = vadd.f32 %v6413_v14, %v14979_v41  ;;  %v14981_v54 = vld [vmem:[#allocation116_spill] sm:$0xff] }
 0xb13   : > { %v6455_v3 = vpop.f32.mrb[243].mxu0  ;;  %v9148_v47 = vpop.eup %9147  ;;  %v6748_v16 = vadd.f32 1.0, %v9146_v5  ;;  %v6566_v60 = vadd.f32 %v6452_v45, %v14978_v0  ;;  %v6525_v13 = vadd.f32 %v6524_v31, %v14945_v6  ;;  %9169 = vrcp.f32 %v6746_v57 }
 0xb14   : > { %v6526_v49 = vpop.f32.mrb[242].mxu1  ;;  %v13545_v7 = vpop.eup %9149  ;;  %v6567_v11 = vadd.f32 %v6523_v12, %v14980_v40  ;;  %v6454_v35 = vadd.f32 %v6453_v10, %v11117_v24  ;;  %v8371_v1 = vmul.f32 -1.442695, %v6565_v55  ;;  %v6456_v57 = vadd.f32 %v6455_v3, %v11117_v24 }
 0xb15   : > { %v6528_v28 = vpop.f32.mrb[243].mxu1  ;;  %v9152_v21 = vpop.eup %9151  ;;  %9171 = vrcp.f32 %v6748_v16  ;;  %v6568_v5 = vadd.f32 %v6525_v13, %v14981_v54  ;;  %v6527_v45 = vadd.f32 %v6526_v49, %v11117_v24  ;;  %v8372_v6 = vmul.f32 -1.442695, %v6566_v60 }
 0xb16   : > { %v9154_v0 = vpop.eup %9153  ;;  %9173 = vtanh.f32 %v6610_v23  ;;  %v6573_v31 = vadd.f32 %v6454_v35, %v14860_v63  ;;  %v8373_v12 = vmul.f32 -1.442695, %v6567_v11  ;;  %v6529_v41 = vadd.f32 %v6528_v28, %v11117_v24 }
 0xb17   : > { %v9156_v14 = vpop.eup %9155  ;;  %9175 = vtanh.f32 %v6612_v30  ;;  %v6575_v10 = vadd.f32 %v6527_v45, %v14738_v46  ;;  %v6459_v16 = vpop.f32.mrb[244].mxu0  ;;  %v8374_v13 = vmul.f32 -1.442695, %v6568_v5  ;;  %v6574_v49 = vadd.f32 %v6456_v57, %v14861_v39 }
 0xb18   : > { %v9158_v55 = vpop.eup %9157  ;;  %9177 = vtanh.f32 %v6617_v38  ;;  %v6850_v23 = vmul.f32 %v9152_v21, %v13484_v36  ;;  %v6461_v60 = vpop.f32.mrb[245].mxu0  ;;  %v8379_v63 = vmul.f32 -1.442695, %v6573_v31  ;;  %v6852_v30 = vmul.f32 %v9154_v0, %v13492_v9 }
 0xb19   : > { %v9160_v40 = vpop.eup %9159  ;;  %9179 = vtanh.f32 %v6619_v34  ;;  %v8381_v3 = vmul.f32 -1.442695, %v6575_v10  ;;  %v6532_v11 = vpop.f32.mrb[244].mxu1  ;;  %v6576_v24 = vadd.f32 %v6529_v41, %v11383_v17  ;;  %v6460_v28 = vadd.f32 %v6459_v16, %v11139_v33 }
 0xb1a   : > { %v6463_v35 = vpop.f32.mrb[246].mxu0  ;;  %v9162_v46 = vpop.eup %9161  ;;  %9181 = vtanh.f32 %v6618_v48  ;;  %v6858_v38 = vmul.f32 %v9160_v40, %v13506_v58  ;;  %v8380_v34 = vmul.f32 -1.442695, %v6574_v49  ;;  %v6533_v9 = vadd.f32 %v6532_v11, %v11139_v33 }
 0xb1b   : > { %v6534_v39 = vpop.f32.mrb[245].mxu1  ;;  %v13562_v54 = vpop.f32.mrb[247].mxu0  ;;  %9183 = vtanh.f32 %v6620_v32  ;;  %v6860_v21 = vmul.f32 %v9162_v46, %v13510_v22  ;;  %v6581_v58 = vadd.f32 %v6460_v28, %v11387_v50  ;;  %v6849_v45 = vmul.f32 %v9148_v47, %v13480_v44 }
 0xb1c   : > { %v13564_v36 = vpop.eup %9163  ;;  %v13568_v5 = vpop.f32.mrb[246].mxu1  ;;  %9185 = vpow2.f32 %v8371_v1  ;;  %v6882_v17 = vpack.c.bf16 %v6858_v38, %v6850_v23  ;;  %v6583_v22 = vadd.f32 %v6533_v9, %v11421_v4  ;;  %v6857_v57 = vmul.f32 %v9156_v14, %v13498_v26 }
 0xb1d   : > { %v13570_v48 = vpop.eup %9165  ;;  %v13574_v0 = vpop.f32.mrb[247].mxu1  ;;  %9187 = vpow2.f32 %v8373_v12  ;;  %v6884_v32 = vpack.c.bf16 %v6860_v21, %v6852_v30  ;;  %v8382_v41 = vmul.f32 -1.442695, %v6576_v24  ;;  %v6851_v1 = vmul.f32 %v13545_v7, %v13487_v29 }
 0xb1e   : > { %v13576_v31 = vpop.eup %9167  ;;  %9189 = vpow2.f32 %v8372_v6  ;;  %6897 = vmatprep.subr.bf16.mxu0 %v6882_v17  ;;  %v6859_v50 = vmul.f32 %v9158_v55, %v13501_v19  ;;  %v8387_v47 = vmul.f32 -1.442695, %v6581_v58  ;;  %v6881_v16 = vpack.c.bf16 %v6857_v57, %v6849_v45 }
 0xb1f   : > { %v9170_v10 = vpop.eup %9169  ;;  %9191 = vpow2.f32 %v8374_v13  ;;  %6950 = vmatprep.subr.bf16.mxu1 %v6884_v32  ;;  %v6462_v12 = vadd.f32 %v6461_v60, %v11139_v33  ;;  %v13584_v49 = vpop.f32.mrb[248].mxu0  ;;  %v6535_v6 = vadd.f32 %v6534_v39, %v11139_v33  ;;  %v6464_v14 = vadd.f32 %v6463_v35, %v14604_v20 }
 0xb20   : > { %v9172_v44 = vpop.eup %9171  ;;  %9193 = vpow2.f32 %v8379_v63  ;;  %v6883_v26 = vpack.c.bf16 %v6859_v50, %v6851_v1  ;;  %v13588_v23 = vpop.f32.mrb[249].mxu0  ;;  %v8389_v29 = vmul.f32 -1.442695, %v6583_v22  ;;  %6898 = vmatpush1.bf16.msra.mxu0 %v6881_v16  ;;  %v6466_v16 = vadd.f32 %v13562_v54, %v14604_v20 }
 0xb21   : > { %v9174_v4 = vpop.eup %9173  ;;  %9195 = vpow2.f32 %v8381_v3  ;;  %v6582_v19 = vadd.f32 %v6462_v12, %v11403_v18  ;;  %v13591_v55 = vpop.f32.mrb[248].mxu1  ;;  %v6584_v40 = vadd.f32 %v6535_v6, %v14740_v2  ;;  %v6589_v33 = vadd.f32 %v6464_v14, %v14741_v8 }
 0xb22   : > { %v9176_v7 = vpop.eup %9175  ;;  %v13593_v13 = vpop.f32.mrb[250].mxu0  ;;  %9197 = vpow2.f32 %v8380_v34  ;;  %6951 = vmatpush1.bf16.msra.mxu1 %v6883_v26  ;;  %v6866_v2 = vmul.f32 %v9174_v4, %v13520_v43  ;;  %v6865_v12 = vmul.f32 %v13564_v36, %v13515_v51  ;;  %v6539_v51 = vadd.f32 %v13574_v0, %v14604_v20 }
 0xb23   : > { %v9178_v60 = vpop.eup %9177  ;;  %v13597_v63 = vpop.f32.mrb[249].mxu1  ;;  %9199 = vpow2.f32 %v8382_v41  ;;  %v8388_v11 = vmul.f32 -1.442695, %v6582_v19  ;;  %v8390_v46 = vmul.f32 -1.442695, %v6584_v40  ;;  %v6868_v34 = vmul.f32 %v9176_v7, %v13528_v62 }
 0xb24   : > { %v13599_v30 = vpop.f32.mrb[251].mxu0  ;;  %v9180_v3 = vpop.eup %9179  ;;  %9201 = vpow2.f32 %v8387_v47  ;;  %v8395_v24 = vmul.f32 -1.442695, %v6589_v33  ;;  %v6873_v14 = vmul.f32 %v9178_v60, %v13531_v52  ;;  %v6867_v7 = vmul.f32 %v13570_v48, %v13524_v61 }
 0xb25   : > { %v13601_v35 = vpop.f32.mrb[250].mxu1  ;;  %v9182_v18 = vpop.eup %9181  ;;  %9203 = vpow2.f32 %v8389_v29  ;;  %v6875_v36 = vmul.f32 %v9180_v3, %v13576_v31  ;;  %v6592_v31 = vadd.f32 %v6539_v51, %v14744_v15 }
 0xb26   : > { %v13603_v38 = vpop.f32.mrb[251].mxu1  ;;  %v9184_v28 = vpop.eup %9183  ;;  %9205 = vpow2.f32 %v8388_v11  ;;  %v6874_v39 = vmul.f32 %v9182_v18, %v9170_v10  ;;  %v6537_v10 = vadd.f32 %v13568_v5, %v14604_v20  ;;  %v6889_v18 = vpack.c.bf16 %v6873_v14, %v6865_v12 }
 0xb27   : > { %v9186_v8 = vpop.eup %9185  ;;  %9207 = vpow2.f32 %v8390_v46  ;;  %v6876_v17 = vmul.f32 %v9184_v28, %v9172_v44  ;;  %v13607_v58 = vpop.f32.mrb[252].mxu0  ;;  %v6891_v48 = vpack.c.bf16 %v6875_v36, %v6867_v7  ;;  %v6590_v28 = vadd.f32 %v6466_v16, %v14743_v42 }
 0xb28   : > { %v9188_v21 = vpop.eup %9187  ;;  %v6725_v9 = vadd.f32 1.0, %v9186_v8  ;;  %9209 = vpow2.f32 %v8395_v24  ;;  %v6890_v22 = vpack.c.bf16 %v6874_v39, %v6866_v2  ;;  %v13609_v57 = vpop.f32.mrb[253].mxu0  ;;  %v6591_v61 = vadd.f32 %v6537_v10, %v14742_v56 }
 0xb29   : > { %v9190_v45 = vpop.eup %9189  ;;  %v6727_v32 = vadd.f32 1.0, %v9188_v21  ;;  %v6892_v1 = vpack.c.bf16 %v6876_v17, %v6868_v34  ;;  %v13613_v62 = vpop.f32.mrb[252].mxu1  ;;  %v6470_v8 = vadd.f32 %v13584_v49, %v11202_v27  ;;  %v6543_v42 = vadd.f32 %v13591_v55, %v11202_v27  ;;  %v13645_v21 = vld [vmem:[%s14044_s3 + $0x40] sm:$0xff]  }
 0xb2a   : > { %v9192_v41 = vpop.eup %9191  ;;  %9211 = vrcp.f32 %v6725_v9  ;;  %v6726_v43 = vadd.f32 1.0, %v9190_v45  ;;  %v13615_v50 = vpop.f32.mrb[254].mxu0  ;;  %6899 = vmatprep.subr.bf16.mxu0 %v6890_v22  ;;  %v8397_v34 = vmul.f32 -1.442695, %v6591_v61  ;;  %v8396_v49 = vmul.f32 -1.442695, %v6590_v28 }
 0xb2b   : > { %v9194_v44 = vpop.eup %9193  ;;  %9213 = vrcp.f32 %v6727_v32  ;;  %v6728_v47 = vadd.f32 1.0, %v9192_v41  ;;  %v13621_v4 = vpop.f32.mrb[253].mxu1  ;;  %6952 = vmatprep.subr.bf16.mxu1 %v6892_v1  ;;  %6900 = vmatpush1.bf16.msra.mxu0 %v6889_v18  ;;  %v6472_v17 = vadd.f32 %v13588_v23, %v11202_v27  ;;  %v8398_v45 = vmul.f32 -1.442695, %v6592_v31  ;;  %v14989_v18 = vld [vmem:[#allocation59_spill] sm:$0xff] }
 0xb2c   : > { %v13623_v26 = vpop.f32.mrb[255].mxu0  ;;  %v9196_v5 = vpop.eup %9195  ;;  %9215 = vrcp.f32 %v6726_v43  ;;  %v6733_v6 = vadd.f32 1.0, %v9194_v44  ;;  %6953 = vmatpush1.bf16.msra.mxu1 %v6891_v48  ;;  %v6545_v32 = vadd.f32 %v13597_v63, %v11202_v27  ;;  %v6597_v41 = vadd.f32 %v6470_v8, %v14745_v37  ;;  %v14982_v27 = vld [vmem:[#allocation86_spill] sm:$0xff]  ;;  %v14990_v61 = vld [vmem:[#allocation63_spill] sm:$0xff] }
 0xb2d   : > { %v13628_v29 = vpop.f32.mrb[254].mxu1  ;;  %v9198_v54 = vpop.eup %9197  ;;  %9217 = vrcp.f32 %v6728_v47  ;;  %v6735_v19 = vadd.f32 1.0, %v9196_v5  ;;  %v6474_v23 = vadd.f32 %v13593_v13, %v11241_v53  ;;  %v6599_v10 = vadd.f32 %v6543_v42, %v14746_v25  ;;  %v14983_v13 = vld [vmem:[#allocation7_spill] sm:$0xff] }
 0xb2e   : > { %v13633_v40 = vpop.f32.mrb[255].mxu1  ;;  %v9200_v33 = vpop.eup %9199  ;;  %9219 = vrcp.f32 %v6733_v6  ;;  %v6734_v11 = vadd.f32 1.0, %v9198_v54  ;;  %8399 = vmatmul.mubr.msk.bf16.vlgmr.msra.gmra.mrb[0].mxu0 %vm1784_vm8, %v13645_v21  ;;  %v6547_v1 = vadd.f32 %v13601_v35, %v11241_v53  ;;  %v6598_v63 = vadd.f32 %v6472_v17, %v14982_v27  ;;  %v14984_v35 = vld [vmem:[#allocation61_spill] sm:$0xff]  ;;  %v14985_v6 = vld [vmem:[#allocation118_spill] sm:$0xff] }
 0xb2f   : > { %v9202_v52 = vpop.eup %9201  ;;  %9221 = vrcp.f32 %v6735_v19  ;;  %v6736_v60 = vadd.f32 1.0, %v9200_v33  ;;  %8401 = vmatmul.mubr.msk.bf16.vlgmr.msra.gmra.mrb[0].mxu1 %vm1784_vm8, %v13645_v21  ;;  %6939 = vmatprep.mubr.bf16.mxu0 %v14616_v59  ;;  %v6476_v47 = vadd.f32 %v13599_v30, %v11241_v53  ;;  %v6600_v16 = vadd.f32 %v6545_v32, %v14983_v13  ;;  %v14986_v30 = vld [vmem:[#allocation58_spill] sm:$0xff]  ;;  %v14994_v32 = vld [vmem:[#allocation99_spill] sm:$0xff] }
 0xb30   : > { %v9204_v46 = vpop.eup %9203  ;;  %9223 = vrcp.f32 %v6734_v11  ;;  %v6741_v24 = vadd.f32 1.0, %v9202_v52  ;;  %6992 = vmatprep.mubr.bf16.mxu1 %v14616_v59  ;;  %v6549_v12 = vadd.f32 %v13603_v38, %v11241_v53  ;;  %v6605_v5 = vadd.f32 %v6474_v23, %v14984_v35  ;;  %v13694_v53 = vld [vmem:[%s14044_s3 + $0x48] sm:$0xff]  }
 0xb31   : > { %v9206_v20 = vpop.eup %9205  ;;  %9225 = vrcp.f32 %v6736_v60  ;;  %v6743_v0 = vadd.f32 1.0, %v9204_v46  ;;  %v6480_v14 = vadd.f32 %v13607_v58, %v14985_v6  ;;  %v6607_v54 = vadd.f32 %v6547_v1, %v14986_v30  ;;  %v14987_v58 = vld [vmem:[#allocation62_spill] sm:$0xff] }
 0xb32   : > { %v9208_v3 = vpop.eup %9207  ;;  %9227 = vrcp.f32 %v6741_v24  ;;  %v6742_v2 = vadd.f32 1.0, %v9206_v20  ;;  %v6553_v19 = vadd.f32 %v13613_v62, %v14985_v6  ;;  %v6606_v51 = vadd.f32 %v6476_v47, %v14987_v58  ;;  %v14988_v62 = vld [vmem:[#allocation87_spill] sm:$0xff] }
 0xb33   : > { %v9210_v56 = vpop.eup %9209  ;;  %9229 = vrcp.f32 %v6743_v0  ;;  %v6744_v39 = vadd.f32 1.0, %v9208_v3  ;;  %v6608_v33 = vadd.f32 %v6549_v12, %v14988_v62  ;;  %v6613_v52 = vadd.f32 %v6480_v14, %v14989_v18  ;;  %v14991_v0 = vld [vmem:[#allocation119_spill] sm:$0xff] }
 0xb34   : > { %v13649_v15 = vpop.eup %9211  ;;  %9231 = vrcp.f32 %v6742_v2  ;;  %v6749_v9 = vadd.f32 1.0, %v9210_v56  ;;  %v6615_v48 = vadd.f32 %v6553_v19, %v14990_v61  ;;  %v6482_v46 = vadd.f32 %v13609_v57, %v14985_v6  ;;  %v14992_v57 = vld [vmem:[#allocation60_spill] sm:$0xff] }
 0xb35   : > { %v13656_v55 = vpop.eup %9213  ;;  %9233 = vrcp.f32 %v6744_v39  ;;  %v6555_v28 = vadd.f32 %v13621_v4, %v14985_v6  ;;  %v6484_v31 = vadd.f32 %v13615_v50, %v14991_v0  ;;  %v6557_v8 = vadd.f32 %v13628_v29, %v14991_v0 }
 0xb36   : > { %v13661_v22 = vpop.eup %9215  ;;  %9235 = vrcp.f32 %v6749_v9  ;;  %8400 = vmatmul.mubr.msk.bf16.gmra.mrb[4].mxu0 %vm1784_vm8, %v13694_v53  ;;  %v6486_v42 = vadd.f32 %v13623_v26, %v14991_v0  ;;  %v6559_v50 = vadd.f32 %v13633_v40, %v14991_v0  ;;  %v14997_v40 = vld [vmem:[#allocation66_spill] sm:$0xff] }
 0xb37   : > { %v13666_v43 = vpop.eup %9217  ;;  %9237 = vpow2.f32 %v8397_v34  ;;  %8402 = vmatmul.mubr.msk.bf16.gmra.mrb[4].mxu1 %vm1784_vm8, %v13694_v53  ;;  %7035 = vmatprep.mubr.bf16.mxu0 %v14616_v59  ;;  %v6614_v34 = vadd.f32 %v6482_v46, %v14992_v57  ;;  %v6621_v29 = vadd.f32 %v6484_v31, %v14994_v32 }
 0xb38   : > { %v13671_v44 = vpop.eup %9219  ;;  %9239 = vpow2.f32 %v8396_v49  ;;  %7088 = vmatprep.mubr.bf16.mxu1 %v14616_v59  ;;  %v14993_v49 = vld [vmem:[#allocation64_spill] sm:$0xff]  ;;  %v6624_v12 = vadd.f32 %v6559_v50, %v14997_v40 }
 0xb39   : > { %v13676_v37 = vpop.eup %9221  ;;  %9241 = vpow2.f32 %v8398_v45  ;;  %v6616_v17 = vadd.f32 %v6555_v28, %v14993_v49  ;;  %v14999_v49 = vld [vmem:[#allocation47_spill] sm:$0xff] }
 0xb3a   : > { %v13681_v25 = vpop.eup %9223  ;;  %9243 = vtanh.f32 %v6597_v41 }
 0xb3b   : > { %v13686_v7 = vpop.eup %9225  ;;  %9245 = vtanh.f32 %v6599_v10  ;;  %v14995_v10 = vld [vmem:[#allocation65_spill] sm:$0xff] }
 0xb3c   : > { %v13698_v38 = vpop.eup %9227  ;;  %9247 = vtanh.f32 %v6598_v63  ;;  %v6623_v1 = vadd.f32 %v6557_v8, %v14995_v10  ;;  %v14996_v63 = vld [vmem:[#allocation69_spill] sm:$0xff]  ;;  %v15002_v10 = vld [vmem:[#allocation30_spill] sm:$0xff] }
 0xb3d   : > { %v13704_v36 = vpop.eup %9229  ;;  %9249 = vtanh.f32 %v6600_v16  ;;  %v6622_v47 = vadd.f32 %v6486_v42, %v14996_v63 }
 0xb3e   : > { %v13708_v11 = vpop.eup %9231  ;;  %9251 = vtanh.f32 %v6605_v5 }
 0xb3f   : > { %v13711_v60 = vpop.eup %9233  ;;  %9253 = vtanh.f32 %v6607_v54 }
 0xb40   : > { %v13716_v24 = vpop.eup %9235  ;;  %9255 = vtanh.f32 %v6606_v51 }
 0xb41   : > { %v9238_v20 = vpop.eup %9237  ;;  %9257 = vtanh.f32 %v6608_v33 }
 0xb42   : > { %v9240_v3 = vpop.eup %9239  ;;  %v6751_v2 = vadd.f32 1.0, %v9238_v20  ;;  %9259 = vtanh.f32 %v6613_v52 }
 0xb43   : > { %v9242_v56 = vpop.eup %9241  ;;  %v6750_v39 = vadd.f32 1.0, %v9240_v3  ;;  %9261 = vtanh.f32 %v6615_v48 }
 0xb44   : > { %v9244_v4 = vpop.eup %9243  ;;  %9263 = vrcp.f32 %v6751_v2  ;;  %v6752_v9 = vadd.f32 1.0, %v9242_v56 }
 0xb45   : > { %v9246_v45 = vpop.eup %9245  ;;  %9265 = vrcp.f32 %v6750_v39  ;;  %v6853_v41 = vmul.f32 %v9244_v4, %v13649_v15 }
 0xb46   : > { %v9248_v23 = vpop.eup %9247  ;;  %9267 = vrcp.f32 %v6752_v9  ;;  %v6855_v26 = vmul.f32 %v9246_v45, %v13656_v55 }
 0xb47   : > { %v9250_v27 = vpop.eup %9249  ;;  %9269 = vtanh.f32 %v6614_v34  ;;  %v6854_v13 = vmul.f32 %v9248_v23, %v13661_v22 }
 0xb48   : > { %v9252_v16 = vpop.eup %9251  ;;  %9271 = vtanh.f32 %v6616_v17  ;;  %v6856_v35 = vmul.f32 %v9250_v27, %v13666_v43 }
 0xb49   : > { %v9254_v5 = vpop.eup %9253  ;;  %9273 = vtanh.f32 %v6621_v29  ;;  %v6861_v15 = vmul.f32 %v9252_v16, %v13671_v44  ;;  %v15004_v16 = vld [vmem:[#allocation8_spill] sm:$0xff] }
 0xb4a   : > { %v9256_v6 = vpop.eup %9255  ;;  %9275 = vtanh.f32 %v6623_v1  ;;  %v6863_v55 = vmul.f32 %v9254_v5, %v13676_v37  ;;  %v15005_v5 = vld [vmem:[#allocation35_spill] sm:$0xff] }
 0xb4b   : > { %v9258_v14 = vpop.eup %9257  ;;  %9277 = vtanh.f32 %v6622_v47  ;;  %v6862_v30 = vmul.f32 %v9256_v6, %v13681_v25  ;;  %v6885_v54 = vpack.c.bf16 %v6861_v15, %v6853_v41  ;;  %v15001_v41 = vld [vmem:[#allocation34_spill] sm:$0xff]  ;;  %v15003_v47 = vld [vmem:[#allocation23_spill] sm:$0xff] }
 0xb4c   : > { %v9260_v22 = vpop.eup %9259  ;;  %9279 = vtanh.f32 %v6624_v12  ;;  %v6864_v19 = vmul.f32 %v9258_v14, %v13686_v7  ;;  %v6887_v58 = vpack.c.bf16 %v6863_v55, %v6855_v26  ;;  %v15006_v6 = vld [vmem:[#allocation31_spill] sm:$0xff] }
 0xb4d   : > { %v9262_v51 = vpop.eup %9261  ;;  %v6886_v43 = vpack.c.bf16 %v6862_v30, %v6854_v13  ;;  %v6869_v62 = vmul.f32 %v9260_v22, %v13698_v38  ;;  %v15007_v22 = vld [vmem:[#allocation26_spill] sm:$0xff] }
 0xb4e   : > { %v9264_v33 = vpop.eup %9263  ;;  %v6888_v44 = vpack.c.bf16 %v6864_v19, %v6856_v35  ;;  %v6871_v18 = vmul.f32 %v9262_v51, %v13704_v36 }
 0xb4f   : > { %v9266_v52 = vpop.eup %9265  ;;  %7003 = vmatprep.subr.bf16.mxu0 %v6886_v43 }
 0xb50   : > { %v9268_v37 = vpop.eup %9267  ;;  %7056 = vmatprep.subr.bf16.mxu1 %v6888_v44  ;;  %7004 = vmatpush1.bf16.msra.mxu0 %v6885_v54 }
 0xb51   : > { %v9270_v25 = vpop.eup %9269  ;;  %7057 = vmatpush1.bf16.msra.mxu1 %v6887_v58 }
 0xb52   : > { %v9272_v61 = vpop.eup %9271  ;;  %v6870_v48 = vmul.f32 %v9270_v25, %v13708_v11 }
 0xb53   : > { %v9274_v7 = vpop.eup %9273  ;;  %v6872_v46 = vmul.f32 %v9272_v61, %v13711_v60  ;;  %v14998_v60 = vld [vmem:[#allocation105_spill] sm:$0xff] }
 0xb54   : > { %v9276_v28 = vpop.eup %9275  ;;  %v6877_v38 = vmul.f32 %v9274_v7, %v13716_v24 }
 0xb55   : > { %v9278_v20 = vpop.eup %9277  ;;  %v6879_v0 = vmul.f32 %v9276_v28, %v9264_v33 }
 0xb56   : > { %v9280_v31 = vpop.eup %9279  ;;  %v6878_v36 = vmul.f32 %v9278_v20, %v9266_v52  ;;  %v6893_v3 = vpack.c.bf16 %v6877_v38, %v6869_v62  ;;  %v15009_v20 = vld [vmem:[#allocation114_spill] sm:$0xff] }
 0xb57   : > { %v6880_v2 = vmul.f32 %v9280_v31, %v9268_v37  ;;  %v6895_v8 = vpack.c.bf16 %v6879_v0, %v6871_v18  ;;  %v15008_v18 = vld [vmem:[#allocation71_spill] sm:$0xff] }
 0xb58   : > { %v6894_v56 = vpack.c.bf16 %v6878_v36, %v6870_v48  ;;  %v15010_v36 = vld [vmem:[#allocation67_spill] sm:$0xff] }
 0xb59   : > { %v6896_v39 = vpack.c.bf16 %v6880_v2, %v6872_v46 }
 0xb5a   : > { %7005 = vmatprep.subr.bf16.mxu0 %v6894_v56 }
 0xb5b   : > { %7058 = vmatprep.subr.bf16.mxu1 %v6896_v39  ;;  %7006 = vmatpush1.bf16.msra.mxu0 %v6893_v3  ;;  %v15011_v39 = vld [vmem:[#allocation3_spill] sm:$0xff] }
 0xb5c   : > { %7059 = vmatpush1.bf16.msra.mxu1 %v6895_v8 }
 0xb5e   : > { %8403 = vmatmul.mubr.msk.bf16.vlgmr.msra.gmra.mrb[8].mxu0 %vm1784_vm8, %v13645_v21 }
 0xb5f   : > { %8405 = vmatmul.mubr.msk.bf16.vlgmr.msra.gmra.mrb[8].mxu1 %vm1784_vm8, %v13645_v21  ;;  %7045 = vmatprep.mubr.bf16.mxu0 %v14616_v59 }
 0xb60   : > { %7098 = vmatprep.mubr.bf16.mxu1 %v14616_v59 }
 0xb66   : > { %8404 = vmatmul.mubr.msk.bf16.gmra.mrb[12].mxu0 %vm1784_vm8, %v13694_v53 }
 0xb67   : > { %8406 = vmatmul.mubr.msk.bf16.gmra.mrb[12].mxu1 %vm1784_vm8, %v13694_v53  ;;  %7265 = vmatprep.mubr.bf16.mxu0 %v14616_v59  ;;  %v15000_v53 = vld [vmem:[#allocation70_spill] sm:$0xff] }
 0xb68   : > { %7318 = vmatprep.mubr.bf16.mxu1 %v14616_v59 }
 0xc01   : > { %v6931_v11 = vpop.f32.mrb[0].mxu0 }
 0xc02   : > { %v6932_v24 = vadd.f32 %v6931_v11, %v14998_v60  ;;  %v6984_v57 = vpop.f32.mrb[0].mxu1  ;;  %v6933_v34 = vpop.f32.mrb[1].mxu0 }
 0xc03   : > { %v6985_v21 = vadd.f32 %v6984_v57, %v14998_v60  ;;  %v6934_v42 = vadd.f32 %v6933_v34, %v14998_v60  ;;  %v6986_v4 = vpop.f32.mrb[1].mxu1  ;;  %v6935_v9 = vpop.f32.mrb[2].mxu0 }
 0xc04   : > { %v7109_v17 = vadd.f32 %v6932_v24, %v14999_v49  ;;  %v6987_v50 = vadd.f32 %v6986_v4, %v14998_v60  ;;  %v6936_v45 = vadd.f32 %v6935_v9, %v15000_v53  ;;  %v6988_v32 = vpop.f32.mrb[2].mxu1  ;;  %v6937_v29 = vpop.f32.mrb[3].mxu0  ;;  %v15012_v24 = vld [vmem:[#allocation29_spill] sm:$0xff]  ;;  %v15013_v4 = vld [vmem:[#allocation27_spill] sm:$0xff] }
 0xc05   : > { %v7111_v23 = vadd.f32 %v6985_v21, %v15001_v41  ;;  %v7110_v1 = vadd.f32 %v6934_v42, %v15002_v10  ;;  %v6989_v26 = vadd.f32 %v6988_v32, %v15000_v53  ;;  %v6938_v27 = vadd.f32 %v6937_v29, %v15000_v53  ;;  %v6990_v63 = vpop.f32.mrb[3].mxu1  ;;  %v15014_v49 = vld [vmem:[#allocation25_spill] sm:$0xff] }
 0xc06   : > { %v7112_v13 = vadd.f32 %v6987_v50, %v15003_v47  ;;  %v7117_v40 = vadd.f32 %v6936_v45, %v15004_v16  ;;  %v6991_v12 = vadd.f32 %v6990_v63, %v15000_v53  ;;  %v7141_v35 = vmul.f32 0.70710677, %v7109_v17  ;;  %v15015_v45 = vld [vmem:[#allocation39_spill] sm:$0xff]  ;;  %v15016_v29 = vld [vmem:[#allocation113_spill] sm:$0xff] }
 0xc07   : > { %v7119_v15 = vadd.f32 %v6989_v26, %v15005_v5  ;;  %v7118_v55 = vadd.f32 %v6938_v27, %v15006_v6  ;;  %v7143_v14 = vmul.f32 0.70710677, %v7111_v23  ;;  %v7142_v30 = vmul.f32 0.70710677, %v7110_v1  ;;  %v15017_v26 = vld [vmem:[#allocation37_spill] sm:$0xff]  ;;  %v13794_v6 = vld [vmem:[%s14044_s3 + $0x80] sm:$0xff]  }
 0xc08   : > { %v7149_v54 = vmul.f32 0.70710677, %v7117_v40  ;;  %v7120_v19 = vadd.f32 %v6991_v12, %v15007_v22  ;;  %v7144_v62 = vmul.f32 0.70710677, %v7112_v13 }
 0xc09   : > { %v7151_v58 = vmul.f32 0.70710677, %v7119_v15  ;;  %v7150_v51 = vmul.f32 0.70710677, %v7118_v55  ;;  %v6941_v43 = vpop.f32.mrb[4].mxu0  ;;  %v13805_v55 = vld [vmem:[%s14044_s3 + $0x88] sm:$0xff]  }
 0xc0a   : > { %v7177_v33 = vpack.c.bf16 %v7149_v54, %v7141_v35  ;;  %v7152_v44 = vmul.f32 0.70710677, %v7120_v19  ;;  %v6942_v52 = vadd.f32 %v6941_v43, %v15008_v18  ;;  %v6994_v37 = vpop.f32.mrb[4].mxu1  ;;  %v6943_v25 = vpop.f32.mrb[5].mxu0 }
 0xc0b   : > { %v7179_v61 = vpack.c.bf16 %v7151_v58, %v7143_v14  ;;  %v6995_v48 = vadd.f32 %v6994_v37, %v15008_v18  ;;  %v6944_v7 = vadd.f32 %v6943_v25, %v15008_v18  ;;  %v6996_v46 = vpop.f32.mrb[5].mxu1  ;;  %v6945_v28 = vpop.f32.mrb[6].mxu0  ;;  %v7178_v38 = vpack.c.bf16 %v7150_v51, %v7142_v30 }
 0xc0c   : > { %v7125_v0 = vadd.f32 %v6942_v52, %v15009_v20  ;;  %v6997_v31 = vadd.f32 %v6996_v46, %v15008_v18  ;;  %v6946_v3 = vadd.f32 %v6945_v28, %v15010_v36  ;;  %v6998_v2 = vpop.f32.mrb[6].mxu1  ;;  %v6947_v8 = vpop.f32.mrb[7].mxu0  ;;  %v7180_v56 = vpack.c.bf16 %v7152_v44, %v7144_v62  ;;  %v15018_v62 = vld [vmem:[#allocation6_spill] sm:$0xff] }
 0xc0d   : > { %v7127_v11 = vadd.f32 %v6995_v48, %v15011_v39  ;;  %v7126_v57 = vadd.f32 %v6944_v7, %v15012_v24  ;;  %v6999_v34 = vadd.f32 %v6998_v2, %v15010_v36  ;;  %v6948_v21 = vadd.f32 %v6947_v8, %v15010_v36  ;;  %v7000_v42 = vpop.f32.mrb[7].mxu1  ;;  %7233 = vmatprep.subr.bf16.mxu0 %v7178_v38  ;;  %v15020_v7 = vld [vmem:[#allocation32_spill] sm:$0xff] }
 0xc0e   : > { %v7128_v9 = vadd.f32 %v6997_v31, %v15013_v4  ;;  %v7133_v17 = vadd.f32 %v6946_v3, %v15014_v49  ;;  %v7001_v50 = vadd.f32 %v7000_v42, %v15010_v36  ;;  %7286 = vmatprep.subr.bf16.mxu1 %v7180_v56  ;;  %7234 = vmatpush1.bf16.msra.mxu0 %v7177_v33  ;;  %v7157_v23 = vmul.f32 0.70710677, %v7125_v0  ;;  %v15021_v0 = vld [vmem:[#allocation83_spill] sm:$0xff]  ;;  %v15022_v3 = vld [vmem:[#allocation38_spill] sm:$0xff]  ;;  %v15023_v56 = vld [vmem:[#allocation57_spill] sm:$0xff] }
 0xc0f   : > { %v7135_v32 = vadd.f32 %v6999_v34, %v15015_v45  ;;  %v7134_v41 = vadd.f32 %v6948_v21, %v15016_v29  ;;  %7287 = vmatpush1.bf16.msra.mxu1 %v7179_v61  ;;  %v7159_v10 = vmul.f32 0.70710677, %v7127_v11  ;;  %v7158_v63 = vmul.f32 0.70710677, %v7126_v57  ;;  %v15019_v61 = vld [vmem:[#allocation36_spill] sm:$0xff]  ;;  %v15025_v42 = vld [vmem:[#allocation5_spill] sm:$0xff] }
 0xc10   : > { %v7165_v1 = vmul.f32 0.70710677, %v7133_v17  ;;  %v7136_v27 = vadd.f32 %v7001_v50, %v15017_v26  ;;  %v7160_v16 = vmul.f32 0.70710677, %v7128_v9  ;;  %v15024_v11 = vld [vmem:[#allocation40_spill] sm:$0xff] }
 0xc11   : > { %v7167_v47 = vmul.f32 0.70710677, %v7135_v32  ;;  %v7166_v13 = vmul.f32 0.70710677, %v7134_v41 }
 0xc12   : > { %v7185_v40 = vpack.c.bf16 %v7165_v1, %v7157_v23  ;;  %v7168_v12 = vmul.f32 0.70710677, %v7136_v27 }
 0xc13   : > { %v7187_v35 = vpack.c.bf16 %v7167_v47, %v7159_v10  ;;  %v7186_v5 = vpack.c.bf16 %v7166_v13, %v7158_v63  ;;  %v15026_v47 = vld [vmem:[#allocation53_spill] sm:$0xff] }
 0xc14   : > { %v7188_v15 = vpack.c.bf16 %v7168_v12, %v7160_v16 }
 0xc15   : > { %7235 = vmatprep.subr.bf16.mxu0 %v7186_v5 }
 0xc16   : > { %7288 = vmatprep.subr.bf16.mxu1 %v7188_v15  ;;  %7236 = vmatpush1.bf16.msra.mxu0 %v7185_v40  ;;  %v15027_v15 = vld [vmem:[#allocation68_spill] sm:$0xff] }
 0xc17   : > { %7289 = vmatpush1.bf16.msra.mxu1 %v7187_v35 }
 0xc19   : > { %8409 = vmatmul.mubr.msk.bf16.vlgmr.msra.gmra.mrb[16].mxu0 %vm1784_vm8, %v13794_v6 }
 0xc1a   : > { %8411 = vmatmul.mubr.msk.bf16.vlgmr.msra.gmra.mrb[16].mxu1 %vm1784_vm8, %v13794_v6  ;;  %7275 = vmatprep.mubr.bf16.mxu0 %v14616_v59 }
 0xc1b   : > { %7328 = vmatprep.mubr.bf16.mxu1 %v14616_v59 }
 0xc21   : > { %8410 = vmatmul.mubr.msk.bf16.gmra.mrb[20].mxu0 %vm1784_vm8, %v13805_v55 }
 0xc22   : > { %8412 = vmatmul.mubr.msk.bf16.gmra.mrb[20].mxu1 %vm1784_vm8, %v13805_v55  ;;  %7371 = vmatprep.mubr.bf16.mxu0 %v14616_v59 }
 0xc23   : > { %7424 = vmatprep.mubr.bf16.mxu1 %v14616_v59 }
 0xc31   : > { %v7037_v14 = vpop.f32.mrb[8].mxu0 }
 0xc32   : > { %v7038_v30 = vadd.f32 %v7037_v14, %v14998_v60  ;;  %v7090_v54 = vpop.f32.mrb[8].mxu1  ;;  %v7039_v22 = vpop.f32.mrb[9].mxu0 }
 0xc33   : > { %v7091_v19 = vadd.f32 %v7090_v54, %v14998_v60  ;;  %v7040_v58 = vadd.f32 %v7039_v22, %v14998_v60  ;;  %v7092_v51 = vpop.f32.mrb[9].mxu1  ;;  %v7041_v43 = vpop.f32.mrb[10].mxu0 }
 0xc34   : > { %v7113_v33 = vadd.f32 %v7038_v30, %v15018_v62  ;;  %v7093_v44 = vadd.f32 %v7092_v51, %v14998_v60  ;;  %v7042_v52 = vadd.f32 %v7041_v43, %v15000_v53  ;;  %v7094_v37 = vpop.f32.mrb[10].mxu1  ;;  %v7043_v25 = vpop.f32.mrb[11].mxu0  ;;  %v15028_v30 = vld [vmem:[#allocation4_spill] sm:$0xff]  ;;  %v15029_v51 = vld [vmem:[#allocation13_spill] sm:$0xff] }
 0xc35   : > { %v7115_v48 = vadd.f32 %v7091_v19, %v15019_v61  ;;  %v7114_v46 = vadd.f32 %v7040_v58, %v15020_v7  ;;  %v7095_v28 = vadd.f32 %v7094_v37, %v15000_v53  ;;  %v7044_v38 = vadd.f32 %v7043_v25, %v15000_v53  ;;  %v7096_v20 = vpop.f32.mrb[11].mxu1  ;;  %v15030_v62 = vld [vmem:[#allocation117_spill] sm:$0xff]  ;;  %v15032_v37 = vld [vmem:[#allocation51_spill] sm:$0xff] }
 0xc36   : > { %v7116_v31 = vadd.f32 %v7093_v44, %v15021_v0  ;;  %v7121_v2 = vadd.f32 %v7042_v52, %v15022_v3  ;;  %v7097_v8 = vadd.f32 %v7096_v20, %v15000_v53  ;;  %v7145_v60 = vmul.f32 0.70710677, %v7113_v33  ;;  %v15031_v44 = vld [vmem:[#allocation15_spill] sm:$0xff] }
 0xc37   : > { %v7123_v39 = vadd.f32 %v7095_v28, %v15023_v56  ;;  %v7122_v24 = vadd.f32 %v7044_v38, %v15024_v11  ;;  %v7147_v57 = vmul.f32 0.70710677, %v7115_v48  ;;  %v7146_v34 = vmul.f32 0.70710677, %v7114_v46  ;;  %v15033_v46 = vld [vmem:[#allocation42_spill] sm:$0xff]  ;;  %v13857_v56 = vpop.permute.xlu1 %7199 }
 0xc38   : > { %v7153_v21 = vmul.f32 0.70710677, %v7121_v2  ;;  %v7124_v4 = vadd.f32 %v7097_v8, %v15025_v42  ;;  %v7148_v50 = vmul.f32 0.70710677, %v7116_v31 }
 0xc39   : > { %v7155_v9 = vmul.f32 0.70710677, %v7123_v39  ;;  %v7154_v49 = vmul.f32 0.70710677, %v7122_v24  ;;  %v7047_v17 = vpop.f32.mrb[12].mxu0  ;;  %v13859_v39 = vpop.permute.xlu0 %7204 }
 0xc3a   : > { %v7181_v45 = vpack.c.bf16 %v7153_v21, %v7145_v60  ;;  %v7156_v32 = vmul.f32 0.70710677, %v7124_v4  ;;  %v7048_v29 = vadd.f32 %v7047_v17, %v15008_v18  ;;  %v7100_v41 = vpop.f32.mrb[12].mxu1  ;;  %v7049_v53 = vpop.f32.mrb[13].mxu0 }
 0xc3b   : > { %v7183_v23 = vpack.c.bf16 %v7155_v9, %v7147_v57  ;;  %v7101_v10 = vadd.f32 %v7100_v41, %v15008_v18  ;;  %v7050_v1 = vadd.f32 %v7049_v53, %v15008_v18  ;;  %v7102_v26 = vpop.f32.mrb[13].mxu1  ;;  %v7051_v27 = vpop.f32.mrb[14].mxu0  ;;  %v7182_v63 = vpack.c.bf16 %v7154_v49, %v7146_v34 }
 0xc3c   : > { %v7129_v13 = vadd.f32 %v7048_v29, %v15026_v47  ;;  %v7103_v16 = vadd.f32 %v7102_v26, %v15008_v18  ;;  %v7052_v40 = vadd.f32 %v7051_v27, %v15010_v36  ;;  %v7104_v12 = vpop.f32.mrb[14].mxu1  ;;  %v7053_v35 = vpop.f32.mrb[15].mxu0  ;;  %v7184_v5 = vpack.c.bf16 %v7156_v32, %v7148_v50 }
 0xc3d   : > { %v7131_v14 = vadd.f32 %v7101_v10, %v15027_v15  ;;  %v7130_v54 = vadd.f32 %v7050_v1, %v15028_v30  ;;  %v7105_v22 = vadd.f32 %v7104_v12, %v15010_v36  ;;  %v7054_v19 = vadd.f32 %v7053_v35, %v15010_v36  ;;  %v7106_v58 = vpop.f32.mrb[15].mxu1  ;;  %7339 = vmatprep.subr.bf16.mxu0 %v7182_v63  ;;  %v13861_v11 = vpop.permute.xlu1 %7209 }
 0xc3e   : > { %v7132_v43 = vadd.f32 %v7103_v16, %v15029_v51  ;;  %v7137_v33 = vadd.f32 %v7052_v40, %v15030_v62  ;;  %v7107_v18 = vadd.f32 %v7106_v58, %v15010_v36  ;;  %7392 = vmatprep.subr.bf16.mxu1 %v7184_v5  ;;  %7340 = vmatpush1.bf16.msra.mxu0 %v7181_v45  ;;  %v7161_v61 = vmul.f32 0.70710677, %v7129_v13 }
 0xc3f   : > { %v7139_v52 = vadd.f32 %v7105_v22, %v15031_v44  ;;  %v7138_v25 = vadd.f32 %v7054_v19, %v15032_v37  ;;  %7393 = vmatpush1.bf16.msra.mxu1 %v7183_v23  ;;  %v7163_v48 = vmul.f32 0.70710677, %v7131_v14  ;;  %v7162_v38 = vmul.f32 0.70710677, %v7130_v54 }
 0xc40   : > { %v7169_v7 = vmul.f32 0.70710677, %v7137_v33  ;;  %v7140_v28 = vadd.f32 %v7107_v18, %v15033_v46  ;;  %v7164_v31 = vmul.f32 0.70710677, %v7132_v43 }
 0xc41   : > { %v7171_v20 = vmul.f32 0.70710677, %v7139_v52  ;;  %v7170_v0 = vmul.f32 0.70710677, %v7138_v25  ;;  %v13870_v29 = vpop.permute.xlu1 %7515 }
 0xc42   : > { %v7189_v3 = vpack.c.bf16 %v7169_v7, %v7161_v61  ;;  %v7172_v2 = vmul.f32 0.70710677, %v7140_v28 }
 0xc43   : > { %v7191_v8 = vpack.c.bf16 %v7171_v20, %v7163_v48  ;;  %v7190_v36 = vpack.c.bf16 %v7170_v0, %v7162_v38 }
 0xc44   : > { %v7192_v60 = vpack.c.bf16 %v7172_v2, %v7164_v31 }
 0xc45   : > { %7341 = vmatprep.subr.bf16.mxu0 %v7190_v36 }
 0xc46   : > { %7394 = vmatprep.subr.bf16.mxu1 %v7192_v60  ;;  %7342 = vmatpush1.bf16.msra.mxu0 %v7189_v3 }
 0xc47   : > { %7395 = vmatpush1.bf16.msra.mxu1 %v7191_v8  ;;  %v13896_v8 = vpop.permute.xlu1 %7525 }
 0xc49   : > { %8413 = vmatmul.mubr.msk.bf16.vlgmr.msra.gmra.mrb[24].mxu0 %vm1784_vm8, %v13794_v6 }
 0xc4a   : > { %8415 = vmatmul.mubr.msk.bf16.vlgmr.msra.gmra.mrb[24].mxu1 %vm1784_vm8, %v13794_v6  ;;  %7381 = vmatprep.mubr.bf16.mxu0 %v14616_v59  ;;  %v13863_v6 = vpop.permute.xlu0 %7214 }
 0xc4b   : > { %7434 = vmatprep.mubr.bf16.mxu1 %v14616_v59 }
 0xc4e   : > { %v13875_v13 = vpop.permute.xlu0 %7520 }
 0xc51   : > { %8414 = vmatmul.mubr.msk.bf16.gmra.mrb[28].mxu0 %vm1784_vm8, %v13805_v55 }
 0xc52   : > { %8416 = vmatmul.mubr.msk.bf16.gmra.mrb[28].mxu1 %vm1784_vm8, %v13805_v55  ;;  %7666 = vmatprep.mubr.bf16.mxu0 %v14616_v59 }
 0xc53   : > { %7707 = vmatprep.mubr.bf16.mxu1 %v14616_v59 }
 0xcec   : > { %v7267_v24 = vpop.f32.mrb[16].mxu0 }
 0xced   : > { %v7268_v57 = vadd.f32 %v7267_v24, %v13857_v56  ;;  %v7320_v34 = vpop.f32.mrb[16].mxu1  ;;  %v7269_v21 = vpop.f32.mrb[17].mxu0 }
 0xcee   : > { %v7321_v42 = vadd.f32 %v7320_v34, %v13857_v56  ;;  %v7270_v55 = vadd.f32 %v7269_v21, %v13857_v56  ;;  %v7322_v4 = vpop.f32.mrb[17].mxu1  ;;  %v7271_v9 = vpop.f32.mrb[18].mxu0 }
 0xcef   : > { %v7481_v49 = vmin.f32 %v7268_v57, 0.0  ;;  %v7323_v17 = vadd.f32 %v7322_v4, %v13857_v56  ;;  %v7272_v50 = vadd.f32 %v7271_v9, %v13859_v39  ;;  %v7324_v45 = vpop.f32.mrb[18].mxu1  ;;  %v7273_v32 = vpop.f32.mrb[19].mxu0  ;;  %v7449_v26 = vmax.f32 %v7268_v57, 0.0 }
 0xcf0   : > { %v7483_v41 = vmin.f32 %v7321_v42, 0.0  ;;  %v7482_v53 = vmin.f32 %v7270_v55, 0.0  ;;  %v7326_v23 = vpop.f32.mrb[19].mxu1  ;;  %v7325_v47 = vadd.f32 %v7324_v45, %v13859_v39  ;;  %v7451_v16 = vmax.f32 %v7321_v42, 0.0 }
 0xcf1   : > { %v7533_v10 = vmul.f32 %v13870_v29, %v7481_v49  ;;  %v7484_v1 = vmin.f32 %v7323_v17, 0.0  ;;  %v7489_v63 = vmin.f32 %v7272_v50, 0.0  ;;  %v7450_v40 = vmax.f32 %v7270_v55, 0.0 }
 0xcf2   : > { %v7535_v27 = vmul.f32 %v13870_v29, %v7483_v41  ;;  %v7274_v12 = vadd.f32 %v7273_v32, %v13859_v39  ;;  %v7327_v35 = vadd.f32 %v7326_v23, %v13859_v39  ;;  %v7534_v5 = vmul.f32 %v13870_v29, %v7482_v53 }
 0xcf3   : > { %v7452_v15 = vmax.f32 %v7323_v17, 0.0  ;;  %v7457_v14 = vmax.f32 %v7272_v50, 0.0  ;;  %v7541_v30 = vmul.f32 %v13875_v13, %v7489_v63  ;;  %v13881_v22 = vadd.f32 %v7533_v10, %v7449_v26 }
 0xcf4   : > { %v7277_v54 = vpop.f32.mrb[20].mxu0  ;;  %v7536_v19 = vmul.f32 %v13870_v29, %v7484_v1  ;;  %v7491_v58 = vmin.f32 %v7325_v47, 0.0  ;;  %v7490_v51 = vmin.f32 %v7274_v12, 0.0  ;;  %v13884_v33 = vadd.f32 %v7535_v27, %v7451_v16  ;;  %v13906_v16 = vpop.permute.xlu0 %7530 }
 0xcf5   : > { %v7330_v43 = vpop.f32.mrb[20].mxu1  ;;  %v7279_v62 = vpop.f32.mrb[21].mxu0  ;;  %v13886_v18 = vadd.f32 %v7541_v30, %v7457_v14  ;;  %v7492_v44 = vmin.f32 %v7327_v35, 0.0  ;;  %v7278_v52 = vadd.f32 %v7277_v54, %v13861_v11  ;;  %v7459_v61 = vmax.f32 %v7325_v47, 0.0 }
 0xcf6   : > { %v7332_v37 = vpop.f32.mrb[21].mxu1  ;;  %v7281_v25 = vpop.f32.mrb[22].mxu0  ;;  %v7543_v48 = vmul.f32 %v13875_v13, %v7491_v58  ;;  %v7331_v7 = vadd.f32 %v7330_v43, %v13861_v11  ;;  %v7280_v46 = vadd.f32 %v7279_v62, %v13861_v11  ;;  %v7542_v0 = vmul.f32 %v13875_v13, %v7490_v51 }
 0xcf7   : > { %v7334_v28 = vpop.f32.mrb[22].mxu1  ;;  %v7283_v38 = vpop.f32.mrb[23].mxu0  ;;  %v7599_v20 = vpack.c.bf16 %v13886_v18, %v13881_v22  ;;  %v7544_v31 = vmul.f32 %v13875_v13, %v7492_v44  ;;  %v7497_v3 = vmin.f32 %v7278_v52, 0.0  ;;  %v7566_v36 = vadd.f32 %v7534_v5, %v7450_v40 }
 0xcf8   : > { %v7336_v2 = vpop.f32.mrb[23].mxu1  ;;  %v7568_v60 = vadd.f32 %v7536_v19, %v7452_v15  ;;  %v7575_v24 = vadd.f32 %v7543_v48, %v7459_v61  ;;  %v7499_v57 = vmin.f32 %v7331_v7, 0.0  ;;  %v7458_v34 = vmax.f32 %v7274_v12, 0.0 }
 0xcf9   : > { %v7460_v21 = vmax.f32 %v7327_v35, 0.0  ;;  %v7549_v42 = vmul.f32 %v13896_v8, %v7497_v3  ;;  %v7498_v55 = vmin.f32 %v7280_v46, 0.0  ;;  %v7465_v9 = vmax.f32 %v7278_v52, 0.0 }
 0xcfa   : > { %v7601_v4 = vpack.c.bf16 %v7575_v24, %v13884_v33  ;;  %v7333_v49 = vadd.f32 %v7332_v37, %v13861_v11  ;;  %v7282_v17 = vadd.f32 %v7281_v25, %v13863_v6  ;;  %v7574_v50 = vadd.f32 %v7542_v0, %v7458_v34  ;;  %v13917_v0 = vld [vmem:[%s14044_s3 + $0x90] sm:$0xff]  }
 0xcfb   : > { %v7576_v45 = vadd.f32 %v7544_v31, %v7460_v21  ;;  %v7335_v32 = vadd.f32 %v7334_v28, %v13863_v6  ;;  %v7284_v41 = vadd.f32 %v7283_v38, %v13863_v6  ;;  %v7467_v53 = vmax.f32 %v7331_v7, 0.0 }
 0xcfc   : > { %v7551_v23 = vmul.f32 %v13896_v8, %v7499_v57  ;;  %v7466_v10 = vmax.f32 %v7280_v46, 0.0  ;;  %v7500_v1 = vmin.f32 %v7333_v49, 0.0  ;;  %v7581_v26 = vadd.f32 %v7549_v42, %v7465_v9 }
 0xcfd   : > { %v7550_v27 = vmul.f32 %v13896_v8, %v7498_v55  ;;  %v7505_v63 = vmin.f32 %v7282_v17, 0.0  ;;  %v7507_v47 = vmin.f32 %v7335_v32, 0.0  ;;  %v7473_v40 = vmax.f32 %v7282_v17, 0.0 }
 0xcfe   : > { %v7475_v12 = vmax.f32 %v7335_v32, 0.0  ;;  %v7506_v35 = vmin.f32 %v7284_v41, 0.0  ;;  %v7337_v5 = vadd.f32 %v7336_v2, %v13863_v6  ;;  %v7600_v30 = vpack.c.bf16 %v7574_v50, %v7566_v36 }
 0xcff   : > { %v7557_v15 = vmul.f32 %v13906_v16, %v7505_v63  ;;  %v7559_v14 = vmul.f32 %v13906_v16, %v7507_v47  ;;  %v7602_v54 = vpack.c.bf16 %v7576_v45, %v7568_v60  ;;  %v7552_v22 = vmul.f32 %v13896_v8, %v7500_v1 }
 0xd00   : > { %v7474_v19 = vmax.f32 %v7284_v41, 0.0  ;;  %v7558_v58 = vmul.f32 %v13906_v16, %v7506_v35  ;;  %v7508_v51 = vmin.f32 %v7337_v5, 0.0  ;;  %v7583_v43 = vadd.f32 %v7551_v23, %v7467_v53  ;;  %7634 = vmatprep.subr.bf16.mxu0 %v7600_v30 }
 0xd01   : > { %v7468_v62 = vmax.f32 %v7333_v49, 0.0  ;;  %v7589_v33 = vadd.f32 %v7557_v15, %v7473_v40  ;;  %v7591_v18 = vadd.f32 %v7559_v14, %v7475_v12  ;;  %7675 = vmatprep.subr.bf16.mxu1 %v7602_v54  ;;  %v7582_v44 = vadd.f32 %v7550_v27, %v7466_v10  ;;  %7635 = vmatpush1.bf16.msra.mxu0 %v7599_v20 }
 0xd02   : > { %v7590_v52 = vadd.f32 %v7558_v58, %v7474_v19  ;;  %v7476_v37 = vmax.f32 %v7337_v5, 0.0  ;;  %v7560_v25 = vmul.f32 %v13906_v16, %v7508_v51  ;;  %7676 = vmatpush1.bf16.msra.mxu1 %v7601_v4 }
 0xd03   : > { %v7607_v61 = vpack.c.bf16 %v7589_v33, %v7581_v26  ;;  %v7609_v48 = vpack.c.bf16 %v7591_v18, %v7583_v43  ;;  %v7584_v7 = vadd.f32 %v7552_v22, %v7468_v62 }
 0xd04   : > { %v7592_v46 = vadd.f32 %v7560_v25, %v7476_v37  ;;  %v7608_v28 = vpack.c.bf16 %v7590_v52, %v7582_v44 }
 0xd06   : > { %7636 = vmatprep.subr.bf16.mxu0 %v7608_v28  ;;  %v7610_v38 = vpack.c.bf16 %v7592_v46, %v7584_v7 }
 0xd07   : > { %7637 = vmatpush1.bf16.msra.mxu0 %v7607_v61 }
 0xd08   : > { %7677 = vmatprep.subr.bf16.mxu1 %v7610_v38 }
 0xd09   : > { %7678 = vmatpush1.bf16.msra.mxu1 %v7609_v48 }
 0xd0a   : > { %8418 = vmatmul.mubr.msk.bf16.vlgmr.msra.gmra.mrb[32].mxu0 %vm1784_vm8, %v13917_v0 }
 0xd0b   : > { %7748 = vmatprep.mubr.bf16.mxu0 %v14616_v59 }
 0xd0c   : > { %8419 = vmatmul.mubr.msk.bf16.vlgmr.msra.gmra.mrb[32].mxu1 %vm1784_vm8, %v13917_v0 }
 0xd0d   : > { %7789 = vmatprep.mubr.bf16.mxu1 %v14616_v59 }
 0xd1c   : > { %v7373_v20 = vpop.f32.mrb[24].mxu0 }
 0xd1d   : > { %v7374_v31 = vadd.f32 %v7373_v20, %v13857_v56  ;;  %v7426_v3 = vpop.f32.mrb[24].mxu1  ;;  %v7375_v2 = vpop.f32.mrb[25].mxu0 }
 0xd1e   : > { %v7427_v36 = vadd.f32 %v7426_v3, %v13857_v56  ;;  %v7376_v60 = vadd.f32 %v7375_v2, %v13857_v56  ;;  %v7428_v24 = vpop.f32.mrb[25].mxu1  ;;  %v7377_v57 = vpop.f32.mrb[26].mxu0 }
 0xd1f   : > { %v7485_v34 = vmin.f32 %v7374_v31, 0.0  ;;  %v7429_v21 = vadd.f32 %v7428_v24, %v13857_v56  ;;  %v7378_v42 = vadd.f32 %v7377_v57, %v13859_v39  ;;  %v7430_v55 = vpop.f32.mrb[26].mxu1  ;;  %v7379_v4 = vpop.f32.mrb[27].mxu0  ;;  %v7453_v45 = vmax.f32 %v7374_v31, 0.0 }
 0xd20   : > { %v7487_v9 = vmin.f32 %v7427_v36, 0.0  ;;  %v7486_v59 = vmin.f32 %v7376_v60, 0.0  ;;  %v7432_v49 = vpop.f32.mrb[27].mxu1  ;;  %v7431_v53 = vadd.f32 %v7430_v55, %v13859_v39  ;;  %v7455_v23 = vmax.f32 %v7427_v36, 0.0 }
 0xd21   : > { %v7537_v17 = vmul.f32 %v13870_v29, %v7485_v34  ;;  %v7488_v50 = vmin.f32 %v7429_v21, 0.0  ;;  %v7493_v41 = vmin.f32 %v7378_v42, 0.0  ;;  %v7454_v10 = vmax.f32 %v7376_v60, 0.0 }
 0xd22   : > { %v7539_v32 = vmul.f32 %v13870_v29, %v7487_v9  ;;  %v7380_v56 = vadd.f32 %v7379_v4, %v13859_v39  ;;  %v7433_v1 = vadd.f32 %v7432_v49, %v13859_v39  ;;  %v7538_v26 = vmul.f32 %v13870_v29, %v7486_v59 }
 0xd23   : > { %v7456_v27 = vmax.f32 %v7429_v21, 0.0  ;;  %v7461_v63 = vmax.f32 %v7378_v42, 0.0  ;;  %v7545_v47 = vmul.f32 %v13875_v13, %v7493_v41  ;;  %v13937_v12 = vadd.f32 %v7537_v17, %v7453_v45 }
 0xd24   : > { %v7383_v40 = vpop.f32.mrb[28].mxu0  ;;  %v7540_v35 = vmul.f32 %v13870_v29, %v7488_v50  ;;  %v7495_v5 = vmin.f32 %v7431_v53, 0.0  ;;  %v7494_v15 = vmin.f32 %v7380_v56, 0.0  ;;  %v13940_v54 = vadd.f32 %v7539_v32, %v7455_v23 }
 0xd25   : > { %v7436_v14 = vpop.f32.mrb[28].mxu1  ;;  %v7385_v30 = vpop.f32.mrb[29].mxu0  ;;  %v7577_v22 = vadd.f32 %v7545_v47, %v7461_v63  ;;  %v7496_v19 = vmin.f32 %v7433_v1, 0.0  ;;  %v7384_v39 = vadd.f32 %v7383_v40, %v13861_v11  ;;  %v7463_v43 = vmax.f32 %v7431_v53, 0.0 }
 0xd26   : > { %v7438_v58 = vpop.f32.mrb[29].mxu1  ;;  %v7387_v51 = vpop.f32.mrb[30].mxu0  ;;  %v7547_v62 = vmul.f32 %v13875_v13, %v7495_v5  ;;  %v7437_v33 = vadd.f32 %v7436_v14, %v13861_v11  ;;  %v7386_v18 = vadd.f32 %v7385_v30, %v13861_v11  ;;  %v7546_v37 = vmul.f32 %v13875_v13, %v7494_v15 }
 0xd27   : > { %v7440_v29 = vpop.f32.mrb[30].mxu1  ;;  %v7389_v44 = vpop.f32.mrb[31].mxu0  ;;  %v7603_v52 = vpack.c.bf16 %v7577_v22, %v13937_v12  ;;  %v7548_v25 = vmul.f32 %v13875_v13, %v7496_v19  ;;  %v7501_v61 = vmin.f32 %v7384_v39, 0.0  ;;  %v7570_v7 = vadd.f32 %v7538_v26, %v7454_v10 }
 0xd28   : > { %v7442_v48 = vpop.f32.mrb[31].mxu1  ;;  %v7572_v46 = vadd.f32 %v7540_v35, %v7456_v27  ;;  %v7579_v28 = vadd.f32 %v7547_v62, %v7463_v43  ;;  %v7503_v38 = vmin.f32 %v7437_v33, 0.0  ;;  %v7462_v20 = vmax.f32 %v7380_v56, 0.0 }
 0xd29   : > { %v7464_v31 = vmax.f32 %v7433_v1, 0.0  ;;  %v7553_v3 = vmul.f32 %v13896_v8, %v7501_v61  ;;  %v7502_v2 = vmin.f32 %v7386_v18, 0.0  ;;  %v7469_v60 = vmax.f32 %v7384_v39, 0.0  ;;  %v13972_v61 = vpop.permute.xlu0 %7817 }
 0xd2a   : > { %v7605_v36 = vpack.c.bf16 %v7579_v28, %v13940_v54  ;;  %v7439_v24 = vadd.f32 %v7438_v58, %v13861_v11  ;;  %v7388_v57 = vadd.f32 %v7387_v51, %v13863_v6  ;;  %v7578_v34 = vadd.f32 %v7546_v37, %v7462_v20  ;;  %v13967_v51 = vpop.permute.xlu1 %7619 }
 0xd2b   : > { %v7580_v13 = vadd.f32 %v7548_v25, %v7464_v31  ;;  %v7441_v21 = vadd.f32 %v7440_v29, %v13863_v6  ;;  %v7390_v42 = vadd.f32 %v7389_v44, %v13863_v6  ;;  %v7471_v55 = vmax.f32 %v7437_v33, 0.0 }
 0xd2c   : > { %v7555_v4 = vmul.f32 %v13896_v8, %v7503_v38  ;;  %v7470_v9 = vmax.f32 %v7386_v18, 0.0  ;;  %v7504_v59 = vmin.f32 %v7439_v24, 0.0  ;;  %v7585_v49 = vadd.f32 %v7553_v3, %v7469_v60 }
 0xd2d   : > { %v7554_v17 = vmul.f32 %v13896_v8, %v7502_v2  ;;  %v7509_v50 = vmin.f32 %v7388_v57, 0.0  ;;  %v7511_v45 = vmin.f32 %v7441_v21, 0.0  ;;  %v7477_v32 = vmax.f32 %v7388_v57, 0.0 }
 0xd2e   : > { %v7479_v11 = vmax.f32 %v7441_v21, 0.0  ;;  %v7510_v41 = vmin.f32 %v7390_v42, 0.0  ;;  %v7443_v53 = vadd.f32 %v7442_v48, %v13863_v6  ;;  %v7604_v56 = vpack.c.bf16 %v7578_v34, %v7570_v7 }
 0xd2f   : > { %v7561_v23 = vmul.f32 %v13906_v16, %v7509_v50  ;;  %v7563_v10 = vmul.f32 %v13906_v16, %v7511_v45  ;;  %v7606_v1 = vpack.c.bf16 %v7580_v13, %v7572_v46  ;;  %v7556_v26 = vmul.f32 %v13896_v8, %v7504_v59  ;;  %v15035_v59 = vld [vmem:[#allocation21_spill] sm:$0xff]  ;;  %v15036_v45 = vld [vmem:[#allocation16_spill] sm:$0xff] }
 0xd30   : > { %v7478_v27 = vmax.f32 %v7390_v42, 0.0  ;;  %v7562_v63 = vmul.f32 %v13906_v16, %v7510_v41  ;;  %v7512_v47 = vmin.f32 %v7443_v53, 0.0  ;;  %v7587_v40 = vadd.f32 %v7555_v4, %v7471_v55  ;;  %7716 = vmatprep.subr.bf16.mxu0 %v7604_v56  ;;  %v15034_v55 = vld [vmem:[#allocation18_spill] sm:$0xff]  ;;  %v15037_v41 = vld [vmem:[#allocation19_spill] sm:$0xff] }
 0xd31   : > { %v7472_v12 = vmax.f32 %v7439_v24, 0.0  ;;  %v7593_v35 = vadd.f32 %v7561_v23, %v7477_v32  ;;  %v7595_v5 = vadd.f32 %v7563_v10, %v7479_v11  ;;  %7757 = vmatprep.subr.bf16.mxu1 %v7606_v1  ;;  %v7586_v15 = vadd.f32 %v7554_v17, %v7470_v9  ;;  %7717 = vmatpush1.bf16.msra.mxu0 %v7603_v52 }
 0xd32   : > { %v7594_v6 = vadd.f32 %v7562_v63, %v7478_v27  ;;  %v7480_v14 = vmax.f32 %v7443_v53, 0.0  ;;  %v7564_v30 = vmul.f32 %v13906_v16, %v7512_v47  ;;  %7758 = vmatpush1.bf16.msra.mxu1 %v7605_v36  ;;  %v9343_v24 = vmov 1983009808  }
 0xd33   : > { %v7611_v54 = vpack.c.bf16 %v7593_v35, %v7585_v49  ;;  %v7613_v22 = vpack.c.bf16 %v7595_v5, %v7587_v40  ;;  %v7588_v8 = vadd.f32 %v7556_v26, %v7472_v12  ;;  %v7952_v57 = vunpack.c.l.s4 %v9343_v24  ;;  %v15038_v26 = vld [vmem:[#allocation24_spill] sm:$0xff]  ;;  %v15039_v12 = vld [vmem:[#allocation22_spill] sm:$0xff] }
 0xd34   : > { %v7596_v19 = vadd.f32 %v7564_v30, %v7480_v14  ;;  %v7612_v39 = vpack.c.bf16 %v7594_v6, %v7586_v15  ;;  %v15040_v30 = vld [vmem:[#allocation17_spill] sm:$0xff] }
 0xd35   : > { %v7953_v47 = vunpack.c.0.s8 %v7952_v57 }
 0xd36   : > { %7718 = vmatprep.subr.bf16.mxu0 %v7612_v39  ;;  %v7614_v58 = vpack.c.bf16 %v7596_v19, %v7588_v8 }
 0xd37   : > { %7719 = vmatpush1.bf16.msra.mxu0 %v7611_v54 }
 0xd38   : > { %7759 = vmatprep.subr.bf16.mxu1 %v7614_v58 }
 0xd39   : > { %7760 = vmatpush1.bf16.msra.mxu1 %v7613_v22  ;;  %v15041_v22 = vld [vmem:[#allocation20_spill] sm:$0xff] }
 0xd3a   : > { %8420 = vmatmul.mubr.msk.bf16.vlgmr.msra.gmra.mrb[36].mxu0 %vm1784_vm8, %v13917_v0 }
 0xd3c   : > { %8421 = vmatmul.mubr.msk.bf16.vlgmr.msra.gmra.mrb[36].mxu1 %vm1784_vm8, %v13917_v0 }
 0xddd   : > { %v7668_v16 = vpop.f32.mrb[32].mxu0 }
 0xdde   : > { %v7669_v43 = vadd.f32 %v7668_v16, %v13967_v51  ;;  %v7670_v62 = vpop.f32.mrb[33].mxu0 }
 0xddf   : > { %v7709_v33 = vpop.f32.mrb[32].mxu1  ;;  %v7671_v18 = vadd.f32 %v7670_v62, %v13967_v51  ;;  %v7672_v29 = vpop.f32.mrb[34].mxu0 }
 0xde0   : > { %v7807_v44 = vmin.f32 %v7669_v43, 0.0  ;;  %v7710_v52 = vadd.f32 %v7709_v33, %v13967_v51  ;;  %v7711_v37 = vpop.f32.mrb[33].mxu1  ;;  %v7673_v25 = vpop.f32.mrb[35].mxu0  ;;  %v7799_v46 = vmax.f32 %v7669_v43, 0.0 }
 0xde1   : > { %v7808_v48 = vmin.f32 %v7671_v18, 0.0  ;;  %v7712_v0 = vadd.f32 %v7711_v37, %v13967_v51  ;;  %v7713_v7 = vpop.f32.mrb[34].mxu1  ;;  %v7800_v31 = vmax.f32 %v7671_v18, 0.0 }
 0xde2   : > { %v7820_v28 = vmul.f32 %v13972_v61, %v7807_v44  ;;  %v7809_v38 = vmin.f32 %v7710_v52, 0.0  ;;  %v7714_v20 = vpop.f32.mrb[35].mxu1  ;;  %v7801_v34 = vmax.f32 %v7710_v52, 0.0  ;;  %v15042_v44 = vld [vmem:[#allocation2_spill] sm:$0xff] }
 0xde3   : > { %v7821_v3 = vmul.f32 %v13972_v61, %v7808_v48  ;;  %v7810_v2 = vmin.f32 %v7712_v0, 0.0  ;;  %v7802_v21 = vmax.f32 %v7712_v0, 0.0  ;;  %v13990_v52 = vsub.s32 %v7953_v47, %v15042_v44  ;;  %v15050_v44 = vld [vmem:[#allocation12_spill] sm:$0xff] }
 0xde4   : > { %v7828_v36 = vadd.f32 %v7820_v28, %v7799_v46  ;;  %v7822_v60 = vmul.f32 %v13972_v61, %v7809_v38 }
 0xde5   : > { %v7829_v13 = vadd.f32 %v7821_v3, %v7800_v31  ;;  %v7823_v42 = vmul.f32 %v13972_v61, %v7810_v2 }
 0xde6   : > { %v7836_v4 = vmul.f32 %v7828_v36, %v15034_v55  ;;  %v7852_v9 = vrot.slane %v7828_v36, 1  ;;  %v7876_v49 = vmul.f32 %v7828_v36, %v15035_v59  ;;  %v7884_v17 = vrot.slane %v7828_v36, 2 }
 0xde7   : > { %v7830_v50 = vadd.f32 %v7822_v60, %v7801_v34  ;;  %v7837_v32 = vmul.f32 %v7829_v13, %v15036_v45  ;;  %v7853_v11 = vrot.slane %v7829_v13, 1  ;;  %v7877_v53 = vmul.f32 %v7829_v13, %v15037_v41 }
 0xde8   : > { %v7900_v23 = vadd.f32 %v7884_v17, %v7876_v49  ;;  %v7885_v10 = vrot.slane %v7829_v13, 2  ;;  %v7831_v56 = vadd.f32 %v7823_v42, %v7802_v21  ;;  %v7868_v1 = vadd.f32 %v7852_v9, %v7836_v4 }
 0xde9   : > { %v7878_v27 = vmul.f32 %v7830_v50, %v15038_v26  ;;  %v7886_v63 = vrot.slane %v7830_v50, 2  ;;  %v7838_v35 = vmul.f32 %v7830_v50, %v15039_v12  ;;  %v7854_v5 = vrot.slane %v7830_v50, 1  ;;  %v15044_v26 = vld [vmem:[#allocation50_spill] sm:$0xff] }
 0xdea   : > { %v7916_v40 = vrot.slane %v7900_v23, 7  ;;  %v7901_v15 = vadd.f32 %v7885_v10, %v7877_v53  ;;  %v7869_v14 = vadd.f32 %v7853_v11, %v7837_v32  ;;  %v7839_v54 = vmul.f32 %v7831_v56, %v15040_v30 }
 0xdeb   : > { %v7902_v6 = vadd.f32 %v7886_v63, %v7878_v27  ;;  %v7879_v8 = vmul.f32 %v7831_v56, %v15041_v22  ;;  %v7855_v58 = vrot.slane %v7831_v56, 1  ;;  %v7887_v16 = vrot.slane %v7831_v56, 2  ;;  %v15043_v56 = vld [vmem:[#allocation52_spill] sm:$0xff]  ;;  %v15047_v22 = vld [vmem:[#allocation33_spill] sm:$0xff] }
 0xdec   : > { %v7933_v19 = vsel %vm7932_vm9, %v7868_v1, %v7916_v40  ;;  %v7917_v39 = vrot.slane %v7901_v15, 7  ;;  %v7870_v62 = vadd.f32 %v7854_v5, %v7838_v35  ;;  %v15045_v40 = vld [vmem:[#allocation28_spill] sm:$0xff]  ;;  %v15046_v5 = vld [vmem:[#allocation11_spill] sm:$0xff] }
 0xded   : > { %v7918_v43 = vrot.slane %v7902_v6, 7  ;;  %v7903_v18 = vadd.f32 %v7887_v16, %v7879_v8  ;;  %v7871_v25 = vadd.f32 %v7855_v58, %v7839_v54 }
 0xdee   : > { %v7934_v33 = vsel %vm7932_vm9, %v7869_v14, %v7917_v39  ;;  %v15048_v39 = vld [vmem:[#allocation54_spill] sm:$0xff] }
 0xdef   : > { %v7949_v29 = vcombine.low %v7933_v19, %v7934_v33  ;;  %v7935_v37 = vsel %vm7932_vm9, %v7870_v62, %v7918_v43  ;;  %v7919_v48 = vrot.slane %v7903_v18, 7  ;;  %v15049_v18 = vld [vmem:[#allocation41_spill] sm:$0xff] }
 0xdf1   : > { %v7936_v0 = vsel %vm7932_vm9, %v7871_v25, %v7919_v48  ;;  %v7957_v7 = vrot.slane %v7949_v29, %v13990_v52 }
 0xdf2   : > { %v7950_v46 = vcombine.low %v7935_v37, %v7936_v0 }
 0xdf4   : > { %v7964_v28 = vrot.slane %v7950_v46, %v13990_v52 }
 0xdf6   : > { %v7965_v38 = vcombine.low %v7957_v7, %v7964_v28 }
 0xdf8   : > { %7985 = vst [vmem:[%s14000_s21] sm:$0xff] %v7965_v38 }
 0xe0d   : > { %v7750_v20 = vpop.f32.mrb[36].mxu0 }
 0xe0e   : > { %v7751_v31 = vadd.f32 %v7750_v20, %v13967_v51  ;;  %v7752_v3 = vpop.f32.mrb[37].mxu0 }
 0xe0f   : > { %v7791_v2 = vpop.f32.mrb[36].mxu1  ;;  %v7753_v36 = vadd.f32 %v7752_v3, %v13967_v51  ;;  %v7754_v60 = vpop.f32.mrb[38].mxu0 }
 0xe10   : > { %v7811_v24 = vmin.f32 %v7751_v31, 0.0  ;;  %v7792_v57 = vadd.f32 %v7791_v2, %v13967_v51  ;;  %v7793_v34 = vpop.f32.mrb[37].mxu1  ;;  %v7755_v13 = vpop.f32.mrb[39].mxu0  ;;  %v7803_v4 = vmax.f32 %v7751_v31, 0.0 }
 0xe11   : > { %v7812_v21 = vmin.f32 %v7753_v36, 0.0  ;;  %v7794_v42 = vadd.f32 %v7793_v34, %v13967_v51  ;;  %v7795_v55 = vpop.f32.mrb[38].mxu1  ;;  %v7804_v17 = vmax.f32 %v7753_v36, 0.0 }
 0xe12   : > { %v7824_v9 = vmul.f32 %v13972_v61, %v7811_v24  ;;  %v7813_v59 = vmin.f32 %v7792_v57, 0.0  ;;  %v7796_v49 = vpop.f32.mrb[39].mxu1  ;;  %v7805_v41 = vmax.f32 %v7792_v57, 0.0 }
 0xe13   : > { %v7825_v50 = vmul.f32 %v13972_v61, %v7812_v21  ;;  %v7814_v45 = vmin.f32 %v7794_v42, 0.0  ;;  %v7806_v23 = vmax.f32 %v7794_v42, 0.0 }
 0xe14   : > { %v7832_v32 = vadd.f32 %v7824_v9, %v7803_v4  ;;  %v7826_v11 = vmul.f32 %v13972_v61, %v7813_v59 }
 0xe15   : > { %v7833_v53 = vadd.f32 %v7825_v50, %v7804_v17  ;;  %v7827_v10 = vmul.f32 %v13972_v61, %v7814_v45 }
 0xe16   : > { %v7840_v51 = vmul.f32 %v7832_v32, %v15043_v56  ;;  %v7856_v1 = vrot.slane %v7832_v32, 1  ;;  %v7880_v27 = vmul.f32 %v7832_v32, %v15044_v26  ;;  %v7888_v63 = vrot.slane %v7832_v32, 2 }
 0xe17   : > { %v7834_v47 = vadd.f32 %v7826_v11, %v7805_v41  ;;  %v7841_v12 = vmul.f32 %v7833_v53, %v15045_v40  ;;  %v7857_v35 = vrot.slane %v7833_v53, 1  ;;  %v7881_v15 = vmul.f32 %v7833_v53, %v15046_v5 }
 0xe18   : > { %v7904_v6 = vadd.f32 %v7888_v63, %v7880_v27  ;;  %v7889_v14 = vrot.slane %v7833_v53, 2  ;;  %v7835_v30 = vadd.f32 %v7827_v10, %v7806_v23  ;;  %v7872_v54 = vadd.f32 %v7856_v1, %v7840_v51 }
 0xe19   : > { %v7882_v8 = vmul.f32 %v7834_v47, %v15047_v22  ;;  %v7890_v19 = vrot.slane %v7834_v47, 2  ;;  %v7842_v58 = vmul.f32 %v7834_v47, %v15048_v39  ;;  %v7858_v16 = vrot.slane %v7834_v47, 1 }
 0xe1a   : > { %v7920_v61 = vrot.slane %v7904_v6, 7  ;;  %v7905_v43 = vadd.f32 %v7889_v14, %v7881_v15  ;;  %v7873_v33 = vadd.f32 %v7857_v35, %v7841_v12  ;;  %v7843_v29 = vmul.f32 %v7835_v30, %v15049_v18 }
 0xe1b   : > { %v7906_v62 = vadd.f32 %v7890_v19, %v7882_v8  ;;  %v7883_v37 = vmul.f32 %v7835_v30, %v15050_v44  ;;  %v7859_v0 = vrot.slane %v7835_v30, 1  ;;  %v7891_v7 = vrot.slane %v7835_v30, 2 }
 0xe1c   : > { %v7937_v25 = vsel %vm7932_vm9, %v7872_v54, %v7920_v61  ;;  %v7921_v48 = vrot.slane %v7905_v43, 7  ;;  %v7874_v28 = vadd.f32 %v7858_v16, %v7842_v58 }
 0xe1d   : > { %v7922_v46 = vrot.slane %v7906_v62, 7  ;;  %v7907_v20 = vadd.f32 %v7891_v7, %v7883_v37  ;;  %v7875_v2 = vadd.f32 %v7859_v0, %v7843_v29 }
 0xe1e   : > { %v7938_v38 = vsel %vm7932_vm9, %v7873_v33, %v7921_v48 }
 0xe1f   : > { %v7966_v31 = vcombine.low %v7937_v25, %v7938_v38  ;;  %v7939_v3 = vsel %vm7932_vm9, %v7874_v28, %v7922_v46  ;;  %v7923_v36 = vrot.slane %v7907_v20, 7 }
 0xe21   : > { %v7940_v60 = vsel %vm7932_vm9, %v7875_v2, %v7923_v36  ;;  %v7974_v24 = vrot.slane %v7966_v31, %v13990_v52 }
 0xe22   : > { %v7967_v57 = vcombine.low %v7939_v3, %v7940_v60 }
 0xe24   : > { %v7981_v34 = vrot.slane %v7967_v57, %v13990_v52 }
 0xe26   : > { %v7982_v13 = vcombine.low %v7974_v24, %v7981_v34 }
 0xe28   : > { %7986 = vst [vmem:[%s14000_s21 + $0x8] sm:$0xff] %v7982_v13 }
 0xe29 PF: > { %s16_s25 = sadd.s32 1, %s9338_s25   ;;  %s15051_s21 = smov %s9330_s23 }
 0xe2a   : > { %p13_p7 = scmp.ge.s32.totalorder %s16_s25, 6   ;;  %s15052_s22 = smov %s9334_s24 }
 0xe2b   : > { %s15053_s23 = smov %s15056_s26  ;;  %s15054_s24 = smov %s15060_s27 }
 0xe2c   :  { %15 = sbr.rel (!%p13_p7) target bundleno = 3 (0x3), region = 80 }

</bundles_post_ra>
